<compile_context>
chip_gen: v7x
topology: tpu7x:2x2x1
jax: 0.10.0
libtpu: 0.0.40
codegen_flags: <defaults>
</compile_context>

<pallas_src>
import math

import jax
import jax.numpy as jnp
from jax.experimental import pallas as pl
from jax.experimental.pallas import tpu as pltpu

EPS = 0.003
H1 = 256          # fcs1 output width
H2 = 128          # fcs2 / fca1 / fc2 output width
TILE_B = 1024     # batch rows per grid step (clamped to batch in the wrapper)


def _round_up(x, m):
    return ((x + m - 1) // m) * m


# ----------------------------------------------------------------------------
# Kernel: one batch tile per grid step, weights resident in VMEM.
# ----------------------------------------------------------------------------
def critic_kernel(state_ref, action_ref,
                  w_s1_ref, b_s1_ref, w_a1_ref, b_a1_ref,
                  w_s2_ref, b_s2_ref, w2_ref, b2_ref,
                  w3_ref, b3_ref, out_ref):
    f32 = jnp.float32
    mm = w_s1_ref.dtype        # bf16 MXU operands, f32 accumulation

    # s1 = relu(state @ W_s1 + b_s1)                         [tile_b, 256] f32
    s1 = jnp.dot(state_ref[...].astype(mm), w_s1_ref[...],
                 preferred_element_type=f32)
    s1 = jnp.maximum(s1 + b_s1_ref[...], 0.0)

    # a1 = relu(action @ W_a1 + b_a1)                        [tile_b, 128] f32
    a1 = jnp.dot(action_ref[...].astype(mm), w_a1_ref[...],
                 preferred_element_type=f32)
    a1 = jnp.maximum(a1 + b_a1_ref[...], 0.0)

    # s2 = relu(s1 @ W_s2 + b_s2)                            [tile_b, 128] f32
    s2 = jnp.dot(s1.astype(mm), w_s2_ref[...], preferred_element_type=f32)
    s2 = jnp.maximum(s2 + b_s2_ref[...], 0.0)

    # x = relu(concat(s2, a1) @ W2 + b2) — concat in bf16 (half-width slab),
    # one K=256, N=128 lane-aligned matmul.
    x = jnp.concatenate([s2.astype(mm), a1.astype(mm)], axis=-1)
    x = jnp.dot(x, w2_ref[...], preferred_element_type=f32)
    x = jnp.maximum(x + b2_ref[...], 0.0)                    # [tile_b, 128] f32

    # q = x @ W3 + b3 — N=1 head as VPU multiply + lane reduction; store as a
    # lane-dense (1, tile_b) slab (b3 read from SMEM as a scalar).
    q = jnp.sum(x * w3_ref[...], axis=-1) + b3_ref[0, 0]     # [tile_b] f32
    out_ref[...] = q.reshape(1, q.shape[0]).astype(out_ref.dtype)


# ----------------------------------------------------------------------------
# Wrapper: batch tiling, padding, BlockSpecs.
# ----------------------------------------------------------------------------
def critic_forward(state, action, params, *, tile_b=TILE_B):
    """state: [n, state_dim], action: [n, action_dim] -> Q: [n, 1] (f32)."""
    n = state.shape[0]
    state_dim = state.shape[1]
    action_dim = action.shape[1]

    # Clamp the tile to the (8-aligned) batch so small batches are one step.
    tile_b = min(tile_b, _round_up(n, 8))
    num_tiles = pl.cdiv(n, tile_b)
    if num_tiles > 1:
        # Even tile count (v7x 2-TC megacore split) with minimal padding.
        num_tiles = _round_up(num_tiles, 2)
        tile_b = _round_up(pl.cdiv(n, num_tiles), 8)
        num_tiles = pl.cdiv(n, tile_b)
        if num_tiles > 1 and num_tiles % 2 != 0:
            num_tiles += 1
    padded_n = num_tiles * tile_b

    if padded_n != n:
        pad = padded_n - n
        state = jnp.pad(state, ((0, pad), (0, 0)))
        action = jnp.pad(action, ((0, pad), (0, 0)))

    weights = (params["w_s1"], params["b_s1"],
               params["w_a1"], params["b_a1"],
               params["w_s2"], params["b_s2"],
               params["w2"], params["b2"],
               params["w3_row"])

    in_specs = [
        pl.BlockSpec((tile_b, state_dim), lambda i: (i, 0)),    # batch-tiled
        pl.BlockSpec((tile_b, action_dim), lambda i: (i, 0)),   # batch-tiled
    ]
    # Weights/biases: full-extent blocks, constant index_map -> VMEM-resident.
    in_specs += [pl.BlockSpec(w.shape, lambda i: (0, 0)) for w in weights]
    # b3: a single scalar, kept in SMEM (no (8,128)-padded VMEM tile).
    in_specs += [pl.BlockSpec(memory_space=pltpu.MemorySpace.SMEM)]

    grid_spec = pltpu.PrefetchScalarGridSpec(
        num_scalar_prefetch=0,
        grid=(num_tiles,),
        in_specs=in_specs,
        out_specs=pl.BlockSpec((1, tile_b), lambda i: (i, 0)),  # lane-dense
    )

    q = pl.pallas_call(
        critic_kernel,
        out_shape=jax.ShapeDtypeStruct((num_tiles, tile_b), jnp.float32),
        grid_spec=grid_spec,
        compiler_params=pltpu.CompilerParams(
            dimension_semantics=("parallel",),          # 2 TCs on v7x
            vmem_limit_bytes=32 * 1024 * 1024,          # safe on 64 MiB v7x VMEM
        ),
    )(state, action, *weights, params["b3"])

    return q.reshape(padded_n, 1)[:n]


# ----------------------------------------------------------------------------
# Deterministic parameter construction (mirrors the PyTorch __init__).
# PyTorch Linear weights are [out, in]; we store them transposed as [in, out].
# fanin_init uses v = 1/sqrt(size[0]) = 1/sqrt(out_features) as written.
# ----------------------------------------------------------------------------
def _uniform(key, shape, bound):
    return jax.random.uniform(key, shape, jnp.float32, -bound, bound)


def init_critic_params(key, state_dim, action_dim, *, compute_dtype=jnp.bfloat16):
    ks = jax.random.split(key, 10)

    w_s1 = _uniform(ks[0], (state_dim, H1), 1.0 / math.sqrt(H1))     # fcs1 fanin_init
    b_s1 = _uniform(ks[1], (1, H1), 1.0 / math.sqrt(state_dim))      # default bias init
    w_s2 = _uniform(ks[2], (H1, H2), 1.0 / math.sqrt(H2))            # fcs2
    b_s2 = _uniform(ks[3], (1, H2), 1.0 / math.sqrt(H1))
    w_a1 = _uniform(ks[4], (action_dim, H2), 1.0 / math.sqrt(H2))    # fca1
    b_a1 = _uniform(ks[5], (1, H2), 1.0 / math.sqrt(action_dim))
    w2   = _uniform(ks[6], (H1, H2), 1.0 / math.sqrt(H2))            # fc2
    b2   = _uniform(ks[7], (1, H2), 1.0 / math.sqrt(H1))
    w3   = _uniform(ks[8], (H2, 1), EPS)                             # fc3: uniform(-EPS, EPS)
    b3   = _uniform(ks[9], (1, 1), 1.0 / math.sqrt(H2))

    return {
        # bf16 MXU operands (f32 accumulation in-kernel):
        "w_s1": w_s1.astype(compute_dtype),
        "w_a1": w_a1.astype(compute_dtype),
        "w_s2": w_s2.astype(compute_dtype),
        "w2":   w2.astype(compute_dtype),
        # f32 VPU operands (bias adds / head stay in f32):
        "b_s1": b_s1, "b_a1": b_a1, "b_s2": b_s2, "b2": b2,
        "w3_row": w3.T,                       # (1, 128) f32 row for the VPU head
        "b3": b3,                             # (1, 1) f32 scalar -> SMEM
        # Untouched f32 originals kept only for the reference checks below.
        "_f32": {"w_s1": w_s1, "b_s1": b_s1, "w_s2": w_s2, "b_s2": b_s2,
                 "w_a1": w_a1, "b_a1": b_a1, "w2": w2, "b2": b2,
                 "w3": w3, "b3": b3},
    }


# ----------------------------------------------------------------------------
# References.
# ----------------------------------------------------------------------------
def critic_reference_f32(state, action, p):
    """Straight f32 transcription of the PyTorch forward (semantic reference)."""
    f = p["_f32"]
    s1 = jax.nn.relu(state @ f["w_s1"] + f["b_s1"])
    s2 = jax.nn.relu(s1 @ f["w_s2"] + f["b_s2"])
    a1 = jax.nn.relu(action @ f["w_a1"] + f["b_a1"])
    x = jnp.concatenate([s2, a1], axis=1)
    x = jax.nn.relu(x @ f["w2"] + f["b2"])
    return x @ f["w3"] + f["b3"]


def critic_reference_matched(state, action, p):
    """Same bf16-operand / f32-accumulate recipe as the kernel (tight tolerance)."""
    dt = p["w_s1"].dtype
    f32 = jnp.float32
    s1 = jax.nn.relu(jnp.dot(state.astype(dt), p["w_s1"],
                             preferred_element_type=f32) + p["b_s1"])
    a1 = jax.nn.relu(jnp.dot(action.astype(dt), p["w_a1"],
                             preferred_element_type=f32) + p["b_a1"])
    s2 = jax.nn.relu(jnp.dot(s1.astype(dt), p["w_s2"],
                             preferred_element_type=f32) + p["b_s2"])
    x = jnp.concatenate([s2.astype(dt), a1.astype(dt)], axis=1)
    x = jax.nn.relu(jnp.dot(x, p["w2"], preferred_element_type=f32) + p["b2"])
    return jnp.sum(x * p["w3_row"], axis=-1, keepdims=True) + p["b3"]


if __name__ == "__main__":
    batch, state_dim, action_dim = 600, 16, 4

    key = jax.random.PRNGKey(0)
    k_state, k_action, k_params = jax.random.split(key, 3)

    state = jax.random.normal(k_state, (batch, state_dim), jnp.float32)
    action = jax.random.normal(k_action, (batch, action_dim), jnp.float32)
    params = init_critic_params(k_params, state_dim, action_dim)

    # Default path: batch=600 -> single grid step of 600 rows (clamped tile).
    q = jax.block_until_ready(critic_forward(state, action, params))
    assert q.shape == (batch, 1), q.shape

    q_matched = critic_reference_matched(state, action, params)
    q_f32 = critic_reference_f32(state, action, params)
    err_m = float(jnp.max(jnp.abs(q - q_matched)))
    err_f = float(jnp.max(jnp.abs(q - q_f32)))
    assert jnp.allclose(q, q_matched, atol=5e-4, rtol=0.0), err_m
    assert jnp.allclose(q, q_f32, atol=5e-3, rtol=0.0), err_f

    # Multi-tile path: forces >1 grid step (even tile count + batch padding).
    q_tiled = jax.block_until_ready(
        critic_forward(state, action, params, tile_b=256))
    assert q_tiled.shape == (batch, 1), q_tiled.shape
    err_t = float(jnp.max(jnp.abs(q_tiled - q_matched)))
    assert jnp.allclose(q_tiled, q_matched, atol=5e-4, rtol=0.0), err_t

    print("KERNEL_OK")
</pallas_src>

<mosaic_0001>
module attributes {stable_mosaic.version = 11 : i64} {
  func.func @critic_kernel(%arg0: i32, %arg1: memref<600x16xf32, #tpu.memory_space<vmem>>, %arg2: memref<600x4xf32, #tpu.memory_space<vmem>>, %arg3: memref<16x256xbf16, #tpu.memory_space<vmem>>, %arg4: memref<1x256xf32, #tpu.memory_space<vmem>>, %arg5: memref<4x128xbf16, #tpu.memory_space<vmem>>, %arg6: memref<1x128xf32, #tpu.memory_space<vmem>>, %arg7: memref<256x128xbf16, #tpu.memory_space<vmem>>, %arg8: memref<1x128xf32, #tpu.memory_space<vmem>>, %arg9: memref<256x128xbf16, #tpu.memory_space<vmem>>, %arg10: memref<1x128xf32, #tpu.memory_space<vmem>>, %arg11: memref<1x128xf32, #tpu.memory_space<vmem>>, %arg12: memref<1x1xf32, #tpu.memory_space<smem>>, %arg13: memref<1x600xf32, #tpu.memory_space<vmem>>) attributes {dimension_semantics = [#tpu.dimension_semantics<parallel>], iteration_bounds = array<i64: 1>, scalar_prefetch = 0 : i64, scratch_operands = 0 : i64, tpu.core_type = #tpu.core_type<tc>, window_params = [{transform_indices = @transform_0, window_bounds = array<i64: 600, 16>}, {transform_indices = @transform_1, window_bounds = array<i64: 600, 4>}, {pipeline_mode = #tpu.pipeline_mode<synchronous>, transform_indices = @transform_2, window_bounds = array<i64: 16, 256>}, {pipeline_mode = #tpu.pipeline_mode<synchronous>, transform_indices = @transform_3, window_bounds = array<i64: 1, 256>}, {pipeline_mode = #tpu.pipeline_mode<synchronous>, transform_indices = @transform_4, window_bounds = array<i64: 4, 128>}, {pipeline_mode = #tpu.pipeline_mode<synchronous>, transform_indices = @transform_5, window_bounds = array<i64: 1, 128>}, {pipeline_mode = #tpu.pipeline_mode<synchronous>, transform_indices = @transform_6, window_bounds = array<i64: 256, 128>}, {pipeline_mode = #tpu.pipeline_mode<synchronous>, transform_indices = @transform_7, window_bounds = array<i64: 1, 128>}, {pipeline_mode = #tpu.pipeline_mode<synchronous>, transform_indices = @transform_8, window_bounds = array<i64: 256, 128>}, {pipeline_mode = #tpu.pipeline_mode<synchronous>, transform_indices = @transform_9, window_bounds = array<i64: 1, 128>}, {pipeline_mode = #tpu.pipeline_mode<synchronous>, transform_indices = @transform_10, window_bounds = array<i64: 1, 128>}, {transform_indices = @transform_11, window_bounds = array<i64: 1, 1>}, {transform_indices = @transform_12, window_bounds = array<i64: 1, 600>}]} {
    %c0 = arith.constant 0 : index
    %c0_0 = arith.constant 0 : index
    %0 = vector.load %arg1[%c0, %c0_0] : memref<600x16xf32, #tpu.memory_space<vmem>>, vector<600x16xf32>
    %1 = arith.truncf %0 : vector<600x16xf32> to vector<600x16xbf16>
    %c0_1 = arith.constant 0 : index
    %c0_2 = arith.constant 0 : index
    %2 = vector.load %arg3[%c0_1, %c0_2] : memref<16x256xbf16, #tpu.memory_space<vmem>>, vector<16x256xbf16>
    %cst = arith.constant dense<0.000000e+00> : vector<600x256xf32>
    %3 = tpu.matmul %1, %2, %cst {dimension_numbers = #tpu.dot_dimension_numbers<[1], [0], [0], [1], [0, 0, 1, 1], [], []>} : vector<600x16xbf16>, vector<16x256xbf16>, vector<600x256xf32> -> vector<600x256xf32>
    %c0_3 = arith.constant 0 : index
    %c0_4 = arith.constant 0 : index
    %4 = vector.load %arg4[%c0_3, %c0_4] : memref<1x256xf32, #tpu.memory_space<vmem>>, vector<1x256xf32>
    %5 = vector.broadcast %4 : vector<1x256xf32> to vector<600x256xf32>
    %6 = arith.addf %3, %5 : vector<600x256xf32>
    %cst_5 = arith.constant 0.000000e+00 : f32
    %7 = vector.broadcast %cst_5 : f32 to vector<600x256xf32>
    %8 = arith.maximumf %6, %7 : vector<600x256xf32>
    %c0_6 = arith.constant 0 : index
    %c0_7 = arith.constant 0 : index
    %9 = vector.load %arg2[%c0_6, %c0_7] : memref<600x4xf32, #tpu.memory_space<vmem>>, vector<600x4xf32>
    %10 = arith.truncf %9 : vector<600x4xf32> to vector<600x4xbf16>
    %c0_8 = arith.constant 0 : index
    %c0_9 = arith.constant 0 : index
    %11 = vector.load %arg5[%c0_8, %c0_9] : memref<4x128xbf16, #tpu.memory_space<vmem>>, vector<4x128xbf16>
    %cst_10 = arith.constant dense<0.000000e+00> : vector<600x128xf32>
    %12 = tpu.matmul %10, %11, %cst_10 {dimension_numbers = #tpu.dot_dimension_numbers<[1], [0], [0], [1], [0, 0, 1, 1], [], []>} : vector<600x4xbf16>, vector<4x128xbf16>, vector<600x128xf32> -> vector<600x128xf32>
    %c0_11 = arith.constant 0 : index
    %c0_12 = arith.constant 0 : index
    %13 = vector.load %arg6[%c0_11, %c0_12] : memref<1x128xf32, #tpu.memory_space<vmem>>, vector<1x128xf32>
    %14 = vector.broadcast %13 : vector<1x128xf32> to vector<600x128xf32>
    %15 = arith.addf %12, %14 : vector<600x128xf32>
    %cst_13 = arith.constant 0.000000e+00 : f32
    %16 = vector.broadcast %cst_13 : f32 to vector<600x128xf32>
    %17 = arith.maximumf %15, %16 : vector<600x128xf32>
    %18 = arith.truncf %8 : vector<600x256xf32> to vector<600x256xbf16>
    %c0_14 = arith.constant 0 : index
    %c0_15 = arith.constant 0 : index
    %19 = vector.load %arg7[%c0_14, %c0_15] : memref<256x128xbf16, #tpu.memory_space<vmem>>, vector<256x128xbf16>
    %cst_16 = arith.constant dense<0.000000e+00> : vector<600x128xf32>
    %20 = tpu.matmul %18, %19, %cst_16 {dimension_numbers = #tpu.dot_dimension_numbers<[1], [0], [0], [1], [0, 0, 1, 1], [], []>} : vector<600x256xbf16>, vector<256x128xbf16>, vector<600x128xf32> -> vector<600x128xf32>
    %c0_17 = arith.constant 0 : index
    %c0_18 = arith.constant 0 : index
    %21 = vector.load %arg8[%c0_17, %c0_18] : memref<1x128xf32, #tpu.memory_space<vmem>>, vector<1x128xf32>
    %22 = vector.broadcast %21 : vector<1x128xf32> to vector<600x128xf32>
    %23 = arith.addf %20, %22 : vector<600x128xf32>
    %cst_19 = arith.constant 0.000000e+00 : f32
    %24 = vector.broadcast %cst_19 : f32 to vector<600x128xf32>
    %25 = arith.maximumf %23, %24 : vector<600x128xf32>
    %26 = arith.truncf %25 : vector<600x128xf32> to vector<600x128xbf16>
    %27 = arith.truncf %17 : vector<600x128xf32> to vector<600x128xbf16>
    %28 = tpu.concatenate %26, %27 in 1 : vector<600x128xbf16>, vector<600x128xbf16> -> vector<600x256xbf16>
    %c0_20 = arith.constant 0 : index
    %c0_21 = arith.constant 0 : index
    %29 = vector.load %arg9[%c0_20, %c0_21] : memref<256x128xbf16, #tpu.memory_space<vmem>>, vector<256x128xbf16>
    %cst_22 = arith.constant dense<0.000000e+00> : vector<600x128xf32>
    %30 = tpu.matmul %28, %29, %cst_22 {dimension_numbers = #tpu.dot_dimension_numbers<[1], [0], [0], [1], [0, 0, 1, 1], [], []>} : vector<600x256xbf16>, vector<256x128xbf16>, vector<600x128xf32> -> vector<600x128xf32>
    %c0_23 = arith.constant 0 : index
    %c0_24 = arith.constant 0 : index
    %31 = vector.load %arg10[%c0_23, %c0_24] : memref<1x128xf32, #tpu.memory_space<vmem>>, vector<1x128xf32>
    %32 = vector.broadcast %31 : vector<1x128xf32> to vector<600x128xf32>
    %33 = arith.addf %30, %32 : vector<600x128xf32>
    %cst_25 = arith.constant 0.000000e+00 : f32
    %34 = vector.broadcast %cst_25 : f32 to vector<600x128xf32>
    %35 = arith.maximumf %33, %34 : vector<600x128xf32>
    %c0_26 = arith.constant 0 : index
    %c0_27 = arith.constant 0 : index
    %36 = vector.load %arg11[%c0_26, %c0_27] : memref<1x128xf32, #tpu.memory_space<vmem>>, vector<1x128xf32>
    %37 = vector.broadcast %36 : vector<1x128xf32> to vector<600x128xf32>
    %38 = arith.mulf %35, %37 : vector<600x128xf32>
    %cst_28 = arith.constant dense<0.000000e+00> : vector<600xf32>
    %39 = vector.multi_reduction <add>, %38, %cst_28 [1] : vector<600x128xf32> to vector<600xf32>
    %c0_29 = arith.constant 0 : index
    %c0_30 = arith.constant 0 : index
    %40 = memref.load %arg12[%c0_29, %c0_30] : memref<1x1xf32, #tpu.memory_space<smem>>
    %41 = vector.broadcast %40 : f32 to vector<600xf32>
    %42 = arith.addf %39, %41 : vector<600xf32>
    %43 = vector.shape_cast %42 : vector<600xf32> to vector<1x600xf32>
    %c0_31 = arith.constant 0 : index
    %c0_32 = arith.constant 0 : index
    %44 = vector.load %arg13[%c0_31, %c0_32] : memref<1x600xf32, #tpu.memory_space<vmem>>, vector<1x600xf32>
    tpu.vector_store %arg13[%c0_31, %c0_32], %43 {strides = array<i32>} : memref<1x600xf32, #tpu.memory_space<vmem>>, vector<1x600xf32>,
    return
  }
  func.func @transform_0(%arg0: i32) -> (i32, i32) {
    %c0_i32 = arith.constant 0 : i32
    %c0_i32_0 = arith.constant 0 : i32
    return %arg0, %c0_i32 : i32, i32
  }
  func.func @transform_1(%arg0: i32) -> (i32, i32) {
    %c0_i32 = arith.constant 0 : i32
    %c0_i32_0 = arith.constant 0 : i32
    return %arg0, %c0_i32 : i32, i32
  }
  func.func @transform_2(%arg0: i32) -> (i32, i32) {
    %c0_i32 = arith.constant 0 : i32
    %c0_i32_0 = arith.constant 0 : i32
    %c0_i32_1 = arith.constant 0 : i32
    return %c0_i32, %c0_i32_0 : i32, i32
  }
  func.func @transform_3(%arg0: i32) -> (i32, i32) {
    %c0_i32 = arith.constant 0 : i32
    %c0_i32_0 = arith.constant 0 : i32
    %c0_i32_1 = arith.constant 0 : i32
    return %c0_i32, %c0_i32_0 : i32, i32
  }
  func.func @transform_4(%arg0: i32) -> (i32, i32) {
    %c0_i32 = arith.constant 0 : i32
    %c0_i32_0 = arith.constant 0 : i32
    %c0_i32_1 = arith.constant 0 : i32
    return %c0_i32, %c0_i32_0 : i32, i32
  }
  func.func @transform_5(%arg0: i32) -> (i32, i32) {
    %c0_i32 = arith.constant 0 : i32
    %c0_i32_0 = arith.constant 0 : i32
    %c0_i32_1 = arith.constant 0 : i32
    return %c0_i32, %c0_i32_0 : i32, i32
  }
  func.func @transform_6(%arg0: i32) -> (i32, i32) {
    %c0_i32 = arith.constant 0 : i32
    %c0_i32_0 = arith.constant 0 : i32
    %c0_i32_1 = arith.constant 0 : i32
    return %c0_i32, %c0_i32_0 : i32, i32
  }
  func.func @transform_7(%arg0: i32) -> (i32, i32) {
    %c0_i32 = arith.constant 0 : i32
    %c0_i32_0 = arith.constant 0 : i32
    %c0_i32_1 = arith.constant 0 : i32
    return %c0_i32, %c0_i32_0 : i32, i32
  }
  func.func @transform_8(%arg0: i32) -> (i32, i32) {
    %c0_i32 = arith.constant 0 : i32
    %c0_i32_0 = arith.constant 0 : i32
    %c0_i32_1 = arith.constant 0 : i32
    return %c0_i32, %c0_i32_0 : i32, i32
  }
  func.func @transform_9(%arg0: i32) -> (i32, i32) {
    %c0_i32 = arith.constant 0 : i32
    %c0_i32_0 = arith.constant 0 : i32
    %c0_i32_1 = arith.constant 0 : i32
    return %c0_i32, %c0_i32_0 : i32, i32
  }
  func.func @transform_10(%arg0: i32) -> (i32, i32) {
    %c0_i32 = arith.constant 0 : i32
    %c0_i32_0 = arith.constant 0 : i32
    %c0_i32_1 = arith.constant 0 : i32
    return %c0_i32, %c0_i32_0 : i32, i32
  }
  func.func @transform_11(%arg0: i32) -> (i32, i32) {
    %c0_i32 = arith.constant 0 : i32
    %c0_i32_0 = arith.constant 0 : i32
    %c0_i32_1 = arith.constant 0 : i32
    return %c0_i32, %c0_i32_0 : i32, i32
  }
  func.func @transform_12(%arg0: i32) -> (i32, i32) {
    %c0_i32 = arith.constant 0 : i32
    %c0_i32_0 = arith.constant 0 : i32
    return %arg0, %c0_i32 : i32, i32
  }
}

</mosaic_0001>

<bundles_post_ra>
// kernel: tpu_custom_call.1
= control target key start
LH: loop header
LB: loop body
LE: loop exit
PB: predicated region body
PF: predicated region fallthrough
CT: control target
= control target key end

     0   :  { %v10204_v2 = vmov 0   ;;  %vm1093_vm0 = vcmask 1041408   ;;  %vm181_vm1 = vcmask 130048   ;;  %vm978_vm2 = vcmask 31744   ;;  %s13720_s0 = inlined_call_operand.vmem [shape: f32[600,16], index: 0, kind: input, shape index: {}]   ;;  %s13721_s1 = inlined_call_operand.vmem [shape: f32[600,4], index: 1, kind: input, shape index: {}]   ;;  %s13722_s2 = inlined_call_operand.vmem [shape: bf16[16,256], index: 2, kind: input, shape index: {}]   ;;  %s13723_s3 = inlined_call_operand.vmem [shape: f32[1,256], index: 3, kind: input, shape index: {}]   ;;  %s13724_s4 = inlined_call_operand.vmem [shape: bf16[4,128], index: 4, kind: input, shape index: {}]   ;;  %s13725_s5 = inlined_call_operand.vmem [shape: f32[1,128], index: 5, kind: input, shape index: {}]   ;;  %s13726_s6 = inlined_call_operand.vmem [shape: bf16[256,128], index: 6, kind: input, shape index: {}]   ;;  %s13727_s7 = inlined_call_operand.vmem [shape: f32[1,128], index: 7, kind: input, shape index: {}]   ;;  %s13728_s8 = inlined_call_operand.vmem [shape: bf16[256,128], index: 8, kind: input, shape index: {}]   ;;  %s13729_s9 = inlined_call_operand.vmem [shape: f32[1,128], index: 9, kind: input, shape index: {}]   ;;  %s13730_s10 = inlined_call_operand.vmem [shape: f32[1,128], index: 10, kind: input, shape index: {}]   ;;  %s13731_s11 = inlined_call_operand.<no memory space> [shape: f32[1,1], index: 11, kind: input, shape index: {}]   ;;  %s13732_s12 = inlined_call_operand.hbm [shape: f32[1,600], index: 12, kind: output, shape index: {}]  }
   0x1   :  { %v10136_v0 = vld [vmem:[%s13722_s2 + $0x4] ss:$8 sps:$4 sm:$0xff]   ;;  %v10138_v1 = vld [vmem:[%s13722_s2] ss:$8 sps:$4 sm:$0xff]   ;;  %328 = vmatprep.mubr.bf16.mxu0 %v10204_v2  ;;  %618 = vmatprep.mubr.bf16.mxu1 %v10204_v2  ;;  %v102_v6 = vld [vmem:[%s13720_s0 + $0x1d0] sm:$0xff] }
   0x2   :  { %v44_v3 = vld [vmem:[%s13720_s0] sm:$0xff]  ;;  %v45_v4 = vld [vmem:[%s13720_s0 + $0x8] sm:$0xff]  ;;  %296 = vmatprep.subr.bf16.mxu0 %v10136_v0  ;;  %10128 = vmatprep.subr.bf16.mxu1 %v10136_v0  ;;  %v103_v7 = vld [vmem:[%s13720_s0 + $0x1d8] sm:$0xff] }
   0x3   :  { %v119_v5 = vpack.c.bf16 %v45_v4, %v44_v3  ;;  %v970_v8 = vld [vmem:[%s13724_s4] sm:$0x3]  ;;  %297 = vmatpush1.bf16.msra.mxu0 %v10138_v1  ;;  %10129 = vmatpush1.bf16.msra.mxu1 %v10138_v1  ;;  %v148_v9 = vpack.c.bf16 %v103_v7, %v102_v6  ;;  %v46_v11 = vld [vmem:[%s13720_s0 + $0x10] sm:$0xff]  ;;  %v47_v12 = vld [vmem:[%s13720_s0 + $0x18] sm:$0xff] }
   0x4   :  { %10130 = vmatprep.subr.msk.bf16.mxu1 %vm1093_vm0, %v970_v8  ;;  %v1095_v10 = vsel %vm1093_vm0, %v970_v8, 0  ;;  %2341 = vmatprep.subr.bf16.mxu0 %v10204_v2  ;;  %v104_v13 = vld [vmem:[%s13720_s0 + $0x1e0] sm:$0xff]  ;;  %v105_v14 = vld [vmem:[%s13720_s0 + $0x1e8] sm:$0xff]  ;;  %v120_v15 = vpack.c.bf16 %v47_v12, %v46_v11  ;;  %v106_v19 = vld [vmem:[%s13720_s0 + $0x1f0] sm:$0xff] }
   0x5   :  { %10134 = vset.pattern.permute.xlu1 %v10204_v2  ;;  %10135 = vset.pattern.permute.xlu0 %v10204_v2  ;;  %v149_v16 = vpack.c.bf16 %v105_v14, %v104_v13  ;;  %v48_v17 = vld [vmem:[%s13720_s0 + $0x20] sm:$0xff]  ;;  %v49_v18 = vld [vmem:[%s13720_s0 + $0x28] sm:$0xff]  ;;  %v107_v20 = vld [vmem:[%s13720_s0 + $0x1f8] sm:$0xff] }
   0x6   :  { %9899 = vmatmul.mubr.msk.bf16.vlgmr.msra.gmra.mrb[0].mxu0 %vm181_vm1, %v119_v5  ;;  %9928 = vmatmul.mubr.msk.bf16.vlgmr.msra.gmra.mrb[0].mxu1 %vm181_vm1, %v148_v9  ;;  %v121_v21 = vpack.c.bf16 %v49_v18, %v48_v17  ;;  %v150_v22 = vpack.c.bf16 %v107_v20, %v106_v19  ;;  %v50_v23 = vld [vmem:[%s13720_s0 + $0x30] sm:$0xff]  ;;  %v51_v24 = vld [vmem:[%s13720_s0 + $0x38] sm:$0xff]  ;;  %v108_v25 = vld [vmem:[%s13720_s0 + $0x200] sm:$0xff] }
   0x7   :  { %10051 = vmatpush3.bf16.msra.mxu1 %v1095_v10  ;;  %338 = vmatprep.mubr.bf16.mxu0 %v10204_v2  ;;  %v109_v26 = vld [vmem:[%s13720_s0 + $0x208] sm:$0xff]  ;;  %v122_v27 = vpack.c.bf16 %v51_v24, %v50_v23  ;;  %v52_v29 = vld [vmem:[%s13720_s0 + $0x40] sm:$0xff]  ;;  %v110_v31 = vld [vmem:[%s13720_s0 + $0x210] sm:$0xff] }
   0x8   :  { %628 = vmatprep.mubr.bf16.mxu1 %v10204_v2  ;;  %1719 = vmatprep.subr.bf16.mxu1 %v10204_v2  ;;  %v151_v28 = vpack.c.bf16 %v109_v26, %v108_v25  ;;  %v53_v30 = vld [vmem:[%s13720_s0 + $0x48] sm:$0xff]  ;;  %v111_v32 = vld [vmem:[%s13720_s0 + $0x218] sm:$0xff]  ;;  %v54_v35 = vld [vmem:[%s13720_s0 + $0x50] sm:$0xff] }
   0x9   :  { %v123_v33 = vpack.c.bf16 %v53_v30, %v52_v29  ;;  %v152_v34 = vpack.c.bf16 %v111_v32, %v110_v31  ;;  %v55_v36 = vld [vmem:[%s13720_s0 + $0x58] sm:$0xff]  ;;  %v112_v37 = vld [vmem:[%s13720_s0 + $0x220] sm:$0xff]  ;;  %v113_v38 = vld [vmem:[%s13720_s0 + $0x228] sm:$0xff] }
   0xa   :  { %v124_v39 = vpack.c.bf16 %v55_v36, %v54_v35  ;;  %v153_v40 = vpack.c.bf16 %v113_v38, %v112_v37  ;;  %v56_v41 = vld [vmem:[%s13720_s0 + $0x60] sm:$0xff]  ;;  %v57_v42 = vld [vmem:[%s13720_s0 + $0x68] sm:$0xff]  ;;  %v114_v43 = vld [vmem:[%s13720_s0 + $0x230] sm:$0xff] }
   0xb   :  { %v115_v44 = vld [vmem:[%s13720_s0 + $0x238] sm:$0xff]  ;;  %v125_v45 = vpack.c.bf16 %v57_v42, %v56_v41  ;;  %v58_v47 = vld [vmem:[%s13720_s0 + $0x70] sm:$0xff]  ;;  %v116_v49 = vld [vmem:[%s13720_s0 + $0x240] sm:$0xff] }
   0xc   :  { %v154_v46 = vpack.c.bf16 %v115_v44, %v114_v43  ;;  %v59_v48 = vld [vmem:[%s13720_s0 + $0x78] sm:$0xff]  ;;  %v117_v50 = vld [vmem:[%s13720_s0 + $0x248] sm:$0xff]  ;;  %v60_v53 = vld [vmem:[%s13720_s0 + $0x80] sm:$0xff] }
   0xd   :  { %v126_v51 = vpack.c.bf16 %v59_v48, %v58_v47  ;;  %v155_v52 = vpack.c.bf16 %v117_v50, %v116_v49  ;;  %v61_v54 = vld [vmem:[%s13720_s0 + $0x88] sm:$0xff]  ;;  %v118_v55 = vld [vmem:[%s13720_s0 + $0x250] sm:$0xff]  ;;  %v857_v56 = vld [vmem:[%s13721_s1] sm:$0xff] }
   0xe   :  { %9900 = vmatmul.mubr.msk.bf16.gmra.mrb[4].mxu0 %vm181_vm1, %v120_v15  ;;  %9929 = vmatmul.mubr.msk.bf16.gmra.mrb[4].mxu1 %vm181_vm1, %v149_v16  ;;  %v858_v57 = vld [vmem:[%s13721_s1 + $0x8] sm:$0xff]  ;;  %v127_v58 = vpack.c.bf16 %v61_v54, %v60_v53  ;;  %v156_v59 = vpack.c.bf16 %v118_v55, %v118_v55  ;;  %v62_v61 = vld [vmem:[%s13720_s0 + $0x90] sm:$0xff]  ;;  %v63_v62 = vld [vmem:[%s13720_s0 + $0x98] sm:$0xff] }
   0xf   :  { %348 = vmatprep.mubr.bf16.mxu0 %v10204_v2  ;;  %638 = vmatprep.mubr.bf16.mxu1 %v10204_v2  ;;  %v932_v60 = vpack.c.bf16 %v858_v57, %v857_v56  ;;  %v859_v63 = vld [vmem:[%s13721_s1 + $0x10] sm:$0xff]  ;;  %v860_v0 = vld [vmem:[%s13721_s1 + $0x18] sm:$0xff] }
  0x16   :  { %9901 = vmatmul.mubr.msk.bf16.gmra.mrb[8].mxu0 %vm181_vm1, %v121_v21  ;;  %9930 = vmatmul.mubr.msk.bf16.gmra.mrb[8].mxu1 %vm181_vm1, %v150_v22 }
  0x17   :  { %358 = vmatprep.mubr.bf16.mxu0 %v10204_v2  ;;  %648 = vmatprep.mubr.bf16.mxu1 %v10204_v2 }
  0x1e   :  { %9902 = vmatmul.mubr.msk.bf16.gmra.mrb[12].mxu0 %vm181_vm1, %v122_v27  ;;  %9931 = vmatmul.mubr.msk.bf16.gmra.mrb[12].mxu1 %vm181_vm1, %v151_v28 }
  0x1f   :  { %368 = vmatprep.mubr.bf16.mxu0 %v10204_v2  ;;  %658 = vmatprep.mubr.bf16.mxu1 %v10204_v2 }
  0x26   :  { %9903 = vmatmul.mubr.msk.bf16.gmra.mrb[16].mxu0 %vm181_vm1, %v123_v33  ;;  %9932 = vmatmul.mubr.msk.bf16.gmra.mrb[16].mxu1 %vm181_vm1, %v152_v34 }
  0x27   :  { %378 = vmatprep.mubr.bf16.mxu0 %v10204_v2  ;;  %668 = vmatprep.mubr.bf16.mxu1 %v10204_v2 }
  0x2e   :  { %9904 = vmatmul.mubr.msk.bf16.gmra.mrb[20].mxu0 %vm181_vm1, %v124_v39  ;;  %9933 = vmatmul.mubr.msk.bf16.gmra.mrb[20].mxu1 %vm181_vm1, %v153_v40 }
  0x2f   :  { %388 = vmatprep.mubr.bf16.mxu0 %v10204_v2  ;;  %678 = vmatprep.mubr.bf16.mxu1 %v10204_v2 }
  0x36   :  { %9905 = vmatmul.mubr.msk.bf16.gmra.mrb[24].mxu0 %vm181_vm1, %v125_v45  ;;  %9934 = vmatmul.mubr.msk.bf16.gmra.mrb[24].mxu1 %vm181_vm1, %v154_v46 }
  0x37   :  { %398 = vmatprep.mubr.bf16.mxu0 %v10204_v2  ;;  %688 = vmatprep.mubr.bf16.mxu1 %v10204_v2 }
  0x3e   :  { %9906 = vmatmul.mubr.msk.bf16.gmra.mrb[28].mxu0 %vm181_vm1, %v126_v51  ;;  %9935 = vmatmul.mubr.msk.bf16.gmra.mrb[28].mxu1 %vm181_vm1, %v155_v52 }
  0x3f   :  { %408 = vmatprep.mubr.bf16.mxu0 %v10204_v2  ;;  %698 = vmatprep.mubr.bf16.mxu1 %v10204_v2 }
  0x46   :  { %9907 = vmatmul.mubr.msk.bf16.gmra.mrb[32].mxu0 %vm181_vm1, %v127_v58  ;;  %9936 = vmatmul.mubr.msk.bf16.gmra.mrb[32].mxu1 %vm181_vm1, %v156_v59 }
  0x47   :  { %418 = vmatprep.mubr.bf16.mxu0 %v10204_v2  ;;  %10052 = vmatprep.mubr.msk.bf16.mxu1 %vm978_vm2, %v932_v60 }
  0x48   :  { %18 = vsyncpa [#allocation4], 0  ;;  %v861_v1 = vld [vmem:[%s13721_s1 + $0x20] sm:$0xff]  ;;  %v862_v3 = vld [vmem:[%s13721_s1 + $0x28] sm:$0xff]  ;;  %v128_v4 = vpack.c.bf16 %v63_v62, %v62_v61  ;;  %v933_v5 = vpack.c.bf16 %v860_v0, %v859_v63  ;;  %vm9447_vm3 = vcmask 130112   ;;  %vm9454_vm4 = vcmask 195712  }
  0x49   :  { %v10139_v6 = vld [vmem:[%s13726_s6] sm:$0xff]   ;;  %v934_v7 = vpack.c.bf16 %v862_v3, %v861_v1  ;;  %v65_v9 = vld [vmem:[%s13720_s0 + $0xa8] sm:$0xff]  ;;  %v863_v10 = vld [vmem:[%s13721_s1 + $0x30] sm:$0xff]  ;;  %vm9461_vm5 = vcmask 261312   ;;  %vm9468_vm6 = vcmask 326912   ;;  %vm9475_vm7 = vcmask 392512  }
  0x4a   :  { %v64_v8 = vld [vmem:[%s13720_s0 + $0xa0] sm:$0xff]  ;;  %v864_v11 = vld [vmem:[%s13721_s1 + $0x38] sm:$0xff]  ;;  %v10140_v12 = vld [vmem:[%s13726_s6 + $0x8] sm:$0xff]   ;;  %vm9482_vm8 = vcmask 458112   ;;  %vm9489_vm9 = vcmask 523712   ;;  %vm9496_vm10 = vcmask 589312  }
  0x4b   :  { %v865_v13 = vld [vmem:[%s13721_s1 + $0x40] sm:$0xff]  ;;  %v866_v14 = vld [vmem:[%s13721_s1 + $0x48] sm:$0xff]  ;;  %v129_v15 = vpack.c.bf16 %v65_v9, %v64_v8  ;;  %v935_v16 = vpack.c.bf16 %v864_v11, %v863_v10  ;;  %v10141_v18 = vld [vmem:[%s13726_s6 + $0x10] sm:$0xff]   ;;  %vm9503_vm11 = vcmask 654912   ;;  %vm9510_vm12 = vcmask 720512  }
  0x4c   :  { %v936_v17 = vpack.c.bf16 %v866_v14, %v865_v13  ;;  %v66_v19 = vld [vmem:[%s13720_s0 + $0xb0] sm:$0xff]  ;;  %v67_v20 = vld [vmem:[%s13720_s0 + $0xb8] sm:$0xff]  ;;  %v869_v23 = vld [vmem:[%s13721_s1 + $0x60] sm:$0xff]  ;;  %vm9517_vm13 = vcmask 786112   ;;  %vm9524_vm14 = vcmask 851712   ;;  %vm9531_vm15 = vcmask 917312  }
  0x4d   :  { %v867_v21 = vld [vmem:[%s13721_s1 + $0x50] sm:$0xff]  ;;  %v868_v22 = vld [vmem:[%s13721_s1 + $0x58] sm:$0xff]  ;;  %v870_v24 = vld [vmem:[%s13721_s1 + $0x68] sm:$0xff]  ;;  %v130_v26 = vpack.c.bf16 %v67_v20, %v66_v19  ;;  %vm9538_vm0 = vcmask 982912  }
  0x4e   :  { %9908 = vmatmul.mubr.msk.bf16.gmra.mrb[36].mxu0 %vm181_vm1, %v128_v4  ;;  %10053 = vmatmul.mubr.msk.bf16.vlgmr.msra.gmra.mrb[36].mxu1 %vm978_vm2, %v933_v5  ;;  %v10142_v25 = vld [vmem:[%s13726_s6 + $0x18] sm:$0xff]   ;;  %v937_v27 = vpack.c.bf16 %v868_v22, %v867_v21  ;;  %v938_v28 = vpack.c.bf16 %v870_v24, %v869_v23  ;;  %v10143_v29 = vld [vmem:[%s13726_s6 + $0x20] sm:$0xff]   ;;  %v69_v31 = vld [vmem:[%s13720_s0 + $0xc8] sm:$0xff] }
  0x4f   :  { %1720 = vmatpush1.bf16.msra.mxu1 %v10139_v6  ;;  %428 = vmatprep.mubr.bf16.mxu0 %v10204_v2  ;;  %v68_v30 = vld [vmem:[%s13720_s0 + $0xc0] sm:$0xff]  ;;  %v871_v32 = vld [vmem:[%s13721_s1 + $0x70] sm:$0xff]  ;;  %v872_v33 = vld [vmem:[%s13721_s1 + $0x78] sm:$0xff] }
  0x50   :  { %10056 = vmatprep.mubr.msk.bf16.mxu1 %vm978_vm2, %v934_v7  ;;  %1721 = vmatprep.subr.bf16.mxu1 %v10204_v2  ;;  %v873_v34 = vld [vmem:[%s13721_s1 + $0x80] sm:$0xff]  ;;  %v874_v35 = vld [vmem:[%s13721_s1 + $0x88] sm:$0xff]  ;;  %v131_v38 = vpack.c.bf16 %v69_v31, %v68_v30  ;;  %v939_v39 = vpack.c.bf16 %v872_v33, %v871_v32  ;;  %v10145_v41 = vld [vmem:[%s13726_s6 + $0x30] sm:$0xff]  }
  0x51   :  { %v10144_v36 = vld [vmem:[%s13726_s6 + $0x28] sm:$0xff]   ;;  %v10154_v37 = vld [vmem:[%s13728_s8] sm:$0xff]   ;;  %v940_v40 = vpack.c.bf16 %v874_v35, %v873_v34  ;;  %v70_v42 = vld [vmem:[%s13720_s0 + $0xd0] sm:$0xff] }
  0x52   :  { %2342 = vmatpush1.bf16.msra.mxu0 %v10154_v37  ;;  %v71_v43 = vld [vmem:[%s13720_s0 + $0xd8] sm:$0xff]  ;;  %v875_v44 = vld [vmem:[%s13721_s1 + $0x90] sm:$0xff]  ;;  %v877_v46 = vld [vmem:[%s13721_s1 + $0xa0] sm:$0xff] }
  0x53   :  { %1722 = vmatpush1.bf16.msra.mxu1 %v10140_v12  ;;  %2343 = vmatprep.subr.bf16.mxu0 %v10204_v2  ;;  %v876_v45 = vld [vmem:[%s13721_s1 + $0x98] sm:$0xff]  ;;  %v878_v47 = vld [vmem:[%s13721_s1 + $0xa8] sm:$0xff]  ;;  %v132_v49 = vpack.c.bf16 %v71_v43, %v70_v42  ;;  %v10147_v52 = vld [vmem:[%s13726_s6 + $0x40] sm:$0xff]  }
  0x54   :  { %1723 = vmatprep.subr.bf16.mxu1 %v10204_v2  ;;  %v10146_v48 = vld [vmem:[%s13726_s6 + $0x38] sm:$0xff]   ;;  %v941_v50 = vpack.c.bf16 %v876_v45, %v875_v44  ;;  %v942_v51 = vpack.c.bf16 %v878_v47, %v877_v46  ;;  %v10156_v53 = vld [vmem:[%s13728_s8 + $0x8] sm:$0xff]   ;;  %v72_v54 = vld [vmem:[%s13720_s0 + $0xe0] sm:$0xff] }
  0x55   :  { %v73_v55 = vld [vmem:[%s13720_s0 + $0xe8] sm:$0xff]  ;;  %v879_v56 = vld [vmem:[%s13721_s1 + $0xb0] sm:$0xff]  ;;  %v880_v57 = vld [vmem:[%s13721_s1 + $0xb8] sm:$0xff] }
  0x56   :  { %9909 = vmatmul.mubr.msk.bf16.gmra.mrb[40].mxu0 %vm181_vm1, %v129_v15  ;;  %10057 = vmatmul.mubr.msk.bf16.gmra.mrb[40].mxu1 %vm978_vm2, %v935_v16  ;;  %v881_v58 = vld [vmem:[%s13721_s1 + $0xc0] sm:$0xff]  ;;  %v882_v59 = vld [vmem:[%s13721_s1 + $0xc8] sm:$0xff]  ;;  %v133_v61 = vpack.c.bf16 %v73_v55, %v72_v54  ;;  %v943_v62 = vpack.c.bf16 %v880_v57, %v879_v56  ;;  %v10149_v0 = vld [vmem:[%s13726_s6 + $0x50] sm:$0xff]  }
  0x57   :  { %438 = vmatprep.mubr.bf16.mxu0 %v10204_v2  ;;  %10060 = vmatprep.mubr.msk.bf16.mxu1 %vm978_vm2, %v936_v17  ;;  %v10148_v60 = vld [vmem:[%s13726_s6 + $0x48] sm:$0xff]   ;;  %v944_v63 = vpack.c.bf16 %v882_v59, %v881_v58  ;;  %v74_v1 = vld [vmem:[%s13720_s0 + $0xf0] sm:$0xff]  ;;  %v75_v3 = vld [vmem:[%s13720_s0 + $0xf8] sm:$0xff] }
  0x58   :  { %1724 = vmatpush1.bf16.msra.mxu1 %v10141_v18  ;;  %2344 = vmatpush1.bf16.msra.mxu0 %v10156_v53  ;;  %v883_v4 = vld [vmem:[%s13721_s1 + $0xd0] sm:$0xff]  ;;  %v884_v5 = vld [vmem:[%s13721_s1 + $0xd8] sm:$0xff]  ;;  %v885_v6 = vld [vmem:[%s13721_s1 + $0xe0] sm:$0xff]  ;;  %v134_v10 = vpack.c.bf16 %v75_v3, %v74_v1 }
  0x59   :  { %1725 = vmatprep.subr.bf16.mxu1 %v10204_v2  ;;  %2345 = vmatprep.subr.bf16.mxu0 %v10204_v2  ;;  %v886_v7 = vld [vmem:[%s13721_s1 + $0xe8] sm:$0xff]  ;;  %v10150_v8 = vld [vmem:[%s13726_s6 + $0x58] sm:$0xff]   ;;  %v10157_v9 = vld [vmem:[%s13728_s8 + $0x10] sm:$0xff]   ;;  %v945_v11 = vpack.c.bf16 %v884_v5, %v883_v4 }
  0x5a   :  { %v946_v12 = vpack.c.bf16 %v886_v7, %v885_v6  ;;  %v10151_v13 = vld [vmem:[%s13726_s6 + $0x60] sm:$0xff]   ;;  %v77_v15 = vld [vmem:[%s13720_s0 + $0x108] sm:$0xff]  ;;  %v887_v16 = vld [vmem:[%s13721_s1 + $0xf0] sm:$0xff] }
  0x5b   :  { %v76_v14 = vld [vmem:[%s13720_s0 + $0x100] sm:$0xff]  ;;  %v888_v17 = vld [vmem:[%s13721_s1 + $0xf8] sm:$0xff]  ;;  %v890_v19 = vld [vmem:[%s13721_s1 + $0x108] sm:$0xff] }
  0x5c   :  { %1726 = vmatpush1.bf16.msra.mxu1 %v10142_v25  ;;  %2346 = vmatpush1.bf16.msra.mxu0 %v10157_v9  ;;  %v889_v18 = vld [vmem:[%s13721_s1 + $0x100] sm:$0xff]  ;;  %v10152_v20 = vld [vmem:[%s13726_s6 + $0x68] sm:$0xff]   ;;  %v135_v21 = vpack.c.bf16 %v77_v15, %v76_v14  ;;  %v947_v22 = vpack.c.bf16 %v888_v17, %v887_v16  ;;  %v10153_v24 = vld [vmem:[%s13726_s6 + $0x70] sm:$0xff]  }
  0x5d   :  { %1727 = vmatprep.subr.bf16.mxu1 %v10204_v2  ;;  %2347 = vmatprep.subr.bf16.mxu0 %v10204_v2  ;;  %v948_v23 = vpack.c.bf16 %v890_v19, %v889_v18  ;;  %v78_v25 = vld [vmem:[%s13720_s0 + $0x110] sm:$0xff]  ;;  %v894_v30 = vld [vmem:[%s13721_s1 + $0x128] sm:$0xff]  ;;  %v10155_v31 = vld [vmem:[%s13726_s6 + $0x78] sm:$0xff]  }
  0x5e   :  { %9910 = vmatmul.mubr.msk.bf16.gmra.mrb[44].mxu0 %vm181_vm1, %v130_v26  ;;  %10061 = vmatmul.mubr.msk.bf16.gmra.mrb[44].mxu1 %vm978_vm2, %v937_v27  ;;  %v79_v26 = vld [vmem:[%s13720_s0 + $0x118] sm:$0xff]  ;;  %v891_v27 = vld [vmem:[%s13721_s1 + $0x110] sm:$0xff]  ;;  %v81_v37 = vld [vmem:[%s13720_s0 + $0x128] sm:$0xff] }
  0x5f   :  { %448 = vmatprep.mubr.bf16.mxu0 %v10204_v2  ;;  %10064 = vmatprep.mubr.msk.bf16.mxu1 %vm978_vm2, %v938_v28  ;;  %v892_v28 = vld [vmem:[%s13721_s1 + $0x118] sm:$0xff]  ;;  %v136_v33 = vpack.c.bf16 %v79_v26, %v78_v25  ;;  %v82_v45 = vld [vmem:[%s13720_s0 + $0x130] sm:$0xff]  ;;  %v84_v57 = vld [vmem:[%s13720_s0 + $0x140] sm:$0xff] }
  0x60   :  { %1728 = vmatpush1.bf16.msra.mxu1 %v10143_v29  ;;  %v893_v29 = vld [vmem:[%s13721_s1 + $0x120] sm:$0xff]  ;;  %v10158_v32 = vld [vmem:[%s13728_s8 + $0x18] sm:$0xff]   ;;  %v949_v34 = vpack.c.bf16 %v892_v28, %v891_v27  ;;  %v899_v47 = vld [vmem:[%s13721_s1 + $0x150] sm:$0xff] }
  0x61   :  { %1729 = vmatprep.subr.bf16.mxu1 %v10204_v2  ;;  %v950_v35 = vpack.c.bf16 %v894_v30, %v893_v29  ;;  %2348 = vmatpush1.bf16.msra.mxu0 %v10158_v32  ;;  %v83_v46 = vld [vmem:[%s13720_s0 + $0x138] sm:$0xff]  ;;  %v903_v55 = vld [vmem:[%s13721_s1 + $0x170] sm:$0xff]  ;;  %v85_v58 = vld [vmem:[%s13720_s0 + $0x148] sm:$0xff] }
  0x62   :  { %2349 = vmatprep.subr.bf16.mxu0 %v10204_v2  ;;  %v904_v56 = vld [vmem:[%s13721_s1 + $0x178] sm:$0xff]  ;;  %v905_v59 = vld [vmem:[%s13721_s1 + $0x180] sm:$0xff]  ;;  %v86_v3 = vld [vmem:[%s13720_s0 + $0x150] sm:$0xff] }
  0x63   :  { %v908_v1 = vld [vmem:[%s13721_s1 + $0x198] sm:$0xff]  ;;  %v909_v5 = vld [vmem:[%s13721_s1 + $0x1a0] sm:$0xff]  ;;  %v910_v6 = vld [vmem:[%s13721_s1 + $0x1a8] sm:$0xff] }
  0x64   :  { %1730 = vmatpush1.bf16.msra.mxu1 %v10144_v36  ;;  %v80_v36 = vld [vmem:[%s13720_s0 + $0x120] sm:$0xff]  ;;  %v87_v4 = vld [vmem:[%s13720_s0 + $0x158] sm:$0xff]  ;;  %v10160_v7 = vld [vmem:[%s13728_s8 + $0x28] sm:$0xff]  }
  0x65   :  { %1731 = vmatprep.subr.bf16.mxu1 %v10204_v2  ;;  %v137_v42 = vpack.c.bf16 %v81_v37, %v80_v36  ;;  %v140_v9 = vpack.c.bf16 %v87_v4, %v86_v3  ;;  %v89_v14 = vld [vmem:[%s13720_s0 + $0x168] sm:$0xff]  ;;  %v913_v15 = vld [vmem:[%s13721_s1 + $0x1c0] sm:$0xff]  ;;  %v919_v30 = vld [vmem:[%s13721_s1 + $0x1f0] sm:$0xff] }
  0x66   :  { %9911 = vmatmul.mubr.msk.bf16.gmra.mrb[48].mxu0 %vm181_vm1, %v131_v38  ;;  %10065 = vmatmul.mubr.msk.bf16.gmra.mrb[48].mxu1 %vm978_vm2, %v939_v39  ;;  %v895_v38 = vld [vmem:[%s13721_s1 + $0x130] sm:$0xff]  ;;  %v896_v39 = vld [vmem:[%s13721_s1 + $0x138] sm:$0xff]  ;;  %v914_v16 = vld [vmem:[%s13721_s1 + $0x1c8] sm:$0xff] }
  0x67   :  { %458 = vmatprep.mubr.bf16.mxu0 %v10204_v2  ;;  %10068 = vmatprep.mubr.msk.bf16.mxu1 %vm978_vm2, %v940_v40  ;;  %v897_v40 = vld [vmem:[%s13721_s1 + $0x140] sm:$0xff]  ;;  %v951_v43 = vpack.c.bf16 %v896_v39, %v895_v38  ;;  %v960_v19 = vpack.c.bf16 %v914_v16, %v913_v15  ;;  %v918_v26 = vld [vmem:[%s13721_s1 + $0x1e8] sm:$0xff]  ;;  %v10162_v39 = vld [vmem:[%s13728_s8 + $0x38] sm:$0xff]  }
  0x68   :  { %1732 = vmatpush1.bf16.msra.mxu1 %v10145_v41  ;;  %v898_v41 = vld [vmem:[%s13721_s1 + $0x148] sm:$0xff]  ;;  %v917_v25 = vld [vmem:[%s13721_s1 + $0x1e0] sm:$0xff]  ;;  %v931_v3 = vld [vmem:[%s13721_s1 + $0x250] sm:$0xff] }
  0x69   :  { %1733 = vmatprep.subr.bf16.mxu1 %v10204_v2  ;;  %v952_v44 = vpack.c.bf16 %v898_v41, %v897_v40  ;;  %v962_v29 = vpack.c.bf16 %v918_v26, %v917_v25  ;;  %v92_v32 = vld [vmem:[%s13720_s0 + $0x180] sm:$0xff]  ;;  %v923_v40 = vld [vmem:[%s13721_s1 + $0x210] sm:$0xff]  ;;  %v924_v41 = vld [vmem:[%s13721_s1 + $0x218] sm:$0xff] }
  0x6a   :  { %v98_v4 = vld [vmem:[%s13720_s0 + $0x1b0] sm:$0xff] }
  0x6c   :  { %1734 = vmatpush1.bf16.msra.mxu1 %v10146_v48  ;;  %v900_v48 = vld [vmem:[%s13721_s1 + $0x158] sm:$0xff] }
  0x6d   :  { %1735 = vmatprep.subr.bf16.mxu1 %v10204_v2  ;;  %v953_v53 = vpack.c.bf16 %v900_v48, %v899_v47  ;;  %v13733_v48 = vlaneseq }
  0x6e   :  { %9912 = vmatmul.mubr.msk.bf16.gmra.mrb[52].mxu0 %vm181_vm1, %v132_v49  ;;  %10069 = vmatmul.mubr.msk.bf16.gmra.mrb[52].mxu1 %vm978_vm2, %v941_v50  ;;  %v901_v49 = vld [vmem:[%s13721_s1 + $0x160] sm:$0xff]  ;;  %v902_v50 = vld [vmem:[%s13721_s1 + $0x168] sm:$0xff] }
  0x6f   :  { %468 = vmatprep.mubr.bf16.mxu0 %v10204_v2  ;;  %10072 = vmatprep.mubr.msk.bf16.mxu1 %vm978_vm2, %v942_v51  ;;  %v10159_v51 = vld [vmem:[%s13728_s8 + $0x20] sm:$0xff]   ;;  %v954_v54 = vpack.c.bf16 %v902_v50, %v901_v49  ;;  %v927_v50 = vld [vmem:[%s13721_s1 + $0x230] sm:$0xff] }
  0x70   :  { %1736 = vmatpush1.bf16.msra.mxu1 %v10147_v52  ;;  %v138_v52 = vpack.c.bf16 %v83_v46, %v82_v45  ;;  %2350 = vmatpush1.bf16.msra.mxu0 %v10159_v51  ;;  %v926_v45 = vld [vmem:[%s13721_s1 + $0x228] sm:$0xff]  ;;  %v965_v46 = vpack.c.bf16 %v924_v41, %v923_v40  ;;  %v10905_v51 = vshrl.u32 %v13733_v48, 7 }
  0x71   :  { %1737 = vmatprep.subr.bf16.mxu1 %v10204_v2  ;;  %2351 = vmatprep.subr.bf16.mxu0 %v10204_v2 }
  0x72   :  { %13780 = vst [vmem:[#allocation6_spill] sm:$0xff] %v10905_v51 }
  0x74   :  { %1738 = vmatpush1.bf16.msra.mxu1 %v10148_v60  ;;  %v906_v60 = vld [vmem:[%s13721_s1 + $0x188] sm:$0xff]  ;;  %2352 = vmatpush1.bf16.msra.mxu0 %v10160_v7 }
  0x75   :  { %1739 = vmatprep.subr.bf16.mxu1 %v10204_v2  ;;  %2353 = vmatprep.subr.bf16.mxu0 %v10204_v2 }
  0x76   :  { %9913 = vmatmul.mubr.msk.bf16.gmra.mrb[56].mxu0 %vm181_vm1, %v133_v61  ;;  %10073 = vmatmul.mubr.msk.bf16.gmra.mrb[56].mxu1 %vm978_vm2, %v943_v62  ;;  %v955_v61 = vpack.c.bf16 %v904_v56, %v903_v55  ;;  %v139_v62 = vpack.c.bf16 %v85_v58, %v84_v57  ;;  %v929_v55 = vld [vmem:[%s13721_s1 + $0x240] sm:$0xff]  ;;  %v930_v56 = vld [vmem:[%s13721_s1 + $0x248] sm:$0xff] }
  0x77   :  { %478 = vmatprep.mubr.bf16.mxu0 %v10204_v2  ;;  %10076 = vmatprep.mubr.msk.bf16.mxu1 %vm978_vm2, %v944_v63  ;;  %v956_v63 = vpack.c.bf16 %v906_v60, %v905_v59  ;;  %v10163_v57 = vld [vmem:[%s13728_s8 + $0x40] sm:$0xff]   ;;  %v10928_v60 = vsub.s32 0, %v10905_v51 }
  0x78   :  { %1740 = vmatpush1.bf16.msra.mxu1 %v10149_v0  ;;  %v907_v0 = vld [vmem:[%s13721_s1 + $0x190] sm:$0xff] }
  0x79   :  { %1741 = vmatprep.subr.bf16.mxu1 %v10204_v2  ;;  %13781 = vst [vmem:[#allocation7_spill] sm:$0xff] %v10928_v60 }
  0x7c   :  { %1742 = vmatpush1.bf16.msra.mxu1 %v10150_v8  ;;  %v957_v8 = vpack.c.bf16 %v908_v1, %v907_v0 }
  0x7d   :  { %1743 = vmatprep.subr.bf16.mxu1 %v10204_v2 }
  0x7e   :  { %9914 = vmatmul.mubr.msk.bf16.gmra.mrb[60].mxu0 %vm181_vm1, %v134_v10  ;;  %10077 = vmatmul.mubr.msk.bf16.gmra.mrb[60].mxu1 %vm978_vm2, %v945_v11  ;;  %v958_v10 = vpack.c.bf16 %v910_v6, %v909_v5  ;;  %v911_v11 = vld [vmem:[%s13721_s1 + $0x1b0] sm:$0xff]  ;;  %v99_v5 = vld [vmem:[%s13720_s0 + $0x1b8] sm:$0xff] }
  0x7f   :  { %488 = vmatprep.mubr.bf16.mxu0 %v10204_v2  ;;  %10080 = vmatprep.mubr.msk.bf16.mxu1 %vm978_vm2, %v946_v12  ;;  %v912_v12 = vld [vmem:[%s13721_s1 + $0x1b8] sm:$0xff] }
  0x80   :  { %1744 = vmatpush1.bf16.msra.mxu1 %v10151_v13  ;;  %v88_v13 = vld [vmem:[%s13720_s0 + $0x160] sm:$0xff]  ;;  %v959_v17 = vpack.c.bf16 %v912_v12, %v911_v11  ;;  %v969_v12 = vpack.c.bf16 %v931_v3, %v931_v3 }
  0x81   :  { %1745 = vmatprep.subr.bf16.mxu1 %v10204_v2  ;;  %v141_v18 = vpack.c.bf16 %v89_v14, %v88_v13  ;;  %v146_v13 = vpack.c.bf16 %v99_v5, %v98_v4 }
  0x84   :  { %1746 = vmatpush1.bf16.msra.mxu1 %v10152_v20  ;;  %v10161_v20 = vld [vmem:[%s13728_s8 + $0x30] sm:$0xff]  }
  0x85   :  { %1747 = vmatprep.subr.bf16.mxu1 %v10204_v2  ;;  %2354 = vmatpush1.bf16.msra.mxu0 %v10161_v20 }
  0x86   :  { %9915 = vmatmul.mubr.msk.bf16.gmra.mrb[64].mxu0 %vm181_vm1, %v135_v21  ;;  %10081 = vmatmul.mubr.msk.bf16.gmra.mrb[64].mxu1 %vm978_vm2, %v947_v22  ;;  %v915_v21 = vld [vmem:[%s13721_s1 + $0x1d0] sm:$0xff]  ;;  %v916_v22 = vld [vmem:[%s13721_s1 + $0x1d8] sm:$0xff] }
  0x87   :  { %498 = vmatprep.mubr.bf16.mxu0 %v10204_v2  ;;  %10084 = vmatprep.mubr.msk.bf16.mxu1 %vm978_vm2, %v948_v23  ;;  %v90_v23 = vld [vmem:[%s13720_s0 + $0x170] sm:$0xff]  ;;  %v961_v27 = vpack.c.bf16 %v916_v22, %v915_v21 }
  0x88   :  { %1748 = vmatpush1.bf16.msra.mxu1 %v10153_v24  ;;  %v91_v24 = vld [vmem:[%s13720_s0 + $0x178] sm:$0xff]  ;;  %2355 = vmatprep.subr.bf16.mxu0 %v10204_v2 }
  0x89   :  { %1749 = vmatprep.subr.bf16.mxu1 %v10204_v2  ;;  %v142_v28 = vpack.c.bf16 %v91_v24, %v90_v23  ;;  %2356 = vmatpush1.bf16.msra.mxu0 %v10162_v39  ;;  %v10164_v39 = vld [vmem:[%s13728_s8 + $0x48] sm:$0xff]  }
  0x8a   :  { %2357 = vmatprep.subr.bf16.mxu0 %v10204_v2 }
  0x8c   :  { %1750 = vmatpush1.bf16.msra.mxu1 %v10155_v31  ;;  %v920_v31 = vld [vmem:[%s13721_s1 + $0x1f8] sm:$0xff] }
  0x8d   :  { %v963_v36 = vpack.c.bf16 %v920_v31, %v919_v30  ;;  %2358 = vmatpush1.bf16.msra.mxu0 %v10163_v57 }
  0x8e   :  { %9916 = vmatmul.mubr.msk.bf16.gmra.mrb[68].mxu0 %vm181_vm1, %v136_v33  ;;  %10085 = vmatmul.mubr.msk.bf16.gmra.mrb[68].mxu1 %vm978_vm2, %v949_v34  ;;  %v93_v33 = vld [vmem:[%s13720_s0 + $0x188] sm:$0xff]  ;;  %v921_v34 = vld [vmem:[%s13721_s1 + $0x200] sm:$0xff] }
  0x8f   :  { %508 = vmatprep.mubr.bf16.mxu0 %v10204_v2  ;;  %10088 = vmatprep.mubr.msk.bf16.mxu1 %vm978_vm2, %v950_v35  ;;  %v922_v35 = vld [vmem:[%s13721_s1 + $0x208] sm:$0xff]  ;;  %v143_v37 = vpack.c.bf16 %v93_v33, %v92_v32  ;;  %v100_v32 = vld [vmem:[%s13720_s0 + $0x1c0] sm:$0xff] }
  0x90   :  { %v964_v38 = vpack.c.bf16 %v922_v35, %v921_v34  ;;  %2359 = vmatprep.subr.bf16.mxu0 %v10204_v2  ;;  %v101_v33 = vld [vmem:[%s13720_s0 + $0x1c8] sm:$0xff] }
  0x91   :  { %2360 = vmatpush1.bf16.msra.mxu0 %v10164_v39 }
  0x92   :  { %2361 = vmatprep.subr.bf16.mxu0 %v10204_v2 }
  0x96   :  { %9917 = vmatmul.mubr.msk.bf16.gmra.mrb[72].mxu0 %vm181_vm1, %v137_v42  ;;  %10089 = vmatmul.mubr.msk.bf16.gmra.mrb[72].mxu1 %vm978_vm2, %v951_v43  ;;  %v94_v42 = vld [vmem:[%s13720_s0 + $0x190] sm:$0xff]  ;;  %v95_v43 = vld [vmem:[%s13720_s0 + $0x198] sm:$0xff] }
  0x97   :  { %518 = vmatprep.mubr.bf16.mxu0 %v10204_v2  ;;  %10092 = vmatprep.mubr.msk.bf16.mxu1 %vm978_vm2, %v952_v44  ;;  %v925_v44 = vld [vmem:[%s13721_s1 + $0x220] sm:$0xff]  ;;  %v144_v47 = vpack.c.bf16 %v95_v43, %v94_v42 }
  0x98   :  { %v966_v49 = vpack.c.bf16 %v926_v45, %v925_v44  ;;  %v147_v45 = vpack.c.bf16 %v101_v33, %v100_v32 }
  0x9e   :  { %9918 = vmatmul.mubr.msk.bf16.gmra.mrb[76].mxu0 %vm181_vm1, %v138_v52  ;;  %10093 = vmatmul.mubr.msk.bf16.gmra.mrb[76].mxu1 %vm978_vm2, %v953_v53  ;;  %v928_v52 = vld [vmem:[%s13721_s1 + $0x238] sm:$0xff]  ;;  %v96_v53 = vld [vmem:[%s13720_s0 + $0x1a0] sm:$0xff] }
  0x9f   :  { %10096 = vmatprep.mubr.msk.bf16.mxu1 %vm978_vm2, %v954_v54  ;;  %528 = vmatprep.mubr.bf16.mxu0 %v10204_v2  ;;  %v97_v54 = vld [vmem:[%s13720_s0 + $0x1a8] sm:$0xff]  ;;  %v967_v58 = vpack.c.bf16 %v928_v52, %v927_v50 }
  0xa0   :  { %v145_v59 = vpack.c.bf16 %v97_v54, %v96_v53 }
  0xa6   :  { %10097 = vmatmul.mubr.msk.bf16.gmra.mrb[80].mxu1 %vm978_vm2, %v955_v61  ;;  %9919 = vmatmul.mubr.msk.bf16.gmra.mrb[80].mxu0 %vm181_vm1, %v139_v62  ;;  %v159_v61 = vld [vmem:[%s13723_s3] sm:$0x3]  ;;  %v10934_v62 = vsub.s32 1, %v10905_v51 }
  0xa7   :  { %10100 = vmatprep.mubr.msk.bf16.mxu1 %vm978_vm2, %v956_v63  ;;  %538 = vmatprep.mubr.bf16.mxu0 %v10204_v2  ;;  %v968_v63 = vpack.c.bf16 %v930_v56, %v929_v55  ;;  %v10940_v0 = vrot.slane %v159_v61, %v10928_v60 }
  0xa8   :  { %13782 = vst [vmem:[#allocation8_spill] sm:$0xff] %v10934_v62  ;;  %v10943_v1 = vrot.slane %v159_v61, %v10934_v62 }
  0xae   :  { %10101 = vmatmul.mubr.msk.bf16.gmra.mrb[84].mxu1 %vm978_vm2, %v957_v8  ;;  %9920 = vmatmul.mubr.msk.bf16.gmra.mrb[84].mxu0 %vm181_vm1, %v140_v9 }
  0xaf   :  { %10104 = vmatprep.mubr.msk.bf16.mxu1 %vm978_vm2, %v958_v10  ;;  %548 = vmatprep.mubr.bf16.mxu0 %v10204_v2 }
  0xb6   :  { %10105 = vmatmul.mubr.msk.bf16.gmra.mrb[88].mxu1 %vm978_vm2, %v959_v17  ;;  %9921 = vmatmul.mubr.msk.bf16.gmra.mrb[88].mxu0 %vm181_vm1, %v141_v18 }
  0xb7   :  { %10108 = vmatprep.mubr.msk.bf16.mxu1 %vm978_vm2, %v960_v19  ;;  %558 = vmatprep.mubr.bf16.mxu0 %v10204_v2 }
  0xbe   :  { %10109 = vmatmul.mubr.msk.bf16.gmra.mrb[92].mxu1 %vm978_vm2, %v961_v27  ;;  %9922 = vmatmul.mubr.msk.bf16.gmra.mrb[92].mxu0 %vm181_vm1, %v142_v28 }
  0xbf   :  { %10112 = vmatprep.mubr.msk.bf16.mxu1 %vm978_vm2, %v962_v29  ;;  %568 = vmatprep.mubr.bf16.mxu0 %v10204_v2 }
  0xc6   :  { %10113 = vmatmul.mubr.msk.bf16.gmra.mrb[96].mxu1 %vm978_vm2, %v963_v36  ;;  %9923 = vmatmul.mubr.msk.bf16.gmra.mrb[96].mxu0 %vm181_vm1, %v143_v37 }
  0xc7   :  { %10116 = vmatprep.mubr.msk.bf16.mxu1 %vm978_vm2, %v964_v38  ;;  %578 = vmatprep.mubr.bf16.mxu0 %v10204_v2 }
  0xce   :  { %10117 = vmatmul.mubr.msk.bf16.gmra.mrb[100].mxu1 %vm978_vm2, %v965_v46  ;;  %9924 = vmatmul.mubr.msk.bf16.gmra.mrb[100].mxu0 %vm181_vm1, %v144_v47 }
  0xcf   :  { %10120 = vmatprep.mubr.msk.bf16.mxu1 %vm978_vm2, %v966_v49  ;;  %588 = vmatprep.mubr.bf16.mxu0 %v10204_v2 }
  0xd6   :  { %10121 = vmatmul.mubr.msk.bf16.gmra.mrb[104].mxu1 %vm978_vm2, %v967_v58  ;;  %9925 = vmatmul.mubr.msk.bf16.gmra.mrb[104].mxu0 %vm181_vm1, %v145_v59 }
  0xd7   :  { %10124 = vmatprep.mubr.msk.bf16.mxu1 %vm978_vm2, %v968_v63  ;;  %598 = vmatprep.mubr.bf16.mxu0 %v10204_v2 }
  0xd9   :  { %v330_v6 = vpop.f32.mrb[0].mxu0  ;;  %v620_v7 = vpop.f32.mrb[0].mxu1 }
  0xda   :  { %v331_v8 = vadd.f32 %v330_v6, %v10940_v0  ;;  %v621_v9 = vadd.f32 %v620_v7, %v10940_v0  ;;  %v332_v10 = vpop.f32.mrb[1].mxu0  ;;  %v622_v11 = vpop.f32.mrb[1].mxu1 }
  0xdb   :  { %v333_v14 = vadd.f32 %v332_v10, %v10943_v1  ;;  %v623_v15 = vadd.f32 %v622_v11, %v10943_v1  ;;  %v334_v16 = vpop.f32.mrb[2].mxu0  ;;  %v624_v17 = vpop.f32.mrb[2].mxu1 }
  0xdc   :  { %v707_v18 = vmax.f32 %v331_v8, 0.0  ;;  %v335_v19 = vadd.f32 %v334_v16, %v10940_v0  ;;  %v625_v20 = vadd.f32 %v624_v17, %v10940_v0  ;;  %v336_v21 = vpop.f32.mrb[3].mxu0  ;;  %v626_v22 = vpop.f32.mrb[3].mxu1  ;;  %v823_v26 = vmax.f32 %v621_v9, 0.0 }
  0xdd   :  { %v708_v23 = vmax.f32 %v333_v14, 0.0  ;;  %v337_v24 = vadd.f32 %v336_v21, %v10943_v1  ;;  %v627_v25 = vadd.f32 %v626_v22, %v10943_v1  ;;  %v824_v29 = vmax.f32 %v623_v15, 0.0 }
  0xde   :  { %v709_v27 = vmax.f32 %v335_v19, 0.0  ;;  %v825_v28 = vmax.f32 %v625_v20, 0.0  ;;  %10125 = vmatmul.mubr.msk.bf16.gmra.mrb[108].mxu1 %vm978_vm2, %v969_v12  ;;  %9926 = vmatmul.mubr.msk.bf16.gmra.mrb[108].mxu0 %vm181_vm1, %v146_v13 }
  0xdf   :  { %v710_v30 = vmax.f32 %v337_v24, 0.0  ;;  %v826_v31 = vmax.f32 %v627_v25, 0.0  ;;  %608 = vmatprep.mubr.bf16.mxu0 %v10204_v2 }
  0xe0   :  { %v1508_v34 = vpack.c.bf16 %v709_v27, %v707_v18  ;;  %v10973_v35 = vpack.c.bf16 %v825_v28, %v823_v26 }
  0xe1   :  { %v340_v36 = vpop.f32.mrb[4].mxu0  ;;  %v630_v37 = vpop.f32.mrb[4].mxu1  ;;  %v1509_v38 = vpack.c.bf16 %v710_v30, %v708_v23  ;;  %v10978_v40 = vpack.c.bf16 %v826_v31, %v824_v29 }
  0xe2   :  { %v341_v41 = vadd.f32 %v340_v36, %v10940_v0  ;;  %v631_v42 = vadd.f32 %v630_v37, %v10940_v0  ;;  %v342_v43 = vpop.f32.mrb[5].mxu0  ;;  %v632_v44 = vpop.f32.mrb[5].mxu1 }
  0xe3   :  { %v343_v46 = vadd.f32 %v342_v43, %v10943_v1  ;;  %v633_v47 = vadd.f32 %v632_v44, %v10943_v1  ;;  %v344_v49 = vpop.f32.mrb[6].mxu0  ;;  %v634_v50 = vpop.f32.mrb[6].mxu1  ;;  %1751 = vmatprep.mubr.bf16.mxu1 %v1509_v38  ;;  %v10165_v43 = vld [vmem:[%s13728_s8 + $0x50] sm:$0xff]  }
  0xe4   :  { %v711_v52 = vmax.f32 %v341_v41, 0.0  ;;  %v345_v53 = vadd.f32 %v344_v49, %v10940_v0  ;;  %v635_v54 = vadd.f32 %v634_v50, %v10940_v0  ;;  %v346_v55 = vpop.f32.mrb[7].mxu0  ;;  %v636_v56 = vpop.f32.mrb[7].mxu1  ;;  %v827_v61 = vmax.f32 %v631_v42, 0.0  ;;  %2362 = vmatpush1.bf16.msra.mxu0 %v10165_v43 }
  0xe5   :  { %v712_v57 = vmax.f32 %v343_v46, 0.0  ;;  %v347_v58 = vadd.f32 %v346_v55, %v10943_v1  ;;  %v637_v59 = vadd.f32 %v636_v56, %v10943_v1  ;;  %v828_v4 = vmax.f32 %v633_v47, 0.0  ;;  %2363 = vmatprep.subr.bf16.mxu0 %v10204_v2 }
  0xe6   :  { %v713_v63 = vmax.f32 %v345_v53, 0.0  ;;  %v829_v3 = vmax.f32 %v635_v54, 0.0  ;;  %1752 = vmatmul.mubr.bf16.vlgmr.msra.gmra.mrb[112].mxu1 %v1508_v34  ;;  %9927 = vmatmul.mubr.msk.bf16.gmra.mrb[112].mxu0 %vm181_vm1, %v147_v45  ;;  %vm9545_vm1 = vcmask 1048512  }
  0xe7   :  { %v714_v5 = vmax.f32 %v347_v58, 0.0  ;;  %v830_v6 = vmax.f32 %v637_v59, 0.0 }
  0xe8   :  { %v1510_v7 = vpack.c.bf16 %v713_v63, %v711_v52  ;;  %v10990_v8 = vpack.c.bf16 %v829_v3, %v827_v61 }
  0xe9   :  { %v350_v9 = vpop.f32.mrb[8].mxu0  ;;  %v640_v10 = vpop.f32.mrb[8].mxu1  ;;  %v1511_v11 = vpack.c.bf16 %v714_v5, %v712_v57  ;;  %v10992_v12 = vpack.c.bf16 %v830_v6, %v828_v4 }
  0xea   :  { %v351_v13 = vadd.f32 %v350_v9, %v10940_v0  ;;  %v641_v14 = vadd.f32 %v640_v10, %v10940_v0  ;;  %v352_v15 = vpop.f32.mrb[9].mxu0  ;;  %v642_v16 = vpop.f32.mrb[9].mxu1 }
  0xeb   :  { %v353_v17 = vadd.f32 %v352_v15, %v10943_v1  ;;  %v643_v18 = vadd.f32 %v642_v16, %v10943_v1  ;;  %v354_v19 = vpop.f32.mrb[10].mxu0  ;;  %v644_v20 = vpop.f32.mrb[10].mxu1  ;;  %1759 = vmatprep.mubr.bf16.mxu1 %v1511_v11 }
  0xec   :  { %v715_v21 = vmax.f32 %v351_v13, 0.0  ;;  %v355_v22 = vadd.f32 %v354_v19, %v10940_v0  ;;  %v645_v23 = vadd.f32 %v644_v20, %v10940_v0  ;;  %v356_v24 = vpop.f32.mrb[11].mxu0  ;;  %v646_v25 = vpop.f32.mrb[11].mxu1  ;;  %v831_v29 = vmax.f32 %v641_v14, 0.0 }
  0xed   :  { %v716_v26 = vmax.f32 %v353_v17, 0.0  ;;  %v357_v27 = vadd.f32 %v356_v24, %v10943_v1  ;;  %v647_v28 = vadd.f32 %v646_v25, %v10943_v1  ;;  %v832_v32 = vmax.f32 %v643_v18, 0.0 }
  0xee   :  { %v717_v30 = vmax.f32 %v355_v22, 0.0  ;;  %v833_v31 = vmax.f32 %v645_v23, 0.0  ;;  %1760 = vmatmul.mubr.bf16.gmra.mrb[116].mxu1 %v1510_v7 }
  0xef   :  { %v718_v33 = vmax.f32 %v357_v27, 0.0  ;;  %v834_v34 = vmax.f32 %v647_v28, 0.0 }
  0xf0   :  { %v11002_v36 = vpack.c.bf16 %v833_v31, %v831_v29  ;;  %v1512_v37 = vpack.c.bf16 %v717_v30, %v715_v21 }
  0xf1   :  { %v11004_v38 = vpack.c.bf16 %v834_v34, %v832_v32  ;;  %v360_v39 = vpop.f32.mrb[12].mxu0  ;;  %v650_v41 = vpop.f32.mrb[12].mxu1  ;;  %v1513_v42 = vpack.c.bf16 %v718_v33, %v716_v26 }
  0xf2   :  { %v361_v44 = vadd.f32 %v360_v39, %v10940_v0  ;;  %v651_v45 = vadd.f32 %v650_v41, %v10940_v0  ;;  %v362_v46 = vpop.f32.mrb[13].mxu0  ;;  %v652_v47 = vpop.f32.mrb[13].mxu1 }
  0xf3   :  { %v363_v49 = vadd.f32 %v362_v46, %v10943_v1  ;;  %v653_v50 = vadd.f32 %v652_v47, %v10943_v1  ;;  %v364_v52 = vpop.f32.mrb[14].mxu0  ;;  %v654_v53 = vpop.f32.mrb[14].mxu1  ;;  %1767 = vmatprep.mubr.bf16.mxu1 %v1513_v42 }
  0xf4   :  { %v719_v54 = vmax.f32 %v361_v44, 0.0  ;;  %v365_v55 = vadd.f32 %v364_v52, %v10940_v0  ;;  %v655_v56 = vadd.f32 %v654_v53, %v10940_v0  ;;  %v366_v57 = vpop.f32.mrb[15].mxu0  ;;  %v656_v58 = vpop.f32.mrb[15].mxu1  ;;  %v835_v3 = vmax.f32 %v651_v45, 0.0  ;;  %v10166_v45 = vld [vmem:[%s13728_s8 + $0x58] sm:$0xff]  }
  0xf5   :  { %v720_v59 = vmax.f32 %v363_v49, 0.0  ;;  %v367_v61 = vadd.f32 %v366_v57, %v10943_v1  ;;  %v657_v63 = vadd.f32 %v656_v58, %v10943_v1  ;;  %v836_v6 = vmax.f32 %v653_v50, 0.0  ;;  %2364 = vmatpush1.bf16.msra.mxu0 %v10166_v45 }
  0xf6   :  { %v721_v4 = vmax.f32 %v365_v55, 0.0  ;;  %v837_v5 = vmax.f32 %v655_v56, 0.0  ;;  %1768 = vmatmul.mubr.bf16.gmra.mrb[120].mxu1 %v1512_v37  ;;  %2365 = vmatprep.subr.bf16.mxu0 %v10204_v2 }
  0xf7   :  { %v722_v7 = vmax.f32 %v367_v61, 0.0  ;;  %v838_v9 = vmax.f32 %v657_v63, 0.0 }
  0xf8   :  { %v1514_v10 = vpack.c.bf16 %v721_v4, %v719_v54  ;;  %v11018_v11 = vpack.c.bf16 %v837_v5, %v835_v3 }
  0xf9   :  { %v1515_v13 = vpack.c.bf16 %v722_v7, %v720_v59  ;;  %v11020_v14 = vpack.c.bf16 %v838_v9, %v836_v6  ;;  %v370_v15 = vpop.f32.mrb[16].mxu0  ;;  %v660_v16 = vpop.f32.mrb[16].mxu1 }
  0xfa   :  { %v371_v17 = vadd.f32 %v370_v15, %v10940_v0  ;;  %v661_v18 = vadd.f32 %v660_v16, %v10940_v0  ;;  %v372_v19 = vpop.f32.mrb[17].mxu0  ;;  %v662_v20 = vpop.f32.mrb[17].mxu1 }
  0xfb   :  { %v373_v21 = vadd.f32 %v372_v19, %v10943_v1  ;;  %v663_v22 = vadd.f32 %v662_v20, %v10943_v1  ;;  %v374_v23 = vpop.f32.mrb[18].mxu0  ;;  %v664_v24 = vpop.f32.mrb[18].mxu1  ;;  %1775 = vmatprep.mubr.bf16.mxu1 %v1515_v13 }
  0xfc   :  { %v723_v25 = vmax.f32 %v371_v17, 0.0  ;;  %v375_v26 = vadd.f32 %v374_v23, %v10940_v0  ;;  %v665_v27 = vadd.f32 %v664_v24, %v10940_v0  ;;  %v376_v28 = vpop.f32.mrb[19].mxu0  ;;  %v666_v29 = vpop.f32.mrb[19].mxu1  ;;  %v839_v33 = vmax.f32 %v661_v18, 0.0 }
  0xfd   :  { %v724_v30 = vmax.f32 %v373_v21, 0.0  ;;  %v377_v31 = vadd.f32 %v376_v28, %v10943_v1  ;;  %v667_v32 = vadd.f32 %v666_v29, %v10943_v1  ;;  %v840_v39 = vmax.f32 %v663_v22, 0.0 }
  0xfe   :  { %v725_v34 = vmax.f32 %v375_v26, 0.0  ;;  %v841_v37 = vmax.f32 %v665_v27, 0.0  ;;  %1776 = vmatmul.mubr.bf16.gmra.mrb[124].mxu1 %v1514_v10 }
  0xff   :  { %v726_v41 = vmax.f32 %v377_v31, 0.0  ;;  %v842_v42 = vmax.f32 %v667_v32, 0.0 }
 0x100   :  { %v1516_v43 = vpack.c.bf16 %v725_v34, %v723_v25  ;;  %v11030_v44 = vpack.c.bf16 %v841_v37, %v839_v33 }
 0x101   :  { %v1517_v46 = vpack.c.bf16 %v726_v41, %v724_v30  ;;  %v11035_v47 = vpack.c.bf16 %v842_v42, %v840_v39  ;;  %v380_v49 = vpop.f32.mrb[20].mxu0  ;;  %v670_v50 = vpop.f32.mrb[20].mxu1  ;;  %v10167_v42 = vld [vmem:[%s13728_s8 + $0x60] sm:$0xff]  }
 0x102   :  { %v381_v52 = vadd.f32 %v380_v49, %v10940_v0  ;;  %v671_v53 = vadd.f32 %v670_v50, %v10940_v0  ;;  %v382_v54 = vpop.f32.mrb[21].mxu0  ;;  %v672_v55 = vpop.f32.mrb[21].mxu1  ;;  %2366 = vmatpush1.bf16.msra.mxu0 %v10167_v42 }
 0x103   :  { %v383_v56 = vadd.f32 %v382_v54, %v10943_v1  ;;  %v673_v57 = vadd.f32 %v672_v55, %v10943_v1  ;;  %v384_v58 = vpop.f32.mrb[22].mxu0  ;;  %v674_v59 = vpop.f32.mrb[22].mxu1  ;;  %1783 = vmatprep.mubr.bf16.mxu1 %v1517_v46  ;;  %2367 = vmatprep.subr.bf16.mxu0 %v10204_v2 }
 0x104   :  { %v727_v61 = vmax.f32 %v381_v52, 0.0  ;;  %v385_v63 = vadd.f32 %v384_v58, %v10940_v0  ;;  %v675_v3 = vadd.f32 %v674_v59, %v10940_v0  ;;  %v386_v4 = vpop.f32.mrb[23].mxu0  ;;  %v676_v5 = vpop.f32.mrb[23].mxu1  ;;  %v843_v10 = vmax.f32 %v671_v53, 0.0 }
 0x105   :  { %v728_v6 = vmax.f32 %v383_v56, 0.0  ;;  %v387_v7 = vadd.f32 %v386_v4, %v10943_v1  ;;  %v677_v9 = vadd.f32 %v676_v5, %v10943_v1  ;;  %v844_v16 = vmax.f32 %v673_v57, 0.0 }
 0x106   :  { %v729_v13 = vmax.f32 %v385_v63, 0.0  ;;  %v845_v15 = vmax.f32 %v675_v3, 0.0  ;;  %1784 = vmatmul.mubr.bf16.gmra.mrb[128].mxu1 %v1516_v43 }
 0x107   :  { %v730_v17 = vmax.f32 %v387_v7, 0.0  ;;  %v846_v18 = vmax.f32 %v677_v9, 0.0 }
 0x108   :  { %v1518_v19 = vpack.c.bf16 %v729_v13, %v727_v61  ;;  %v11046_v20 = vpack.c.bf16 %v845_v15, %v843_v10 }
 0x109   :  { %v1519_v21 = vpack.c.bf16 %v730_v17, %v728_v6  ;;  %v11048_v22 = vpack.c.bf16 %v846_v18, %v844_v16  ;;  %v390_v23 = vpop.f32.mrb[24].mxu0  ;;  %v680_v24 = vpop.f32.mrb[24].mxu1 }
 0x10a   :  { %v391_v25 = vadd.f32 %v390_v23, %v10940_v0  ;;  %v681_v26 = vadd.f32 %v680_v24, %v10940_v0  ;;  %v392_v27 = vpop.f32.mrb[25].mxu0  ;;  %v682_v28 = vpop.f32.mrb[25].mxu1 }
 0x10b   :  { %v393_v29 = vadd.f32 %v392_v27, %v10943_v1  ;;  %v683_v30 = vadd.f32 %v682_v28, %v10943_v1  ;;  %v394_v31 = vpop.f32.mrb[26].mxu0  ;;  %v684_v32 = vpop.f32.mrb[26].mxu1  ;;  %1791 = vmatprep.mubr.bf16.mxu1 %v1519_v21 }
 0x10c   :  { %v731_v33 = vmax.f32 %v391_v25, 0.0  ;;  %v395_v34 = vadd.f32 %v394_v31, %v10940_v0  ;;  %v685_v37 = vadd.f32 %v684_v32, %v10940_v0  ;;  %v396_v39 = vpop.f32.mrb[27].mxu0  ;;  %v686_v41 = vpop.f32.mrb[27].mxu1  ;;  %v847_v49 = vmax.f32 %v681_v26, 0.0 }
 0x10d   :  { %v732_v43 = vmax.f32 %v393_v29, 0.0  ;;  %v397_v45 = vadd.f32 %v396_v39, %v10943_v1  ;;  %v687_v46 = vadd.f32 %v686_v41, %v10943_v1  ;;  %v848_v53 = vmax.f32 %v683_v30, 0.0  ;;  %v10168_v41 = vld [vmem:[%s13728_s8 + $0x68] sm:$0xff]  }
 0x10e   :  { %v733_v50 = vmax.f32 %v395_v34, 0.0  ;;  %v849_v52 = vmax.f32 %v685_v37, 0.0  ;;  %1792 = vmatmul.mubr.bf16.gmra.mrb[132].mxu1 %v1518_v19  ;;  %2368 = vmatpush1.bf16.msra.mxu0 %v10168_v41 }
 0x10f   :  { %v734_v54 = vmax.f32 %v397_v45, 0.0  ;;  %v850_v55 = vmax.f32 %v687_v46, 0.0  ;;  %2369 = vmatprep.subr.bf16.mxu0 %v10204_v2 }
 0x110   :  { %v1520_v56 = vpack.c.bf16 %v733_v50, %v731_v33  ;;  %v11062_v57 = vpack.c.bf16 %v849_v52, %v847_v49 }
 0x111   :  { %v1521_v58 = vpack.c.bf16 %v734_v54, %v732_v43  ;;  %v11064_v59 = vpack.c.bf16 %v850_v55, %v848_v53  ;;  %v400_v61 = vpop.f32.mrb[28].mxu0  ;;  %v690_v63 = vpop.f32.mrb[28].mxu1 }
 0x112   :  { %v401_v3 = vadd.f32 %v400_v61, %v10940_v0  ;;  %v691_v4 = vadd.f32 %v690_v63, %v10940_v0  ;;  %v402_v5 = vpop.f32.mrb[29].mxu0  ;;  %v692_v6 = vpop.f32.mrb[29].mxu1 }
 0x113   :  { %v403_v7 = vadd.f32 %v402_v5, %v10943_v1  ;;  %v693_v9 = vadd.f32 %v692_v6, %v10943_v1  ;;  %v404_v10 = vpop.f32.mrb[30].mxu0  ;;  %v694_v13 = vpop.f32.mrb[30].mxu1  ;;  %1799 = vmatprep.mubr.bf16.mxu1 %v1521_v58 }
 0x114   :  { %v735_v15 = vmax.f32 %v401_v3, 0.0  ;;  %v405_v16 = vadd.f32 %v404_v10, %v10940_v0  ;;  %v695_v17 = vadd.f32 %v694_v13, %v10940_v0  ;;  %v406_v18 = vpop.f32.mrb[31].mxu0  ;;  %v696_v19 = vpop.f32.mrb[31].mxu1  ;;  %v851_v25 = vmax.f32 %v691_v4, 0.0  ;;  %v11093_v3 = vld [vmem:[%s13725_s5] ss:$0 sm:$0xff] }
 0x115   :  { %v736_v21 = vmax.f32 %v403_v7, 0.0  ;;  %v407_v23 = vadd.f32 %v406_v18, %v10943_v1  ;;  %v697_v24 = vadd.f32 %v696_v19, %v10943_v1  ;;  %v852_v28 = vmax.f32 %v693_v9, 0.0 }
 0x116   :  { %v737_v26 = vmax.f32 %v405_v16, 0.0  ;;  %v853_v27 = vmax.f32 %v695_v17, 0.0  ;;  %1800 = vmatmul.mubr.bf16.gmra.mrb[136].mxu1 %v1520_v56 }
 0x117   :  { %v738_v29 = vmax.f32 %v407_v23, 0.0  ;;  %v854_v30 = vmax.f32 %v697_v24, 0.0 }
 0x118   :  { %v1522_v31 = vpack.c.bf16 %v737_v26, %v735_v15  ;;  %v11074_v32 = vpack.c.bf16 %v853_v27, %v851_v25 }
 0x119   :  { %v1523_v33 = vpack.c.bf16 %v738_v29, %v736_v21  ;;  %v11076_v34 = vpack.c.bf16 %v854_v30, %v852_v28  ;;  %v410_v37 = vpop.f32.mrb[32].mxu0  ;;  %v11078_v39 = vpop.f32.mrb[32].mxu1 }
 0x11a   :  { %v411_v42 = vadd.f32 %v410_v37, %v10940_v0  ;;  %v412_v43 = vpop.f32.mrb[33].mxu0  ;;  %v11084_v45 = vpop.f32.mrb[33].mxu1 }
 0x11b   :  { %v413_v46 = vadd.f32 %v412_v43, %v10943_v1  ;;  %v414_v49 = vpop.f32.mrb[34].mxu0  ;;  %v704_v50 = vpop.f32.mrb[34].mxu1  ;;  %1807 = vmatprep.mubr.bf16.mxu1 %v1523_v33 }
 0x11c   :  { %v739_v52 = vmax.f32 %v411_v42, 0.0  ;;  %v415_v53 = vadd.f32 %v414_v49, %v10940_v0  ;;  %v416_v54 = vpop.f32.mrb[35].mxu0  ;;  %v705_v55 = vpop.f32.mrb[35].mxu1 }
 0x11d   :  { %v740_v56 = vmax.f32 %v413_v46, 0.0  ;;  %v417_v58 = vadd.f32 %v416_v54, %v10943_v1  ;;  %v10169_v54 = vld [vmem:[%s13728_s8 + $0x70] sm:$0xff]  }
 0x11e   :  { %v741_v61 = vmax.f32 %v415_v53, 0.0  ;;  %1808 = vmatmul.mubr.bf16.gmra.mrb[140].mxu1 %v1522_v31  ;;  %2370 = vmatpush1.bf16.msra.mxu0 %v10169_v54 }
 0x11f   :  { %v742_v63 = vmax.f32 %v417_v58, 0.0  ;;  %2371 = vmatprep.subr.bf16.mxu0 %v10204_v2 }
 0x120   :  { %v1524_v4 = vpack.c.bf16 %v741_v61, %v739_v52 }
 0x121   :  { %v1525_v5 = vpack.c.bf16 %v742_v63, %v740_v56  ;;  %v420_v6 = vpop.f32.mrb[36].mxu0  ;;  %v10054_v7 = vpop.f32.mrb[36].mxu1 }
 0x122   :  { %v421_v9 = vadd.f32 %v420_v6, %v10940_v0  ;;  %v1140_v10 = vadd.f32 %v10054_v7, %v11093_v3  ;;  %v422_v13 = vpop.f32.mrb[37].mxu0  ;;  %v1131_v15 = vpop.f32.mrb[37].mxu1 }
 0x123   :  { %v423_v16 = vadd.f32 %v422_v13, %v10943_v1  ;;  %v1132_v17 = vadd.f32 %v11093_v3, %v1131_v15  ;;  %v424_v18 = vpop.f32.mrb[38].mxu0  ;;  %v10055_v19 = vpop.f32.mrb[38].mxu1  ;;  %1815 = vmatprep.mubr.bf16.mxu1 %v1525_v5 }
 0x124   :  { %v743_v21 = vmax.f32 %v421_v9, 0.0  ;;  %v425_v23 = vadd.f32 %v424_v18, %v10940_v0  ;;  %v1143_v24 = vadd.f32 %v10055_v19, %v11093_v3  ;;  %v426_v25 = vpop.f32.mrb[39].mxu0  ;;  %v1134_v26 = vpop.f32.mrb[39].mxu1  ;;  %v1435_v30 = vmax.f32 %v1140_v10, 0.0 }
 0x125   :  { %v744_v27 = vmax.f32 %v423_v16, 0.0  ;;  %v427_v28 = vadd.f32 %v426_v25, %v10943_v1  ;;  %v1135_v29 = vadd.f32 %v11093_v3, %v1134_v26  ;;  %v1433_v37 = vmax.f32 %v1132_v17, 0.0 }
 0x126   :  { %v745_v31 = vmax.f32 %v425_v23, 0.0  ;;  %v1436_v33 = vmax.f32 %v1143_v24, 0.0  ;;  %1816 = vmatmul.mubr.bf16.gmra.mrb[144].mxu1 %v1524_v4 }
 0x127   :  { %v746_v41 = vmax.f32 %v427_v28, 0.0  ;;  %v1434_v42 = vmax.f32 %v1135_v29, 0.0 }
 0x128   :  { %v1526_v43 = vpack.c.bf16 %v745_v31, %v743_v21  ;;  %v11103_v46 = vpack.c.bf16 %v1436_v33, %v1435_v30 }
 0x129   :  { %v1527_v49 = vpack.c.bf16 %v746_v41, %v744_v27  ;;  %v2168_v50 = vpack.c.bf16 %v1434_v42, %v1433_v37  ;;  %v430_v52 = vpop.f32.mrb[40].mxu0  ;;  %v10058_v53 = vpop.f32.mrb[40].mxu1 }
 0x12a   :  { %v431_v55 = vadd.f32 %v430_v52, %v10940_v0  ;;  %v1156_v56 = vadd.f32 %v10058_v53, %v11093_v3  ;;  %v432_v58 = vpop.f32.mrb[41].mxu0  ;;  %v1147_v61 = vpop.f32.mrb[41].mxu1 }
 0x12b   :  { %v433_v63 = vadd.f32 %v432_v58, %v10943_v1  ;;  %v1148_v4 = vadd.f32 %v11093_v3, %v1147_v61  ;;  %v434_v5 = vpop.f32.mrb[42].mxu0  ;;  %v10059_v6 = vpop.f32.mrb[42].mxu1  ;;  %1823 = vmatprep.mubr.bf16.mxu1 %v1527_v49  ;;  %2373 = vmatprep.mubr.bf16.mxu0 %v2168_v50 }
 0x12c   :  { %v747_v7 = vmax.f32 %v431_v55, 0.0  ;;  %v435_v9 = vadd.f32 %v434_v5, %v10940_v0  ;;  %v1159_v10 = vadd.f32 %v10059_v6, %v11093_v3  ;;  %v436_v13 = vpop.f32.mrb[43].mxu0  ;;  %v1150_v15 = vpop.f32.mrb[43].mxu1  ;;  %v1439_v19 = vmax.f32 %v1156_v56, 0.0 }
 0x12d   :  { %v748_v16 = vmax.f32 %v433_v63, 0.0  ;;  %v437_v17 = vadd.f32 %v436_v13, %v10943_v1  ;;  %v1151_v18 = vadd.f32 %v11093_v3, %v1150_v15  ;;  %v1437_v24 = vmax.f32 %v1148_v4, 0.0 }
 0x12e   :  { %v749_v21 = vmax.f32 %v435_v9, 0.0  ;;  %v1440_v23 = vmax.f32 %v1159_v10, 0.0  ;;  %1824 = vmatmul.mubr.bf16.gmra.mrb[148].mxu1 %v1526_v43 }
 0x12f   :  { %v750_v25 = vmax.f32 %v437_v17, 0.0  ;;  %v1438_v26 = vmax.f32 %v1151_v18, 0.0 }
 0x130   :  { %v1528_v27 = vpack.c.bf16 %v749_v21, %v747_v7  ;;  %v11117_v28 = vpack.c.bf16 %v1440_v23, %v1439_v19  ;;  %v10170_v23 = vld [vmem:[%s13728_s8 + $0x78] sm:$0xff]  }
 0x131   :  { %v1529_v29 = vpack.c.bf16 %v750_v25, %v748_v16  ;;  %v11119_v30 = vpack.c.bf16 %v1438_v26, %v1437_v24  ;;  %v440_v31 = vpop.f32.mrb[44].mxu0  ;;  %v10062_v33 = vpop.f32.mrb[44].mxu1  ;;  %2372 = vmatpush1.bf16.msra.mxu0 %v10170_v23 }
 0x132   :  { %v441_v37 = vadd.f32 %v440_v31, %v10940_v0  ;;  %v1172_v41 = vadd.f32 %v10062_v33, %v11093_v3  ;;  %v442_v2 = vpop.f32.mrb[45].mxu0  ;;  %v1163_v42 = vpop.f32.mrb[45].mxu1 }
 0x133   :  { %v443_v49 = vadd.f32 %v442_v2, %v10943_v1  ;;  %v1164_v43 = vadd.f32 %v11093_v3, %v1163_v42  ;;  %v444_v50 = vpop.f32.mrb[46].mxu0  ;;  %v10063_v52 = vpop.f32.mrb[46].mxu1  ;;  %1831 = vmatprep.mubr.bf16.mxu1 %v1529_v29 }
 0x134   :  { %v751_v53 = vmax.f32 %v441_v37, 0.0  ;;  %v445_v54 = vadd.f32 %v444_v50, %v10940_v0  ;;  %v1175_v55 = vadd.f32 %v10063_v52, %v11093_v3  ;;  %v446_v56 = vpop.f32.mrb[47].mxu0  ;;  %v1166_v58 = vpop.f32.mrb[47].mxu1  ;;  %v1443_v5 = vmax.f32 %v1172_v41, 0.0 }
 0x135   :  { %v752_v61 = vmax.f32 %v443_v49, 0.0  ;;  %v447_v63 = vadd.f32 %v446_v56, %v10943_v1  ;;  %v1167_v4 = vadd.f32 %v11093_v3, %v1166_v58  ;;  %v1441_v9 = vmax.f32 %v1164_v43, 0.0 }
 0x136   :  { %v753_v6 = vmax.f32 %v445_v54, 0.0  ;;  %v1444_v7 = vmax.f32 %v1175_v55, 0.0  ;;  %1832 = vmatmul.mubr.bf16.gmra.mrb[152].mxu1 %v1528_v27 }
 0x137   :  { %v754_v10 = vmax.f32 %v447_v63, 0.0  ;;  %v1442_v13 = vmax.f32 %v1167_v4, 0.0 }
 0x138   :  { %v1530_v15 = vpack.c.bf16 %v753_v6, %v751_v53  ;;  %v11129_v16 = vpack.c.bf16 %v1444_v7, %v1443_v5 }
 0x139   :  { %v1531_v17 = vpack.c.bf16 %v754_v10, %v752_v61  ;;  %v11131_v18 = vpack.c.bf16 %v1442_v13, %v1441_v9  ;;  %v450_v19 = vpop.f32.mrb[48].mxu0  ;;  %v10066_v21 = vpop.f32.mrb[48].mxu1 }
 0x13a   :  { %v451_v24 = vadd.f32 %v450_v19, %v10940_v0  ;;  %v1188_v25 = vadd.f32 %v10066_v21, %v11093_v3  ;;  %v452_v26 = vpop.f32.mrb[49].mxu0  ;;  %v1179_v27 = vpop.f32.mrb[49].mxu1 }
 0x13b   :  { %v453_v29 = vadd.f32 %v452_v26, %v10943_v1  ;;  %v1180_v31 = vadd.f32 %v11093_v3, %v1179_v27  ;;  %v454_v33 = vpop.f32.mrb[50].mxu0  ;;  %v10067_v37 = vpop.f32.mrb[50].mxu1  ;;  %1839 = vmatprep.mubr.bf16.mxu1 %v1531_v17 }
 0x13c   :  { %v755_v41 = vmax.f32 %v451_v24, 0.0  ;;  %v455_v2 = vadd.f32 %v454_v33, %v10940_v0  ;;  %v1191_v42 = vadd.f32 %v10067_v37, %v11093_v3  ;;  %v456_v49 = vpop.f32.mrb[51].mxu0  ;;  %v1182_v43 = vpop.f32.mrb[51].mxu1  ;;  %v1447_v54 = vmax.f32 %v1188_v25, 0.0 }
 0x13d   :  { %v756_v50 = vmax.f32 %v453_v29, 0.0  ;;  %v457_v52 = vadd.f32 %v456_v49, %v10943_v1  ;;  %v1183_v53 = vadd.f32 %v11093_v3, %v1182_v43  ;;  %v1445_v58 = vmax.f32 %v1180_v31, 0.0 }
 0x13e   :  { %v757_v55 = vmax.f32 %v455_v2, 0.0  ;;  %v1448_v56 = vmax.f32 %v1191_v42, 0.0  ;;  %1840 = vmatmul.mubr.bf16.gmra.mrb[156].mxu1 %v1530_v15 }
 0x13f   :  { %v758_v61 = vmax.f32 %v457_v52, 0.0  ;;  %v1446_v63 = vmax.f32 %v1183_v53, 0.0 }
 0x140   :  { %v1532_v4 = vpack.c.bf16 %v757_v55, %v755_v41  ;;  %v11144_v5 = vpack.c.bf16 %v1448_v56, %v1447_v54 }
 0x141   :  { %v1533_v6 = vpack.c.bf16 %v758_v61, %v756_v50  ;;  %v11146_v7 = vpack.c.bf16 %v1446_v63, %v1445_v58  ;;  %v460_v9 = vpop.f32.mrb[52].mxu0  ;;  %v10070_v10 = vpop.f32.mrb[52].mxu1 }
 0x142   :  { %v461_v13 = vadd.f32 %v460_v9, %v10940_v0  ;;  %v1204_v17 = vadd.f32 %v10070_v10, %v11093_v3  ;;  %v462_v19 = vpop.f32.mrb[53].mxu0  ;;  %v1195_v21 = vpop.f32.mrb[53].mxu1 }
 0x143   :  { %v463_v23 = vadd.f32 %v462_v19, %v10943_v1  ;;  %v1196_v15 = vadd.f32 %v11093_v3, %v1195_v21  ;;  %v464_v24 = vpop.f32.mrb[54].mxu0  ;;  %v10071_v25 = vpop.f32.mrb[54].mxu1  ;;  %1847 = vmatprep.mubr.bf16.mxu1 %v1533_v6 }
 0x144   :  { %v759_v26 = vmax.f32 %v461_v13, 0.0  ;;  %v465_v27 = vadd.f32 %v464_v24, %v10940_v0  ;;  %v1207_v29 = vadd.f32 %v10071_v25, %v11093_v3  ;;  %v466_v31 = vpop.f32.mrb[55].mxu0  ;;  %v1198_v33 = vpop.f32.mrb[55].mxu1  ;;  %v1451_v42 = vmax.f32 %v1204_v17, 0.0 }
 0x145   :  { %v760_v37 = vmax.f32 %v463_v23, 0.0  ;;  %v467_v41 = vadd.f32 %v466_v31, %v10943_v1  ;;  %v1199_v2 = vadd.f32 %v11093_v3, %v1198_v33  ;;  %v1449_v50 = vmax.f32 %v1196_v15, 0.0 }
 0x146   :  { %v761_v49 = vmax.f32 %v465_v27, 0.0  ;;  %v1452_v43 = vmax.f32 %v1207_v29, 0.0  ;;  %1848 = vmatmul.mubr.bf16.gmra.mrb[160].mxu1 %v1532_v4 }
 0x147   :  { %v762_v52 = vmax.f32 %v467_v41, 0.0  ;;  %v1450_v53 = vmax.f32 %v1199_v2, 0.0 }
 0x148   :  { %v1534_v54 = vpack.c.bf16 %v761_v49, %v759_v26  ;;  %v11156_v55 = vpack.c.bf16 %v1452_v43, %v1451_v42 }
 0x149   :  { %v1535_v56 = vpack.c.bf16 %v762_v52, %v760_v37  ;;  %v11158_v58 = vpack.c.bf16 %v1450_v53, %v1449_v50  ;;  %v470_v61 = vpop.f32.mrb[56].mxu0  ;;  %v10074_v63 = vpop.f32.mrb[56].mxu1 }
 0x14a   :  { %v471_v6 = vadd.f32 %v470_v61, %v10940_v0  ;;  %v1220_v9 = vadd.f32 %v10074_v63, %v11093_v3  ;;  %v472_v10 = vpop.f32.mrb[57].mxu0  ;;  %v1211_v13 = vpop.f32.mrb[57].mxu1 }
 0x14b   :  { %v473_v17 = vadd.f32 %v472_v10, %v10943_v1  ;;  %v1212_v4 = vadd.f32 %v11093_v3, %v1211_v13  ;;  %v474_v19 = vpop.f32.mrb[58].mxu0  ;;  %v10075_v21 = vpop.f32.mrb[58].mxu1  ;;  %1855 = vmatprep.mubr.bf16.mxu1 %v1535_v56 }
 0x14c   :  { %v763_v23 = vmax.f32 %v471_v6, 0.0  ;;  %v475_v15 = vadd.f32 %v474_v19, %v10940_v0  ;;  %v1223_v24 = vadd.f32 %v10075_v21, %v11093_v3  ;;  %v476_v25 = vpop.f32.mrb[59].mxu0  ;;  %v1214_v26 = vpop.f32.mrb[59].mxu1  ;;  %v1455_v33 = vmax.f32 %v1220_v9, 0.0 }
 0x14d   :  { %v764_v27 = vmax.f32 %v473_v17, 0.0  ;;  %v477_v29 = vadd.f32 %v476_v25, %v10943_v1  ;;  %v1215_v31 = vadd.f32 %v11093_v3, %v1214_v26  ;;  %v1453_v2 = vmax.f32 %v1212_v4, 0.0 }
 0x14e   :  { %v765_v37 = vmax.f32 %v475_v15, 0.0  ;;  %v1456_v41 = vmax.f32 %v1223_v24, 0.0  ;;  %1856 = vmatmul.mubr.bf16.gmra.mrb[164].mxu1 %v1534_v54 }
 0x14f   :  { %v766_v42 = vmax.f32 %v477_v29, 0.0  ;;  %v1454_v49 = vmax.f32 %v1215_v31, 0.0 }
 0x150   :  { %v1536_v43 = vpack.c.bf16 %v765_v37, %v763_v23  ;;  %v11168_v50 = vpack.c.bf16 %v1456_v41, %v1455_v33 }
 0x151   :  { %v1537_v52 = vpack.c.bf16 %v766_v42, %v764_v27  ;;  %v11170_v53 = vpack.c.bf16 %v1454_v49, %v1453_v2  ;;  %v480_v56 = vpop.f32.mrb[60].mxu0  ;;  %v10078_v61 = vpop.f32.mrb[60].mxu1 }
 0x152   :  { %v481_v63 = vadd.f32 %v480_v56, %v10940_v0  ;;  %v1236_v6 = vadd.f32 %v10078_v61, %v11093_v3  ;;  %v482_v10 = vpop.f32.mrb[61].mxu0  ;;  %v1227_v9 = vpop.f32.mrb[61].mxu1 }
 0x153   :  { %v483_v13 = vadd.f32 %v482_v10, %v10943_v1  ;;  %v1228_v54 = vadd.f32 %v11093_v3, %v1227_v9  ;;  %v484_v17 = vpop.f32.mrb[62].mxu0  ;;  %v10079_v4 = vpop.f32.mrb[62].mxu1  ;;  %1863 = vmatprep.mubr.bf16.mxu1 %v1537_v52 }
 0x154   :  { %v767_v19 = vmax.f32 %v481_v63, 0.0  ;;  %v485_v21 = vadd.f32 %v484_v17, %v10940_v0  ;;  %v1239_v23 = vadd.f32 %v10079_v4, %v11093_v3  ;;  %v486_v15 = vpop.f32.mrb[63].mxu0  ;;  %v1230_v24 = vpop.f32.mrb[63].mxu1  ;;  %v1459_v29 = vmax.f32 %v1236_v6, 0.0 }
 0x155   :  { %v768_v25 = vmax.f32 %v483_v13, 0.0  ;;  %v487_v26 = vadd.f32 %v486_v15, %v10943_v1  ;;  %v1231_v27 = vadd.f32 %v11093_v3, %v1230_v24  ;;  %v1457_v37 = vmax.f32 %v1228_v54, 0.0 }
 0x156   :  { %v769_v31 = vmax.f32 %v485_v21, 0.0  ;;  %v1460_v33 = vmax.f32 %v1239_v23, 0.0  ;;  %1864 = vmatmul.mubr.bf16.gmra.mrb[168].mxu1 %v1536_v43 }
 0x157   :  { %v770_v41 = vmax.f32 %v487_v26, 0.0  ;;  %v1458_v2 = vmax.f32 %v1231_v27, 0.0 }
 0x158   :  { %v1538_v42 = vpack.c.bf16 %v769_v31, %v767_v19  ;;  %v11180_v49 = vpack.c.bf16 %v1460_v33, %v1459_v29 }
 0x159   :  { %v1539_v52 = vpack.c.bf16 %v770_v41, %v768_v25  ;;  %v11182_v56 = vpack.c.bf16 %v1458_v2, %v1457_v37  ;;  %v490_v61 = vpop.f32.mrb[64].mxu0  ;;  %v10082_v63 = vpop.f32.mrb[64].mxu1 }
 0x15a   :  { %v491_v10 = vadd.f32 %v490_v61, %v10940_v0  ;;  %v1252_v9 = vadd.f32 %v10082_v63, %v11093_v3  ;;  %v492_v13 = vpop.f32.mrb[65].mxu0  ;;  %v1243_v6 = vpop.f32.mrb[65].mxu1 }
 0x15b   :  { %v493_v17 = vadd.f32 %v492_v13, %v10943_v1  ;;  %v1244_v43 = vadd.f32 %v11093_v3, %v1243_v6  ;;  %v494_v54 = vpop.f32.mrb[66].mxu0  ;;  %v10083_v4 = vpop.f32.mrb[66].mxu1  ;;  %1871 = vmatprep.mubr.bf16.mxu1 %v1539_v52 }
 0x15c   :  { %v771_v19 = vmax.f32 %v491_v10, 0.0  ;;  %v495_v21 = vadd.f32 %v494_v54, %v10940_v0  ;;  %v1255_v23 = vadd.f32 %v10083_v4, %v11093_v3  ;;  %v496_v15 = vpop.f32.mrb[67].mxu0  ;;  %v1246_v24 = vpop.f32.mrb[67].mxu1  ;;  %v1463_v29 = vmax.f32 %v1252_v9, 0.0 }
 0x15d   :  { %v772_v25 = vmax.f32 %v493_v17, 0.0  ;;  %v497_v26 = vadd.f32 %v496_v15, %v10943_v1  ;;  %v1247_v27 = vadd.f32 %v11093_v3, %v1246_v24  ;;  %v1461_v37 = vmax.f32 %v1244_v43, 0.0 }
 0x15e   :  { %v773_v31 = vmax.f32 %v495_v21, 0.0  ;;  %v1464_v33 = vmax.f32 %v1255_v23, 0.0  ;;  %1872 = vmatmul.mubr.bf16.gmra.mrb[172].mxu1 %v1538_v42 }
 0x15f   :  { %v774_v41 = vmax.f32 %v497_v26, 0.0  ;;  %v1462_v2 = vmax.f32 %v1247_v27, 0.0 }
 0x160   :  { %v1540_v52 = vpack.c.bf16 %v773_v31, %v771_v19  ;;  %v11192_v61 = vpack.c.bf16 %v1464_v33, %v1463_v29 }
 0x161   :  { %v1541_v63 = vpack.c.bf16 %v774_v41, %v772_v25  ;;  %v11194_v10 = vpack.c.bf16 %v1462_v2, %v1461_v37  ;;  %v500_v13 = vpop.f32.mrb[68].mxu0  ;;  %v10086_v6 = vpop.f32.mrb[68].mxu1 }
 0x162   :  { %v501_v17 = vadd.f32 %v500_v13, %v10940_v0  ;;  %v1268_v54 = vadd.f32 %v10086_v6, %v11093_v3  ;;  %v502_v4 = vpop.f32.mrb[69].mxu0  ;;  %v1259_v9 = vpop.f32.mrb[69].mxu1 }
 0x163   :  { %v503_v21 = vadd.f32 %v502_v4, %v10943_v1  ;;  %v1260_v42 = vadd.f32 %v11093_v3, %v1259_v9  ;;  %v504_v43 = vpop.f32.mrb[70].mxu0  ;;  %v10087_v23 = vpop.f32.mrb[70].mxu1  ;;  %1879 = vmatprep.mubr.bf16.mxu1 %v1541_v63 }
 0x164   :  { %v775_v19 = vmax.f32 %v501_v17, 0.0  ;;  %v505_v15 = vadd.f32 %v504_v43, %v10940_v0  ;;  %v1271_v24 = vadd.f32 %v10087_v23, %v11093_v3  ;;  %v506_v25 = vpop.f32.mrb[71].mxu0  ;;  %v1262_v26 = vpop.f32.mrb[71].mxu1  ;;  %v1467_v33 = vmax.f32 %v1268_v54, 0.0 }
 0x165   :  { %v776_v27 = vmax.f32 %v503_v21, 0.0  ;;  %v507_v29 = vadd.f32 %v506_v25, %v10943_v1  ;;  %v1263_v31 = vadd.f32 %v11093_v3, %v1262_v26  ;;  %v1465_v2 = vmax.f32 %v1260_v42, 0.0 }
 0x166   :  { %v777_v37 = vmax.f32 %v505_v15, 0.0  ;;  %v1468_v41 = vmax.f32 %v1271_v24, 0.0  ;;  %1880 = vmatmul.mubr.bf16.gmra.mrb[176].mxu1 %v1540_v52 }
 0x167   :  { %v778_v13 = vmax.f32 %v507_v29, 0.0  ;;  %v1466_v6 = vmax.f32 %v1263_v31, 0.0 }
 0x168   :  { %v1542_v63 = vpack.c.bf16 %v777_v37, %v775_v19  ;;  %v11204_v17 = vpack.c.bf16 %v1468_v41, %v1467_v33 }
 0x169   :  { %v1543_v4 = vpack.c.bf16 %v778_v13, %v776_v27  ;;  %v11206_v9 = vpack.c.bf16 %v1466_v6, %v1465_v2  ;;  %v510_v43 = vpop.f32.mrb[72].mxu0  ;;  %v10090_v23 = vpop.f32.mrb[72].mxu1 }
 0x16a   :  { %v511_v21 = vadd.f32 %v510_v43, %v10940_v0  ;;  %v1284_v25 = vadd.f32 %v10090_v23, %v11093_v3  ;;  %v512_v26 = vpop.f32.mrb[73].mxu0  ;;  %v1275_v54 = vpop.f32.mrb[73].mxu1 }
 0x16b   :  { %v513_v15 = vadd.f32 %v512_v26, %v10943_v1  ;;  %v1276_v52 = vadd.f32 %v11093_v3, %v1275_v54  ;;  %v514_v42 = vpop.f32.mrb[74].mxu0  ;;  %v10091_v24 = vpop.f32.mrb[74].mxu1  ;;  %1887 = vmatprep.mubr.bf16.mxu1 %v1543_v4 }
 0x16c   :  { %v779_v19 = vmax.f32 %v511_v21, 0.0  ;;  %v515_v27 = vadd.f32 %v514_v42, %v10940_v0  ;;  %v1287_v29 = vadd.f32 %v10091_v24, %v11093_v3  ;;  %v516_v31 = vpop.f32.mrb[75].mxu0  ;;  %v1278_v33 = vpop.f32.mrb[75].mxu1  ;;  %v1471_v13 = vmax.f32 %v1284_v25, 0.0 }
 0x16d   :  { %v780_v37 = vmax.f32 %v513_v15, 0.0  ;;  %v517_v41 = vadd.f32 %v516_v31, %v10943_v1  ;;  %v1279_v2 = vadd.f32 %v11093_v3, %v1278_v33  ;;  %v1469_v23 = vmax.f32 %v1276_v52, 0.0 }
 0x16e   :  { %v781_v6 = vmax.f32 %v515_v27, 0.0  ;;  %v1472_v43 = vmax.f32 %v1287_v29, 0.0  ;;  %1888 = vmatmul.mubr.bf16.gmra.mrb[180].mxu1 %v1542_v63 }
 0x16f   :  { %v782_v26 = vmax.f32 %v517_v41, 0.0  ;;  %v1470_v54 = vmax.f32 %v1279_v2, 0.0 }
 0x170   :  { %v1544_v4 = vpack.c.bf16 %v781_v6, %v779_v19  ;;  %v11216_v21 = vpack.c.bf16 %v1472_v43, %v1471_v13 }
 0x171   :  { %v1545_v42 = vpack.c.bf16 %v782_v26, %v780_v37  ;;  %v11218_v48 = vpack.c.bf16 %v1470_v54, %v1469_v23  ;;  %v520_v24 = vpop.f32.mrb[76].mxu0  ;;  %v10094_v62 = vpop.f32.mrb[76].mxu1 }
 0x172   :  { %v521_v15 = vadd.f32 %v520_v24, %v10940_v0  ;;  %v1300_v31 = vadd.f32 %v10094_v62, %v11093_v3  ;;  %v522_v33 = vpop.f32.mrb[77].mxu0  ;;  %v1291_v25 = vpop.f32.mrb[77].mxu1 }
 0x173   :  { %v523_v27 = vadd.f32 %v522_v33, %v10943_v1  ;;  %v1292_v63 = vadd.f32 %v11093_v3, %v1291_v25  ;;  %v524_v52 = vpop.f32.mrb[78].mxu0  ;;  %v10095_v29 = vpop.f32.mrb[78].mxu1  ;;  %1895 = vmatprep.mubr.bf16.mxu1 %v1545_v42 }
 0x174   :  { %v783_v19 = vmax.f32 %v521_v15, 0.0  ;;  %v525_v37 = vadd.f32 %v524_v52, %v10940_v0  ;;  %v1303_v41 = vadd.f32 %v10095_v29, %v11093_v3  ;;  %v526_v2 = vpop.f32.mrb[79].mxu0  ;;  %v1294_v13 = vpop.f32.mrb[79].mxu1  ;;  %v1475_v23 = vmax.f32 %v1300_v31, 0.0 }
 0x175   :  { %v784_v6 = vmax.f32 %v523_v27, 0.0  ;;  %v527_v43 = vadd.f32 %v526_v2, %v10943_v1  ;;  %v1295_v62 = vadd.f32 %v11093_v3, %v1294_v13  ;;  %v1473_v24 = vmax.f32 %v1292_v63, 0.0 }
 0x176   :  { %v785_v26 = vmax.f32 %v525_v37, 0.0  ;;  %v1476_v54 = vmax.f32 %v1303_v41, 0.0  ;;  %1896 = vmatmul.mubr.bf16.gmra.mrb[184].mxu1 %v1544_v4 }
 0x177   :  { %v786_v33 = vmax.f32 %v527_v43, 0.0  ;;  %v1474_v25 = vmax.f32 %v1295_v62, 0.0 }
 0x178   :  { %v1546_v42 = vpack.c.bf16 %v785_v26, %v783_v19  ;;  %v11228_v15 = vpack.c.bf16 %v1476_v54, %v1475_v23 }
 0x179   :  { %v1547_v52 = vpack.c.bf16 %v786_v33, %v784_v6  ;;  %v11230_v60 = vpack.c.bf16 %v1474_v25, %v1473_v24  ;;  %v10098_v29 = vpop.f32.mrb[80].mxu1  ;;  %v530_v51 = vpop.f32.mrb[80].mxu0 }
 0x17a   :  { %13783 = vst [vmem:[#allocation9_spill] sm:$0xff] %v11228_v15  ;;  %v1316_v27 = vadd.f32 %v10098_v29, %v11093_v3  ;;  %v1307_v2 = vpop.f32.mrb[81].mxu1  ;;  %v531_v13 = vadd.f32 %v530_v51, %v10940_v0  ;;  %v532_v31 = vpop.f32.mrb[81].mxu0 }
 0x17b   :  { %13784 = vst [vmem:[#allocation10_spill] sm:$0xff] %v11230_v60  ;;  %v1308_v37 = vadd.f32 %v11093_v3, %v1307_v2  ;;  %v10099_v4 = vpop.f32.mrb[82].mxu1  ;;  %1903 = vmatprep.mubr.bf16.mxu1 %v1547_v52  ;;  %v533_v63 = vadd.f32 %v532_v31, %v10943_v1  ;;  %v534_v19 = vpop.f32.mrb[82].mxu0 }
 0x17c   :  { %v787_v41 = vmax.f32 %v531_v13, 0.0  ;;  %v1319_v6 = vadd.f32 %v10099_v4, %v11093_v3  ;;  %v1310_v43 = vpop.f32.mrb[83].mxu1  ;;  %v535_v62 = vadd.f32 %v534_v19, %v10940_v0  ;;  %v536_v23 = vpop.f32.mrb[83].mxu0  ;;  %v1479_v24 = vmax.f32 %v1316_v27, 0.0 }
 0x17d   :  { %v788_v26 = vmax.f32 %v533_v63, 0.0  ;;  %v1311_v54 = vadd.f32 %v11093_v3, %v1310_v43  ;;  %v537_v51 = vadd.f32 %v536_v23, %v10943_v1  ;;  %v1477_v52 = vmax.f32 %v1308_v37, 0.0 }
 0x17e   :  { %v1480_v33 = vmax.f32 %v1319_v6, 0.0  ;;  %v789_v25 = vmax.f32 %v535_v62, 0.0  ;;  %1904 = vmatmul.mubr.bf16.gmra.mrb[188].mxu1 %v1546_v42 }
 0x17f   :  { %v1478_v29 = vmax.f32 %v1311_v54, 0.0  ;;  %v790_v2 = vmax.f32 %v537_v51, 0.0 }
 0x180   :  { %v11240_v31 = vpack.c.bf16 %v1480_v33, %v1479_v24  ;;  %v1548_v13 = vpack.c.bf16 %v789_v25, %v787_v41 }
 0x181   :  { %v11242_v4 = vpack.c.bf16 %v1478_v29, %v1477_v52  ;;  %v1549_v15 = vpack.c.bf16 %v790_v2, %v788_v26  ;;  %v10102_v19 = vpop.f32.mrb[84].mxu1  ;;  %v540_v60 = vpop.f32.mrb[84].mxu0 }
 0x182   :  { %13785 = vst [vmem:[#allocation11_spill] sm:$0xff] %v11240_v31  ;;  %v1332_v63 = vadd.f32 %v10102_v19, %v11093_v3  ;;  %v1323_v43 = vpop.f32.mrb[85].mxu1  ;;  %v541_v23 = vadd.f32 %v540_v60, %v10940_v0  ;;  %v542_v27 = vpop.f32.mrb[85].mxu0 }
 0x183   :  { %13786 = vst [vmem:[#allocation12_spill] sm:$0xff] %v11242_v4  ;;  %v1324_v6 = vadd.f32 %v11093_v3, %v1323_v43  ;;  %v10103_v42 = vpop.f32.mrb[86].mxu1  ;;  %v543_v37 = vadd.f32 %v542_v27, %v10943_v1  ;;  %v544_v62 = vpop.f32.mrb[86].mxu0  ;;  %1911 = vmatprep.mubr.bf16.mxu1 %v1549_v15 }
 0x184   :  { %v791_v54 = vmax.f32 %v541_v23, 0.0  ;;  %v1335_v41 = vadd.f32 %v10103_v42, %v11093_v3  ;;  %v1326_v51 = vpop.f32.mrb[87].mxu1  ;;  %v545_v26 = vadd.f32 %v544_v62, %v10940_v0  ;;  %v546_v24 = vpop.f32.mrb[87].mxu0  ;;  %v1483_v52 = vmax.f32 %v1332_v63, 0.0 }
 0x185   :  { %v792_v33 = vmax.f32 %v543_v37, 0.0  ;;  %v1327_v25 = vadd.f32 %v11093_v3, %v1326_v51  ;;  %v547_v60 = vadd.f32 %v546_v24, %v10943_v1  ;;  %v1481_v19 = vmax.f32 %v1324_v6, 0.0 }
 0x186   :  { %v1484_v29 = vmax.f32 %v1335_v41, 0.0  ;;  %v793_v2 = vmax.f32 %v545_v26, 0.0  ;;  %1912 = vmatmul.mubr.bf16.gmra.mrb[192].mxu1 %v1548_v13 }
 0x187   :  { %v1482_v43 = vmax.f32 %v1327_v25, 0.0  ;;  %v794_v27 = vmax.f32 %v547_v60, 0.0 }
 0x188   :  { %v11252_v15 = vpack.c.bf16 %v1484_v29, %v1483_v52  ;;  %v1550_v23 = vpack.c.bf16 %v793_v2, %v791_v54 }
 0x189   :  { %v11254_v42 = vpack.c.bf16 %v1482_v43, %v1481_v19  ;;  %v1551_v31 = vpack.c.bf16 %v794_v27, %v792_v33  ;;  %v10106_v62 = vpop.f32.mrb[88].mxu1  ;;  %v550_v4 = vpop.f32.mrb[88].mxu0 }
 0x18a   :  { %13787 = vst [vmem:[#allocation13_spill] sm:$0xff] %v11252_v15  ;;  %v1348_v37 = vadd.f32 %v10106_v62, %v11093_v3  ;;  %v1339_v51 = vpop.f32.mrb[89].mxu1  ;;  %v551_v24 = vadd.f32 %v550_v4, %v10940_v0  ;;  %v552_v63 = vpop.f32.mrb[89].mxu0 }
 0x18b   :  { %13788 = vst [vmem:[#allocation14_spill] sm:$0xff] %v11254_v42  ;;  %v1340_v41 = vadd.f32 %v11093_v3, %v1339_v51  ;;  %v10107_v13 = vpop.f32.mrb[90].mxu1  ;;  %v553_v6 = vadd.f32 %v552_v63, %v10943_v1  ;;  %v554_v26 = vpop.f32.mrb[90].mxu0  ;;  %1919 = vmatprep.mubr.bf16.mxu1 %v1551_v31 }
 0x18c   :  { %v795_v25 = vmax.f32 %v551_v24, 0.0  ;;  %v1351_v54 = vadd.f32 %v10107_v13, %v11093_v3  ;;  %v1342_v60 = vpop.f32.mrb[91].mxu1  ;;  %v555_v33 = vadd.f32 %v554_v26, %v10940_v0  ;;  %v556_v52 = vpop.f32.mrb[91].mxu0  ;;  %v1487_v19 = vmax.f32 %v1348_v37, 0.0 }
 0x18d   :  { %v796_v29 = vmax.f32 %v553_v6, 0.0  ;;  %v1343_v2 = vadd.f32 %v11093_v3, %v1342_v60  ;;  %v557_v4 = vadd.f32 %v556_v52, %v10943_v1  ;;  %v1485_v62 = vmax.f32 %v1340_v41, 0.0 }
 0x18e   :  { %v1488_v43 = vmax.f32 %v1351_v54, 0.0  ;;  %v797_v27 = vmax.f32 %v555_v33, 0.0  ;;  %1920 = vmatmul.mubr.bf16.gmra.mrb[196].mxu1 %v1550_v23 }
 0x18f   :  { %v1486_v51 = vmax.f32 %v1343_v2, 0.0  ;;  %v798_v63 = vmax.f32 %v557_v4, 0.0 }
 0x190   :  { %v11264_v31 = vpack.c.bf16 %v1488_v43, %v1487_v19  ;;  %v1552_v24 = vpack.c.bf16 %v797_v27, %v795_v25 }
 0x191   :  { %v11266_v13 = vpack.c.bf16 %v1486_v51, %v1485_v62  ;;  %v1553_v15 = vpack.c.bf16 %v798_v63, %v796_v29  ;;  %v10110_v26 = vpop.f32.mrb[92].mxu1  ;;  %v560_v42 = vpop.f32.mrb[92].mxu0 }
 0x192   :  { %13789 = vst [vmem:[#allocation15_spill] sm:$0xff] %v11264_v31  ;;  %v1364_v6 = vadd.f32 %v10110_v26, %v11093_v3  ;;  %v1355_v60 = vpop.f32.mrb[93].mxu1  ;;  %v561_v52 = vadd.f32 %v560_v42, %v10940_v0  ;;  %v562_v37 = vpop.f32.mrb[93].mxu0 }
 0x193   :  { %13790 = vst [vmem:[#allocation16_spill] sm:$0xff] %v11266_v13  ;;  %v1356_v54 = vadd.f32 %v11093_v3, %v1355_v60  ;;  %v10111_v23 = vpop.f32.mrb[94].mxu1  ;;  %v563_v41 = vadd.f32 %v562_v37, %v10943_v1  ;;  %v564_v33 = vpop.f32.mrb[94].mxu0  ;;  %1927 = vmatprep.mubr.bf16.mxu1 %v1553_v15 }
 0x194   :  { %v799_v2 = vmax.f32 %v561_v52, 0.0  ;;  %v1367_v25 = vadd.f32 %v10111_v23, %v11093_v3  ;;  %v1358_v4 = vpop.f32.mrb[95].mxu1  ;;  %v565_v29 = vadd.f32 %v564_v33, %v10940_v0  ;;  %v566_v19 = vpop.f32.mrb[95].mxu0  ;;  %v1491_v62 = vmax.f32 %v1364_v6, 0.0 }
 0x195   :  { %v800_v43 = vmax.f32 %v563_v41, 0.0  ;;  %v1359_v27 = vadd.f32 %v11093_v3, %v1358_v4  ;;  %v567_v42 = vadd.f32 %v566_v19, %v10943_v1  ;;  %v1489_v26 = vmax.f32 %v1356_v54, 0.0 }
 0x196   :  { %v1492_v51 = vmax.f32 %v1367_v25, 0.0  ;;  %v801_v63 = vmax.f32 %v565_v29, 0.0  ;;  %1928 = vmatmul.mubr.bf16.gmra.mrb[200].mxu1 %v1552_v24 }
 0x197   :  { %v1490_v60 = vmax.f32 %v1359_v27, 0.0  ;;  %v802_v37 = vmax.f32 %v567_v42, 0.0 }
 0x198   :  { %v11276_v15 = vpack.c.bf16 %v1492_v51, %v1491_v62  ;;  %v1554_v52 = vpack.c.bf16 %v801_v63, %v799_v2 }
 0x199   :  { %v11278_v23 = vpack.c.bf16 %v1490_v60, %v1489_v26  ;;  %v1555_v31 = vpack.c.bf16 %v802_v37, %v800_v43  ;;  %v10114_v33 = vpop.f32.mrb[96].mxu1  ;;  %v570_v13 = vpop.f32.mrb[96].mxu0 }
 0x19a   :  { %13791 = vst [vmem:[#allocation17_spill] sm:$0xff] %v11276_v15  ;;  %v1380_v41 = vadd.f32 %v10114_v33, %v11093_v3  ;;  %v1371_v4 = vpop.f32.mrb[97].mxu1  ;;  %v571_v19 = vadd.f32 %v570_v13, %v10940_v0  ;;  %v572_v6 = vpop.f32.mrb[97].mxu0 }
 0x19b   :  { %13792 = vst [vmem:[#allocation18_spill] sm:$0xff] %v11278_v23  ;;  %v1372_v25 = vadd.f32 %v11093_v3, %v1371_v4  ;;  %v10115_v24 = vpop.f32.mrb[98].mxu1  ;;  %v573_v54 = vadd.f32 %v572_v6, %v10943_v1  ;;  %v574_v29 = vpop.f32.mrb[98].mxu0  ;;  %1935 = vmatprep.mubr.bf16.mxu1 %v1555_v31 }
 0x19c   :  { %v803_v27 = vmax.f32 %v571_v19, 0.0  ;;  %v1383_v2 = vadd.f32 %v10115_v24, %v11093_v3  ;;  %v1374_v42 = vpop.f32.mrb[99].mxu1  ;;  %v575_v43 = vadd.f32 %v574_v29, %v10940_v0  ;;  %v576_v62 = vpop.f32.mrb[99].mxu0  ;;  %v1495_v26 = vmax.f32 %v1380_v41, 0.0 }
 0x19d   :  { %v804_v51 = vmax.f32 %v573_v54, 0.0  ;;  %v1375_v63 = vadd.f32 %v11093_v3, %v1374_v42  ;;  %v577_v13 = vadd.f32 %v576_v62, %v10943_v1  ;;  %v1493_v33 = vmax.f32 %v1372_v25, 0.0 }
 0x19e   :  { %v1496_v60 = vmax.f32 %v1383_v2, 0.0  ;;  %v805_v37 = vmax.f32 %v575_v43, 0.0  ;;  %1936 = vmatmul.mubr.bf16.gmra.mrb[204].mxu1 %v1554_v52 }
 0x19f   :  { %v1494_v4 = vmax.f32 %v1375_v63, 0.0  ;;  %v806_v6 = vmax.f32 %v577_v13, 0.0 }
 0x1a0   :  { %v11288_v31 = vpack.c.bf16 %v1496_v60, %v1495_v26  ;;  %v1556_v19 = vpack.c.bf16 %v805_v37, %v803_v27 }
 0x1a1   :  { %v11290_v24 = vpack.c.bf16 %v1494_v4, %v1493_v33  ;;  %v1557_v15 = vpack.c.bf16 %v806_v6, %v804_v51  ;;  %v10118_v29 = vpop.f32.mrb[100].mxu1  ;;  %v580_v23 = vpop.f32.mrb[100].mxu0 }
 0x1a2   :  { %13793 = vst [vmem:[#allocation19_spill] sm:$0xff] %v11288_v31  ;;  %v1396_v54 = vadd.f32 %v10118_v29, %v11093_v3  ;;  %v1387_v42 = vpop.f32.mrb[101].mxu1  ;;  %v581_v62 = vadd.f32 %v580_v23, %v10940_v0  ;;  %v582_v41 = vpop.f32.mrb[101].mxu0 }
 0x1a3   :  { %13794 = vst [vmem:[#allocation20_spill] sm:$0xff] %v11290_v24  ;;  %v1388_v2 = vadd.f32 %v11093_v3, %v1387_v42  ;;  %v10119_v52 = vpop.f32.mrb[102].mxu1  ;;  %v583_v25 = vadd.f32 %v582_v41, %v10943_v1  ;;  %v584_v43 = vpop.f32.mrb[102].mxu0  ;;  %1943 = vmatprep.mubr.bf16.mxu1 %v1557_v15 }
 0x1a4   :  { %v807_v63 = vmax.f32 %v581_v62, 0.0  ;;  %v1399_v27 = vadd.f32 %v10119_v52, %v11093_v3  ;;  %v1390_v13 = vpop.f32.mrb[103].mxu1  ;;  %v585_v51 = vadd.f32 %v584_v43, %v10940_v0  ;;  %v586_v26 = vpop.f32.mrb[103].mxu0  ;;  %v1499_v33 = vmax.f32 %v1396_v54, 0.0 }
 0x1a5   :  { %v808_v60 = vmax.f32 %v583_v25, 0.0  ;;  %v1391_v37 = vadd.f32 %v11093_v3, %v1390_v13  ;;  %v587_v23 = vadd.f32 %v586_v26, %v10943_v1  ;;  %v1497_v29 = vmax.f32 %v1388_v2, 0.0  ;;  %v10171_v3 = vld [vmem:[%s13725_s5] ss:$0 sm:$0xff] }
 0x1a6   :  { %v1500_v4 = vmax.f32 %v1399_v27, 0.0  ;;  %v809_v6 = vmax.f32 %v585_v51, 0.0  ;;  %1944 = vmatmul.mubr.bf16.gmra.mrb[208].mxu1 %v1556_v19 }
 0x1a7   :  { %v1498_v42 = vmax.f32 %v1391_v37, 0.0  ;;  %v810_v41 = vmax.f32 %v587_v23, 0.0 }
 0x1a8   :  { %v11300_v15 = vpack.c.bf16 %v1500_v4, %v1499_v33  ;;  %v1558_v62 = vpack.c.bf16 %v809_v6, %v807_v63 }
 0x1a9   :  { %v11302_v52 = vpack.c.bf16 %v1498_v42, %v1497_v29  ;;  %v1559_v31 = vpack.c.bf16 %v810_v41, %v808_v60  ;;  %v10122_v43 = vpop.f32.mrb[104].mxu1  ;;  %v590_v24 = vpop.f32.mrb[104].mxu0 }
 0x1aa   :  { %13795 = vst [vmem:[#allocation21_spill] sm:$0xff] %v11300_v15  ;;  %v1412_v25 = vadd.f32 %v10171_v3, %v10122_v43  ;;  %v1403_v54 = vpop.f32.mrb[105].mxu1  ;;  %v591_v27 = vadd.f32 %v590_v24, %v10940_v0  ;;  %v592_v19 = vpop.f32.mrb[105].mxu0 }
 0x1ab   :  { %13796 = vst [vmem:[#allocation22_spill] sm:$0xff] %v11302_v52  ;;  %v1404_v2 = vadd.f32 %v10171_v3, %v1403_v54  ;;  %v10123_v13 = vpop.f32.mrb[106].mxu1  ;;  %v593_v51 = vadd.f32 %v592_v19, %v10943_v1  ;;  %v594_v26 = vpop.f32.mrb[106].mxu0  ;;  %1951 = vmatprep.mubr.bf16.mxu1 %v1559_v31 }
 0x1ac   :  { %v811_v63 = vmax.f32 %v591_v27, 0.0  ;;  %v1415_v37 = vadd.f32 %v10171_v3, %v10123_v13  ;;  %v1406_v60 = vpop.f32.mrb[107].mxu1  ;;  %v595_v23 = vadd.f32 %v594_v26, %v10940_v0  ;;  %v596_v33 = vpop.f32.mrb[107].mxu0  ;;  %v1503_v42 = vmax.f32 %v1412_v25, 0.0 }
 0x1ad   :  { %v812_v4 = vmax.f32 %v593_v51, 0.0  ;;  %v1407_v6 = vadd.f32 %v10171_v3, %v1406_v60  ;;  %v597_v29 = vadd.f32 %v596_v33, %v10943_v1  ;;  %v1501_v43 = vmax.f32 %v1404_v2, 0.0 }
 0x1ae   :  { %v1504_v41 = vmax.f32 %v1415_v37, 0.0  ;;  %v813_v24 = vmax.f32 %v595_v23, 0.0  ;;  %1952 = vmatmul.mubr.bf16.gmra.mrb[212].mxu1 %v1558_v62 }
 0x1af   :  { %v1502_v54 = vmax.f32 %v1407_v6, 0.0  ;;  %v814_v15 = vmax.f32 %v597_v29, 0.0 }
 0x1b0   :  { %v11311_v19 = vpack.c.bf16 %v1504_v41, %v1503_v42  ;;  %v1560_v31 = vpack.c.bf16 %v813_v24, %v811_v63 }
 0x1b1   :  { %v11313_v27 = vpack.c.bf16 %v1502_v54, %v1501_v43  ;;  %v1561_v13 = vpack.c.bf16 %v814_v15, %v812_v4  ;;  %v11315_v52 = vpop.f32.mrb[108].mxu1  ;;  %v600_v26 = vpop.f32.mrb[108].mxu0 }
 0x1b2   :  { %13797 = vst [vmem:[#allocation23_spill] sm:$0xff] %v11315_v52  ;;  %v1419_v51 = vpop.f32.mrb[109].mxu1  ;;  %v601_v60 = vadd.f32 %v600_v26, %v10940_v0  ;;  %v602_v33 = vpop.f32.mrb[109].mxu0  ;;  %v11324_v26 = vld [vmem:[%s13727_s7] ss:$0 sm:$0xff] }
 0x1b3   :  { %v1420_v25 = vadd.f32 %v10171_v3, %v1419_v51  ;;  %v10127_v37 = vpop.f32.mrb[110].mxu1  ;;  %v603_v62 = vadd.f32 %v602_v33, %v10943_v1  ;;  %v604_v2 = vpop.f32.mrb[110].mxu0  ;;  %1959 = vmatprep.mubr.bf16.mxu1 %v1561_v13 }
 0x1b4   :  { %v815_v23 = vmax.f32 %v601_v60, 0.0  ;;  %v1422_v6 = vpop.f32.mrb[111].mxu1  ;;  %v605_v63 = vadd.f32 %v604_v2, %v10940_v0  ;;  %v606_v29 = vpop.f32.mrb[111].mxu0 }
 0x1b5   :  { %v816_v42 = vmax.f32 %v603_v62, 0.0  ;;  %v1423_v15 = vadd.f32 %v10171_v3, %v1422_v6  ;;  %v607_v4 = vadd.f32 %v606_v29, %v10943_v1  ;;  %v1505_v24 = vmax.f32 %v1420_v25, 0.0 }
 0x1b6   :  { %v817_v41 = vmax.f32 %v605_v63, 0.0  ;;  %1960 = vmatmul.mubr.bf16.gmra.mrb[216].mxu1 %v1560_v31 }
 0x1b7   :  { %v1506_v43 = vmax.f32 %v1423_v15, 0.0  ;;  %v818_v54 = vmax.f32 %v607_v4, 0.0 }
 0x1b8   :  { %v1562_v13 = vpack.c.bf16 %v817_v41, %v815_v23 }
 0x1b9   :  { %v11326_v51 = vpack.c.bf16 %v1506_v43, %v1505_v24  ;;  %v1563_v60 = vpack.c.bf16 %v818_v54, %v816_v42  ;;  %v1753_v33 = vpop.f32.mrb[112].mxu1  ;;  %v610_v37 = vpop.f32.mrb[112].mxu0 }
 0x1ba   :  { %v1754_v3 = vadd.f32 %v11324_v26, %v1753_v33  ;;  %v1755_v62 = vpop.f32.mrb[113].mxu1  ;;  %v611_v2 = vadd.f32 %v610_v37, %v10940_v0  ;;  %v612_v31 = vpop.f32.mrb[113].mxu0 }
 0x1bb   :  { %13798 = vst [vmem:[#allocation24_spill] sm:$0xff] %v11326_v51  ;;  %v1756_v25 = vpop.f32.mrb[114].mxu1  ;;  %v613_v6 = vadd.f32 %v612_v31, %v10943_v1  ;;  %v614_v63 = vpop.f32.mrb[114].mxu0  ;;  %1967 = vmatprep.mubr.bf16.mxu1 %v1563_v60 }
 0x1bc   :  { %v819_v29 = vmax.f32 %v611_v2, 0.0  ;;  %v1757_v15 = vadd.f32 %v11324_v26, %v1756_v25  ;;  %v1758_v23 = vpop.f32.mrb[115].mxu1  ;;  %v615_v4 = vadd.f32 %v614_v63, %v10940_v0  ;;  %v616_v42 = vpop.f32.mrb[115].mxu0  ;;  %v2055_v43 = vmax.f32 %v1754_v3, 0.0 }
 0x1bd   :  { %v820_v41 = vmax.f32 %v613_v6, 0.0  ;;  %v617_v24 = vadd.f32 %v616_v42, %v10943_v1 }
 0x1be   :  { %v2056_v54 = vmax.f32 %v1757_v15, 0.0  ;;  %v821_v33 = vmax.f32 %v615_v4, 0.0  ;;  %1968 = vmatmul.mubr.bf16.gmra.mrb[220].mxu1 %v1562_v13 }
 0x1bf   :  { %v822_v37 = vmax.f32 %v617_v24, 0.0 }
 0x1c0   :  { %v2130_v62 = vpack.c.bf16 %v2056_v54, %v2055_v43  ;;  %v1564_v51 = vpack.c.bf16 %v821_v33, %v819_v29 }
 0x1c1   :  { %v1565_v31 = vpack.c.bf16 %v822_v37, %v820_v41  ;;  %v1761_v52 = vpop.f32.mrb[116].mxu1 }
 0x1c2   :  { %v1762_v60 = vadd.f32 %v11324_v26, %v1761_v52  ;;  %v1763_v2 = vpop.f32.mrb[117].mxu1  ;;  %2374 = vmatmul.mubr.bf16.vlgmr.msra.gmra.mrb[116].mxu0 %v2130_v62 }
 0x1c3   :  { %v1764_v25 = vpop.f32.mrb[118].mxu1  ;;  %2381 = vmatprep.mubr.bf16.mxu0 %v11103_v46  ;;  %1975 = vmatprep.mubr.bf16.mxu1 %v1565_v31 }
 0x1c4   :  { %v1765_v6 = vadd.f32 %v11324_v26, %v1764_v25  ;;  %v1766_v63 = vpop.f32.mrb[119].mxu1  ;;  %v2057_v3 = vmax.f32 %v1762_v60, 0.0 }
 0x1c6   :  { %v2058_v15 = vmax.f32 %v1765_v6, 0.0  ;;  %1976 = vmatmul.mubr.bf16.gmra.mrb[224].mxu1 %v1564_v51 }
 0x1c7   :  { %1983 = vmatprep.mubr.bf16.mxu1 %v10978_v40 }
 0x1c8   :  { %v2131_v13 = vpack.c.bf16 %v2058_v15, %v2057_v3 }
 0x1c9   :  { %v1769_v29 = vpop.f32.mrb[120].mxu1 }
 0x1ca   :  { %v1770_v23 = vadd.f32 %v11324_v26, %v1769_v29  ;;  %v1771_v4 = vpop.f32.mrb[121].mxu1  ;;  %2382 = vmatmul.mubr.bf16.gmra.mrb[120].mxu0 %v2131_v13 }
 0x1cb   :  { %v1772_v52 = vpop.f32.mrb[122].mxu1  ;;  %2389 = vmatprep.mubr.bf16.mxu0 %v11119_v30 }
 0x1cc   :  { %v1773_v46 = vadd.f32 %v11324_v26, %v1772_v52  ;;  %v1774_v42 = vpop.f32.mrb[123].mxu1  ;;  %v2059_v41 = vmax.f32 %v1770_v23, 0.0 }
 0x1ce   :  { %v2060_v24 = vmax.f32 %v1773_v46, 0.0  ;;  %1984 = vmatmul.mubr.bf16.gmra.mrb[228].mxu1 %v10973_v35 }
 0x1cf   :  { %1991 = vmatprep.mubr.bf16.mxu1 %v10992_v12 }
 0x1d0   :  { %v2132_v51 = vpack.c.bf16 %v2060_v24, %v2059_v41 }
 0x1d1   :  { %v1777_v40 = vpop.f32.mrb[124].mxu1 }
 0x1d2   :  { %v1778_v43 = vadd.f32 %v11324_v26, %v1777_v40  ;;  %v1779_v54 = vpop.f32.mrb[125].mxu1  ;;  %2390 = vmatmul.mubr.bf16.gmra.mrb[124].mxu0 %v2132_v51 }
 0x1d3   :  { %v1780_v33 = vpop.f32.mrb[126].mxu1  ;;  %2397 = vmatprep.mubr.bf16.mxu0 %v11117_v28 }
 0x1d4   :  { %v1781_v30 = vadd.f32 %v11324_v26, %v1780_v33  ;;  %v1782_v37 = vpop.f32.mrb[127].mxu1  ;;  %v2061_v62 = vmax.f32 %v1778_v43, 0.0 }
 0x1d6   :  { %v2062_v31 = vmax.f32 %v1781_v30, 0.0  ;;  %1992 = vmatmul.mubr.bf16.gmra.mrb[232].mxu1 %v10990_v8 }
 0x1d7   :  { %1999 = vmatprep.mubr.bf16.mxu1 %v11004_v38 }
 0x1d8   :  { %v2133_v35 = vpack.c.bf16 %v2062_v31, %v2061_v62 }
 0x1d9   :  { %v1785_v12 = vpop.f32.mrb[128].mxu1 }
 0x1da   :  { %v1786_v60 = vadd.f32 %v11324_v26, %v1785_v12  ;;  %v1787_v2 = vpop.f32.mrb[129].mxu1  ;;  %2398 = vmatmul.mubr.bf16.gmra.mrb[128].mxu0 %v2133_v35 }
 0x1db   :  { %v1788_v25 = vpop.f32.mrb[130].mxu1  ;;  %2405 = vmatprep.mubr.bf16.mxu0 %v11131_v18  ;;  %v703_v2 = vadd.f32 %v11084_v45, %v10943_v1 }
 0x1dc   :  { %v1789_v28 = vadd.f32 %v11324_v26, %v1788_v25  ;;  %v1790_v6 = vpop.f32.mrb[131].mxu1  ;;  %v2063_v63 = vmax.f32 %v1786_v60, 0.0 }
 0x1de   :  { %v2064_v3 = vmax.f32 %v1789_v28, 0.0  ;;  %2000 = vmatmul.mubr.bf16.gmra.mrb[236].mxu1 %v11002_v36 }
 0x1df   :  { %2007 = vmatprep.mubr.bf16.mxu1 %v11020_v14 }
 0x1e0   :  { %v2134_v8 = vpack.c.bf16 %v2064_v3, %v2063_v63 }
 0x1e1   :  { %v1793_v38 = vpop.f32.mrb[132].mxu1 }
 0x1e2   :  { %v1794_v15 = vadd.f32 %v11324_v26, %v1793_v38  ;;  %v1795_v13 = vpop.f32.mrb[133].mxu1  ;;  %2406 = vmatmul.mubr.bf16.gmra.mrb[132].mxu0 %v2134_v8  ;;  %v701_v8 = vadd.f32 %v11078_v39, %v10940_v0 }
 0x1e3   :  { %v1796_v29 = vpop.f32.mrb[134].mxu1  ;;  %2413 = vmatprep.mubr.bf16.mxu0 %v11129_v16 }
 0x1e4   :  { %v1797_v18 = vadd.f32 %v11324_v26, %v1796_v29  ;;  %v1798_v23 = vpop.f32.mrb[135].mxu1  ;;  %v2065_v4 = vmax.f32 %v1794_v15, 0.0 }
 0x1e6   :  { %v2066_v52 = vmax.f32 %v1797_v18, 0.0  ;;  %2008 = vmatmul.mubr.bf16.gmra.mrb[240].mxu1 %v11018_v11 }
 0x1e7   :  { %2015 = vmatprep.mubr.bf16.mxu1 %v11035_v47 }
 0x1e8   :  { %v2135_v36 = vpack.c.bf16 %v2066_v52, %v2065_v4 }
 0x1e9   :  { %v1801_v14 = vpop.f32.mrb[136].mxu1 }
 0x1ea   :  { %v1802_v46 = vadd.f32 %v11324_v26, %v1801_v14  ;;  %v1803_v42 = vpop.f32.mrb[137].mxu1  ;;  %2414 = vmatmul.mubr.bf16.gmra.mrb[136].mxu0 %v2135_v36 }
 0x1eb   :  { %v1804_v41 = vpop.f32.mrb[138].mxu1  ;;  %2421 = vmatprep.mubr.bf16.mxu0 %v11146_v7 }
 0x1ec   :  { %v1805_v16 = vadd.f32 %v11324_v26, %v1804_v41  ;;  %v1806_v24 = vpop.f32.mrb[139].mxu1  ;;  %v2067_v51 = vmax.f32 %v1802_v46, 0.0 }
 0x1ee   :  { %v2068_v40 = vmax.f32 %v1805_v16, 0.0  ;;  %2016 = vmatmul.mubr.bf16.gmra.mrb[244].mxu1 %v11030_v44 }
 0x1ef   :  { %2023 = vmatprep.mubr.bf16.mxu1 %v11048_v22 }
 0x1f0   :  { %v2136_v11 = vpack.c.bf16 %v2068_v40, %v2067_v51 }
 0x1f1   :  { %v1809_v47 = vpop.f32.mrb[140].mxu1 }
 0x1f2   :  { %v1810_v43 = vadd.f32 %v11324_v26, %v1809_v47  ;;  %v1811_v54 = vpop.f32.mrb[141].mxu1  ;;  %2422 = vmatmul.mubr.bf16.gmra.mrb[140].mxu0 %v2136_v11 }
 0x1f3   :  { %v1812_v33 = vpop.f32.mrb[142].mxu1  ;;  %2429 = vmatprep.mubr.bf16.mxu0 %v11144_v5 }
 0x1f4   :  { %v1813_v7 = vadd.f32 %v11324_v26, %v1812_v33  ;;  %v1814_v30 = vpop.f32.mrb[143].mxu1  ;;  %v2069_v37 = vmax.f32 %v1810_v43, 0.0 }
 0x1f6   :  { %v2070_v62 = vmax.f32 %v1813_v7, 0.0  ;;  %2024 = vmatmul.mubr.bf16.gmra.mrb[248].mxu1 %v11046_v20 }
 0x1f7   :  { %2031 = vmatprep.mubr.bf16.mxu1 %v11064_v59  ;;  %v856_v59 = vmax.f32 %v703_v2, 0.0 }
 0x1f8   :  { %v2137_v44 = vpack.c.bf16 %v2070_v62, %v2069_v37 }
 0x1f9   :  { %v1817_v22 = vpop.f32.mrb[144].mxu1  ;;  %v1583_v38 = vpack.c.bf16 %v856_v59, %v856_v59 }
 0x1fa   :  { %v1818_v31 = vadd.f32 %v11324_v26, %v1817_v22  ;;  %v1819_v35 = vpop.f32.mrb[145].mxu1  ;;  %2430 = vmatmul.mubr.bf16.gmra.mrb[144].mxu0 %v2137_v44 }
 0x1fb   :  { %v1820_v12 = vpop.f32.mrb[146].mxu1  ;;  %2437 = vmatprep.mubr.bf16.mxu0 %v11158_v58 }
 0x1fc   :  { %v1821_v5 = vadd.f32 %v11324_v26, %v1820_v12  ;;  %v1822_v60 = vpop.f32.mrb[147].mxu1  ;;  %v2071_v25 = vmax.f32 %v1818_v31, 0.0 }
 0x1fe   :  { %v2072_v28 = vmax.f32 %v1821_v5, 0.0  ;;  %2032 = vmatmul.mubr.bf16.gmra.mrb[252].mxu1 %v11062_v57 }
 0x1ff   :  { %2039 = vmatprep.mubr.bf16.mxu1 %v11076_v34  ;;  %v855_v34 = vmax.f32 %v701_v8, 0.0 }
 0x200   :  { %v2138_v20 = vpack.c.bf16 %v2072_v28, %v2071_v25 }
 0x201   :  { %v1825_v6 = vpop.f32.mrb[148].mxu1  ;;  %v1582_v0 = vpack.c.bf16 %v855_v34, %v855_v34 }
 0x202   :  { %v1826_v63 = vadd.f32 %v11324_v26, %v1825_v6  ;;  %v1827_v3 = vpop.f32.mrb[149].mxu1  ;;  %2438 = vmatmul.mubr.bf16.gmra.mrb[148].mxu0 %v2138_v20 }
 0x203   :  { %v1828_v58 = vpop.f32.mrb[150].mxu1  ;;  %2445 = vmatprep.mubr.bf16.mxu0 %v11156_v55 }
 0x204   :  { %v1829_v1 = vadd.f32 %v11324_v26, %v1828_v58  ;;  %v1830_v45 = vpop.f32.mrb[151].mxu1  ;;  %v2073_v57 = vmax.f32 %v1826_v63, 0.0 }
 0x206   :  { %v2074_v15 = vmax.f32 %v1829_v1, 0.0  ;;  %2040 = vmatmul.mubr.bf16.gmra.mrb[0].mxu1 %v11074_v32 }
 0x207   :  { %2047 = vmatprep.mubr.bf16.mxu1 %v1583_v38 }
 0x208   :  { %v2139_v13 = vpack.c.bf16 %v2074_v15, %v2073_v57 }
 0x209   :  { %v1833_v29 = vpop.f32.mrb[152].mxu1 }
 0x20a   :  { %v1834_v18 = vadd.f32 %v11324_v26, %v1833_v29  ;;  %v1835_v23 = vpop.f32.mrb[153].mxu1  ;;  %2446 = vmatmul.mubr.bf16.gmra.mrb[152].mxu0 %v2139_v13 }
 0x20b   :  { %v1836_v55 = vpop.f32.mrb[154].mxu1  ;;  %2453 = vmatprep.mubr.bf16.mxu0 %v11170_v53 }
 0x20c   :  { %v1837_v39 = vadd.f32 %v11324_v26, %v1836_v55  ;;  %v1838_v4 = vpop.f32.mrb[155].mxu1  ;;  %v2075_v52 = vmax.f32 %v1834_v18, 0.0 }
 0x20e   :  { %v2076_v36 = vmax.f32 %v1837_v39, 0.0  ;;  %2048 = vmatmul.mubr.bf16.gmra.mrb[4].mxu1 %v1582_v0 }
 0x210   :  { %v2140_v14 = vpack.c.bf16 %v2076_v36, %v2075_v52 }
 0x211   :  { %v1841_v32 = vpop.f32.mrb[156].mxu1 }
 0x212   :  { %v1842_v46 = vadd.f32 %v11324_v26, %v1841_v32  ;;  %v1843_v42 = vpop.f32.mrb[157].mxu1  ;;  %2454 = vmatmul.mubr.bf16.gmra.mrb[156].mxu0 %v2140_v14 }
 0x213   :  { %v1844_v41 = vpop.f32.mrb[158].mxu1  ;;  %2461 = vmatprep.mubr.bf16.mxu0 %v11168_v50 }
 0x214   :  { %v1845_v16 = vadd.f32 %v11324_v26, %v1844_v41  ;;  %v1846_v24 = vpop.f32.mrb[159].mxu1  ;;  %v2077_v53 = vmax.f32 %v1842_v46, 0.0 }
 0x216   :  { %v2078_v51 = vmax.f32 %v1845_v16, 0.0 }
 0x218   :  { %v2141_v40 = vpack.c.bf16 %v2078_v51, %v2077_v53 }
 0x219   :  { %v1849_v11 = vpop.f32.mrb[160].mxu1 }
 0x21a   :  { %v1850_v47 = vadd.f32 %v11324_v26, %v1849_v11  ;;  %v1851_v43 = vpop.f32.mrb[161].mxu1  ;;  %2462 = vmatmul.mubr.bf16.gmra.mrb[160].mxu0 %v2141_v40 }
 0x21b   :  { %v1852_v54 = vpop.f32.mrb[162].mxu1  ;;  %2469 = vmatprep.mubr.bf16.mxu0 %v11182_v56 }
 0x21c   :  { %v1853_v33 = vadd.f32 %v11324_v26, %v1852_v54  ;;  %v1854_v7 = vpop.f32.mrb[163].mxu1  ;;  %v2079_v30 = vmax.f32 %v1850_v47, 0.0 }
 0x21e   :  { %v2080_v37 = vmax.f32 %v1853_v33, 0.0 }
 0x220   :  { %v2142_v50 = vpack.c.bf16 %v2080_v37, %v2079_v30 }
 0x221   :  { %v1857_v62 = vpop.f32.mrb[164].mxu1 }
 0x222   :  { %v1858_v44 = vadd.f32 %v11324_v26, %v1857_v62  ;;  %v1859_v22 = vpop.f32.mrb[165].mxu1  ;;  %2470 = vmatmul.mubr.bf16.gmra.mrb[164].mxu0 %v2142_v50 }
 0x223   :  { %v1860_v31 = vpop.f32.mrb[166].mxu1  ;;  %2477 = vmatprep.mubr.bf16.mxu0 %v11180_v49 }
 0x224   :  { %v1861_v35 = vadd.f32 %v11324_v26, %v1860_v31  ;;  %v1862_v12 = vpop.f32.mrb[167].mxu1  ;;  %v2081_v5 = vmax.f32 %v1858_v44, 0.0 }
 0x226   :  { %v2082_v60 = vmax.f32 %v1861_v35, 0.0 }
 0x228   :  { %v2143_v56 = vpack.c.bf16 %v2082_v60, %v2081_v5  ;;  %v13799_v60 = vld [vmem:[#allocation10_spill] sm:$0xff] }
 0x229   :  { %v1865_v2 = vpop.f32.mrb[168].mxu1 }
 0x22a   :  { %v1866_v25 = vadd.f32 %v11324_v26, %v1865_v2  ;;  %v1867_v28 = vpop.f32.mrb[169].mxu1  ;;  %2478 = vmatmul.mubr.bf16.gmra.mrb[168].mxu0 %v2143_v56 }
 0x22b   :  { %v1868_v20 = vpop.f32.mrb[170].mxu1  ;;  %2485 = vmatprep.mubr.bf16.mxu0 %v11194_v10 }
 0x22c   :  { %v1869_v59 = vadd.f32 %v11324_v26, %v1868_v20  ;;  %v1870_v6 = vpop.f32.mrb[171].mxu1  ;;  %v2083_v63 = vmax.f32 %v1866_v25, 0.0 }
 0x22e   :  { %v2084_v3 = vmax.f32 %v1869_v59, 0.0 }
 0x230   :  { %v2144_v49 = vpack.c.bf16 %v2084_v3, %v2083_v63  ;;  %v13800_v3 = vld [vmem:[#allocation9_spill] sm:$0xff] }
 0x231   :  { %v1873_v58 = vpop.f32.mrb[172].mxu1 }
 0x232   :  { %v1874_v8 = vadd.f32 %v11324_v26, %v1873_v58  ;;  %v1875_v1 = vpop.f32.mrb[173].mxu1  ;;  %2486 = vmatmul.mubr.bf16.gmra.mrb[172].mxu0 %v2144_v49 }
 0x233   :  { %v1876_v45 = vpop.f32.mrb[174].mxu1  ;;  %2493 = vmatprep.mubr.bf16.mxu0 %v11192_v61 }
 0x234   :  { %v1877_v38 = vadd.f32 %v11324_v26, %v1876_v45  ;;  %v1878_v57 = vpop.f32.mrb[175].mxu1  ;;  %v2085_v15 = vmax.f32 %v1874_v8, 0.0 }
 0x236   :  { %v2086_v34 = vmax.f32 %v1877_v38, 0.0 }
 0x238   :  { %v2145_v10 = vpack.c.bf16 %v2086_v34, %v2085_v15 }
 0x239   :  { %v1881_v13 = vpop.f32.mrb[176].mxu1 }
 0x23a   :  { %v1882_v29 = vadd.f32 %v11324_v26, %v1881_v13  ;;  %v1883_v18 = vpop.f32.mrb[177].mxu1  ;;  %2494 = vmatmul.mubr.bf16.gmra.mrb[176].mxu0 %v2145_v10  ;;  %v13801_v10 = vld [vmem:[#allocation12_spill] sm:$0xff] }
 0x23b   :  { %v1884_v23 = vpop.f32.mrb[178].mxu1  ;;  %2501 = vmatprep.mubr.bf16.mxu0 %v11206_v9 }
 0x23c   :  { %v1885_v55 = vadd.f32 %v11324_v26, %v1884_v23  ;;  %v1886_v0 = vpop.f32.mrb[179].mxu1  ;;  %v2087_v39 = vmax.f32 %v1882_v29, 0.0 }
 0x23e   :  { %v2088_v4 = vmax.f32 %v1885_v55, 0.0 }
 0x240   :  { %v2146_v61 = vpack.c.bf16 %v2088_v4, %v2087_v39 }
 0x241   :  { %v1889_v52 = vpop.f32.mrb[180].mxu1 }
 0x242   :  { %v1890_v36 = vadd.f32 %v11324_v26, %v1889_v52  ;;  %v1891_v14 = vpop.f32.mrb[181].mxu1  ;;  %2502 = vmatmul.mubr.bf16.gmra.mrb[180].mxu0 %v2146_v61  ;;  %v13802_v52 = vld [vmem:[#allocation11_spill] sm:$0xff] }
 0x243   :  { %v1892_v32 = vpop.f32.mrb[182].mxu1  ;;  %2509 = vmatprep.mubr.bf16.mxu0 %v11204_v17 }
 0x244   :  { %v1893_v46 = vadd.f32 %v11324_v26, %v1892_v32  ;;  %v1894_v42 = vpop.f32.mrb[183].mxu1  ;;  %v2089_v41 = vmax.f32 %v1890_v36, 0.0 }
 0x246   :  { %v2090_v16 = vmax.f32 %v1893_v46, 0.0 }
 0x248   :  { %v2147_v9 = vpack.c.bf16 %v2090_v16, %v2089_v41 }
 0x249   :  { %v1897_v24 = vpop.f32.mrb[184].mxu1 }
 0x24a   :  { %v1898_v53 = vadd.f32 %v11324_v26, %v1897_v24  ;;  %v1899_v51 = vpop.f32.mrb[185].mxu1  ;;  %2510 = vmatmul.mubr.bf16.gmra.mrb[184].mxu0 %v2147_v9 }
 0x24b   :  { %v1900_v40 = vpop.f32.mrb[186].mxu1  ;;  %2517 = vmatprep.mubr.bf16.mxu0 %v11218_v48 }
 0x24c   :  { %v1901_v11 = vadd.f32 %v11324_v26, %v1900_v40  ;;  %v1902_v47 = vpop.f32.mrb[187].mxu1  ;;  %v2091_v43 = vmax.f32 %v1898_v53, 0.0  ;;  %v13803_v53 = vld [vmem:[#allocation14_spill] sm:$0xff] }
 0x24e   :  { %v2092_v54 = vmax.f32 %v1901_v11, 0.0 }
 0x250   :  { %v2148_v17 = vpack.c.bf16 %v2092_v54, %v2091_v43 }
 0x251   :  { %v1905_v33 = vpop.f32.mrb[188].mxu1 }
 0x252   :  { %v1906_v7 = vadd.f32 %v11324_v26, %v1905_v33  ;;  %v1907_v30 = vpop.f32.mrb[189].mxu1  ;;  %2518 = vmatmul.mubr.bf16.gmra.mrb[188].mxu0 %v2148_v17 }
 0x253   :  { %v1908_v37 = vpop.f32.mrb[190].mxu1  ;;  %2525 = vmatprep.mubr.bf16.mxu0 %v11216_v21  ;;  %v13804_v30 = vld [vmem:[#allocation13_spill] sm:$0xff] }
 0x254   :  { %v1909_v50 = vadd.f32 %v11324_v26, %v1908_v37  ;;  %v1910_v62 = vpop.f32.mrb[191].mxu1  ;;  %v2093_v44 = vmax.f32 %v1906_v7, 0.0 }
 0x256   :  { %v2094_v22 = vmax.f32 %v1909_v50, 0.0 }
 0x258   :  { %v2149_v48 = vpack.c.bf16 %v2094_v22, %v2093_v44 }
 0x259   :  { %v1913_v31 = vpop.f32.mrb[192].mxu1 }
 0x25a   :  { %v1914_v35 = vadd.f32 %v11324_v26, %v1913_v31  ;;  %v1915_v12 = vpop.f32.mrb[193].mxu1  ;;  %2526 = vmatmul.mubr.bf16.gmra.mrb[192].mxu0 %v2149_v48 }
 0x25b   :  { %v1916_v5 = vpop.f32.mrb[194].mxu1  ;;  %2533 = vmatprep.mubr.bf16.mxu0 %v13799_v60 }
 0x25c   :  { %v2095_v56 = vmax.f32 %v1914_v35, 0.0  ;;  %v1917_v2 = vadd.f32 %v11324_v26, %v1916_v5  ;;  %v1918_v25 = vpop.f32.mrb[195].mxu1  ;;  %v13805_v5 = vld [vmem:[#allocation16_spill] sm:$0xff] }
 0x25e   :  { %v2096_v28 = vmax.f32 %v1917_v2, 0.0 }
 0x260   :  { %v2150_v21 = vpack.c.bf16 %v2096_v28, %v2095_v56 }
 0x261   :  { %v1921_v20 = vpop.f32.mrb[196].mxu1 }
 0x262   :  { %v1922_v59 = vadd.f32 %v11324_v26, %v1921_v20  ;;  %v1923_v6 = vpop.f32.mrb[197].mxu1  ;;  %2534 = vmatmul.mubr.bf16.gmra.mrb[196].mxu0 %v2150_v21 }
 0x263   :  { %v1924_v63 = vpop.f32.mrb[198].mxu1  ;;  %2541 = vmatprep.mubr.bf16.mxu0 %v13800_v3  ;;  %v11437_v3 = vld [vmem:[%s13729_s9] ss:$0 sm:$0xff] }
 0x264   :  { %v2097_v49 = vmax.f32 %v1922_v59, 0.0  ;;  %v1925_v58 = vadd.f32 %v11324_v26, %v1924_v63  ;;  %v1926_v8 = vpop.f32.mrb[199].mxu1  ;;  %v13806_v63 = vld [vmem:[#allocation15_spill] sm:$0xff] }
 0x266   :  { %v2098_v1 = vmax.f32 %v1925_v58, 0.0 }
 0x268   :  { %v2151_v45 = vpack.c.bf16 %v2098_v1, %v2097_v49 }
 0x269   :  { %v1929_v38 = vpop.f32.mrb[200].mxu1 }
 0x26a   :  { %v1930_v57 = vadd.f32 %v11324_v26, %v1929_v38  ;;  %v1931_v15 = vpop.f32.mrb[201].mxu1  ;;  %2542 = vmatmul.mubr.bf16.gmra.mrb[200].mxu0 %v2151_v45 }
 0x26b   :  { %v1932_v34 = vpop.f32.mrb[202].mxu1  ;;  %2549 = vmatprep.mubr.bf16.mxu0 %v13801_v10 }
 0x26c   :  { %v2099_v13 = vmax.f32 %v1930_v57, 0.0  ;;  %v1933_v29 = vadd.f32 %v11324_v26, %v1932_v34  ;;  %v1934_v18 = vpop.f32.mrb[203].mxu1  ;;  %v11444_v34 = vld [vmem:[%s13730_s10] ss:$0 sm:$0xff] }
 0x26e   :  { %v2100_v23 = vmax.f32 %v1933_v29, 0.0 }
 0x270   :  { %v2152_v55 = vpack.c.bf16 %v2100_v23, %v2099_v13 }
 0x271   :  { %v1937_v0 = vpop.f32.mrb[204].mxu1 }
 0x272   :  { %v1938_v39 = vadd.f32 %v11324_v26, %v1937_v0  ;;  %v1939_v4 = vpop.f32.mrb[205].mxu1  ;;  %2550 = vmatmul.mubr.bf16.gmra.mrb[204].mxu0 %v2152_v55 }
 0x273   :  { %v1940_v61 = vpop.f32.mrb[206].mxu1  ;;  %2557 = vmatprep.mubr.bf16.mxu0 %v13802_v52  ;;  %v13807_v52 = vld [vmem:[#allocation18_spill] sm:$0xff] }
 0x274   :  { %v2101_v36 = vmax.f32 %v1938_v39, 0.0  ;;  %v1941_v14 = vadd.f32 %v11324_v26, %v1940_v61  ;;  %v1942_v32 = vpop.f32.mrb[207].mxu1 }
 0x276   :  { %v2102_v46 = vmax.f32 %v1941_v14, 0.0 }
 0x278   :  { %v2153_v42 = vpack.c.bf16 %v2102_v46, %v2101_v36 }
 0x279   :  { %v1945_v41 = vpop.f32.mrb[208].mxu1 }
 0x27a   :  { %v1946_v16 = vadd.f32 %v11324_v26, %v1945_v41  ;;  %v1947_v9 = vpop.f32.mrb[209].mxu1  ;;  %2558 = vmatmul.mubr.bf16.gmra.mrb[208].mxu0 %v2153_v42 }
 0x27b   :  { %v1948_v24 = vpop.f32.mrb[210].mxu1  ;;  %2565 = vmatprep.mubr.bf16.mxu0 %v13803_v53 }
 0x27c   :  { %v2103_v51 = vmax.f32 %v1946_v16, 0.0  ;;  %v1949_v40 = vadd.f32 %v11324_v26, %v1948_v24  ;;  %v1950_v11 = vpop.f32.mrb[211].mxu1 }
 0x27e   :  { %v2104_v47 = vmax.f32 %v1949_v40, 0.0 }
 0x280   :  { %v2154_v43 = vpack.c.bf16 %v2104_v47, %v2103_v51 }
 0x281   :  { %v1953_v54 = vpop.f32.mrb[212].mxu1 }
 0x282   :  { %v1954_v17 = vadd.f32 %v11324_v26, %v1953_v54  ;;  %v1955_v33 = vpop.f32.mrb[213].mxu1  ;;  %2566 = vmatmul.mubr.bf16.gmra.mrb[212].mxu0 %v2154_v43 }
 0x283   :  { %v1956_v7 = vpop.f32.mrb[214].mxu1  ;;  %2573 = vmatprep.mubr.bf16.mxu0 %v13804_v30  ;;  %v13808_v30 = vld [vmem:[#allocation17_spill] sm:$0xff] }
 0x284   :  { %v2105_v37 = vmax.f32 %v1954_v17, 0.0  ;;  %v1957_v50 = vadd.f32 %v11324_v26, %v1956_v7  ;;  %v1958_v62 = vpop.f32.mrb[215].mxu1 }
 0x286   :  { %v2106_v44 = vmax.f32 %v1957_v50, 0.0 }
 0x288   :  { %v2155_v22 = vpack.c.bf16 %v2106_v44, %v2105_v37 }
 0x289   :  { %v1961_v48 = vpop.f32.mrb[216].mxu1 }
 0x28a   :  { %v1962_v31 = vadd.f32 %v11324_v26, %v1961_v48  ;;  %v1963_v35 = vpop.f32.mrb[217].mxu1  ;;  %2574 = vmatmul.mubr.bf16.gmra.mrb[216].mxu0 %v2155_v22 }
 0x28b   :  { %v1964_v12 = vpop.f32.mrb[218].mxu1  ;;  %2581 = vmatprep.mubr.bf16.mxu0 %v13805_v5 }
 0x28c   :  { %v2107_v60 = vmax.f32 %v1962_v31, 0.0  ;;  %v1965_v56 = vadd.f32 %v11324_v26, %v1964_v12  ;;  %v1966_v2 = vpop.f32.mrb[219].mxu1 }
 0x28e   :  { %v2108_v25 = vmax.f32 %v1965_v56, 0.0 }
 0x290   :  { %v2156_v28 = vpack.c.bf16 %v2108_v25, %v2107_v60 }
 0x291   :  { %v1969_v21 = vpop.f32.mrb[220].mxu1 }
 0x292   :  { %v1970_v20 = vadd.f32 %v11324_v26, %v1969_v21  ;;  %v1971_v59 = vpop.f32.mrb[221].mxu1  ;;  %2582 = vmatmul.mubr.bf16.gmra.mrb[220].mxu0 %v2156_v28 }
 0x293   :  { %v1972_v6 = vpop.f32.mrb[222].mxu1  ;;  %2589 = vmatprep.mubr.bf16.mxu0 %v13806_v63  ;;  %v13809_v63 = vld [vmem:[#allocation20_spill] sm:$0xff] }
 0x294   :  { %v2109_v49 = vmax.f32 %v1970_v20, 0.0  ;;  %v1973_v58 = vadd.f32 %v11324_v26, %v1972_v6  ;;  %v1974_v8 = vpop.f32.mrb[223].mxu1 }
 0x295   :  { %v2375_v1 = vpop.f32.mrb[116].mxu0 }
 0x296   :  { %v2110_v45 = vmax.f32 %v1973_v58, 0.0  ;;  %v2376_v38 = vadd.f32 %v11437_v3, %v2375_v1  ;;  %v2377_v57 = vpop.f32.mrb[117].mxu0 }
 0x297   :  { %v2378_v15 = vpop.f32.mrb[118].mxu0 }
 0x298   :  { %v2157_v10 = vpack.c.bf16 %v2110_v45, %v2109_v49  ;;  %v2677_v13 = vmax.f32 %v2376_v38, 0.0  ;;  %v2379_v29 = vadd.f32 %v11437_v3, %v2378_v15  ;;  %v2380_v18 = vpop.f32.mrb[119].mxu0 }
 0x299   :  { %v1977_v23 = vpop.f32.mrb[224].mxu1 }
 0x29a   :  { %v2678_v55 = vmax.f32 %v2379_v29, 0.0  ;;  %v1978_v0 = vadd.f32 %v11324_v26, %v1977_v23  ;;  %v1979_v39 = vpop.f32.mrb[225].mxu1  ;;  %2590 = vmatmul.mubr.bf16.gmra.mrb[224].mxu0 %v2157_v10  ;;  %v2759_v4 = vmul.f32 %v11444_v34, %v2677_v13 }
 0x29b   :  { %v1980_v61 = vpop.f32.mrb[226].mxu1  ;;  %2597 = vmatprep.mubr.bf16.mxu0 %v13807_v52 }
 0x29c   :  { %v2111_v36 = vmax.f32 %v1978_v0, 0.0  ;;  %v1981_v14 = vadd.f32 %v11324_v26, %v1980_v61  ;;  %2834 = vadd.xlane.f32.xlu0 %v2759_v4  ;;  %v1982_v32 = vpop.f32.mrb[227].mxu1  ;;  %v2760_v9 = vmul.f32 %v11444_v34, %v2678_v55 }
 0x29d   :  { %v2383_v46 = vpop.f32.mrb[120].mxu0 }
 0x29e   :  { %v2112_v42 = vmax.f32 %v1981_v14, 0.0  ;;  %v2384_v41 = vadd.f32 %v11437_v3, %v2383_v46  ;;  %v2385_v16 = vpop.f32.mrb[121].mxu0 }
 0x29f   :  { %v2386_v24 = vpop.f32.mrb[122].mxu0 }
 0x2a0   :  { %v2158_v53 = vpack.c.bf16 %v2112_v42, %v2111_v36  ;;  %v2679_v51 = vmax.f32 %v2384_v41, 0.0  ;;  %v2387_v40 = vadd.f32 %v11437_v3, %v2386_v24  ;;  %v2388_v11 = vpop.f32.mrb[123].mxu0  ;;  %2836 = vadd.xlane.f32.xlu0 %v2760_v9  ;;  %v13810_v36 = vld [vmem:[#allocation19_spill] sm:$0xff] }
 0x2a1   :  { %v1985_v47 = vpop.f32.mrb[228].mxu1 }
 0x2a2   :  { %v2680_v43 = vmax.f32 %v2387_v40, 0.0  ;;  %v1986_v54 = vadd.f32 %v11324_v26, %v1985_v47  ;;  %v1987_v17 = vpop.f32.mrb[229].mxu1  ;;  %2598 = vmatmul.mubr.bf16.gmra.mrb[228].mxu0 %v2158_v53  ;;  %v2761_v33 = vmul.f32 %v11444_v34, %v2679_v51 }
 0x2a3   :  { %v1988_v7 = vpop.f32.mrb[230].mxu1  ;;  %2605 = vmatprep.mubr.bf16.mxu0 %v13808_v30 }
 0x2a4   :  { %v1989_v37 = vadd.f32 %v11324_v26, %v1988_v7  ;;  %v1990_v50 = vpop.f32.mrb[231].mxu1  ;;  %2838 = vadd.xlane.f32.xlu1 %v2761_v33  ;;  %v2113_v44 = vmax.f32 %v1986_v54, 0.0  ;;  %v2762_v35 = vmul.f32 %v11444_v34, %v2680_v43 }
 0x2a5   :  { %v2391_v62 = vpop.f32.mrb[124].mxu0 }
 0x2a6   :  { %v2114_v22 = vmax.f32 %v1989_v37, 0.0  ;;  %v2392_v48 = vadd.f32 %v11437_v3, %v2391_v62  ;;  %v2393_v31 = vpop.f32.mrb[125].mxu0  ;;  %v13811_v37 = vld [vmem:[#allocation22_spill] sm:$0xff] }
 0x2a7   :  { %v2394_v12 = vpop.f32.mrb[126].mxu0 }
 0x2a8   :  { %v2159_v5 = vpack.c.bf16 %v2114_v22, %v2113_v44  ;;  %v2681_v60 = vmax.f32 %v2392_v48, 0.0  ;;  %v2395_v56 = vadd.f32 %v11437_v3, %v2394_v12  ;;  %v2396_v2 = vpop.f32.mrb[127].mxu0  ;;  %2840 = vadd.xlane.f32.xlu1 %v2762_v35 }
 0x2a9   :  { %v1993_v25 = vpop.f32.mrb[232].mxu1 }
 0x2aa   :  { %v2682_v28 = vmax.f32 %v2395_v56, 0.0  ;;  %v1994_v21 = vadd.f32 %v11324_v26, %v1993_v25  ;;  %v1995_v20 = vpop.f32.mrb[233].mxu1  ;;  %2606 = vmatmul.mubr.bf16.gmra.mrb[232].mxu0 %v2159_v5  ;;  %v2763_v59 = vmul.f32 %v11444_v34, %v2681_v60 }
 0x2ab   :  { %v1996_v6 = vpop.f32.mrb[234].mxu1  ;;  %2613 = vmatprep.mubr.bf16.mxu0 %v13809_v63 }
 0x2ac   :  { %v1997_v49 = vadd.f32 %v11324_v26, %v1996_v6  ;;  %v1998_v58 = vpop.f32.mrb[235].mxu1  ;;  %2842 = vadd.xlane.f32.xlu0 %v2763_v59  ;;  %v2764_v8 = vmul.f32 %v11444_v34, %v2682_v28  ;;  %v2115_v45 = vmax.f32 %v1994_v21, 0.0 }
 0x2ad   :  { %v2399_v1 = vpop.f32.mrb[128].mxu0 }
 0x2ae   :  { %v2116_v38 = vmax.f32 %v1997_v49, 0.0  ;;  %v2400_v57 = vadd.f32 %v11437_v3, %v2399_v1  ;;  %v2401_v15 = vpop.f32.mrb[129].mxu0  ;;  %2844 = vadd.xlane.f32.xlu1 %v2764_v8  ;;  %v13812_v49 = vld [vmem:[#allocation21_spill] sm:$0xff] }
 0x2af   :  { %v2402_v10 = vpop.f32.mrb[130].mxu0 }
 0x2b0   :  { %v2160_v13 = vpack.c.bf16 %v2116_v38, %v2115_v45  ;;  %v2683_v29 = vmax.f32 %v2400_v57, 0.0  ;;  %v2403_v18 = vadd.f32 %v11437_v3, %v2402_v10  ;;  %v2404_v23 = vpop.f32.mrb[131].mxu0 }
 0x2b1   :  { %v2001_v55 = vpop.f32.mrb[236].mxu1 }
 0x2b2   :  { %v2684_v0 = vmax.f32 %v2403_v18, 0.0  ;;  %v2002_v39 = vadd.f32 %v11324_v26, %v2001_v55  ;;  %v2003_v4 = vpop.f32.mrb[237].mxu1  ;;  %2614 = vmatmul.mubr.bf16.gmra.mrb[236].mxu0 %v2160_v13  ;;  %v2765_v61 = vmul.f32 %v11444_v34, %v2683_v29 }
 0x2b3   :  { %v2004_v52 = vpop.f32.mrb[238].mxu1  ;;  %2621 = vmatprep.mubr.bf16.mxu0 %v13810_v36 }
 0x2b4   :  { %v2005_v14 = vadd.f32 %v11324_v26, %v2004_v52  ;;  %v2006_v32 = vpop.f32.mrb[239].mxu1  ;;  %2846 = vadd.xlane.f32.xlu0 %v2765_v61  ;;  %v2766_v46 = vmul.f32 %v11444_v34, %v2684_v0  ;;  %v2117_v41 = vmax.f32 %v2002_v39, 0.0 }
 0x2b5   :  { %v2407_v42 = vpop.f32.mrb[132].mxu0 }
 0x2b6   :  { %v2118_v16 = vmax.f32 %v2005_v14, 0.0  ;;  %v2408_v9 = vadd.f32 %v11437_v3, %v2407_v42  ;;  %v2409_v24 = vpop.f32.mrb[133].mxu0  ;;  %2848 = vadd.xlane.f32.xlu1 %v2766_v46 }
 0x2b7   :  { %v2410_v53 = vpop.f32.mrb[134].mxu0 }
 0x2b8   :  { %v2161_v51 = vpack.c.bf16 %v2118_v16, %v2117_v41  ;;  %v2685_v40 = vmax.f32 %v2408_v9, 0.0  ;;  %v2411_v11 = vadd.f32 %v11437_v3, %v2410_v53  ;;  %v2412_v47 = vpop.f32.mrb[135].mxu0 }
 0x2b9   :  { %v2009_v43 = vpop.f32.mrb[240].mxu1 }
 0x2ba   :  { %v2686_v54 = vmax.f32 %v2411_v11, 0.0  ;;  %v2010_v17 = vadd.f32 %v11324_v26, %v2009_v43  ;;  %v2011_v33 = vpop.f32.mrb[241].mxu1  ;;  %2622 = vmatmul.mubr.bf16.gmra.mrb[240].mxu0 %v2161_v51  ;;  %v2767_v7 = vmul.f32 %v11444_v34, %v2685_v40 }
 0x2bb   :  { %v2012_v30 = vpop.f32.mrb[242].mxu1  ;;  %2629 = vmatprep.mubr.bf16.mxu0 %v13811_v37 }
 0x2bc   :  { %v2013_v50 = vadd.f32 %v11324_v26, %v2012_v30  ;;  %v2014_v62 = vpop.f32.mrb[243].mxu1  ;;  %2850 = vadd.xlane.f32.xlu0 %v2767_v7  ;;  %v2768_v44 = vmul.f32 %v11444_v34, %v2686_v54  ;;  %v2119_v48 = vmax.f32 %v2010_v17, 0.0 }
 0x2bd   :  { %v2415_v22 = vpop.f32.mrb[136].mxu0 }
 0x2be   :  { %v2120_v31 = vmax.f32 %v2013_v50, 0.0  ;;  %v2416_v35 = vadd.f32 %v11437_v3, %v2415_v22  ;;  %v2417_v12 = vpop.f32.mrb[137].mxu0  ;;  %2852 = vadd.xlane.f32.xlu1 %v2768_v44 }
 0x2bf   :  { %v2418_v5 = vpop.f32.mrb[138].mxu0 }
 0x2c0   :  { %v2162_v60 = vpack.c.bf16 %v2120_v31, %v2119_v48  ;;  %v2687_v56 = vmax.f32 %v2416_v35, 0.0  ;;  %v2419_v2 = vadd.f32 %v11437_v3, %v2418_v5  ;;  %v2420_v25 = vpop.f32.mrb[139].mxu0 }
 0x2c1   :  { %v2017_v28 = vpop.f32.mrb[244].mxu1 }
 0x2c2   :  { %v2688_v21 = vmax.f32 %v2419_v2, 0.0  ;;  %v2018_v20 = vadd.f32 %v11324_v26, %v2017_v28  ;;  %v2019_v59 = vpop.f32.mrb[245].mxu1  ;;  %2630 = vmatmul.mubr.bf16.gmra.mrb[244].mxu0 %v2162_v60  ;;  %v2769_v6 = vmul.f32 %v11444_v34, %v2687_v56  ;;  %v13813_v2 = vld [vmem:[#allocation23_spill] sm:$0xff] }
 0x2c3   :  { %v2020_v63 = vpop.f32.mrb[246].mxu1  ;;  %2637 = vmatprep.mubr.bf16.mxu0 %v13812_v49  ;;  %v13814_v49 = vld [vmem:[#allocation24_spill] sm:$0xff] }
 0x2c4   :  { %v2021_v58 = vadd.f32 %v11324_v26, %v2020_v63  ;;  %v2022_v8 = vpop.f32.mrb[247].mxu1  ;;  %2854 = vadd.xlane.f32.xlu0 %v2769_v6  ;;  %v2770_v1 = vmul.f32 %v11444_v34, %v2688_v21  ;;  %v2121_v38 = vmax.f32 %v2018_v20, 0.0 }
 0x2c5   :  { %v2423_v45 = vpop.f32.mrb[140].mxu0 }
 0x2c6   :  { %v2122_v57 = vmax.f32 %v2021_v58, 0.0  ;;  %v2424_v15 = vadd.f32 %v11437_v3, %v2423_v45  ;;  %v2425_v10 = vpop.f32.mrb[141].mxu0  ;;  %2856 = vadd.xlane.f32.xlu1 %v2770_v1 }
 0x2c7   :  { %v2426_v13 = vpop.f32.mrb[142].mxu0 }
 0x2c8   :  { %v2163_v29 = vpack.c.bf16 %v2122_v57, %v2121_v38  ;;  %v2689_v18 = vmax.f32 %v2424_v15, 0.0  ;;  %v2427_v23 = vadd.f32 %v11437_v3, %v2426_v13  ;;  %v2428_v55 = vpop.f32.mrb[143].mxu0 }
 0x2c9   :  { %v2025_v0 = vpop.f32.mrb[248].mxu1 }
 0x2ca   :  { %v2690_v39 = vmax.f32 %v2427_v23, 0.0  ;;  %v2026_v4 = vadd.f32 %v11324_v26, %v2025_v0  ;;  %v2027_v61 = vpop.f32.mrb[249].mxu1  ;;  %2638 = vmatmul.mubr.bf16.gmra.mrb[248].mxu0 %v2163_v29  ;;  %v2771_v52 = vmul.f32 %v11444_v34, %v2689_v18 }
 0x2cb   :  { %v2028_v36 = vpop.f32.mrb[250].mxu1  ;;  %2645 = vmatprep.mubr.bf16.mxu0 %v11313_v27 }
 0x2cc   :  { %v2029_v14 = vadd.f32 %v11324_v26, %v2028_v36  ;;  %v2030_v32 = vpop.f32.mrb[251].mxu1  ;;  %2858 = vadd.xlane.f32.xlu0 %v2771_v52  ;;  %v2772_v46 = vmul.f32 %v11444_v34, %v2690_v39  ;;  %v2123_v41 = vmax.f32 %v2026_v4, 0.0  ;;  %v10172_v26 = vld [vmem:[%s13727_s7] ss:$0 sm:$0xff] }
 0x2cd   :  { %v2431_v42 = vpop.f32.mrb[144].mxu0 }
 0x2ce   :  { %v2124_v16 = vmax.f32 %v2029_v14, 0.0  ;;  %v2432_v9 = vadd.f32 %v11437_v3, %v2431_v42  ;;  %v2433_v24 = vpop.f32.mrb[145].mxu0  ;;  %2860 = vadd.xlane.f32.xlu1 %v2772_v46 }
 0x2cf   :  { %v2434_v53 = vpop.f32.mrb[146].mxu0 }
 0x2d0   :  { %v2164_v51 = vpack.c.bf16 %v2124_v16, %v2123_v41  ;;  %v2691_v40 = vmax.f32 %v2432_v9, 0.0  ;;  %v2435_v11 = vadd.f32 %v11437_v3, %v2434_v53  ;;  %v2436_v47 = vpop.f32.mrb[147].mxu0 }
 0x2d1   :  { %v2033_v27 = vpop.f32.mrb[252].mxu1 }
 0x2d2   :  { %v2692_v43 = vmax.f32 %v2435_v11, 0.0  ;;  %v2034_v54 = vadd.f32 %v10172_v26, %v2033_v27  ;;  %v2035_v17 = vpop.f32.mrb[253].mxu1  ;;  %2646 = vmatmul.mubr.bf16.gmra.mrb[252].mxu0 %v2164_v51  ;;  %v2773_v33 = vmul.f32 %v11444_v34, %v2691_v40 }
 0x2d3   :  { %v2036_v7 = vpop.f32.mrb[254].mxu1  ;;  %2653 = vmatprep.mubr.bf16.mxu0 %v11311_v19  ;;  %v10173_v19 = vld [vmem:[%s13725_s5] ss:$0 sm:$0xff] }
 0x2d4   :  { %v2037_v30 = vadd.f32 %v10172_v26, %v2036_v7  ;;  %v2038_v37 = vpop.f32.mrb[255].mxu1  ;;  %2862 = vadd.xlane.f32.xlu0 %v2773_v33  ;;  %v2774_v50 = vmul.f32 %v11444_v34, %v2692_v43  ;;  %v2125_v44 = vmax.f32 %v2034_v54, 0.0  ;;  %v1428_v25 = vadd.f32 %v10173_v19, %v13813_v2 }
 0x2d5   :  { %v2439_v62 = vpop.f32.mrb[148].mxu0 }
 0x2d6   :  { %v2126_v22 = vmax.f32 %v2037_v30, 0.0  ;;  %v2440_v48 = vadd.f32 %v11437_v3, %v2439_v62  ;;  %v2441_v31 = vpop.f32.mrb[149].mxu0  ;;  %2864 = vadd.xlane.f32.xlu1 %v2774_v50  ;;  %v1507_v45 = vmax.f32 %v1428_v25, 0.0 }
 0x2d7   :  { %v2442_v35 = vpop.f32.mrb[150].mxu0 }
 0x2d8   :  { %v2165_v12 = vpack.c.bf16 %v2126_v22, %v2125_v44  ;;  %v2693_v5 = vmax.f32 %v2440_v48, 0.0  ;;  %v2443_v60 = vadd.f32 %v11437_v3, %v2442_v35  ;;  %v2444_v56 = vpop.f32.mrb[151].mxu0  ;;  %v2205_v39 = vpack.c.bf16 %v1507_v45, %v1507_v45 }
 0x2d9   :  { %v2041_v28 = vpop.f32.mrb[0].mxu1 }
 0x2da   :  { %v2694_v21 = vmax.f32 %v2443_v60, 0.0  ;;  %v2042_v20 = vadd.f32 %v10172_v26, %v2041_v28  ;;  %v2043_v59 = vpop.f32.mrb[1].mxu1  ;;  %2654 = vmatmul.mubr.bf16.gmra.mrb[0].mxu0 %v2165_v12  ;;  %v2775_v6 = vmul.f32 %v11444_v34, %v2693_v5 }
 0x2db   :  { %v2044_v63 = vpop.f32.mrb[2].mxu1  ;;  %2661 = vmatprep.mubr.bf16.mxu0 %v13814_v49 }
 0x2dc   :  { %v2045_v58 = vadd.f32 %v10172_v26, %v2044_v63  ;;  %v2046_v8 = vpop.f32.mrb[3].mxu1  ;;  %2866 = vadd.xlane.f32.xlu0 %v2775_v6  ;;  %v2776_v1 = vmul.f32 %v11444_v34, %v2694_v21  ;;  %v2127_v57 = vmax.f32 %v2042_v20, 0.0 }
 0x2dd   :  { %v2447_v38 = vpop.f32.mrb[152].mxu0 }
 0x2de   :  { %v2128_v15 = vmax.f32 %v2045_v58, 0.0  ;;  %v2448_v10 = vadd.f32 %v11437_v3, %v2447_v38  ;;  %v2449_v13 = vpop.f32.mrb[153].mxu0  ;;  %2868 = vadd.xlane.f32.xlu1 %v2776_v1 }
 0x2df   :  { %v2450_v29 = vpop.f32.mrb[154].mxu0 }
 0x2e0   :  { %v2166_v18 = vpack.c.bf16 %v2128_v15, %v2127_v57  ;;  %v2695_v23 = vmax.f32 %v2448_v10, 0.0  ;;  %v2451_v55 = vadd.f32 %v11437_v3, %v2450_v29  ;;  %v2452_v0 = vpop.f32.mrb[155].mxu0 }
 0x2e1   :  { %v2049_v4 = vpop.f32.mrb[4].mxu1 }
 0x2e2   :  { %v2696_v61 = vmax.f32 %v2451_v55, 0.0  ;;  %v2050_v52 = vadd.f32 %v10172_v26, %v2049_v4  ;;  %v2051_v36 = vpop.f32.mrb[5].mxu1  ;;  %2662 = vmatmul.mubr.bf16.gmra.mrb[4].mxu0 %v2166_v18  ;;  %v2777_v14 = vmul.f32 %v11444_v34, %v2695_v23 }
 0x2e3   :  { %v2052_v32 = vpop.f32.mrb[6].mxu1  ;;  %2669 = vmatprep.mubr.bf16.mxu0 %v2205_v39 }
 0x2e4   :  { %v2129_v46 = vmax.f32 %v2050_v52, 0.0  ;;  %v2053_v42 = vpop.f32.mrb[7].mxu1  ;;  %2870 = vadd.xlane.f32.xlu0 %v2777_v14  ;;  %v2778_v41 = vmul.f32 %v11444_v34, %v2696_v61 }
 0x2e5   :  { %v2455_v16 = vpop.f32.mrb[156].mxu0 }
 0x2e6   :  { %v2456_v9 = vadd.f32 %v11437_v3, %v2455_v16  ;;  %v2457_v24 = vpop.f32.mrb[157].mxu0  ;;  %2872 = vadd.xlane.f32.xlu1 %v2778_v41  ;;  %v2167_v51 = vpack.c.bf16 %v2129_v46, %v2129_v46 }
 0x2e7   :  { %v2458_v53 = vpop.f32.mrb[158].mxu0 }
 0x2e8   :  { %v2697_v40 = vmax.f32 %v2456_v9, 0.0  ;;  %v2459_v11 = vadd.f32 %v11437_v3, %v2458_v53  ;;  %v2460_v47 = vpop.f32.mrb[159].mxu0 }
 0x2ea   :  { %v2698_v27 = vmax.f32 %v2459_v11, 0.0  ;;  %2670 = vmatmul.mubr.bf16.gmra.mrb[8].mxu0 %v2167_v51  ;;  %v2779_v43 = vmul.f32 %v11444_v34, %v2697_v40 }
 0x2ec   :  { %2874 = vadd.xlane.f32.xlu0 %v2779_v43  ;;  %v2780_v26 = vmul.f32 %v11444_v34, %v2698_v27 }
 0x2ed   :  { %v2463_v54 = vpop.f32.mrb[160].mxu0 }
 0x2ee   :  { %v2464_v17 = vadd.f32 %v11437_v3, %v2463_v54  ;;  %v2465_v33 = vpop.f32.mrb[161].mxu0  ;;  %2876 = vadd.xlane.f32.xlu1 %v2780_v26 }
 0x2ef   :  { %v2466_v7 = vpop.f32.mrb[162].mxu0 }
 0x2f0   :  { %v2699_v30 = vmax.f32 %v2464_v17, 0.0  ;;  %v2467_v37 = vadd.f32 %v11437_v3, %v2466_v7  ;;  %v2468_v50 = vpop.f32.mrb[163].mxu0 }
 0x2f2   :  { %v2700_v62 = vmax.f32 %v2467_v37, 0.0  ;;  %v2781_v44 = vmul.f32 %v11444_v34, %v2699_v30 }
 0x2f4   :  { %2878 = vadd.xlane.f32.xlu0 %v2781_v44  ;;  %v2782_v22 = vmul.f32 %v11444_v34, %v2700_v62 }
 0x2f5   :  { %v2471_v48 = vpop.f32.mrb[164].mxu0 }
 0x2f6   :  { %v2472_v31 = vadd.f32 %v11437_v3, %v2471_v48  ;;  %v2473_v35 = vpop.f32.mrb[165].mxu0  ;;  %2880 = vadd.xlane.f32.xlu1 %v2782_v22 }
 0x2f7   :  { %v2474_v12 = vpop.f32.mrb[166].mxu0  ;;  %v11551_v35 = vstv %s13731_s11 }
 0x2f8   :  { %v2701_v5 = vmax.f32 %v2472_v31, 0.0  ;;  %v2475_v60 = vadd.f32 %v11437_v3, %v2474_v12  ;;  %v2476_v56 = vpop.f32.mrb[167].mxu0 }
 0x2fa   :  { %v2702_v19 = vmax.f32 %v2475_v60, 0.0  ;;  %v2783_v2 = vmul.f32 %v11444_v34, %v2701_v5 }
 0x2fc   :  { %2882 = vadd.xlane.f32.xlu0 %v2783_v2  ;;  %v2784_v25 = vmul.f32 %v11444_v34, %v2702_v19 }
 0x2fd   :  { %v2479_v28 = vpop.f32.mrb[168].mxu0 }
 0x2fe   :  { %v2480_v21 = vadd.f32 %v11437_v3, %v2479_v28  ;;  %v2481_v20 = vpop.f32.mrb[169].mxu0  ;;  %2884 = vadd.xlane.f32.xlu1 %v2784_v25  ;;  %v10205_v28 = vmov 1966171168  }
 0x2ff   :  { %v2482_v59 = vpop.f32.mrb[170].mxu0 }
 0x300   :  { %v2703_v6 = vmax.f32 %v2480_v21, 0.0  ;;  %v2483_v63 = vadd.f32 %v11437_v3, %v2482_v59  ;;  %v2484_v49 = vpop.f32.mrb[171].mxu0  ;;  %v5541_v21 = vunpack.c.l.s4 %v10205_v28  ;;  %v13815_v59 = vld [vmem:[#allocation6_spill] sm:$0xff] }
 0x302   :  { %v2704_v58 = vmax.f32 %v2483_v63, 0.0  ;;  %v2785_v8 = vmul.f32 %v11444_v34, %v2703_v6  ;;  %v11558_v6 = vsub.s32 2, %v13815_v59  ;;  %v11561_v63 = vsub.s32 3, %v13815_v59 }
 0x304   :  { %2886 = vadd.xlane.f32.xlu0 %v2785_v8  ;;  %v2786_v1 = vmul.f32 %v11444_v34, %v2704_v58  ;;  %v11564_v8 = vsub.s32 4, %v13815_v59 }
 0x305   :  { %v2487_v45 = vpop.f32.mrb[172].mxu0 }
 0x306   :  { %v2488_v38 = vadd.f32 %v11437_v3, %v2487_v45  ;;  %v2489_v57 = vpop.f32.mrb[173].mxu0  ;;  %2888 = vadd.xlane.f32.xlu1 %v2786_v1  ;;  %v11567_v1 = vsub.s32 5, %v13815_v59  ;;  %v11570_v45 = vsub.s32 6, %v13815_v59 }
 0x307   :  { %v2490_v15 = vpop.f32.mrb[174].mxu0 }
 0x308   :  { %v2705_v10 = vmax.f32 %v2488_v38, 0.0  ;;  %v2491_v13 = vadd.f32 %v11437_v3, %v2490_v15  ;;  %v2492_v29 = vpop.f32.mrb[175].mxu0  ;;  %v11573_v38 = vsub.s32 7, %v13815_v59 }
 0x309   :  { %v13817_v29 = vld [vmem:[#allocation8_spill] sm:$0xff] }
 0x30a   :  { %v2706_v18 = vmax.f32 %v2491_v13, 0.0  ;;  %v2787_v23 = vmul.f32 %v11444_v34, %v2705_v10  ;;  %v13816_v10 = vld [vmem:[#allocation7_spill] sm:$0xff] }
 0x30c   :  { %2890 = vadd.xlane.f32.xlu0 %v2787_v23  ;;  %v2788_v55 = vmul.f32 %v11444_v34, %v2706_v18  ;;  %v5542_v23 = vunpack.c.0.s8 %v5541_v21 }
 0x30d   :  { %v2495_v0 = vpop.f32.mrb[176].mxu0 }
 0x30e   :  { %v2496_v39 = vadd.f32 %v11437_v3, %v2495_v0  ;;  %v2497_v4 = vpop.f32.mrb[177].mxu0  ;;  %2892 = vadd.xlane.f32.xlu1 %v2788_v55 }
 0x30f   :  { %v2498_v61 = vpop.f32.mrb[178].mxu0 }
 0x310   :  { %v2707_v52 = vmax.f32 %v2496_v39, 0.0  ;;  %v2499_v36 = vadd.f32 %v11437_v3, %v2498_v61  ;;  %v2500_v14 = vpop.f32.mrb[179].mxu0 }
 0x312   :  { %v2708_v32 = vmax.f32 %v2499_v36, 0.0  ;;  %v2789_v46 = vmul.f32 %v11444_v34, %v2707_v52 }
 0x314   :  { %2894 = vadd.xlane.f32.xlu0 %v2789_v46  ;;  %v2790_v42 = vmul.f32 %v11444_v34, %v2708_v32 }
 0x315   :  { %v2503_v41 = vpop.f32.mrb[180].mxu0 }
 0x316   :  { %v2504_v16 = vadd.f32 %v11437_v3, %v2503_v41  ;;  %v2505_v9 = vpop.f32.mrb[181].mxu0  ;;  %2896 = vadd.xlane.f32.xlu1 %v2790_v42 }
 0x317   :  { %v2506_v24 = vpop.f32.mrb[182].mxu0 }
 0x318   :  { %v2709_v53 = vmax.f32 %v2504_v16, 0.0  ;;  %v2507_v51 = vadd.f32 %v11437_v3, %v2506_v24  ;;  %v2508_v40 = vpop.f32.mrb[183].mxu0  ;;  %v11588_v24 = vsub.s32 %v5542_v23, %v13815_v59 }
 0x31a   :  { %v2710_v11 = vmax.f32 %v2507_v51, 0.0  ;;  %v2791_v47 = vmul.f32 %v11444_v34, %v2709_v53 }
 0x31c   :  { %2898 = vadd.xlane.f32.xlu0 %v2791_v47  ;;  %v2792_v27 = vmul.f32 %v11444_v34, %v2710_v11 }
 0x31d   :  { %v2511_v43 = vpop.f32.mrb[184].mxu0 }
 0x31e   :  { %v2512_v26 = vadd.f32 %v11437_v3, %v2511_v43  ;;  %v2513_v54 = vpop.f32.mrb[185].mxu0  ;;  %2900 = vadd.xlane.f32.xlu1 %v2792_v27 }
 0x31f   :  { %v2514_v17 = vpop.f32.mrb[186].mxu0 }
 0x320   :  { %v2711_v33 = vmax.f32 %v2512_v26, 0.0  ;;  %v2515_v7 = vadd.f32 %v11437_v3, %v2514_v17  ;;  %v2516_v30 = vpop.f32.mrb[187].mxu0 }
 0x322   :  { %v2712_v37 = vmax.f32 %v2515_v7, 0.0  ;;  %v2793_v50 = vmul.f32 %v11444_v34, %v2711_v33 }
 0x324   :  { %2902 = vadd.xlane.f32.xlu0 %v2793_v50  ;;  %v2794_v62 = vmul.f32 %v11444_v34, %v2712_v37 }
 0x325   :  { %v2519_v44 = vpop.f32.mrb[188].mxu0 }
 0x326   :  { %v2520_v22 = vadd.f32 %v11437_v3, %v2519_v44  ;;  %v2521_v48 = vpop.f32.mrb[189].mxu0  ;;  %2904 = vadd.xlane.f32.xlu1 %v2794_v62 }
 0x327   :  { %v2522_v31 = vpop.f32.mrb[190].mxu0 }
 0x328   :  { %v2713_v12 = vmax.f32 %v2520_v22, 0.0  ;;  %v2523_v5 = vadd.f32 %v11437_v3, %v2522_v31  ;;  %v2524_v60 = vpop.f32.mrb[191].mxu0 }
 0x329   :  { %v2835_v56 = vpop.xlane.xlu0 %2834 }
 0x32a   :  { %v2714_v19 = vmax.f32 %v2523_v5, 0.0  ;;  %v2986_v2 = vadd.f32 %v11551_v35, %v2835_v56  ;;  %v2795_v25 = vmul.f32 %v11444_v34, %v2713_v12 }
 0x32c   :  { %2906 = vadd.xlane.f32.xlu0 %v2795_v25  ;;  %v2796_v20 = vmul.f32 %v11444_v34, %v2714_v19  ;;  %v3139_v13 = vrot.slane %v2986_v2, %v13816_v10  ;;  %v3143_v18 = vrot.slane %v2986_v2, %v13817_v29  ;;  %v3147_v52 = vrot.slane %v2986_v2, %v11558_v6 }
 0x32d   :  { %v2527_v49 = vpop.f32.mrb[192].mxu0  ;;  %v2837_v58 = vpop.xlane.xlu0 %2836  ;;  %v3151_v36 = vrot.slane %v2986_v2, %v11561_v63  ;;  %v3155_v14 = vrot.slane %v2986_v2, %v11564_v8  ;;  %v3159_v32 = vrot.slane %v2986_v2, %v11567_v1  ;;  %v3163_v46 = vrot.slane %v2986_v2, %v11570_v45 }
 0x32e   :  { %v2528_v57 = vadd.f32 %v11437_v3, %v2527_v49  ;;  %v2529_v15 = vpop.f32.mrb[193].mxu0  ;;  %2908 = vadd.xlane.f32.xlu1 %v2796_v20  ;;  %v2987_v55 = vadd.f32 %v11551_v35, %v2837_v58  ;;  %v3167_v42 = vrot.slane %v2986_v2, %v11573_v38  ;;  %v5536_v9 = vcombine.low %v3139_v13, %v3143_v18 }
 0x32f   :  { %v2530_v0 = vpop.f32.mrb[194].mxu0  ;;  %v5537_v54 = vcombine.low %v3147_v52, %v3151_v36  ;;  %v5538_v17 = vcombine.low %v3155_v14, %v3159_v32 }
 0x330   :  { %v2715_v39 = vmax.f32 %v2528_v57, 0.0  ;;  %v2531_v4 = vadd.f32 %v11437_v3, %v2530_v0  ;;  %v2532_v61 = vpop.f32.mrb[195].mxu0  ;;  %v3171_v53 = vrot.slane %v2987_v55, %v13816_v10  ;;  %v3175_v51 = vrot.slane %v2987_v55, %v13817_v29 }
 0x331   :  { %v3179_v40 = vrot.slane %v2987_v55, %v11558_v6  ;;  %v3183_v11 = vrot.slane %v2987_v55, %v11561_v63  ;;  %v3187_v27 = vrot.slane %v2987_v55, %v11564_v8  ;;  %v3191_v43 = vrot.slane %v2987_v55, %v11567_v1 }
 0x332   :  { %v2716_v41 = vmax.f32 %v2531_v4, 0.0  ;;  %v2797_v16 = vmul.f32 %v11444_v34, %v2715_v39  ;;  %v3195_v26 = vrot.slane %v2987_v55, %v11570_v45  ;;  %v5539_v33 = vcombine.low %v3163_v46, %v3167_v42 }
 0x333   :  { %v3199_v7 = vrot.slane %v2987_v55, %v11573_v38  ;;  %v5585_v62 = vcombine.low %v3171_v53, %v3175_v51  ;;  %v5586_v44 = vcombine.low %v3179_v40, %v3183_v11  ;;  %v5587_v22 = vcombine.low %v3187_v27, %v3191_v43  ;;  %v2839_v11 = vpop.xlane.xlu1 %2838 }
 0x334   :  { %2910 = vadd.xlane.f32.xlu0 %v2797_v16  ;;  %v2798_v47 = vmul.f32 %v11444_v34, %v2716_v41  ;;  %v5546_v12 = vrot.slane %v5536_v9, %v11588_v24  ;;  %v5553_v5 = vrot.slane %v5537_v54, %v11588_v24  ;;  %v5560_v60 = vrot.slane %v5538_v17, %v11588_v24 }
 0x335   :  { %v2535_v30 = vpop.f32.mrb[196].mxu0  ;;  %v5588_v48 = vcombine.low %v3195_v26, %v3199_v7  ;;  %v5567_v56 = vrot.slane %v5539_v33, %v11588_v24  ;;  %v5595_v19 = vrot.slane %v5585_v62, %v11588_v24  ;;  %v5602_v2 = vrot.slane %v5586_v44, %v11588_v24 }
 0x336   :  { %2912 = vadd.xlane.f32.xlu1 %v2798_v47  ;;  %v2537_v37 = vpop.f32.mrb[197].mxu0  ;;  %v5609_v25 = vrot.slane %v5587_v22, %v11588_v24  ;;  %v5568_v21 = vcombine.low %v5546_v12, %v5553_v5  ;;  %v2988_v27 = vadd.f32 %v11551_v35, %v2839_v11  ;;  %v2536_v43 = vadd.f32 %v11437_v3, %v2535_v30 }
 0x337   :  { %v2538_v50 = vpop.f32.mrb[198].mxu0  ;;  %v5616_v28 = vrot.slane %v5588_v48, %v11588_v24  ;;  %v5569_v20 = vcombine.low %v5560_v60, %v5567_v56  ;;  %v5617_v15 = vcombine.low %v5595_v19, %v5602_v2  ;;  %v2841_v7 = vpop.xlane.xlu1 %2840 }
 0x338   :  { %v2540_v31 = vpop.f32.mrb[199].mxu0  ;;  %v5576_v23 = vrot.slane %v5568_v21, %v11588_v24  ;;  %v2539_v54 = vadd.f32 %v11437_v3, %v2538_v50  ;;  %v2717_v62 = vmax.f32 %v2536_v43, 0.0  ;;  %v3203_v44 = vrot.slane %v2988_v27, %v13816_v10 }
 0x339   :  { %v5618_v13 = vcombine.low %v5609_v25, %v5616_v28  ;;  %v5583_v55 = vrot.slane %v5569_v20, %v11588_v24  ;;  %v5625_v0 = vrot.slane %v5617_v15, %v11588_v24  ;;  %v3207_v22 = vrot.slane %v2988_v27, %v13817_v29  ;;  %v11636_v19 = vpop.xlane.xlu0 %2842 }
 0x33a   :  { %v3211_v48 = vrot.slane %v2988_v27, %v11558_v6  ;;  %v2718_v31 = vmax.f32 %v2539_v54, 0.0  ;;  %v3215_v12 = vrot.slane %v2988_v27, %v11561_v63  ;;  %v3219_v30 = vrot.slane %v2988_v27, %v11564_v8 }
 0x33b   :  { %v5632_v39 = vrot.slane %v5618_v13, %v11588_v24  ;;  %v5584_v4 = vcombine.low %v5576_v23, %v5583_v55  ;;  %v3223_v50 = vrot.slane %v2988_v27, %v11567_v1  ;;  %v2989_v5 = vadd.f32 %v11551_v35, %v2841_v7 }
 0x33c   :  { %v3227_v60 = vrot.slane %v2988_v27, %v11570_v45  ;;  %v3231_v56 = vrot.slane %v2988_v27, %v11573_v38  ;;  %v2799_v21 = vmul.f32 %v11444_v34, %v2717_v62  ;;  %v5634_v15 = vcombine.low %v3203_v44, %v3207_v22 }
 0x33d   :  { %v2543_v49 = vpop.f32.mrb[200].mxu0  ;;  %v5633_v14 = vcombine.low %v5625_v0, %v5632_v39  ;;  %v5635_v13 = vcombine.low %v3211_v48, %v3215_v12  ;;  %v3235_v0 = vrot.slane %v2989_v5, %v13816_v10  ;;  %v3239_v39 = vrot.slane %v2989_v5, %v13817_v29 }
 0x33e   :  { %v2545_v58 = vpop.f32.mrb[201].mxu0  ;;  %v2544_v37 = vadd.f32 %v11437_v3, %v2543_v49  ;;  %v2800_v49 = vmul.f32 %v11444_v34, %v2718_v31  ;;  %v5637_v55 = vcombine.low %v3227_v60, %v3231_v56  ;;  %v3263_v11 = vrot.slane %v2989_v5, %v11573_v38 }
 0x33f   :  { %v11607_v57 = vpop.f32.mrb[202].mxu0  ;;  %v5644_v27 = vrot.slane %v5634_v15, %v11588_v24  ;;  %v5651_v43 = vrot.slane %v5635_v13, %v11588_v24  ;;  %v5683_v22 = vcombine.low %v3235_v0, %v3239_v39 }
 0x340   :  { %v2548_v18 = vpop.f32.mrb[203].mxu0  ;;  %v2719_v2 = vmax.f32 %v2544_v37, 0.0  ;;  %v5665_v62 = vrot.slane %v5637_v55, %v11588_v24 }
 0x341   :  { %v5636_v18 = vcombine.low %v3219_v30, %v3223_v50 }
 0x345   :  { %v2551_v61 = vpop.f32.mrb[204].mxu0 }
 0x346   :  { %v2553_v52 = vpop.f32.mrb[205].mxu0  ;;  %v2552_v25 = vadd.f32 %v11437_v3, %v2551_v61  ;;  %v11648_v61 = vpop.xlane.xlu0 %2846 }
 0x347   :  { %9212 = vperm.xlu1 %10134, %v5584_v4   ;;  %v11613_v36 = vpop.f32.mrb[206].mxu0  ;;  %v3243_v4 = vrot.slane %v2989_v5, %v11558_v6 }
 0x348   :  { %v2556_v32 = vpop.f32.mrb[207].mxu0  ;;  %v2721_v52 = vmax.f32 %v2552_v25, 0.0 }
 0x349   :  { %v2801_v32 = vmul.f32 %v11444_v34, %v2719_v2  ;;  %v5693_v2 = vrot.slane %v5683_v22, %v11588_v24 }
 0x34a   :  { %9215 = vperm.xlu0 %10135, %v5633_v14   ;;  %v2803_v7 = vmul.f32 %v11444_v34, %v2721_v52 }
 0x34d   :  { %v2559_v46 = vpop.f32.mrb[208].mxu0 }
 0x34e   :  { %v2561_v42 = vpop.f32.mrb[209].mxu0  ;;  %v2560_v14 = vadd.f32 %v11437_v3, %v2559_v46  ;;  %v5658_v46 = vrot.slane %v5636_v18, %v11588_v24 }
 0x34f   :  { %v11615_v41 = vpop.f32.mrb[210].mxu0  ;;  %v3247_v42 = vrot.slane %v2989_v5, %v11561_v63 }
 0x350   :  { %v2564_v16 = vpop.f32.mrb[211].mxu0  ;;  %v2723_v54 = vmax.f32 %v2560_v14, 0.0  ;;  %v5667_v56 = vcombine.low %v5658_v46, %v5665_v62 }
 0x351   :  { %v3251_v16 = vrot.slane %v2989_v5, %v11564_v8  ;;  %v5684_v48 = vcombine.low %v3243_v4, %v3247_v42 }
 0x352   :  { %v5681_v55 = vrot.slane %v5667_v56, %v11588_v24 }
 0x353   :  { %v5700_v25 = vrot.slane %v5684_v48, %v11588_v24 }
 0x355   :  { %v2567_v9 = vpop.f32.mrb[212].mxu0  ;;  %v5715_v0 = vcombine.low %v5693_v2, %v5700_v25 }
 0x356   :  { %v2569_v53 = vpop.f32.mrb[213].mxu0 }
 0x357   :  { %v11617_v51 = vpop.f32.mrb[214].mxu0  ;;  %v3255_v53 = vrot.slane %v2989_v5, %v11567_v1 }
 0x358   :  { %v2572_v40 = vpop.f32.mrb[215].mxu0 }
 0x359   :  { %v3259_v40 = vrot.slane %v2989_v5, %v11570_v45  ;;  %v5685_v31 = vcombine.low %v3251_v16, %v3255_v53 }
 0x35b   :  { %v5686_v12 = vcombine.low %v3259_v40, %v3263_v11 }
 0x35d   :  { %v11619_v47 = vpop.f32.mrb[216].mxu0 }
 0x35e   :  { %v2577_v26 = vpop.f32.mrb[217].mxu0 }
 0x35f   :  { %v11624_v17 = vpop.f32.mrb[218].mxu0  ;;  %v11660_v26 = vpop.xlane.xlu0 %2850 }
 0x360   :  { %v2580_v33 = vpop.f32.mrb[219].mxu0 }
 0x361   :  { %v2568_v33 = vadd.f32 %v11437_v3, %v2567_v9  ;;  %v2805_v3 = vmul.f32 %v11444_v34, %v2723_v54  ;;  %v5666_v9 = vcombine.low %v5644_v27, %v5651_v43  ;;  %v5723_v43 = vrot.slane %v5715_v0, %v11588_v24 }
 0x363   :  { %v2855_v5 = vpop.xlane.xlu0 %2854  ;;  %v2725_v60 = vmax.f32 %v2568_v33, 0.0 }
 0x365   :  { %v11639_v28 = vpop.f32.mrb[220].mxu0  ;;  %v2807_v13 = vmul.f32 %v11444_v34, %v2725_v60 }
 0x366   :  { %v2585_v20 = vpop.f32.mrb[221].mxu0 }
 0x367   :  { %v11643_v58 = vpop.f32.mrb[222].mxu0  ;;  %v5714_v20 = vrot.slane %v5686_v12, %v11588_v24 }
 0x368   :  { %v2588_v23 = vpop.f32.mrb[223].mxu0 }
 0x369   :  { %2914 = vadd.xlane.f32.xlu0 %v2799_v21  ;;  %v5707_v21 = vrot.slane %v5685_v31, %v11588_v24  ;;  %v5674_v23 = vrot.slane %v5666_v9, %v11588_v24 }
 0x36b   :  { %2916 = vadd.xlane.f32.xlu1 %v2800_v49  ;;  %v2996_v49 = vadd.f32 %v11551_v35, %v2855_v5  ;;  %v5716_v39 = vcombine.low %v5707_v21, %v5714_v20  ;;  %v5682_v27 = vcombine.low %v5674_v23, %v5681_v55 }
 0x36d   :  { %2918 = vadd.xlane.f32.xlu0 %v2801_v32  ;;  %v11664_v37 = vpop.f32.mrb[224].mxu0  ;;  %v3459_v14 = vrot.slane %v2996_v49, %v13816_v10  ;;  %v3463_v32 = vrot.slane %v2996_v49, %v13817_v29  ;;  %v3467_v42 = vrot.slane %v2996_v49, %v11558_v6  ;;  %v3471_v16 = vrot.slane %v2996_v49, %v11561_v63 }
 0x36e   :  { %v2593_v44 = vpop.f32.mrb[225].mxu0  ;;  %v3475_v34 = vrot.slane %v2996_v49, %v11564_v8  ;;  %v3479_v53 = vrot.slane %v2996_v49, %v11567_v1  ;;  %v3483_v40 = vrot.slane %v2996_v49, %v11570_v45  ;;  %v3487_v11 = vrot.slane %v2996_v49, %v11573_v38 }
 0x36f   :  { %v11667_v30 = vpop.f32.mrb[226].mxu0  ;;  %v5730_v46 = vrot.slane %v5716_v39, %v11588_v24  ;;  %v6026_v33 = vcombine.low %v3459_v14, %v3463_v32  ;;  %v11715_v32 = vld [vmem:[%s13729_s9] ss:$0 sm:$0xff] }
 0x370   :  { %v2596_v50 = vpop.f32.mrb[227].mxu0  ;;  %v6028_v62 = vcombine.low %v3475_v34, %v3479_v53  ;;  %v6029_v44 = vcombine.low %v3483_v40, %v3487_v11  ;;  %v2990_v34 = vadd.f32 %v11551_v35, %v11636_v19  ;;  %v2845_v53 = vpop.xlane.xlu1 %2844 }
 0x371   :  { %2922 = vadd.xlane.f32.xlu0 %v2803_v7  ;;  %v6027_v7 = vcombine.low %v3467_v42, %v3471_v16  ;;  %v5731_v48 = vcombine.low %v5723_v43, %v5730_v46  ;;  %v6036_v50 = vrot.slane %v6026_v33, %v11588_v24  ;;  %v2547_v42 = vadd.f32 %v11715_v32, %v11607_v57 }
 0x372   :  { %v6050_v60 = vrot.slane %v6028_v62, %v11588_v24  ;;  %v2991_v11 = vadd.f32 %v11551_v35, %v2845_v53  ;;  %v3267_v43 = vrot.slane %v2990_v34, %v13816_v10  ;;  %v3271_v46 = vrot.slane %v2990_v34, %v13817_v29 }
 0x373   :  { %v6043_v5 = vrot.slane %v6027_v7, %v11588_v24  ;;  %v3275_v33 = vrot.slane %v2990_v34, %v11558_v6  ;;  %v3279_v7 = vrot.slane %v2990_v34, %v11561_v63  ;;  %v3283_v57 = vrot.slane %v2990_v34, %v11564_v8 }
 0x374   :  { %v3291_v19 = vrot.slane %v2990_v34, %v11570_v45 }
 0x375   :  { %2926 = vadd.xlane.f32.xlu0 %v2805_v3  ;;  %v11675_v15 = vpop.f32.mrb[228].mxu0  ;;  %v6057_v3 = vrot.slane %v6029_v44, %v11588_v24  ;;  %v6058_v56 = vcombine.low %v6036_v50, %v6043_v5  ;;  %v3287_v44 = vrot.slane %v2990_v34, %v11567_v1  ;;  %v11739_v5 = vld [vmem:[%s13730_s10] ss:$0 sm:$0xff] }
 0x376   :  { %v2601_v18 = vpop.f32.mrb[229].mxu0 }
 0x377   :  { %v11680_v4 = vpop.f32.mrb[230].mxu0  ;;  %v6059_v2 = vcombine.low %v6050_v60, %v6057_v3  ;;  %v6066_v49 = vrot.slane %v6058_v56, %v11588_v24  ;;  %v5732_v3 = vcombine.low %v3267_v43, %v3271_v46  ;;  %v5733_v56 = vcombine.low %v3275_v33, %v3279_v7 }
 0x378   :  { %v2604_v52 = vpop.f32.mrb[231].mxu0 }
 0x379   :  { %2930 = vadd.xlane.f32.xlu0 %v2807_v13  ;;  %v6073_v13 = vrot.slane %v6059_v2, %v11588_v24  ;;  %v5734_v2 = vcombine.low %v3283_v57, %v3287_v44  ;;  %v5749_v46 = vrot.slane %v5733_v56, %v11588_v24 }
 0x37b   :  { %v6074_v23 = vcombine.low %v6066_v49, %v6073_v13  ;;  %v2576_v49 = vadd.f32 %v11715_v32, %v11619_v47  ;;  %v3303_v13 = vrot.slane %v2991_v11, %v13817_v29  ;;  %v2859_v47 = vpop.xlane.xlu0 %2858  ;;  %v5756_v33 = vrot.slane %v5734_v2, %v11588_v24 }
 0x37c   :  { %9218 = vperm.xlu1 %10134, %v5682_v27   ;;  %v2720_v27 = vmax.f32 %v2547_v42, 0.0  ;;  %v3323_v42 = vrot.slane %v2991_v11, %v11570_v45 }
 0x37d   :  { %v11692_v54 = vpop.f32.mrb[232].mxu0 }
 0x37e   :  { %v2609_v22 = vpop.f32.mrb[233].mxu0  ;;  %v2802_v60 = vmul.f32 %v11739_v5, %v2720_v27  ;;  %v2727_v27 = vmax.f32 %v2576_v49, 0.0 }
 0x37f   :  { %v11694_v31 = vpop.f32.mrb[234].mxu0  ;;  %v3295_v22 = vrot.slane %v2990_v34, %v11573_v38  ;;  %v3327_v34 = vrot.slane %v2991_v11, %v11573_v38 }
 0x380   :  { %v2612_v12 = vpop.f32.mrb[235].mxu0  ;;  %9221 = vperm.xlu1 %10134, %v5731_v48  }
 0x385   :  { %v11700_v9 = vpop.f32.mrb[236].mxu0 }
 0x386   :  { %v2617_v25 = vpop.f32.mrb[237].mxu0 }
 0x387   :  { %v11702_v21 = vpop.f32.mrb[238].mxu0  ;;  %v5735_v25 = vcombine.low %v3291_v19, %v3295_v22 }
 0x388   :  { %v2620_v20 = vpop.f32.mrb[239].mxu0 }
 0x389   :  { %v3299_v20 = vrot.slane %v2991_v11, %v13816_v10  ;;  %v5763_v7 = vrot.slane %v5735_v25, %v11588_v24 }
 0x38b   :  { %v5781_v44 = vcombine.low %v3299_v20, %v3303_v13  ;;  %v5765_v49 = vcombine.low %v5756_v33, %v5763_v7 }
 0x38d   :  { %v11706_v18 = vpop.f32.mrb[240].mxu0 }
 0x38e   :  { %v2625_v55 = vpop.f32.mrb[241].mxu0 }
 0x38f   :  { %v11708_v0 = vpop.f32.mrb[242].mxu0  ;;  %9242 = vperm.xlu0 %10135, %v6074_v23   ;;  %v3307_v23 = vrot.slane %v2991_v11, %v11558_v6  ;;  %v3311_v55 = vrot.slane %v2991_v11, %v11561_v63 }
 0x390   :  { %13818 = vst [vmem:[#allocation10_spill] sm:$0xff] %v11708_v0  ;;  %v2628_v39 = vpop.f32.mrb[243].mxu0 }
 0x391   :  { %v3315_v39 = vrot.slane %v2991_v11, %v11564_v8  ;;  %v5782_v19 = vcombine.low %v3307_v23, %v3311_v55 }
 0x393   :  { %v5798_v56 = vrot.slane %v5782_v19, %v11588_v24 }
 0x395   :  { %v11710_v52 = vpop.f32.mrb[244].mxu0 }
 0x396   :  { %v2633_v14 = vpop.f32.mrb[245].mxu0 }
 0x397   :  { %v11719_v16 = vpop.f32.mrb[246].mxu0  ;;  %v3319_v14 = vrot.slane %v2991_v11, %v11567_v1  ;;  %v5784_v11 = vcombine.low %v3323_v42, %v3327_v34 }
 0x398   :  { %13819 = vst [vmem:[#allocation9_spill] sm:$0xff] %v11719_v16  ;;  %v2636_v40 = vpop.f32.mrb[247].mxu0 }
 0x399   :  { %v5742_v40 = vrot.slane %v5732_v3, %v11588_v24  ;;  %v5783_v22 = vcombine.low %v3315_v39, %v3319_v14  ;;  %v5812_v25 = vrot.slane %v5784_v11, %v11588_v24 }
 0x39b   :  { %v5764_v3 = vcombine.low %v5742_v40, %v5749_v46  ;;  %v5805_v2 = vrot.slane %v5783_v22, %v11588_v24  ;;  %v5779_v46 = vrot.slane %v5765_v49, %v11588_v24 }
 0x39d   :  { %v11728_v62 = vpop.f32.mrb[248].mxu0  ;;  %v5814_v7 = vcombine.low %v5805_v2, %v5812_v25 }
 0x39e   :  { %v2641_v48 = vpop.f32.mrb[249].mxu0 }
 0x39f   :  { %v11734_v12 = vpop.f32.mrb[250].mxu0 }
 0x3a0   :  { %13820 = vst [vmem:[#allocation12_spill] sm:$0xff] %v11734_v12  ;;  %v2644_v50 = vpop.f32.mrb[251].mxu0  ;;  %v5828_v12 = vrot.slane %v5814_v7, %v11588_v24  ;;  %v2849_v7 = vpop.xlane.xlu1 %2848 }
 0x3a1   :  { %v2998_v50 = vadd.f32 %v11551_v35, %v2859_v47 }
 0x3a3   :  { %v3523_v20 = vrot.slane %v2998_v50, %v13816_v10  ;;  %v3527_v13 = vrot.slane %v2998_v50, %v13817_v29  ;;  %v3531_v23 = vrot.slane %v2998_v50, %v11558_v6  ;;  %v3535_v55 = vrot.slane %v2998_v50, %v11561_v63 }
 0x3a4   :  { %2920 = vadd.xlane.f32.xlu1 %v2802_v60  ;;  %v2809_v60 = vmul.f32 %v11739_v5, %v2727_v27  ;;  %v3539_v14 = vrot.slane %v2998_v50, %v11564_v8  ;;  %v3543_v42 = vrot.slane %v2998_v50, %v11567_v1  ;;  %v3547_v34 = vrot.slane %v2998_v50, %v11570_v45 }
 0x3a5   :  { %v11752_v53 = vpop.f32.mrb[252].mxu0  ;;  %v3551_v40 = vrot.slane %v2998_v50, %v11573_v38  ;;  %v5772_v27 = vrot.slane %v5764_v3, %v11588_v24  ;;  %v6124_v19 = vcombine.low %v3523_v20, %v3527_v13  ;;  %v6125_v22 = vcombine.low %v3531_v23, %v3535_v55 }
 0x3a6   :  { %13821 = vst [vmem:[#allocation11_spill] sm:$0xff] %v11752_v53  ;;  %v2649_v43 = vpop.f32.mrb[253].mxu0  ;;  %v6126_v11 = vcombine.low %v3539_v14, %v3543_v42 }
 0x3a7   :  { %v11758_v57 = vpop.f32.mrb[254].mxu0  ;;  %v5791_v43 = vrot.slane %v5781_v44, %v11588_v24  ;;  %v6134_v3 = vrot.slane %v6124_v19, %v11588_v24  ;;  %v6141_v49 = vrot.slane %v6125_v22, %v11588_v24 }
 0x3a8   :  { %13822 = vst [vmem:[#allocation14_spill] sm:$0xff] %v11758_v57  ;;  %v2652_v48 = vpop.f32.mrb[255].mxu0 }
 0x3a9   :  { %v5813_v33 = vcombine.low %v5791_v43, %v5798_v56  ;;  %v6127_v48 = vcombine.low %v3547_v34, %v3551_v40  ;;  %v6148_v43 = vrot.slane %v6126_v11, %v11588_v24  ;;  %v6156_v13 = vcombine.low %v6134_v3, %v6141_v49 }
 0x3aa   :  { %v2993_v3 = vadd.f32 %v11551_v35, %v2849_v7 }
 0x3ab   :  { %v6155_v56 = vrot.slane %v6127_v48, %v11588_v24  ;;  %v6164_v42 = vrot.slane %v6156_v13, %v11588_v24 }
 0x3ad   :  { %v11766_v57 = vpop.f32.mrb[0].mxu0  ;;  %v6157_v23 = vcombine.low %v6148_v43, %v6155_v56 }
 0x3ae   :  { %13823 = vst [vmem:[#allocation13_spill] sm:$0xff] %v11766_v57  ;;  %v2657_v39 = vpop.f32.mrb[1].mxu0  ;;  %2934 = vadd.xlane.f32.xlu0 %v2809_v60  ;;  %v5780_v60 = vcombine.low %v5772_v27, %v5779_v46 }
 0x3af   :  { %v11776_v47 = vpop.f32.mrb[2].mxu0  ;;  %v5821_v39 = vrot.slane %v5813_v33, %v11588_v24  ;;  %v6171_v34 = vrot.slane %v6157_v23, %v11588_v24  ;;  %v2992_v33 = vadd.f32 %v11551_v35, %v11648_v61  ;;  %v2863_v23 = vpop.xlane.xlu0 %2862 }
 0x3b0   :  { %13824 = vst [vmem:[#allocation16_spill] sm:$0xff] %v11776_v47  ;;  %v2660_v44 = vpop.f32.mrb[3].mxu0 }
 0x3b1   :  { %v5829_v25 = vcombine.low %v5821_v39, %v5828_v12  ;;  %v6172_v46 = vcombine.low %v6164_v42, %v6171_v34  ;;  %v2555_v12 = vadd.f32 %v11715_v32, %v11613_v36  ;;  %v3331_v44 = vrot.slane %v2992_v33, %v13816_v10 }
 0x3b2   :  { %v3335_v19 = vrot.slane %v2992_v33, %v13817_v29  ;;  %v3339_v22 = vrot.slane %v2992_v33, %v11558_v6  ;;  %v3343_v11 = vrot.slane %v2992_v33, %v11561_v63  ;;  %v3347_v48 = vrot.slane %v2992_v33, %v11564_v8 }
 0x3b3   :  { %v3355_v39 = vrot.slane %v2992_v33, %v11570_v45  ;;  %v3359_v61 = vrot.slane %v2992_v33, %v11573_v38  ;;  %v2584_v36 = vadd.f32 %v11715_v32, %v11639_v28  ;;  %v3367_v42 = vrot.slane %v2993_v3, %v13817_v29 }
 0x3b4   :  { %v5830_v49 = vcombine.low %v3331_v44, %v3335_v19  ;;  %v5831_v43 = vcombine.low %v3339_v22, %v3343_v11  ;;  %v3371_v34 = vrot.slane %v2993_v3, %v11558_v6  ;;  %v3379_v28 = vrot.slane %v2993_v3, %v11564_v8 }
 0x3b5   :  { %v11782_v16 = vpop.f32.mrb[4].mxu0  ;;  %9224 = vperm.xlu1 %10134, %v5780_v60   ;;  %v3351_v60 = vrot.slane %v2992_v33, %v11567_v1  ;;  %v3391_v33 = vrot.slane %v2993_v3, %v11573_v38  ;;  %v3000_v22 = vadd.f32 %v11551_v35, %v2863_v23 }
 0x3b6   :  { %13825 = vst [vmem:[#allocation15_spill] sm:$0xff] %v11782_v16  ;;  %v2665_v50 = vpop.f32.mrb[5].mxu0  ;;  %v5847_v7 = vrot.slane %v5831_v43, %v11588_v24 }
 0x3b7   :  { %v11788_v2 = vpop.f32.mrb[6].mxu0  ;;  %v2722_v50 = vmax.f32 %v2555_v12, 0.0  ;;  %v5832_v56 = vcombine.low %v3347_v48, %v3351_v60  ;;  %v5840_v12 = vrot.slane %v5830_v49, %v11588_v24  ;;  %v3591_v49 = vrot.slane %v3000_v22, %v13817_v29 }
 0x3b8   :  { %13826 = vst [vmem:[#allocation18_spill] sm:$0xff] %v11788_v2  ;;  %v2668_v20 = vpop.f32.mrb[7].mxu0  ;;  %v3595_v43 = vrot.slane %v3000_v22, %v11558_v6  ;;  %v3615_v23 = vrot.slane %v3000_v22, %v11573_v38 }
 0x3b9   :  { %9227 = vperm.xlu1 %10134, %v5829_v25   ;;  %v5833_v25 = vcombine.low %v3355_v39, %v3359_v61  ;;  %v2729_v20 = vmax.f32 %v2584_v36, 0.0  ;;  %v2804_v13 = vmul.f32 %v11739_v5, %v2722_v50  ;;  %v5854_v44 = vrot.slane %v5832_v56, %v11588_v24 }
 0x3ba   :  { %v5862_v50 = vcombine.low %v5840_v12, %v5847_v7  ;;  %v3599_v56 = vrot.slane %v3000_v22, %v11561_v63 }
 0x3bb   :  { %v5861_v19 = vrot.slane %v5833_v25, %v11588_v24  ;;  %v2811_v11 = vmul.f32 %v11739_v5, %v2729_v20  ;;  %v3603_v25 = vrot.slane %v3000_v22, %v11564_v8  ;;  %v3611_v20 = vrot.slane %v3000_v22, %v11570_v45 }
 0x3bc   :  { %v5870_v12 = vrot.slane %v5862_v50, %v11588_v24 }
 0x3bd   :  { %v11790_v55 = vpop.f32.mrb[8].mxu0  ;;  %v5863_v36 = vcombine.low %v5854_v44, %v5861_v19 }
 0x3be   :  { %13827 = vst [vmem:[#allocation17_spill] sm:$0xff] %v11790_v55  ;;  %v2673_v14 = vpop.f32.mrb[9].mxu0 }
 0x3bf   :  { %v2674_v40 = vpop.f32.mrb[10].mxu0  ;;  %v3363_v14 = vrot.slane %v2993_v3, %v13816_v10  ;;  %v5877_v7 = vrot.slane %v5863_v36, %v11588_v24 }
 0x3c0   :  { %v2675_v27 = vpop.f32.mrb[11].mxu0  ;;  %v3375_v40 = vrot.slane %v2993_v3, %v11561_v63 }
 0x3c1   :  { %v3383_v27 = vrot.slane %v2993_v3, %v11567_v1  ;;  %v5879_v48 = vcombine.low %v3363_v14, %v3367_v42 }
 0x3c2   :  { %v5880_v60 = vcombine.low %v3371_v34, %v3375_v40 }
 0x3c3   :  { %v5881_v39 = vcombine.low %v3379_v28, %v3383_v27  ;;  %v5889_v14 = vrot.slane %v5879_v48, %v11588_v24  ;;  %v6223_v27 = vcombine.low %v3595_v43, %v3599_v56 }
 0x3c4   :  { %9248 = vperm.xlu0 %10135, %v6172_v46   ;;  %v3387_v46 = vrot.slane %v2993_v3, %v11570_v45  ;;  %v3587_v3 = vrot.slane %v3000_v22, %v13816_v10  ;;  %v5896_v42 = vrot.slane %v5880_v60, %v11588_v24 }
 0x3c5   :  { %v5903_v34 = vrot.slane %v5881_v39, %v11588_v24  ;;  %v5878_v39 = vcombine.low %v5870_v12, %v5877_v7 }
 0x3c6   :  { %v5882_v61 = vcombine.low %v3387_v46, %v3391_v33  ;;  %v6222_v28 = vcombine.low %v3587_v3, %v3591_v49  ;;  %v6225_v33 = vcombine.low %v3611_v20, %v3615_v23  ;;  %v5911_v44 = vcombine.low %v5889_v14, %v5896_v42  ;;  %v2853_v20 = vpop.xlane.xlu1 %2852 }
 0x3c7   :  { %v2563_v23 = vadd.f32 %v11715_v32, %v11615_v41  ;;  %v2592_v14 = vadd.f32 %v11715_v32, %v11664_v37  ;;  %v2995_v41 = vadd.f32 %v11551_v35, %v2853_v20  ;;  %v2867_v37 = vpop.xlane.xlu0 %2866 }
 0x3c8   :  { %v5910_v40 = vrot.slane %v5882_v61, %v11588_v24  ;;  %v6253_v60 = vrot.slane %v6225_v33, %v11588_v24  ;;  %v5919_v61 = vrot.slane %v5911_v44, %v11588_v24 }
 0x3c9   :  { %v2724_v12 = vmax.f32 %v2563_v23, 0.0  ;;  %v2731_v7 = vmax.f32 %v2592_v14, 0.0 }
 0x3ca   :  { %v5912_v19 = vcombine.low %v5903_v34, %v5910_v40 }
 0x3cc   :  { %v5926_v3 = vrot.slane %v5912_v19, %v11588_v24 }
 0x3ce   :  { %v5927_v43 = vcombine.low %v5919_v61, %v5926_v3  ;;  %v2806_v61 = vmul.f32 %v11739_v5, %v2724_v12  ;;  %v2813_v3 = vmul.f32 %v11739_v5, %v2731_v7 }
 0x3dd   :  { %2924 = vadd.xlane.f32.xlu1 %v2804_v13  ;;  %v3607_v13 = vrot.slane %v3000_v22, %v11567_v1  ;;  %v6232_v22 = vrot.slane %v6222_v28, %v11588_v24 }
 0x3df   :  { %v6224_v46 = vcombine.low %v3603_v25, %v3607_v13  ;;  %v2994_v13 = vadd.f32 %v11551_v35, %v11660_v26 }
 0x3e1   :  { %v6246_v48 = vrot.slane %v6224_v46, %v11588_v24  ;;  %v3395_v42 = vrot.slane %v2994_v13, %v13816_v10  ;;  %v3399_v34 = vrot.slane %v2994_v13, %v13817_v29  ;;  %v3403_v40 = vrot.slane %v2994_v13, %v11558_v6 }
 0x3e2   :  { %v3407_v28 = vrot.slane %v2994_v13, %v11561_v63  ;;  %v3415_v46 = vrot.slane %v2994_v13, %v11567_v1  ;;  %v3419_v26 = vrot.slane %v2994_v13, %v11570_v45  ;;  %v3423_v33 = vrot.slane %v2994_v13, %v11573_v38 }
 0x3e3   :  { %2938 = vadd.xlane.f32.xlu0 %v2811_v11  ;;  %v6239_v11 = vrot.slane %v6223_v27, %v11588_v24  ;;  %v6255_v50 = vcombine.low %v6246_v48, %v6253_v60  ;;  %v3411_v27 = vrot.slane %v2994_v13, %v11564_v8  ;;  %v5928_v44 = vcombine.low %v3395_v42, %v3399_v34 }
 0x3e4   :  { %v5929_v19 = vcombine.low %v3403_v40, %v3407_v28  ;;  %v3002_v48 = vadd.f32 %v11551_v35, %v2867_v37  ;;  %v3427_v60 = vrot.slane %v2995_v41, %v13816_v10 }
 0x3e5   :  { %v6254_v49 = vcombine.low %v6232_v22, %v6239_v11  ;;  %v6269_v56 = vrot.slane %v6255_v50, %v11588_v24  ;;  %v5930_v22 = vcombine.low %v3411_v27, %v3415_v46  ;;  %v5931_v11 = vcombine.low %v3419_v26, %v3423_v33 }
 0x3e6   :  { %v3439_v50 = vrot.slane %v2995_v41, %v11561_v63  ;;  %v5938_v13 = vrot.slane %v5928_v44, %v11588_v24  ;;  %v5945_v20 = vrot.slane %v5929_v19, %v11588_v24  ;;  %v3651_v42 = vrot.slane %v3002_v48, %v13816_v10 }
 0x3e7   :  { %v6262_v36 = vrot.slane %v6254_v49, %v11588_v24  ;;  %v3435_v49 = vrot.slane %v2995_v41, %v11558_v6  ;;  %v5952_v23 = vrot.slane %v5930_v22, %v11588_v24  ;;  %v5959_v14 = vrot.slane %v5931_v11, %v11588_v24 }
 0x3e8   :  { %v3655_v34 = vrot.slane %v3002_v48, %v13817_v29  ;;  %v3659_v40 = vrot.slane %v3002_v48, %v11558_v6  ;;  %v3663_v28 = vrot.slane %v3002_v48, %v11561_v63  ;;  %v3667_v27 = vrot.slane %v3002_v48, %v11564_v8 }
 0x3e9   :  { %v6270_v25 = vcombine.low %v6262_v36, %v6269_v56  ;;  %v3447_v36 = vrot.slane %v2995_v41, %v11567_v1  ;;  %v3451_v56 = vrot.slane %v2995_v41, %v11570_v45  ;;  %v3671_v46 = vrot.slane %v3002_v48, %v11567_v1 }
 0x3ea   :  { %v3675_v26 = vrot.slane %v3002_v48, %v11570_v45  ;;  %v3679_v33 = vrot.slane %v3002_v48, %v11573_v38  ;;  %v5978_v12 = vcombine.low %v3435_v49, %v3439_v50  ;;  %v5960_v44 = vcombine.low %v5938_v13, %v5945_v20 }
 0x3eb   :  { %v5961_v19 = vcombine.low %v5952_v23, %v5959_v14  ;;  %v6320_v22 = vcombine.low %v3651_v42, %v3655_v34  ;;  %v6321_v11 = vcombine.low %v3659_v40, %v3663_v28  ;;  %v2857_v28 = vpop.xlane.xlu1 %2856 }
 0x3ec   :  { %v6323_v2 = vcombine.low %v3675_v26, %v3679_v33  ;;  %v5994_v47 = vrot.slane %v5978_v12, %v11588_v24  ;;  %v5968_v50 = vrot.slane %v5960_v44, %v11588_v24  ;;  %v2571_v26 = vadd.f32 %v11715_v32, %v11617_v51  ;;  %v2871_v33 = vpop.xlane.xlu0 %2870 }
 0x3ed   :  { %v6330_v48 = vrot.slane %v6320_v22, %v11588_v24 }
 0x3ee   :  { %9230 = vperm.xlu1 %10134, %v5878_v39   ;;  %v3431_v39 = vrot.slane %v2995_v41, %v13817_v29  ;;  %v6351_v49 = vrot.slane %v6323_v2, %v11588_v24  ;;  %v2726_v44 = vmax.f32 %v2571_v26, 0.0 }
 0x3f2   :  { %9233 = vperm.xlu1 %10134, %v5927_v43   ;;  %v3443_v43 = vrot.slane %v2995_v41, %v11564_v8 }
 0x3f4   :  { %v5979_v37 = vcombine.low %v3443_v43, %v3447_v36  ;;  %v5975_v43 = vrot.slane %v5961_v19, %v11588_v24 }
 0x3f6   :  { %v6001_v55 = vrot.slane %v5979_v37, %v11588_v24  ;;  %v5976_v20 = vcombine.low %v5968_v50, %v5975_v43  ;;  %v3004_v37 = vadd.f32 %v11551_v35, %v2871_v33 }
 0x3f8   :  { %v3719_v50 = vrot.slane %v3004_v37, %v13817_v29  ;;  %v3723_v43 = vrot.slane %v3004_v37, %v11558_v6 }
 0x3f9   :  { %9254 = vperm.xlu0 %10135, %v6270_v25   ;;  %v3455_v25 = vrot.slane %v2995_v41, %v11573_v38  ;;  %v5977_v41 = vcombine.low %v3427_v60, %v3431_v39  ;;  %v6337_v60 = vrot.slane %v6321_v11, %v11588_v24 }
 0x3fb   :  { %v5980_v7 = vcombine.low %v3451_v56, %v3455_v25  ;;  %v6352_v25 = vcombine.low %v6330_v48, %v6337_v60 }
 0x3fd   :  { %v6008_v16 = vrot.slane %v5980_v7, %v11588_v24  ;;  %v6360_v42 = vrot.slane %v6352_v25, %v11588_v24 }
 0x3ff   :  { %v6010_v56 = vcombine.low %v6001_v55, %v6008_v16 }
 0x401   :  { %v6024_v14 = vrot.slane %v6010_v56, %v11588_v24  ;;  %v3731_v56 = vrot.slane %v3004_v37, %v11564_v8 }
 0x416   :  { %2928 = vadd.xlane.f32.xlu1 %v2806_v61  ;;  %v6322_v61 = vcombine.low %v3667_v27, %v3671_v46  ;;  %v11898_v27 = vpop.xlane.xlu1 %2860  ;;  %v2600_v46 = vadd.f32 %v11715_v32, %v11675_v15 }
 0x418   :  { %2942 = vadd.xlane.f32.xlu0 %v2813_v3  ;;  %v5987_v3 = vrot.slane %v5977_v41, %v11588_v24  ;;  %v6344_v39 = vrot.slane %v6322_v61, %v11588_v24  ;;  %v2997_v41 = vadd.f32 %v11551_v35, %v2857_v28  ;;  %v2733_v7 = vmax.f32 %v2600_v46, 0.0 }
 0x41a   :  { %v6009_v36 = vcombine.low %v5987_v3, %v5994_v47  ;;  %v6353_v13 = vcombine.low %v6344_v39, %v6351_v49  ;;  %v11900_v16 = vpop.xlane.xlu1 %2864  ;;  %v3491_v22 = vrot.slane %v2997_v41, %v13816_v10  ;;  %v3495_v11 = vrot.slane %v2997_v41, %v13817_v29 }
 0x41b   :  { %v3499_v15 = vrot.slane %v2997_v41, %v11558_v6  ;;  %v3503_v61 = vrot.slane %v2997_v41, %v11561_v63  ;;  %v3507_v51 = vrot.slane %v2997_v41, %v11564_v8  ;;  %v3511_v3 = vrot.slane %v2997_v41, %v11567_v1 }
 0x41c   :  { %v6017_v23 = vrot.slane %v6009_v36, %v11588_v24  ;;  %v6367_v34 = vrot.slane %v6353_v13, %v11588_v24  ;;  %v3515_v48 = vrot.slane %v2997_v41, %v11570_v45  ;;  %v3519_v60 = vrot.slane %v2997_v41, %v11573_v38 }
 0x41d   :  { %v2815_v39 = vmul.f32 %v11739_v5, %v2733_v7  ;;  %v3715_v49 = vrot.slane %v3004_v37, %v13816_v10  ;;  %v3727_v36 = vrot.slane %v3004_v37, %v11561_v63  ;;  %v2808_v13 = vmul.f32 %v11739_v5, %v2726_v44 }
 0x41e   :  { %v6025_v40 = vcombine.low %v6017_v23, %v6024_v14  ;;  %v6368_v2 = vcombine.low %v6360_v42, %v6367_v34  ;;  %v11902_v47 = vpop.xlane.xlu1 %2868  ;;  %v3739_v23 = vrot.slane %v3004_v37, %v11570_v45  ;;  %v3743_v14 = vrot.slane %v3004_v37, %v11573_v38 }
 0x41f   :  { %v6075_v42 = vcombine.low %v3491_v22, %v3495_v11  ;;  %v6076_v34 = vcombine.low %v3499_v15, %v3503_v61  ;;  %v6418_v46 = vcombine.low %v3715_v49, %v3719_v50  ;;  %v6419_v26 = vcombine.low %v3723_v43, %v3727_v36 }
 0x420   :  { %v6421_v41 = vcombine.low %v3739_v23, %v3743_v14 }
 0x421   :  { %v6085_v7 = vrot.slane %v6075_v42, %v11588_v24  ;;  %v6092_v44 = vrot.slane %v6076_v34, %v11588_v24  ;;  %v6428_v22 = vrot.slane %v6418_v46, %v11588_v24  ;;  %v6435_v11 = vrot.slane %v6419_v26, %v11588_v24 }
 0x422   :  { %v11904_v55 = vpop.xlane.xlu1 %2872  ;;  %v6449_v61 = vrot.slane %v6421_v41, %v11588_v24 }
 0x426   :  { %v11911_v12 = vpop.xlane.xlu1 %2876 }
 0x427   :  { %9236 = vperm.xlu1 %10134, %v5976_v20   ;;  %v3735_v20 = vrot.slane %v3004_v37, %v11567_v1 }
 0x429   :  { %v6420_v33 = vcombine.low %v3731_v56, %v3735_v20 }
 0x42a   :  { %v11914_v19 = vpop.xlane.xlu1 %2880 }
 0x42b   :  { %9239 = vperm.xlu1 %10134, %v6025_v40   ;;  %13828 = vst [vmem:[#allocation20_spill] sm:$0xff] %v11914_v19  ;;  %v6077_v40 = vcombine.low %v3507_v51, %v3511_v3  ;;  %v6442_v15 = vrot.slane %v6420_v33, %v11588_v24  ;;  %v6107_v51 = vcombine.low %v6085_v7, %v6092_v44 }
 0x42c   :  { %v2608_v44 = vadd.f32 %v11715_v32, %v11692_v54 }
 0x42d   :  { %v6451_v49 = vcombine.low %v6442_v15, %v6449_v61  ;;  %v6115_v50 = vrot.slane %v6107_v51, %v11588_v24 }
 0x42e   :  { %9260 = vperm.xlu0 %10135, %v6368_v2   ;;  %v11930_v25 = vpop.xlane.xlu1 %2884  ;;  %v6078_v2 = vcombine.low %v3515_v48, %v3519_v60  ;;  %v6450_v60 = vcombine.low %v6428_v22, %v6435_v11  ;;  %v2999_v11 = vadd.f32 %v11551_v35, %v11898_v27  ;;  %v2735_v51 = vmax.f32 %v2608_v44, 0.0 }
 0x42f   :  { %13829 = vst [vmem:[#allocation19_spill] sm:$0xff] %v11930_v25 }
 0x430   :  { %v6106_v25 = vrot.slane %v6078_v2, %v11588_v24  ;;  %v6458_v56 = vrot.slane %v6450_v60, %v11588_v24  ;;  %v3559_v54 = vrot.slane %v2999_v11, %v13817_v29  ;;  %v3571_v27 = vrot.slane %v2999_v11, %v11564_v8 }
 0x432   :  { %v11936_v28 = vpop.xlane.xlu1 %2888 }
 0x433   :  { %13830 = vst [vmem:[#allocation22_spill] sm:$0xff] %v11936_v28 }
 0x436   :  { %v11942_v37 = vpop.xlane.xlu1 %2892 }
 0x437   :  { %13831 = vst [vmem:[#allocation21_spill] sm:$0xff] %v11942_v37 }
 0x43a   :  { %v11948_v48 = vpop.xlane.xlu1 %2896 }
 0x43b   :  { %13832 = vst [vmem:[#allocation23_spill] sm:$0xff] %v11948_v48 }
 0x43e   :  { %v11952_v36 = vpop.xlane.xlu1 %2900 }
 0x43f   :  { %13833 = vst [vmem:[#allocation24_spill] sm:$0xff] %v11952_v36 }
 0x442   :  { %v11956_v23 = vpop.xlane.xlu1 %2904 }
 0x443   :  { %13834 = vst [vmem:[#allocation6_spill] sm:$0xff] %v11956_v23 }
 0x446   :  { %v11958_v42 = vpop.xlane.xlu1 %2908 }
 0x447   :  { %13835 = vst [vmem:[#allocation7_spill] sm:$0xff] %v11958_v42 }
 0x44d   :  { %2946 = vadd.xlane.f32.xlu0 %v2815_v39  ;;  %v6099_v39 = vrot.slane %v6077_v40, %v11588_v24  ;;  %v11962_v40 = vpop.xlane.xlu1 %2912 }
 0x44e   :  { %13836 = vst [vmem:[#allocation8_spill] sm:$0xff] %v11962_v40 }
 0x44f   :  { %2932 = vadd.xlane.f32.xlu1 %v2808_v13  ;;  %v6108_v3 = vcombine.low %v6099_v39, %v6106_v25  ;;  %v6465_v13 = vrot.slane %v6451_v49, %v11588_v24  ;;  %v2875_v25 = vpop.xlane.xlu0 %2874  ;;  %v2579_v39 = vadd.f32 %v11715_v32, %v11624_v17  ;;  %v3555_v49 = vrot.slane %v2999_v11, %v13816_v10 }
 0x450   :  { %v3006_v61 = vadd.f32 %v11551_v35, %v2875_v25  ;;  %v3567_v17 = vrot.slane %v2999_v11, %v11561_v63 }
 0x451   :  { %v6122_v43 = vrot.slane %v6108_v3, %v11588_v24  ;;  %v6466_v14 = vcombine.low %v6458_v56, %v6465_v13  ;;  %v11968_v26 = vpop.permute.xlu1 %9212  ;;  %v2728_v3 = vmax.f32 %v2579_v39, 0.0  ;;  %v3575_v56 = vrot.slane %v2999_v11, %v11567_v1 }
 0x452   :  { %v3579_v13 = vrot.slane %v2999_v11, %v11570_v45  ;;  %v3779_v25 = vrot.slane %v3006_v61, %v13816_v10  ;;  %v3783_v44 = vrot.slane %v3006_v61, %v13817_v29  ;;  %v3787_v39 = vrot.slane %v3006_v61, %v11558_v6 }
 0x453   :  { %v6123_v20 = vcombine.low %v6115_v50, %v6122_v43  ;;  %v11960_v34 = vpop.xlane.xlu0 %2878  ;;  %v3563_v50 = vrot.slane %v2999_v11, %v11558_v6  ;;  %v3795_v40 = vrot.slane %v3006_v61, %v11564_v8  ;;  %v2810_v23 = vmul.f32 %v11739_v5, %v2728_v3 }
 0x454   :  { %v3799_v36 = vrot.slane %v3006_v61, %v11567_v1  ;;  %v6173_v37 = vcombine.low %v3555_v49, %v3559_v54  ;;  %v6175_v28 = vcombine.low %v3571_v27, %v3575_v56  ;;  %v6516_v0 = vcombine.low %v3779_v25, %v3783_v44 }
 0x455   :  { %v11972_v41 = vpop.xlane.xlu1 %2916 }
 0x456   :  { %13837 = vst [vmem:[#allocation25_spill] sm:$0xff] %v11972_v41  ;;  %v3791_v41 = vrot.slane %v3006_v61, %v11561_v63  ;;  %v6183_v3 = vrot.slane %v6173_v37, %v11588_v24  ;;  %v6197_v53 = vrot.slane %v6175_v28, %v11588_v24  ;;  %v6526_v54 = vrot.slane %v6516_v0, %v11588_v24 }
 0x457   :  { %v11964_v2 = vpop.xlane.xlu0 %2882 }
 0x459   :  { %v11980_v22 = vpop.permute.xlu1 %9218 }
 0x45b   :  { %v11966_v46 = vpop.xlane.xlu0 %2886 }
 0x45d   :  { %v11993_v43 = vpop.permute.xlu1 %9221 }
 0x45f   :  { %v11970_v33 = vpop.xlane.xlu0 %2890 }
 0x460   :  { %9245 = vperm.xlu1 %10134, %v6123_v20   ;;  %v3583_v20 = vrot.slane %v2999_v11, %v11573_v38  ;;  %v3803_v11 = vrot.slane %v3006_v61, %v11570_v45 }
 0x461   :  { %v12011_v48 = vpop.xlane.xlu1 %2920 }
 0x462   :  { %13842 = vst [vmem:[#allocation30_spill] sm:$0xff] %v12011_v48 }
 0x463   :  { %9266 = vperm.xlu0 %10135, %v6466_v14   ;;  %v11974_v7 = vpop.xlane.xlu0 %2894  ;;  %v2817_v14 = vmul.f32 %v11739_v5, %v2735_v51  ;;  %v3807_v51 = vrot.slane %v3006_v61, %v11573_v38 }
 0x464   :  { %13838 = vst [vmem:[#allocation26_spill] sm:$0xff] %v11974_v7 }
 0x465   :  { %v6519_v7 = vcombine.low %v3803_v11, %v3807_v51  ;;  %v12019_v48 = vpop.permute.xlu1 %9224 }
 0x467   :  { %v11984_v15 = vpop.xlane.xlu0 %2898 }
 0x468   :  { %13839 = vst [vmem:[#allocation27_spill] sm:$0xff] %v11984_v15  ;;  %v6176_v15 = vcombine.low %v3579_v13, %v3583_v20  ;;  %v13846_v13 = vlaneseq }
 0x469   :  { %v9228_v28 = vpop.permute.xlu1 %9227 }
 0x46a   :  { %v6204_v61 = vrot.slane %v6176_v15, %v11588_v24  ;;  %v12034_v20 = vand.u32 127, %v13846_v13 }
 0x46b   :  { %v11987_v60 = vpop.xlane.xlu0 %2902 }
 0x46c   :  { %13840 = vst [vmem:[#allocation28_spill] sm:$0xff] %v11987_v60  ;;  %v6174_v60 = vcombine.low %v3563_v50, %v3567_v17  ;;  %v9442_v25 = vadd.s32 4294967288, %v12034_v20  ;;  %v9449_v44 = vadd.s32 4294967280, %v12034_v20  ;;  %v9456_v11 = vadd.s32 4294967272, %v12034_v20 }
 0x46e   :  { %v6190_v19 = vrot.slane %v6174_v60, %v11588_v24 }
 0x46f   :  { %v12005_v42 = vpop.xlane.xlu0 %2906 }
 0x470   :  { %13841 = vst [vmem:[#allocation29_spill] sm:$0xff] %v12005_v42  ;;  %v6517_v42 = vcombine.low %v3787_v39, %v3791_v41  ;;  %v6206_v41 = vcombine.low %v6197_v53, %v6204_v61  ;;  %v9470_v61 = vadd.s32 4294967256, %v12034_v20 }
 0x472   :  { %v6220_v27 = vrot.slane %v6206_v41, %v11588_v24 }
 0x473   :  { %v12013_v57 = vpop.xlane.xlu0 %2910 }
 0x474   :  { %13843 = vst [vmem:[#allocation31_spill] sm:$0xff] %v12013_v57 }
 0x477   :  { %v9216_v49 = vpop.permute.xlu0 %9215 }
 0x47b   :  { %v12025_v37 = vpop.xlane.xlu0 %2914 }
 0x47c   :  { %13844 = vst [vmem:[#allocation32_spill] sm:$0xff] %v12025_v37 }
 0x47f   :  { %v12029_v56 = vpop.xlane.xlu0 %2918 }
 0x480   :  { %13845 = vst [vmem:[#allocation33_spill] sm:$0xff] %v12029_v56 }
 0x482   :  { %2950 = vadd.xlane.f32.xlu0 %v2817_v14  ;;  %v6518_v14 = vcombine.low %v3795_v40, %v3799_v36  ;;  %v6547_v36 = vrot.slane %v6519_v7, %v11588_v24  ;;  %v6205_v40 = vcombine.low %v6183_v3, %v6190_v19  ;;  %v12036_v19 = vpop.xlane.xlu1 %2924  ;;  %v12045_v3 = vsub.s32 %v9442_v25, %v13815_v59 }
 0x483   :  { %13847 = vst [vmem:[#allocation34_spill] sm:$0xff] %v12036_v19  ;;  %v12040_v39 = vpop.xlane.xlu0 %2922 }
 0x484   :  { %2936 = vadd.xlane.f32.xlu1 %v2810_v23  ;;  %v6533_v23 = vrot.slane %v6517_v42, %v11588_v24  ;;  %v6540_v50 = vrot.slane %v6518_v14, %v11588_v24  ;;  %v6213_v15 = vrot.slane %v6205_v40, %v11588_v24  ;;  %13848 = vst [vmem:[#allocation35_spill] sm:$0xff] %v12040_v39  ;;  %v9463_v14 = vadd.s32 4294967264, %v12034_v20 }
 0x485   :  { %13849 = vst [vmem:[#allocation36_spill] sm:$0xff] %v12045_v3  ;;  %v9484_v40 = vadd.s32 4294967240, %v12034_v20 }
 0x486   :  { %v6548_v60 = vcombine.low %v6526_v54, %v6533_v23  ;;  %v6549_v17 = vcombine.low %v6540_v50, %v6547_v36  ;;  %v6221_v53 = vcombine.low %v6213_v15, %v6220_v27  ;;  %v9231_v51 = vpop.permute.xlu1 %9230  ;;  %v12049_v54 = vsub.s32 %v9449_v44, %v13815_v59 }
 0x487   :  { %v9477_v23 = vadd.s32 4294967248, %v12034_v20  ;;  %v12054_v50 = vsub.s32 %v12034_v20, %v13815_v59  ;;  %v12057_v36 = vsub.s32 %v9456_v11, %v13815_v59  ;;  %v12060_v41 = vpop.xlane.xlu0 %2926  ;;  %v12067_v15 = vsub.s32 %v9470_v61, %v13815_v59 }
 0x488   :  { %v6556_v0 = vrot.slane %v6548_v60, %v11588_v24  ;;  %v6563_v42 = vrot.slane %v6549_v17, %v11588_v24  ;;  %13850 = vst [vmem:[#allocation37_spill] sm:$0xff] %v12049_v54  ;;  %13853 = vst [vmem:[#allocation40_spill] sm:$0xff] %v12060_v41  ;;  %v12063_v60 = vsub.s32 %v9463_v14, %v13815_v59 }
 0x489   :  { %13851 = vst [vmem:[#allocation38_spill] sm:$0xff] %v12054_v50  ;;  %13852 = vst [vmem:[#allocation39_spill] sm:$0xff] %v12057_v36  ;;  %v9446_v17 = vrot.slane %v9216_v49, %v12045_v3  ;;  %v9460_v49 = vrot.slane %v11993_v43, %v12057_v36  ;;  %v12080_v25 = vsub.s32 %v9484_v40, %v13815_v59  ;;  %v9498_v40 = vadd.s32 4294967224, %v12034_v20 }
 0x48a   :  { %v6564_v7 = vcombine.low %v6556_v0, %v6563_v42  ;;  %13854 = vst [vmem:[#allocation41_spill] sm:$0xff] %v12063_v60  ;;  %13855 = vst [vmem:[#allocation42_spill] sm:$0xff] %v12067_v15  ;;  %v9234_v27 = vpop.permute.xlu1 %9233  ;;  %v9453_v0 = vrot.slane %v11980_v22, %v12049_v54  ;;  %v12072_v42 = vsub.s32 %v9477_v23, %v13815_v59 }
 0x48b   :  { %13857 = vst [vmem:[#allocation44_spill] sm:$0xff] %v12080_v25  ;;  %v9467_v44 = vrot.slane %v12019_v48, %v12063_v60  ;;  %v9474_v11 = vrot.slane %v9228_v28, %v12067_v15  ;;  %v12089_v61 = vpop.xlane.xlu0 %2930  ;;  %v9488_v28 = vrot.slane %v9234_v27, %v12080_v25  ;;  %v12104_v13 = vsub.s32 %v9498_v40, %v13815_v59 }
 0x48c   :  { %13856 = vst [vmem:[#allocation43_spill] sm:$0xff] %v12072_v42  ;;  %13859 = vst [vmem:[#allocation46_spill] sm:$0xff] %v12089_v61  ;;  %v9481_v43 = vrot.slane %v9231_v51, %v12072_v42  ;;  %v2587_v40 = vadd.f32 %v11715_v32, %v11643_v58 }
 0x48d   :  { %13861 = vst [vmem:[#allocation48_spill] sm:$0xff] %v12104_v13 }
 0x48f   :  { %v9243_v27 = vpop.permute.xlu0 %9242 }
 0x495   :  { %9251 = vperm.xlu1 %10134, %v6221_v53   ;;  %v9491_v53 = vadd.s32 4294967232, %v12034_v20 }
 0x497   :  { %v12093_v23 = vsub.s32 %v9491_v53, %v13815_v59 }
 0x498   :  { %9272 = vperm.xlu0 %10135, %v6564_v7   ;;  %v9441_v7 = vrot.slane %v11968_v26, %v12054_v50 }
 0x499   :  { %13860 = vst [vmem:[#allocation47_spill] sm:$0xff] %v12093_v23 }
 0x49a   :  { %v9448_v22 = vsel %vm9447_vm3, %v9446_v17, %v9441_v7  ;;  %v9505_v17 = vadd.s32 4294967216, %v12034_v20 }
 0x49b   :  { %v9455_v26 = vsel %vm9454_vm4, %v9453_v0, %v9448_v22 }
 0x49c   :  { %v9462_v48 = vsel %vm9461_vm5, %v9460_v49, %v9455_v26  ;;  %v12107_v49 = vsub.s32 %v9505_v17, %v13815_v59 }
 0x49d   :  { %v9469_v7 = vsel %vm9468_vm6, %v9467_v44, %v9462_v48 }
 0x49e   :  { %v9476_v0 = vsel %vm9475_vm7, %v9474_v11, %v9469_v7  ;;  %13862 = vst [vmem:[#allocation49_spill] sm:$0xff] %v12107_v49  ;;  %v9509_v7 = vrot.slane %v9243_v27, %v12107_v49 }
 0x49f   :  { %v9483_v51 = vsel %vm9482_vm8, %v9481_v43, %v9476_v0  ;;  %v2616_v43 = vadd.f32 %v11715_v32, %v11700_v9 }
 0x4a0   :  { %v9490_v26 = vsel %vm9489_vm9, %v9488_v28, %v9483_v51  ;;  %v3001_v28 = vadd.f32 %v11551_v35, %v11900_v16 }
 0x4a1   :  { %v2737_v51 = vmax.f32 %v2616_v43, 0.0 }
 0x4a2   :  { %v3619_v9 = vrot.slane %v3001_v28, %v13816_v10  ;;  %v3627_v27 = vrot.slane %v3001_v28, %v11558_v6  ;;  %v3631_v58 = vrot.slane %v3001_v28, %v11561_v63  ;;  %v3635_v32 = vrot.slane %v3001_v28, %v11564_v8 }
 0x4a3   :  { %v12086_v14 = vpop.xlane.xlu1 %2928  ;;  %v3639_v16 = vrot.slane %v3001_v28, %v11567_v1 }
 0x4a4   :  { %13858 = vst [vmem:[#allocation45_spill] sm:$0xff] %v12086_v14 }
 0x4a5   :  { %v6273_v61 = vcombine.low %v3635_v32, %v3639_v16 }
 0x4a7   :  { %v9237_v22 = vpop.permute.xlu1 %9236 }
 0x4a8   :  { %v9495_v53 = vrot.slane %v9237_v22, %v12093_v23  ;;  %v3008_v22 = vadd.f32 %v11551_v35, %v11960_v34  ;;  %v2819_v34 = vmul.f32 %v11739_v5, %v2737_v51 }
 0x4aa   :  { %v9497_v44 = vsel %vm9496_vm10, %v9495_v53, %v9490_v26  ;;  %v2730_v53 = vmax.f32 %v2587_v40, 0.0  ;;  %v3623_v26 = vrot.slane %v3001_v28, %v13817_v29  ;;  %v3847_v43 = vrot.slane %v3008_v22, %v13817_v29 }
 0x4ab   :  { %v9240_v48 = vpop.permute.xlu1 %9239  ;;  %v3855_v40 = vrot.slane %v3008_v22, %v11561_v63  ;;  %v3863_v19 = vrot.slane %v3008_v22, %v11567_v1  ;;  %v3867_v49 = vrot.slane %v3008_v22, %v11570_v45 }
 0x4ac   :  { %v9502_v11 = vrot.slane %v9240_v48, %v12104_v13  ;;  %v3647_v48 = vrot.slane %v3001_v28, %v11573_v38  ;;  %v2812_v14 = vmul.f32 %v11739_v5, %v2730_v53  ;;  %v6271_v51 = vcombine.low %v3619_v9, %v3623_v26 }
 0x4ad   :  { %v6272_v13 = vcombine.low %v3627_v27, %v3631_v58  ;;  %v6295_v5 = vrot.slane %v6273_v61, %v11588_v24 }
 0x4ae   :  { %v9504_v17 = vsel %vm9503_vm11, %v9502_v11, %v9497_v44  ;;  %v3643_v44 = vrot.slane %v3001_v28, %v11570_v45  ;;  %v3843_v11 = vrot.slane %v3008_v22, %v13816_v10  ;;  %v3871_v28 = vrot.slane %v3008_v22, %v11573_v38 }
 0x4af   :  { %v12121_v0 = vsel %vm9510_vm12, %v9509_v7, %v9504_v17  ;;  %v3851_v7 = vrot.slane %v3008_v22, %v11558_v6  ;;  %v3859_v17 = vrot.slane %v3008_v22, %v11564_v8  ;;  %v6281_v37 = vrot.slane %v6271_v51, %v11588_v24 }
 0x4b0   :  { %v6274_v41 = vcombine.low %v3643_v44, %v3647_v48  ;;  %v6614_v23 = vcombine.low %v3843_v11, %v3847_v43  ;;  %v6617_v56 = vcombine.low %v3867_v49, %v3871_v28  ;;  %v12171_v43 = vld [vmem:[%s13729_s9] ss:$0 sm:$0xff]  ;;  %v3003_v51 = vadd.f32 %v11551_v35, %v11902_v47 }
 0x4b1   :  { %v6615_v25 = vcombine.low %v3851_v7, %v3855_v40  ;;  %v6616_v39 = vcombine.low %v3859_v17, %v3863_v19  ;;  %v2624_v7 = vadd.f32 %v12171_v43, %v11706_v18  ;;  %v2595_v17 = vadd.f32 %v12171_v43, %v11667_v30 }
 0x4b2   :  { %v6302_v53 = vrot.slane %v6274_v41, %v11588_v24  ;;  %v6624_v57 = vrot.slane %v6614_v23, %v11588_v24  ;;  %v3683_v18 = vrot.slane %v3003_v51, %v13816_v10  ;;  %v3691_v30 = vrot.slane %v3003_v51, %v11558_v6 }
 0x4b3   :  { %v6631_v22 = vrot.slane %v6615_v25, %v11588_v24  ;;  %v6638_v9 = vrot.slane %v6616_v39, %v11588_v24  ;;  %v12155_v25 = vpop.xlane.xlu0 %2934  ;;  %v3703_v47 = vrot.slane %v3003_v51, %v11567_v1 }
 0x4b4   :  { %v6304_v27 = vcombine.low %v6295_v5, %v6302_v53  ;;  %v3010_v5 = vadd.f32 %v11551_v35, %v11964_v2  ;;  %v2739_v53 = vmax.f32 %v2624_v7, 0.0  ;;  %v12198_v2 = vld [vmem:[%s13730_s10] ss:$0 sm:$0xff] }
 0x4b5   :  { %v6646_v19 = vcombine.low %v6624_v57, %v6631_v22  ;;  %v2732_v22 = vmax.f32 %v2595_v17, 0.0 }
 0x4b7   :  { %2954 = vadd.xlane.f32.xlu0 %v2819_v34  ;;  %v6288_v34 = vrot.slane %v6272_v13, %v11588_v24  ;;  %v6318_v13 = vrot.slane %v6304_v27, %v11588_v24  ;;  %v6654_v61 = vrot.slane %v6646_v19, %v11588_v24  ;;  %v9249_v44 = vpop.permute.xlu0 %9248  ;;  %v3711_v27 = vrot.slane %v3003_v51, %v11573_v38 }
 0x4b8   :  { %v2821_v19 = vmul.f32 %v12198_v2, %v2739_v53 }
 0x4b9   :  { %2940 = vadd.xlane.f32.xlu1 %v2812_v14  ;;  %v6645_v14 = vrot.slane %v6617_v56, %v11588_v24  ;;  %v6303_v26 = vcombine.low %v6281_v37, %v6288_v34  ;;  %v9512_v56 = vadd.s32 4294967208, %v12034_v20  ;;  %v9519_v37 = vadd.s32 4294967200, %v12034_v20 }
 0x4bb   :  { %v6647_v49 = vcombine.low %v6638_v9, %v6645_v14  ;;  %v6311_v58 = vrot.slane %v6303_v26, %v11588_v24  ;;  %v12162_v39 = vsub.s32 %v9512_v56, %v13815_v59  ;;  %v12165_v16 = vsub.s32 %v9519_v37, %v13815_v59 }
 0x4bc   :  { %v3687_v9 = vrot.slane %v3003_v51, %v13817_v29  ;;  %v3695_v14 = vrot.slane %v3003_v51, %v11561_v63  ;;  %v3707_v26 = vrot.slane %v3003_v51, %v11570_v45  ;;  %v3931_v56 = vrot.slane %v3010_v5, %v11570_v45 }
 0x4bd   :  { %v6661_v41 = vrot.slane %v6647_v49, %v11588_v24  ;;  %v6319_v32 = vcombine.low %v6311_v58, %v6318_v13  ;;  %13864 = vst [vmem:[#allocation51_spill] sm:$0xff] %v12162_v39  ;;  %13865 = vst [vmem:[#allocation52_spill] sm:$0xff] %v12165_v16  ;;  %v9523_v40 = vrot.slane %v9249_v44, %v12165_v16 }
 0x4be   :  { %v3907_v49 = vrot.slane %v3010_v5, %v13816_v10  ;;  %v3911_v58 = vrot.slane %v3010_v5, %v13817_v29  ;;  %v3915_v13 = vrot.slane %v3010_v5, %v11558_v6  ;;  %v3935_v37 = vrot.slane %v3010_v5, %v11573_v38 }
 0x4bf   :  { %v6662_v23 = vcombine.low %v6654_v61, %v6661_v41  ;;  %v3919_v61 = vrot.slane %v3010_v5, %v11561_v63  ;;  %v3923_v41 = vrot.slane %v3010_v5, %v11564_v8  ;;  %v6369_v44 = vcombine.low %v3683_v18, %v3687_v9 }
 0x4c0   :  { %v6372_v7 = vcombine.low %v3707_v26, %v3711_v27 }
 0x4c1   :  { %v6713_v17 = vcombine.low %v3915_v13, %v3919_v61  ;;  %v6379_v53 = vrot.slane %v6369_v44, %v11588_v24 }
 0x4ca   :  { %9257 = vperm.xlu1 %10134, %v6319_v32   ;;  %v2814_v32 = vmul.f32 %v12198_v2, %v2732_v22 }
 0x4cd   :  { %9278 = vperm.xlu0 %10135, %v6662_v23   ;;  %v3927_v23 = vrot.slane %v3010_v5, %v11567_v1  ;;  %v6729_v5 = vrot.slane %v6713_v17, %v11588_v24 }
 0x4dc   :  { %v12159_v57 = vpop.xlane.xlu1 %2932 }
 0x4dd   :  { %13863 = vst [vmem:[#allocation50_spill] sm:$0xff] %v12159_v57  ;;  %v6400_v57 = vrot.slane %v6372_v7, %v11588_v24 }
 0x4e0   :  { %v9246_v48 = vpop.permute.xlu1 %9245 }
 0x4e1   :  { %v9516_v11 = vrot.slane %v9246_v48, %v12162_v39  ;;  %v6370_v48 = vcombine.low %v3691_v30, %v3695_v14 }
 0x4e3   :  { %v9518_v28 = vsel %vm9517_vm13, %v9516_v11, %v12121_v0  ;;  %v3699_v0 = vrot.slane %v3003_v51, %v11564_v8  ;;  %v6715_v51 = vcombine.low %v3931_v56, %v3935_v37 }
 0x4e4   :  { %v12183_v34 = vsel %vm9524_vm14, %v9523_v40, %v9518_v28  ;;  %v6712_v40 = vcombine.low %v3907_v49, %v3911_v58  ;;  %v6714_v28 = vcombine.low %v3923_v41, %v3927_v23  ;;  %v12222_v41 = vpop.xlane.xlu0 %2938 }
 0x4e5   :  { %v6371_v11 = vcombine.low %v3699_v0, %v3703_v47  ;;  %v6743_v9 = vrot.slane %v6715_v51, %v11588_v24 }
 0x4e6   :  { %v6722_v16 = vrot.slane %v6712_v40, %v11588_v24  ;;  %v6736_v18 = vrot.slane %v6714_v28, %v11588_v24  ;;  %v2603_v40 = vadd.f32 %v12171_v43, %v11680_v4  ;;  %v3005_v28 = vadd.f32 %v11551_v35, %v11904_v55 }
 0x4e7   :  { %v6393_v22 = vrot.slane %v6371_v11, %v11588_v24  ;;  %v2632_v11 = vadd.f32 %v12171_v43, %v11710_v52 }
 0x4e8   :  { %v6744_v0 = vcombine.low %v6722_v16, %v6729_v5  ;;  %v6745_v47 = vcombine.low %v6736_v18, %v6743_v9  ;;  %v9255_v37 = vpop.permute.xlu0 %9254  ;;  %v3747_v52 = vrot.slane %v3005_v28, %v13816_v10  ;;  %v3751_v5 = vrot.slane %v3005_v28, %v13817_v29 }
 0x4e9   :  { %v6402_v14 = vcombine.low %v6393_v22, %v6400_v57  ;;  %v9533_v57 = vadd.s32 4294967184, %v12034_v20  ;;  %v2734_v22 = vmax.f32 %v2603_v40, 0.0  ;;  %v3755_v18 = vrot.slane %v3005_v28, %v11558_v6 }
 0x4ea   :  { %v6752_v49 = vrot.slane %v6744_v0, %v11588_v24  ;;  %v6759_v58 = vrot.slane %v6745_v47, %v11588_v24  ;;  %v3759_v4 = vrot.slane %v3005_v28, %v11561_v63  ;;  %v3767_v9 = vrot.slane %v3005_v28, %v11567_v1 }
 0x4eb   :  { %v6416_v27 = vrot.slane %v6402_v14, %v11588_v24  ;;  %v12232_v56 = vsub.s32 %v9533_v57, %v13815_v59  ;;  %v3771_v55 = vrot.slane %v3005_v28, %v11570_v45 }
 0x4ec   :  { %2958 = vadd.xlane.f32.xlu0 %v2821_v19  ;;  %v6386_v19 = vrot.slane %v6370_v48, %v11588_v24  ;;  %v6760_v61 = vcombine.low %v6752_v49, %v6759_v58  ;;  %v2816_v49 = vmul.f32 %v12198_v2, %v2734_v22  ;;  %v6468_v57 = vcombine.low %v3755_v18, %v3759_v4 }
 0x4ed   :  { %13867 = vst [vmem:[#allocation54_spill] sm:$0xff] %v12232_v56  ;;  %v9537_v7 = vrot.slane %v9255_v37, %v12232_v56 }
 0x4ee   :  { %2944 = vadd.xlane.f32.xlu1 %v2814_v32  ;;  %v6401_v30 = vcombine.low %v6379_v53, %v6386_v19  ;;  %v9526_v32 = vadd.s32 4294967192, %v12034_v20  ;;  %v3012_v53 = vadd.f32 %v11551_v35, %v11966_v46  ;;  %v2741_v19 = vmax.f32 %v2632_v11, 0.0 }
 0x4f0   :  { %v6409_v26 = vrot.slane %v6401_v30, %v11588_v24  ;;  %v12229_v23 = vsub.s32 %v9526_v32, %v13815_v59  ;;  %v3775_v30 = vrot.slane %v3005_v28, %v11573_v38  ;;  %v2823_v46 = vmul.f32 %v12198_v2, %v2741_v19 }
 0x4f1   :  { %v3971_v14 = vrot.slane %v3012_v53, %v13816_v10  ;;  %v3975_v0 = vrot.slane %v3012_v53, %v13817_v29  ;;  %v3979_v47 = vrot.slane %v3012_v53, %v11558_v6  ;;  %v3991_v58 = vrot.slane %v3012_v53, %v11567_v1 }
 0x4f2   :  { %v6417_v13 = vcombine.low %v6409_v26, %v6416_v27  ;;  %13866 = vst [vmem:[#allocation53_spill] sm:$0xff] %v12229_v23  ;;  %v3983_v26 = vrot.slane %v3012_v53, %v11561_v63  ;;  %v3987_v27 = vrot.slane %v3012_v53, %v11564_v8  ;;  %v6467_v32 = vcombine.low %v3747_v52, %v3751_v5 }
 0x4f4   :  { %v6811_v11 = vcombine.low %v3979_v47, %v3983_v26 }
 0x4ff   :  { %9263 = vperm.xlu1 %10134, %v6417_v13   ;;  %v3995_v13 = vrot.slane %v3012_v53, %v11570_v45 }
 0x502   :  { %9284 = vperm.xlu0 %10135, %v6760_v61   ;;  %v3999_v61 = vrot.slane %v3012_v53, %v11573_v38  ;;  %v6827_v53 = vrot.slane %v6811_v11, %v11588_v24 }
 0x504   :  { %v6813_v40 = vcombine.low %v3995_v13, %v3999_v61 }
 0x506   :  { %v6841_v5 = vrot.slane %v6813_v40, %v11588_v24 }
 0x511   :  { %v12226_v16 = vpop.xlane.xlu1 %2936 }
 0x515   :  { %v9252_v44 = vpop.permute.xlu1 %9251 }
 0x516   :  { %v9530_v48 = vrot.slane %v9252_v44, %v12229_v23  ;;  %v6470_v44 = vcombine.low %v3771_v55, %v3775_v30 }
 0x518   :  { %v9532_v17 = vsel %vm9531_vm15, %v9530_v48, %v12183_v34  ;;  %v3763_v34 = vrot.slane %v3005_v28, %v11564_v8  ;;  %v6810_v48 = vcombine.low %v3971_v14, %v3975_v0  ;;  %v6484_v28 = vrot.slane %v6468_v57, %v11588_v24 }
 0x519   :  { %v9539_v51 = vsel %vm9538_vm0, %v9537_v7, %v9532_v17  ;;  %v6812_v7 = vcombine.low %v3987_v27, %v3991_v58  ;;  %v6477_v17 = vrot.slane %v6467_v32, %v11588_v24  ;;  %v6498_v22 = vrot.slane %v6470_v44, %v11588_v24 }
 0x51a   :  { %v6469_v37 = vcombine.low %v3763_v34, %v3767_v9  ;;  %v9540_v27 = vadd.s32 4294967176, %v12034_v20  ;;  %v2611_v32 = vadd.f32 %v12171_v43, %v11694_v31  ;;  %v2640_v57 = vadd.f32 %v12171_v43, %v11728_v62 }
 0x51b   :  { %v6834_v52 = vrot.slane %v6812_v7, %v11588_v24  ;;  %v6499_v18 = vcombine.low %v6477_v17, %v6484_v28  ;;  %v3007_v20 = vadd.f32 %v11551_v35, %v11911_v12 }
 0x51c   :  { %v6491_v19 = vrot.slane %v6469_v37, %v11588_v24  ;;  %v12281_v58 = vsub.s32 %v9540_v27, %v13815_v59  ;;  %v2736_v44 = vmax.f32 %v2611_v32, 0.0  ;;  %v3014_v59 = vadd.f32 %v11551_v35, %v11970_v33 }
 0x51d   :  { %v6843_v9 = vcombine.low %v6834_v52, %v6841_v5  ;;  %v6507_v55 = vrot.slane %v6499_v18, %v11588_v24  ;;  %v3811_v11 = vrot.slane %v3007_v20, %v13816_v10  ;;  %v3815_v7 = vrot.slane %v3007_v20, %v13817_v29 }
 0x51e   :  { %v6500_v4 = vcombine.low %v6491_v19, %v6498_v22  ;;  %13868 = vst [vmem:[#allocation55_spill] sm:$0xff] %v12281_v58  ;;  %v3819_v31 = vrot.slane %v3007_v20, %v11558_v6  ;;  %v3823_v40 = vrot.slane %v3007_v20, %v11561_v63  ;;  %v3827_v62 = vrot.slane %v3007_v20, %v11564_v8 }
 0x51f   :  { %v6857_v0 = vrot.slane %v6843_v9, %v11588_v24  ;;  %v3835_v17 = vrot.slane %v3007_v20, %v11570_v45  ;;  %v3839_v12 = vrot.slane %v3007_v20, %v11573_v38  ;;  %v2818_v33 = vmul.f32 %v12198_v2, %v2736_v44 }
 0x520   :  { %v6514_v30 = vrot.slane %v6500_v4, %v11588_v24  ;;  %v4035_v19 = vrot.slane %v3014_v59, %v13816_v10  ;;  %v4039_v22 = vrot.slane %v3014_v59, %v13817_v29  ;;  %v4051_v52 = vrot.slane %v3014_v59, %v11564_v8 }
 0x521   :  { %2962 = vadd.xlane.f32.xlu0 %v2823_v46  ;;  %v6820_v46 = vrot.slane %v6810_v48, %v11588_v24  ;;  %v2743_v48 = vmax.f32 %v2640_v57, 0.0  ;;  %v4055_v5 = vrot.slane %v3014_v59, %v11567_v1  ;;  %v4059_v18 = vrot.slane %v3014_v59, %v11570_v45 }
 0x522   :  { %v6515_v47 = vcombine.low %v6507_v55, %v6514_v30  ;;  %v4063_v4 = vrot.slane %v3014_v59, %v11573_v38  ;;  %v6566_v9 = vcombine.low %v3819_v31, %v3823_v40  ;;  %v6568_v30 = vcombine.low %v3835_v17, %v3839_v12 }
 0x523   :  { %2948 = vadd.xlane.f32.xlu1 %v2816_v49  ;;  %v6842_v34 = vcombine.low %v6820_v46, %v6827_v53  ;;  %v2825_v28 = vmul.f32 %v12198_v2, %v2743_v48  ;;  %v4043_v46 = vrot.slane %v3014_v59, %v11558_v6  ;;  %v4047_v53 = vrot.slane %v3014_v59, %v11561_v63 }
 0x524   :  { %v6596_v32 = vrot.slane %v6568_v30, %v11588_v24 }
 0x525   :  { %v6850_v14 = vrot.slane %v6842_v34, %v11588_v24  ;;  %v6565_v34 = vcombine.low %v3811_v11, %v3815_v7 }
 0x527   :  { %v6858_v26 = vcombine.low %v6850_v14, %v6857_v0  ;;  %v6908_v14 = vcombine.low %v4035_v19, %v4039_v22  ;;  %v6909_v0 = vcombine.low %v4043_v46, %v4047_v53  ;;  %v6575_v27 = vrot.slane %v6565_v34, %v11588_v24  ;;  %v13871_v34 = vld [vmem:[#allocation11_spill] sm:$0xff] }
 0x529   :  { %v6918_v57 = vrot.slane %v6908_v14, %v11588_v24  ;;  %v13872_v14 = vld [vmem:[#allocation20_spill] sm:$0xff] }
 0x534   :  { %9269 = vperm.xlu1 %10134, %v6515_v47   ;;  %v6910_v47 = vcombine.low %v4051_v52, %v4055_v5 }
 0x536   :  { %v6932_v44 = vrot.slane %v6910_v47, %v11588_v24 }
 0x537   :  { %9290 = vperm.xlu0 %10135, %v6858_v26   ;;  %v6911_v26 = vcombine.low %v4059_v18, %v4063_v4  ;;  %v2619_v4 = vadd.f32 %v12171_v43, %v11702_v21 }
 0x539   :  { %v6939_v48 = vrot.slane %v6911_v26, %v11588_v24  ;;  %v2738_v26 = vmax.f32 %v2619_v4, 0.0 }
 0x53b   :  { %v6941_v31 = vcombine.low %v6932_v44, %v6939_v48 }
 0x53d   :  { %v6955_v17 = vrot.slane %v6941_v31, %v11588_v24  ;;  %v2820_v31 = vmul.f32 %v12198_v2, %v2738_v26 }
 0x546   :  { %v12278_v49 = vpop.xlane.xlu1 %2940 }
 0x54a   :  { %v9258_v13 = vpop.permute.xlu1 %9257 }
 0x54b   :  { %v9544_v61 = vrot.slane %v9258_v13, %v12281_v58  ;;  %v6582_v13 = vrot.slane %v6566_v9, %v11588_v24  ;;  %v2648_v9 = vadd.f32 %v12171_v43, %v13871_v34 }
 0x54d   :  { %v12289_v37 = vsel %vm9545_vm1, %v9544_v61, %v9539_v51  ;;  %v3831_v51 = vrot.slane %v3007_v20, %v11567_v1  ;;  %v6925_v20 = vrot.slane %v6909_v0, %v11588_v24  ;;  %v6597_v59 = vcombine.low %v6575_v27, %v6582_v13  ;;  %v13873_v13 = vld [vmem:[#allocation26_spill] sm:$0xff] }
 0x54e   :  { %13869 = vst [vmem:[#allocation56_spill] sm:$0xff] %v12289_v37  ;;  %v3009_v0 = vadd.f32 %v11551_v35, %v13872_v14  ;;  %v2745_v27 = vmax.f32 %v2648_v9, 0.0 }
 0x54f   :  { %v6567_v55 = vcombine.low %v3827_v62, %v3831_v51  ;;  %v6940_v7 = vcombine.low %v6918_v57, %v6925_v20  ;;  %v6605_v40 = vrot.slane %v6597_v59, %v11588_v24 }
 0x550   :  { %v3879_v21 = vrot.slane %v3009_v0, %v13817_v29  ;;  %v3883_v57 = vrot.slane %v3009_v0, %v11558_v6  ;;  %v3887_v20 = vrot.slane %v3009_v0, %v11561_v63  ;;  %v3891_v44 = vrot.slane %v3009_v0, %v11564_v8 }
 0x551   :  { %v6589_v61 = vrot.slane %v6567_v55, %v11588_v24  ;;  %v6948_v51 = vrot.slane %v6940_v7, %v11588_v24  ;;  %v3895_v48 = vrot.slane %v3009_v0, %v11567_v1  ;;  %v3899_v59 = vrot.slane %v3009_v0, %v11570_v45 }
 0x552   :  { %v2827_v7 = vmul.f32 %v12198_v2, %v2745_v27 }
 0x553   :  { %v6598_v11 = vcombine.low %v6589_v61, %v6596_v32  ;;  %v3016_v61 = vadd.f32 %v11551_v35, %v13873_v13  ;;  %v3875_v32 = vrot.slane %v3009_v0, %v13816_v10 }
 0x555   :  { %v6612_v62 = vrot.slane %v6598_v11, %v11588_v24  ;;  %v3903_v11 = vrot.slane %v3009_v0, %v11573_v38 }
 0x556   :  { %2966 = vadd.xlane.f32.xlu0 %v2825_v28  ;;  %v6956_v28 = vcombine.low %v6948_v51, %v6955_v17  ;;  %v4107_v51 = vrot.slane %v3016_v61, %v11558_v6  ;;  %v4111_v17 = vrot.slane %v3016_v61, %v11561_v63 }
 0x557   :  { %v6613_v12 = vcombine.low %v6605_v40, %v6612_v62  ;;  %v4099_v40 = vrot.slane %v3016_v61, %v13816_v10  ;;  %v4103_v62 = vrot.slane %v3016_v61, %v13817_v29  ;;  %v6666_v4 = vcombine.low %v3899_v59, %v3903_v11 }
 0x558   :  { %2952 = vadd.xlane.f32.xlu1 %v2818_v33  ;;  %v12325_v33 = vpop.xlane.xlu0 %2942  ;;  %v7007_v9 = vcombine.low %v4107_v51, %v4111_v17 }
 0x559   :  { %v7006_v34 = vcombine.low %v4099_v40, %v4103_v62  ;;  %v6694_v27 = vrot.slane %v6666_v4, %v11588_v24 }
 0x55b   :  { %v7016_v13 = vrot.slane %v7006_v34, %v11588_v24 }
 0x55c   :  { %v9261_v19 = vpop.permute.xlu0 %9260 }
 0x55d   :  { %v9550_v5 = vrot.slane %v9261_v19, %v12054_v50  ;;  %v4123_v19 = vrot.slane %v3016_v61, %v11570_v45 }
 0x560   :  { %v12327_v22 = vpop.xlane.xlu0 %2946 }
 0x564   :  { %v9267_v53 = vpop.permute.xlu0 %9266 }
 0x565   :  { %v9559_v55 = vrot.slane %v9267_v53, %v12049_v54  ;;  %v4127_v53 = vrot.slane %v3016_v61, %v11573_v38  ;;  %v13894_v54 = vld [vmem:[#allocation44_spill] sm:$0xff] }
 0x568   :  { %v12374_v51 = vpop.xlane.xlu0 %2950 }
 0x569   :  { %9275 = vperm.xlu1 %10134, %v6613_v12   ;;  %v4115_v12 = vrot.slane %v3016_v61, %v11564_v8 }
 0x56c   :  { %9296 = vperm.xlu0 %10135, %v6956_v28   ;;  %v4119_v28 = vrot.slane %v3016_v61, %v11567_v1  ;;  %v7023_v61 = vrot.slane %v7007_v9, %v11588_v24  ;;  %v13877_v9 = vld [vmem:[#allocation19_spill] sm:$0xff] }
 0x57b   :  { %v12329_v46 = vpop.xlane.xlu1 %2944 }
 0x57c   :  { %13870 = vst [vmem:[#allocation57_spill] sm:$0xff] %v12329_v46 }
 0x57f   :  { %v9264_v52 = vpop.permute.xlu1 %9263 }
 0x580   :  { %v9554_v18 = vrot.slane %v9264_v52, %v12045_v3  ;;  %v6663_v52 = vcombine.low %v3875_v32, %v3879_v21 }
 0x582   :  { %v9555_v30 = vsel %vm9447_vm3, %v9554_v18, %v9550_v5  ;;  %v6664_v5 = vcombine.low %v3883_v57, %v3887_v20  ;;  %v6665_v18 = vcombine.low %v3891_v44, %v3895_v48  ;;  %v6673_v14 = vrot.slane %v6663_v52, %v11588_v24 }
 0x583   :  { %v9560_v47 = vsel %vm9454_vm4, %v9559_v55, %v9555_v30  ;;  %v7008_v55 = vcombine.low %v4115_v12, %v4119_v28  ;;  %v7009_v30 = vcombine.low %v4123_v19, %v4127_v53  ;;  %v7038_v44 = vcombine.low %v7016_v13, %v7023_v61  ;;  %v9273_v12 = vpop.permute.xlu0 %9272  ;;  %v13875_v53 = vld [vmem:[#allocation10_spill] sm:$0xff] }
 0x584   :  { %v6680_v0 = vrot.slane %v6664_v5, %v11588_v24  ;;  %v6687_v26 = vrot.slane %v6665_v18, %v11588_v24  ;;  %v2627_v52 = vadd.f32 %v12171_v43, %v13875_v53  ;;  %v13876_v5 = vld [vmem:[#allocation13_spill] sm:$0xff]  ;;  %v9569_v4 = vrot.slane %v9273_v12, %v12063_v60 }
 0x585   :  { %v7030_v32 = vrot.slane %v7008_v55, %v11588_v24  ;;  %v7037_v21 = vrot.slane %v7009_v30, %v11588_v24  ;;  %v2656_v18 = vadd.f32 %v12171_v43, %v13876_v5  ;;  %v3011_v55 = vadd.f32 %v11551_v35, %v13877_v9 }
 0x586   :  { %v6695_v57 = vcombine.low %v6673_v14, %v6680_v0  ;;  %v6696_v20 = vcombine.low %v6687_v26, %v6694_v27  ;;  %v2740_v14 = vmax.f32 %v2627_v52, 0.0  ;;  %v13878_v26 = vld [vmem:[#allocation27_spill] sm:$0xff] }
 0x587   :  { %v7039_v48 = vcombine.low %v7030_v32, %v7037_v21  ;;  %v2747_v0 = vmax.f32 %v2656_v18, 0.0  ;;  %v3018_v27 = vadd.f32 %v11551_v35, %v13878_v26  ;;  %v3939_v13 = vrot.slane %v3011_v55, %v13816_v10 }
 0x588   :  { %v6703_v59 = vrot.slane %v6695_v57, %v11588_v24  ;;  %v6710_v11 = vrot.slane %v6696_v20, %v11588_v24  ;;  %v3943_v61 = vrot.slane %v3011_v55, %v13817_v29  ;;  %v3947_v32 = vrot.slane %v3011_v55, %v11558_v6 }
 0x589   :  { %v3951_v21 = vrot.slane %v3011_v55, %v11561_v63  ;;  %v3959_v57 = vrot.slane %v3011_v55, %v11567_v1  ;;  %v3963_v20 = vrot.slane %v3011_v55, %v11570_v45  ;;  %v4183_v12 = vrot.slane %v3018_v27, %v11567_v1 }
 0x58a   :  { %v6711_v40 = vcombine.low %v6703_v59, %v6710_v11  ;;  %v2822_v59 = vmul.f32 %v12198_v2, %v2740_v14  ;;  %v4163_v11 = vrot.slane %v3018_v27, %v13816_v10  ;;  %v6761_v53 = vcombine.low %v3939_v13, %v3943_v61 }
 0x58b   :  { %2970 = vadd.xlane.f32.xlu0 %v2827_v7  ;;  %v7046_v7 = vrot.slane %v7038_v44, %v11588_v24  ;;  %v3967_v44 = vrot.slane %v3011_v55, %v11573_v38  ;;  %v6762_v52 = vcombine.low %v3947_v32, %v3951_v21 }
 0x58c   :  { %v6771_v14 = vrot.slane %v6761_v53, %v11588_v24 }
 0x58d   :  { %2956 = vadd.xlane.f32.xlu1 %v2820_v31  ;;  %v7053_v31 = vrot.slane %v7039_v48, %v11588_v24  ;;  %v2829_v48 = vmul.f32 %v12198_v2, %v2747_v0  ;;  %v6764_v18 = vcombine.low %v3963_v20, %v3967_v44  ;;  %v6778_v0 = vrot.slane %v6762_v52, %v11588_v24  ;;  %v13881_v52 = vld [vmem:[#allocation15_spill] sm:$0xff] }
 0x58f   :  { %v7054_v62 = vcombine.low %v7046_v7, %v7053_v31  ;;  %v4167_v7 = vrot.slane %v3018_v27, %v13817_v29  ;;  %v4171_v31 = vrot.slane %v3018_v27, %v11558_v6  ;;  %v6793_v32 = vcombine.low %v6771_v14, %v6778_v0 }
 0x591   :  { %v6801_v20 = vrot.slane %v6793_v32, %v11588_v24 }
 0x59e   :  { %9281 = vperm.xlu1 %10134, %v6711_v40   ;;  %v4175_v40 = vrot.slane %v3018_v27, %v11561_v63 }
 0x5a1   :  { %9302 = vperm.xlu0 %10135, %v7054_v62   ;;  %v4179_v62 = vrot.slane %v3018_v27, %v11564_v8 }
 0x5a3   :  { %v7106_v9 = vcombine.low %v4179_v62, %v4183_v12 }
 0x5a5   :  { %v7128_v13 = vrot.slane %v7106_v9, %v11588_v24 }
 0x5b0   :  { %v12376_v17 = vpop.xlane.xlu1 %2948 }
 0x5b1   :  { %13874 = vst [vmem:[#allocation11_spill] sm:$0xff] %v12376_v17 }
 0x5b4   :  { %v9270_v28 = vpop.permute.xlu1 %9269 }
 0x5b5   :  { %v9564_v19 = vrot.slane %v9270_v28, %v12057_v36  ;;  %v4187_v28 = vrot.slane %v3018_v27, %v11570_v45 }
 0x5b7   :  { %v9565_v34 = vsel %vm9461_vm5, %v9564_v19, %v9560_v47  ;;  %v3955_v47 = vrot.slane %v3011_v55, %v11564_v8  ;;  %v4191_v19 = vrot.slane %v3018_v27, %v11573_v38 }
 0x5b8   :  { %v9570_v30 = vsel %vm9468_vm6, %v9569_v4, %v9565_v34  ;;  %v7104_v4 = vcombine.low %v4163_v11, %v4167_v7  ;;  %v7105_v34 = vcombine.low %v4171_v31, %v4175_v40  ;;  %v12420_v40 = vpop.xlane.xlu0 %2954 }
 0x5b9   :  { %v6763_v5 = vcombine.low %v3955_v47, %v3959_v57  ;;  %v7107_v55 = vcombine.low %v4187_v28, %v4191_v19  ;;  %v13880_v19 = vld [vmem:[#allocation9_spill] sm:$0xff] }
 0x5ba   :  { %v7114_v60 = vrot.slane %v7104_v4, %v11588_v24  ;;  %v7121_v27 = vrot.slane %v7105_v34, %v11588_v24  ;;  %v2635_v53 = vadd.f32 %v12171_v43, %v13880_v19  ;;  %v13882_v34 = vld [vmem:[#allocation22_spill] sm:$0xff] }
 0x5bb   :  { %v6785_v26 = vrot.slane %v6763_v5, %v11588_v24  ;;  %v7135_v61 = vrot.slane %v7107_v55, %v11588_v24  ;;  %v2664_v5 = vadd.f32 %v12171_v43, %v13881_v52  ;;  %v3013_v9 = vadd.f32 %v11551_v35, %v13882_v34 }
 0x5bc   :  { %v7136_v47 = vcombine.low %v7114_v60, %v7121_v27  ;;  %v9279_v12 = vpop.permute.xlu0 %9278  ;;  %v2742_v14 = vmax.f32 %v2635_v53, 0.0 }
 0x5bd   :  { %v7137_v57 = vcombine.low %v7128_v13, %v7135_v61  ;;  %v2749_v0 = vmax.f32 %v2664_v5, 0.0  ;;  %v4003_v27 = vrot.slane %v3013_v9, %v13816_v10  ;;  %v4007_v13 = vrot.slane %v3013_v9, %v13817_v29 }
 0x5be   :  { %v4011_v61 = vrot.slane %v3013_v9, %v11558_v6  ;;  %v4015_v32 = vrot.slane %v3013_v9, %v11561_v63 }
 0x5bf   :  { %v7151_v11 = vrot.slane %v7137_v57, %v11588_v24  ;;  %v4031_v57 = vrot.slane %v3013_v9, %v11573_v38  ;;  %v6859_v53 = vcombine.low %v4003_v27, %v4007_v13 }
 0x5c0   :  { %2974 = vadd.xlane.f32.xlu0 %v2829_v48  ;;  %v6792_v48 = vrot.slane %v6764_v18, %v11588_v24  ;;  %v9579_v18 = vrot.slane %v9279_v12, %v12072_v42  ;;  %v6860_v52 = vcombine.low %v4011_v61, %v4015_v32 }
 0x5c2   :  { %2960 = vadd.xlane.f32.xlu1 %v2822_v59  ;;  %v6794_v21 = vcombine.low %v6785_v26, %v6792_v48  ;;  %v7144_v59 = vrot.slane %v7136_v47, %v11588_v24  ;;  %v13883_v26 = vld [vmem:[#allocation28_spill] sm:$0xff]  ;;  %v4027_v47 = vrot.slane %v3013_v9, %v11570_v45 }
 0x5c3   :  { %v3020_v48 = vadd.f32 %v11551_v35, %v13883_v26  ;;  %v6876_v26 = vrot.slane %v6860_v52, %v11588_v24 }
 0x5c4   :  { %v6808_v44 = vrot.slane %v6794_v21, %v11588_v24  ;;  %v7152_v31 = vcombine.low %v7144_v59, %v7151_v11  ;;  %v4023_v21 = vrot.slane %v3013_v9, %v11567_v1 }
 0x5c5   :  { %v4227_v59 = vrot.slane %v3020_v48, %v13816_v10  ;;  %v4231_v11 = vrot.slane %v3020_v48, %v13817_v29  ;;  %v4243_v12 = vrot.slane %v3020_v48, %v11564_v8  ;;  %v4255_v19 = vrot.slane %v3020_v48, %v11573_v38 }
 0x5c6   :  { %v6809_v7 = vcombine.low %v6801_v20, %v6808_v44  ;;  %v2824_v20 = vmul.f32 %v12198_v2, %v2742_v14  ;;  %v2831_v44 = vmul.f32 %v12198_v2, %v2749_v0  ;;  %v6869_v0 = vrot.slane %v6859_v53, %v11588_v24 }
 0x5c8   :  { %v6891_v61 = vcombine.low %v6869_v0, %v6876_v26 }
 0x5d3   :  { %9287 = vperm.xlu1 %10134, %v6809_v7   ;;  %v4235_v7 = vrot.slane %v3020_v48, %v11558_v6 }
 0x5d6   :  { %9308 = vperm.xlu0 %10135, %v7152_v31   ;;  %v4239_v31 = vrot.slane %v3020_v48, %v11561_v63 }
 0x5d8   :  { %v7203_v34 = vcombine.low %v4235_v7, %v4239_v31  ;;  %v13884_v31 = vld [vmem:[#allocation21_spill] sm:$0xff] }
 0x5e5   :  { %v12422_v62 = vpop.xlane.xlu1 %2952 }
 0x5e6   :  { %13879 = vst [vmem:[#allocation20_spill] sm:$0xff] %v12422_v62 }
 0x5e9   :  { %v9276_v28 = vpop.permute.xlu1 %9275 }
 0x5ea   :  { %v9574_v60 = vrot.slane %v9276_v28, %v12067_v15  ;;  %v4247_v28 = vrot.slane %v3020_v48, %v11567_v1 }
 0x5ec   :  { %v9575_v4 = vsel %vm9475_vm7, %v9574_v60, %v9570_v30  ;;  %v4019_v30 = vrot.slane %v3013_v9, %v11564_v8  ;;  %v4251_v60 = vrot.slane %v3020_v48, %v11570_v45  ;;  %v7204_v9 = vcombine.low %v4243_v12, %v4247_v28  ;;  %v13885_v28 = vld [vmem:[#allocation12_spill] sm:$0xff] }
 0x5ed   :  { %v12434_v55 = vsel %vm9482_vm8, %v9579_v18, %v9575_v4  ;;  %v6862_v18 = vcombine.low %v4027_v47, %v4031_v57  ;;  %v7202_v4 = vcombine.low %v4227_v59, %v4231_v11  ;;  %v7219_v48 = vrot.slane %v7203_v34, %v11588_v24 }
 0x5ee   :  { %v6861_v5 = vcombine.low %v4019_v30, %v4023_v21  ;;  %v7205_v14 = vcombine.low %v4251_v60, %v4255_v19  ;;  %v7226_v27 = vrot.slane %v7204_v9, %v11588_v24  ;;  %v6899_v47 = vrot.slane %v6891_v61, %v11588_v24  ;;  %v13887_v19 = vld [vmem:[#allocation17_spill] sm:$0xff] }
 0x5ef   :  { %v6890_v42 = vrot.slane %v6862_v18, %v11588_v24  ;;  %v7212_v15 = vrot.slane %v7202_v4, %v11588_v24  ;;  %v3015_v12 = vadd.f32 %v11551_v35, %v13884_v31  ;;  %v2672_v53 = vadd.f32 %v12171_v43, %v13887_v19 }
 0x5f0   :  { %v7233_v13 = vrot.slane %v7205_v14, %v11588_v24 }
 0x5f1   :  { %v7234_v30 = vcombine.low %v7212_v15, %v7219_v48  ;;  %v13886_v15 = vld [vmem:[#allocation29_spill] sm:$0xff]  ;;  %v4067_v52 = vrot.slane %v3015_v12, %v13816_v10  ;;  %v4075_v18 = vrot.slane %v3015_v12, %v11558_v6  ;;  %v4079_v4 = vrot.slane %v3015_v12, %v11561_v63  ;;  %v13888_v48 = vld [vmem:[#allocation31_spill] sm:$0xff] }
 0x5f2   :  { %v7235_v21 = vcombine.low %v7226_v27, %v7233_v13  ;;  %v3022_v60 = vadd.f32 %v11551_v35, %v13886_v15  ;;  %v4083_v34 = vrot.slane %v3015_v12, %v11564_v8  ;;  %v4087_v9 = vrot.slane %v3015_v12, %v11567_v1  ;;  %v13890_v15 = vld [vmem:[#allocation32_spill] sm:$0xff] }
 0x5f3   :  { %v4091_v14 = vrot.slane %v3015_v12, %v11570_v45  ;;  %v4095_v0 = vrot.slane %v3015_v12, %v11573_v38  ;;  %v3024_v27 = vadd.f32 %v11551_v35, %v13888_v48  ;;  %v6958_v61 = vcombine.low %v4075_v18, %v4079_v4  ;;  %v13893_v18 = vld [vmem:[#allocation35_spill] sm:$0xff] }
 0x5f4   :  { %v7249_v59 = vrot.slane %v7235_v21, %v11588_v24  ;;  %v4315_v31 = vrot.slane %v3022_v60, %v11570_v45  ;;  %v12504_v19 = vadd.f32 %v11551_v35, %v13890_v15  ;;  %v12514_v4 = vadd.f32 %v11551_v35, %v13893_v18 }
 0x5f5   :  { %2978 = vadd.xlane.f32.xlu0 %v2831_v44  ;;  %v6883_v44 = vrot.slane %v6861_v5, %v11588_v24  ;;  %v4071_v5 = vrot.slane %v3015_v12, %v13817_v29  ;;  %v6960_v21 = vcombine.low %v4091_v14, %v4095_v0  ;;  %v4319_v12 = vrot.slane %v3022_v60, %v11573_v38 }
 0x5f6   :  { %v4355_v15 = vrot.slane %v3024_v27, %v13816_v10  ;;  %v4363_v18 = vrot.slane %v3024_v27, %v11558_v6 }
 0x5f7   :  { %2964 = vadd.xlane.f32.xlu1 %v2824_v20  ;;  %v6892_v32 = vcombine.low %v6883_v44, %v6890_v42  ;;  %v7242_v20 = vrot.slane %v7234_v30, %v11588_v24  ;;  %v2643_v42 = vadd.f32 %v12171_v43, %v13885_v28  ;;  %v2751_v44 = vmax.f32 %v2672_v53, 0.0 }
 0x5f8   :  { %v6957_v13 = vcombine.low %v4067_v52, %v4071_v5  ;;  %v4291_v30 = vrot.slane %v3022_v60, %v13816_v10  ;;  %v13892_v52 = vld [vmem:[#allocation33_spill] sm:$0xff]  ;;  %v7303_v48 = vcombine.low %v4315_v31, %v4319_v12 }
 0x5f9   :  { %v6906_v57 = vrot.slane %v6892_v32, %v11588_v24  ;;  %v7250_v7 = vcombine.low %v7242_v20, %v7249_v59  ;;  %v2744_v26 = vmax.f32 %v2643_v42, 0.0  ;;  %v6959_v32 = vcombine.low %v4083_v34, %v4087_v9  ;;  %v12490_v59 = vpop.xlane.xlu0 %2958 }
 0x5fa   :  { %v4303_v20 = vrot.slane %v3022_v60, %v11561_v63  ;;  %13889 = vst [vmem:[#allocation26_spill] sm:$0xff] %v12490_v59  ;;  %v12500_v42 = vmul.f32 %v12198_v2, %v2751_v44  ;;  %v12510_v5 = vadd.f32 %v11551_v35, %v13892_v52  ;;  %v6974_v34 = vrot.slane %v6958_v61, %v11588_v24 }
 0x5fb   :  { %v6907_v11 = vcombine.low %v6899_v47, %v6906_v57  ;;  %v4295_v47 = vrot.slane %v3022_v60, %v13817_v29  ;;  %v4299_v57 = vrot.slane %v3022_v60, %v11558_v6  ;;  %v12497_v28 = vmul.f32 %v12198_v2, %v2744_v26 }
 0x5fc   :  { %v6981_v2 = vrot.slane %v6959_v32, %v11588_v24  ;;  %v6988_v9 = vrot.slane %v6960_v21, %v11588_v24  ;;  %v4359_v52 = vrot.slane %v3024_v27, %v13817_v29  ;;  %v4371_v61 = vrot.slane %v3024_v27, %v11564_v8 }
 0x5fd   :  { %v7300_v14 = vcombine.low %v4291_v30, %v4295_v47  ;;  %v7301_v0 = vcombine.low %v4299_v57, %v4303_v20  ;;  %v9285_v26 = vpop.permute.xlu0 %9284  ;;  %v4375_v32 = vrot.slane %v3024_v27, %v11567_v1  ;;  %v4379_v47 = vrot.slane %v3024_v27, %v11570_v45  ;;  %v13895_v20 = vld [vmem:[#allocation47_spill] sm:$0xff] }
 0x5fe   :  { %v4383_v57 = vrot.slane %v3024_v27, %v11573_v38 }
 0x5ff   :  { %v7310_v31 = vrot.slane %v7300_v14, %v11588_v24  ;;  %v7317_v12 = vrot.slane %v7301_v0, %v11588_v24  ;;  %v4423_v14 = vrot.slane %v12504_v19, %v13817_v29  ;;  %v4431_v0 = vrot.slane %v12504_v19, %v11561_v63 }
 0x608   :  { %9293 = vperm.xlu1 %10134, %v6907_v11   ;;  %v4307_v11 = vrot.slane %v3022_v60, %v11564_v8 }
 0x60b   :  { %9314 = vperm.xlu0 %10135, %v7250_v7   ;;  %v4311_v7 = vrot.slane %v3022_v60, %v11567_v1  ;;  %v6967_v60 = vrot.slane %v6957_v13, %v11588_v24  ;;  %v4367_v13 = vrot.slane %v3024_v27, %v11561_v63  ;;  %v4419_v27 = vrot.slane %v12504_v19, %v13816_v10 }
 0x60d   :  { %v7302_v44 = vcombine.low %v4307_v11, %v4311_v7  ;;  %v12527_v30 = vcombine.low %v6967_v60, %v6974_v34  ;;  %v9589_v11 = vrot.slane %v9285_v26, %v13895_v20  ;;  %v12532_v7 = vcombine.low %v6981_v2, %v6988_v9 }
 0x60e   :  { %v7398_v60 = vcombine.low %v4355_v15, %v4359_v52  ;;  %v7399_v34 = vcombine.low %v4363_v18, %v4367_v13  ;;  %v7401_v9 = vcombine.low %v4379_v47, %v4383_v57  ;;  %v4435_v26 = vrot.slane %v12504_v19, %v11564_v8 }
 0x60f   :  { %v7324_v50 = vrot.slane %v7302_v44, %v11588_v24  ;;  %v4439_v44 = vrot.slane %v12504_v19, %v11567_v1  ;;  %v4483_v15 = vrot.slane %v12510_v5, %v13816_v10  ;;  %v4487_v52 = vrot.slane %v12510_v5, %v13817_v29 }
 0x610   :  { %v4491_v18 = vrot.slane %v12510_v5, %v11558_v6  ;;  %v4495_v13 = vrot.slane %v12510_v5, %v11561_v63  ;;  %v6997_v47 = vrot.slane %v12527_v30, %v11588_v24  ;;  %v7004_v57 = vrot.slane %v12532_v7, %v11588_v24 }
 0x611   :  { %v7408_v37 = vrot.slane %v7398_v60, %v11588_v24  ;;  %v7415_v58 = vrot.slane %v7399_v34, %v11588_v24  ;;  %v7429_v62 = vrot.slane %v7401_v9, %v11588_v24  ;;  %v7496_v17 = vcombine.low %v4419_v27, %v4423_v14 }
 0x612   :  { %v7498_v46 = vcombine.low %v4435_v26, %v4439_v44  ;;  %v7594_v30 = vcombine.low %v4483_v15, %v4487_v52  ;;  %v7595_v56 = vcombine.low %v4491_v18, %v4495_v13  ;;  %v4571_v60 = vrot.slane %v12514_v4, %v11570_v45 }
 0x613   :  { %v4575_v34 = vrot.slane %v12514_v4, %v11573_v38  ;;  %v7430_v14 = vcombine.low %v7408_v37, %v7415_v58  ;;  %v7005_v13 = vcombine.low %v6997_v47, %v7004_v57 }
 0x614   :  { %v7520_v26 = vrot.slane %v7498_v46, %v11588_v24 }
 0x615   :  { %v7695_v37 = vcombine.low %v4571_v60, %v4575_v34 }
 0x617   :  { %v7723_v47 = vrot.slane %v7695_v37, %v11588_v24 }
 0x61a   :  { %v12506_v53 = vpop.xlane.xlu1 %2956 }
 0x61b   :  { %13891 = vst [vmem:[#allocation10_spill] sm:$0xff] %v12506_v53 }
 0x61e   :  { %v9282_v36 = vpop.permute.xlu1 %9281 }
 0x61f   :  { %v9584_v21 = vrot.slane %v9282_v36, %v13894_v54  ;;  %v7331_v36 = vrot.slane %v7303_v48, %v11588_v24  ;;  %v7400_v54 = vcombine.low %v4371_v61, %v4375_v32  ;;  %v4447_v48 = vrot.slane %v12504_v19, %v11573_v38 }
 0x620   :  { %v4499_v61 = vrot.slane %v12510_v5, %v11564_v8  ;;  %v4503_v32 = vrot.slane %v12510_v5, %v11567_v1 }
 0x621   :  { %v9585_v3 = vsel %vm9489_vm9, %v9584_v21, %v12434_v55  ;;  %v4427_v55 = vrot.slane %v12504_v19, %v11558_v6  ;;  %v4511_v21 = vrot.slane %v12510_v5, %v11573_v38  ;;  %v7333_v20 = vcombine.low %v7324_v50, %v7331_v36 }
 0x622   :  { %v12543_v2 = vsel %vm9496_vm10, %v9589_v11, %v9585_v3  ;;  %v4443_v3 = vrot.slane %v12504_v19, %v11570_v45  ;;  %v4507_v19 = vrot.slane %v12510_v5, %v11570_v45  ;;  %v7332_v11 = vcombine.low %v7310_v31, %v7317_v12 }
 0x623   :  { %v7422_v53 = vrot.slane %v7400_v54, %v11588_v24  ;;  %v7497_v59 = vcombine.low %v4427_v55, %v4431_v0  ;;  %v7596_v23 = vcombine.low %v4499_v61, %v4503_v32  ;;  %v4547_v50 = vrot.slane %v12514_v4, %v13816_v10 }
 0x624   :  { %v7499_v5 = vcombine.low %v4443_v3, %v4447_v48  ;;  %v7597_v7 = vcombine.low %v4507_v19, %v4511_v21  ;;  %v4551_v31 = vrot.slane %v12514_v4, %v13817_v29  ;;  %v4555_v54 = vrot.slane %v12514_v4, %v11558_v6 }
 0x625   :  { %v4559_v12 = vrot.slane %v12514_v4, %v11561_v63  ;;  %v4567_v36 = vrot.slane %v12514_v4, %v11567_v1  ;;  %v7340_v27 = vrot.slane %v7332_v11, %v11588_v24  ;;  %v7347_v9 = vrot.slane %v7333_v20, %v11588_v24 }
 0x626   :  { %v7431_v55 = vcombine.low %v7422_v53, %v7429_v62  ;;  %v7513_v0 = vrot.slane %v7497_v59, %v11588_v24  ;;  %v7527_v44 = vrot.slane %v7499_v5, %v11588_v24  ;;  %v7604_v3 = vrot.slane %v7594_v30, %v11588_v24  ;;  %v13896_v62 = vld [vmem:[#allocation23_spill] sm:$0xff]  ;;  %v13897_v59 = vld [vmem:[#allocation14_spill] sm:$0xff]  ;;  %v13898_v53 = vld [vmem:[#allocation40_spill] sm:$0xff] }
 0x627   :  { %v7611_v48 = vrot.slane %v7595_v56, %v11588_v24  ;;  %v7625_v15 = vrot.slane %v7597_v7, %v11588_v24  ;;  %v7692_v52 = vcombine.low %v4547_v50, %v4551_v31  ;;  %v7693_v20 = vcombine.low %v4555_v54, %v4559_v12  ;;  %v13899_v56 = vld [vmem:[#allocation46_spill] sm:$0xff] }
 0x628   :  { %v12617_v46 = vadd.f32 %v12171_v43, %v13897_v59  ;;  %v3032_v18 = vadd.f32 %v11551_v35, %v13898_v53  ;;  %v7348_v61 = vcombine.low %v7340_v27, %v7347_v9  ;;  %v7438_v32 = vrot.slane %v7430_v14, %v11588_v24 }
 0x629   :  { %v7445_v19 = vrot.slane %v7431_v55, %v11588_v24  ;;  %v12627_v11 = vcombine.low %v7520_v26, %v7527_v44  ;;  %v12629_v5 = vcombine.low %v7604_v3, %v7611_v48  ;;  %v7702_v30 = vrot.slane %v7692_v52, %v11588_v24 }
 0x62a   :  { %2982 = vadd.xlane.f32.xlu0 %v12500_v42  ;;  %v4563_v42 = vrot.slane %v12514_v4, %v11564_v8  ;;  %v7618_v4 = vrot.slane %v7596_v23, %v11588_v24  ;;  %v3034_v23 = vadd.f32 %v11551_v35, %v13899_v56  ;;  %v7709_v7 = vrot.slane %v7693_v20, %v11588_v24 }
 0x62b   :  { %v4611_v57 = vrot.slane %v3032_v18, %v13816_v10  ;;  %v4615_v31 = vrot.slane %v3032_v18, %v13817_v29  ;;  %v4619_v54 = vrot.slane %v3032_v18, %v11558_v6  ;;  %v4623_v12 = vrot.slane %v3032_v18, %v11561_v63 }
 0x62c   :  { %2968 = vadd.xlane.f32.xlu1 %v12497_v28  ;;  %v7506_v28 = vrot.slane %v7496_v17, %v11588_v24  ;;  %v7694_v58 = vcombine.low %v4563_v42, %v4567_v36  ;;  %v12613_v17 = vadd.f32 %v11551_v35, %v13896_v62  ;;  %v12631_v43 = vcombine.low %v7618_v4, %v7625_v15 }
 0x62d   :  { %v4627_v42 = vrot.slane %v3032_v18, %v11564_v8  ;;  %v4631_v36 = vrot.slane %v3032_v18, %v11567_v1  ;;  %v4635_v60 = vrot.slane %v3032_v18, %v11570_v45  ;;  %v4639_v34 = vrot.slane %v3032_v18, %v11573_v38 }
 0x62e   :  { %v12625_v21 = vcombine.low %v7506_v28, %v7513_v0  ;;  %v7716_v50 = vrot.slane %v7694_v58, %v11588_v24  ;;  %v4675_v27 = vrot.slane %v3034_v23, %v13816_v10  ;;  %v4679_v9 = vrot.slane %v3034_v23, %v13817_v29 }
 0x62f   :  { %v4683_v14 = vrot.slane %v3034_v23, %v11558_v6  ;;  %v4687_v55 = vrot.slane %v3034_v23, %v11561_v63  ;;  %v4691_v28 = vrot.slane %v3034_v23, %v11564_v8  ;;  %v4695_v0 = vrot.slane %v3034_v23, %v11567_v1 }
 0x630   :  { %v4699_v26 = vrot.slane %v3034_v23, %v11570_v45  ;;  %v4703_v44 = vrot.slane %v3034_v23, %v11573_v38  ;;  %v3036_v3 = vadd.f32 %v11551_v35, %v12155_v25  ;;  %v7446_v48 = vcombine.low %v7438_v32, %v7445_v19 }
 0x631   :  { %v7536_v4 = vrot.slane %v12625_v21, %v11588_v24  ;;  %v7543_v15 = vrot.slane %v12627_v11, %v11588_v24  ;;  %v7634_v52 = vrot.slane %v12629_v5, %v11588_v24  ;;  %v7641_v20 = vrot.slane %v12631_v43, %v11588_v24 }
 0x632   :  { %v7724_v58 = vcombine.low %v7702_v30, %v7709_v7  ;;  %v7725_v37 = vcombine.low %v7716_v50, %v7723_v47  ;;  %v7790_v62 = vcombine.low %v4611_v57, %v4615_v31  ;;  %v7791_v59 = vcombine.low %v4619_v54, %v4623_v12 }
 0x633   :  { %v7792_v53 = vcombine.low %v4627_v42, %v4631_v36  ;;  %v7793_v18 = vcombine.low %v4635_v60, %v4639_v34  ;;  %v7888_v25 = vcombine.low %v4675_v27, %v4679_v9  ;;  %v7889_v56 = vcombine.low %v4683_v14, %v4687_v55 }
 0x634   :  { %v7890_v23 = vcombine.low %v4691_v28, %v4695_v0  ;;  %v7891_v32 = vcombine.low %v4699_v26, %v4703_v44  ;;  %v4739_v19 = vrot.slane %v3036_v3, %v13816_v10  ;;  %v4743_v21 = vrot.slane %v3036_v3, %v13817_v29 }
 0x635   :  { %v4747_v11 = vrot.slane %v3036_v3, %v11558_v6  ;;  %v4751_v5 = vrot.slane %v3036_v3, %v11561_v63  ;;  %v4755_v43 = vrot.slane %v3036_v3, %v11564_v8  ;;  %v4759_v30 = vrot.slane %v3036_v3, %v11567_v1 }
 0x636   :  { %v4763_v7 = vrot.slane %v3036_v3, %v11570_v45  ;;  %v4767_v50 = vrot.slane %v3036_v3, %v11573_v38  ;;  %v3038_v47 = vadd.f32 %v11551_v35, %v12222_v41  ;;  %v7739_v57 = vrot.slane %v7725_v37, %v11588_v24 }
 0x637   :  { %v7800_v31 = vrot.slane %v7790_v62, %v11588_v24  ;;  %v7807_v54 = vrot.slane %v7791_v59, %v11588_v24  ;;  %v7814_v12 = vrot.slane %v7792_v53, %v11588_v24  ;;  %v7821_v42 = vrot.slane %v7793_v18, %v11588_v24 }
 0x638   :  { %v7898_v36 = vrot.slane %v7888_v25, %v11588_v24  ;;  %v3040_v60 = vadd.f32 %v11551_v35, %v12325_v33  ;;  %v7905_v41 = vrot.slane %v7889_v56, %v11588_v24  ;;  %v7912_v34 = vrot.slane %v7890_v23, %v11588_v24 }
 0x639   :  { %v7919_v27 = vrot.slane %v7891_v32, %v11588_v24  ;;  %v7986_v9 = vcombine.low %v4739_v19, %v4743_v21  ;;  %v7987_v14 = vcombine.low %v4747_v11, %v4751_v5  ;;  %v7989_v55 = vcombine.low %v4763_v7, %v4767_v50 }
 0x63a   :  { %v4803_v28 = vrot.slane %v3038_v47, %v13816_v10  ;;  %v4807_v0 = vrot.slane %v3038_v47, %v13817_v29  ;;  %v4811_v26 = vrot.slane %v3038_v47, %v11558_v6  ;;  %v4815_v44 = vrot.slane %v3038_v47, %v11561_v63 }
 0x63b   :  { %v4819_v33 = vrot.slane %v3038_v47, %v11564_v8  ;;  %v4823_v3 = vrot.slane %v3038_v47, %v11567_v1  ;;  %v4831_v37 = vrot.slane %v3038_v47, %v11573_v38  ;;  %v7544_v62 = vcombine.low %v7536_v4, %v7543_v15 }
 0x63c   :  { %v7642_v59 = vcombine.low %v7634_v52, %v7641_v20  ;;  %v7822_v18 = vcombine.low %v7800_v31, %v7807_v54  ;;  %v7823_v25 = vcombine.low %v7814_v12, %v7821_v42  ;;  %v7920_v56 = vcombine.low %v7898_v36, %v7905_v41 }
 0x63d   :  { %9299 = vperm.xlu1 %10134, %v7005_v13   ;;  %v7732_v13 = vrot.slane %v7724_v58, %v11588_v24  ;;  %v4827_v58 = vrot.slane %v3038_v47, %v11570_v45  ;;  %v7921_v23 = vcombine.low %v7912_v34, %v7919_v27  ;;  %v7996_v32 = vrot.slane %v7986_v9, %v11588_v24 }
 0x63e   :  { %v8003_v19 = vrot.slane %v7987_v14, %v11588_v24  ;;  %v8017_v21 = vrot.slane %v7989_v55, %v11588_v24  ;;  %v8084_v11 = vcombine.low %v4803_v28, %v4807_v0  ;;  %v8085_v5 = vcombine.low %v4811_v26, %v4815_v44 }
 0x63f   :  { %v7740_v53 = vcombine.low %v7732_v13, %v7739_v57  ;;  %v4867_v4 = vrot.slane %v3040_v60, %v13816_v10  ;;  %v4871_v15 = vrot.slane %v3040_v60, %v13817_v29  ;;  %v4875_v52 = vrot.slane %v3040_v60, %v11558_v6 }
 0x640   :  { %9320 = vperm.xlu0 %10135, %v7348_v61   ;;  %v7988_v61 = vcombine.low %v4755_v43, %v4759_v30  ;;  %v8086_v43 = vcombine.low %v4819_v33, %v4823_v3  ;;  %v8087_v30 = vcombine.low %v4827_v58, %v4831_v37  ;;  %v4879_v20 = vrot.slane %v3040_v60, %v11561_v63 }
 0x641   :  { %v4883_v7 = vrot.slane %v3040_v60, %v11564_v8  ;;  %v3042_v50 = vadd.f32 %v11551_v35, %v12327_v22  ;;  %v4887_v47 = vrot.slane %v3040_v60, %v11567_v1  ;;  %v4891_v13 = vrot.slane %v3040_v60, %v11570_v45 }
 0x642   :  { %v4895_v57 = vrot.slane %v3040_v60, %v11573_v38  ;;  %v7830_v31 = vrot.slane %v7822_v18, %v11588_v24  ;;  %v7837_v54 = vrot.slane %v7823_v25, %v11588_v24  ;;  %v7928_v12 = vrot.slane %v7920_v56, %v11588_v24 }
 0x643   :  { %v7935_v42 = vrot.slane %v7921_v23, %v11588_v24  ;;  %v8018_v36 = vcombine.low %v7996_v32, %v8003_v19  ;;  %v8094_v34 = vrot.slane %v8084_v11, %v11588_v24  ;;  %v8101_v22 = vrot.slane %v8085_v5, %v11588_v24 }
 0x644   :  { %9326 = vperm.xlu0 %10135, %v7446_v48   ;;  %v8010_v48 = vrot.slane %v7988_v61, %v11588_v24  ;;  %v8108_v27 = vrot.slane %v8086_v43, %v11588_v24  ;;  %v8115_v9 = vrot.slane %v8087_v30, %v11588_v24  ;;  %v8182_v60 = vcombine.low %v4867_v4, %v4871_v15  ;;  %v12715_v61 = vpop.xlane.xlu0 %2962 }
 0x645   :  { %v8183_v14 = vcombine.low %v4875_v52, %v4879_v20  ;;  %13900 = vst [vmem:[#allocation13_spill] sm:$0xff] %v12715_v61  ;;  %v8184_v55 = vcombine.low %v4883_v7, %v4887_v47  ;;  %v8185_v28 = vcombine.low %v4891_v13, %v4895_v57  ;;  %v4931_v0 = vrot.slane %v3042_v50, %v13816_v10  ;;  %v13902_v52 = vld [vmem:[#allocation48_spill] sm:$0xff]  ;;  %v13903_v13 = vld [vmem:[#allocation49_spill] sm:$0xff]  ;;  %v13923_v61 = vld [vmem:[#allocation54_spill] sm:$0xff] }
 0x646   :  { %v8019_v41 = vcombine.low %v8010_v48, %v8017_v21  ;;  %v4935_v26 = vrot.slane %v3042_v50, %v13817_v29  ;;  %v4939_v33 = vrot.slane %v3042_v50, %v11558_v6  ;;  %v4943_v3 = vrot.slane %v3042_v50, %v11561_v63 }
 0x647   :  { %v4947_v58 = vrot.slane %v3042_v50, %v11564_v8  ;;  %v4951_v37 = vrot.slane %v3042_v50, %v11567_v1  ;;  %v4955_v18 = vrot.slane %v3042_v50, %v11570_v45  ;;  %v4959_v25 = vrot.slane %v3042_v50, %v11573_v38 }
 0x648   :  { %9332 = vperm.xlu0 %10135, %v7544_v62   ;;  %v3044_v62 = vadd.f32 %v11551_v35, %v12374_v51  ;;  %v7936_v56 = vcombine.low %v7928_v12, %v7935_v42  ;;  %v8026_v23 = vrot.slane %v8018_v36, %v11588_v24  ;;  %v8033_v32 = vrot.slane %v8019_v41, %v11588_v24  ;;  %v9291_v48 = vpop.permute.xlu0 %9290 }
 0x649   :  { %v8116_v19 = vcombine.low %v8094_v34, %v8101_v22  ;;  %v8117_v21 = vcombine.low %v8108_v27, %v8115_v9  ;;  %v8192_v11 = vrot.slane %v8182_v60, %v11588_v24  ;;  %v8199_v5 = vrot.slane %v8183_v14, %v11588_v24 }
 0x64a   :  { %v8206_v51 = vrot.slane %v8184_v55, %v11588_v24  ;;  %v8213_v43 = vrot.slane %v8185_v28, %v11588_v24  ;;  %v8280_v30 = vcombine.low %v4931_v0, %v4935_v26  ;;  %v8281_v4 = vcombine.low %v4939_v33, %v4943_v3 }
 0x64b   :  { %v8282_v15 = vcombine.low %v4947_v58, %v4951_v37  ;;  %v8283_v7 = vcombine.low %v4955_v18, %v4959_v25  ;;  %v4995_v50 = vrot.slane %v3044_v62, %v13816_v10  ;;  %v4999_v47 = vrot.slane %v3044_v62, %v13817_v29 }
 0x64c   :  { %9338 = vperm.xlu0 %10135, %v7642_v59   ;;  %v7838_v59 = vcombine.low %v7830_v31, %v7837_v54  ;;  %v9599_v57 = vrot.slane %v9291_v48, %v13903_v13  ;;  %v5003_v31 = vrot.slane %v3044_v62, %v11558_v6  ;;  %v5007_v54 = vrot.slane %v3044_v62, %v11561_v63 }
 0x64d   :  { %v5011_v12 = vrot.slane %v3044_v62, %v11564_v8  ;;  %v5015_v36 = vrot.slane %v3044_v62, %v11567_v1  ;;  %v5019_v41 = vrot.slane %v3044_v62, %v11570_v45  ;;  %v5023_v34 = vrot.slane %v3044_v62, %v11573_v38 }
 0x64e   :  { %v2746_v22 = vmax.f32 %v12617_v46, 0.0  ;;  %v8034_v27 = vcombine.low %v8026_v23, %v8033_v32  ;;  %v4131_v9 = vrot.slane %v12613_v17, %v13816_v10  ;;  %v8124_v14 = vrot.slane %v8116_v19, %v11588_v24 }
 0x64f   :  { %v12719_v44 = vpop.xlane.xlu1 %2960  ;;  %v8214_v55 = vcombine.low %v8192_v11, %v8199_v5  ;;  %v8215_v28 = vcombine.low %v8206_v51, %v8213_v43  ;;  %v8290_v0 = vrot.slane %v8280_v30, %v11588_v24  ;;  %v8297_v26 = vrot.slane %v8281_v4, %v11588_v24 }
 0x650   :  { %13901 = vst [vmem:[#allocation19_spill] sm:$0xff] %v12719_v44  ;;  %9344 = vperm.xlu0 %10135, %v7740_v53   ;;  %v8304_v46 = vrot.slane %v8282_v15, %v11588_v24  ;;  %v8311_v33 = vrot.slane %v8283_v7, %v11588_v24  ;;  %v8378_v3 = vcombine.low %v4995_v50, %v4999_v47  ;;  %v12782_v15 = vld [vmem:[%s13730_s10] ss:$0 sm:$0xff] }
 0x651   :  { %v8379_v58 = vcombine.low %v5003_v31, %v5007_v54  ;;  %v8380_v37 = vcombine.low %v5011_v12, %v5015_v36  ;;  %v8381_v62 = vcombine.low %v5019_v41, %v5023_v34  ;;  %v4139_v18 = vrot.slane %v12613_v17, %v11558_v6 }
 0x652   :  { %v4143_v25 = vrot.slane %v12613_v17, %v11561_v63  ;;  %v4151_v32 = vrot.slane %v12613_v17, %v11567_v1  ;;  %v4155_v19 = vrot.slane %v12613_v17, %v11570_v45  ;;  %v4159_v48 = vrot.slane %v12613_v17, %v11573_v38 }
 0x653   :  { %v9288_v53 = vpop.permute.xlu1 %9287  ;;  %v8229_v11 = vrot.slane %v8215_v28, %v11588_v24  ;;  %v8312_v5 = vcombine.low %v8290_v0, %v8297_v26  ;;  %v8313_v51 = vcombine.low %v8304_v46, %v8311_v33  ;;  %v8395_v43 = vrot.slane %v8379_v58, %v11588_v24  ;;  %v13904_v33 = vld [vmem:[#allocation24_spill] sm:$0xff] }
 0x654   :  { %v9594_v20 = vrot.slane %v9288_v53, %v13902_v52  ;;  %9350 = vperm.xlu0 %10135, %v7838_v59   ;;  %v4135_v59 = vrot.slane %v12613_v17, %v13817_v29  ;;  %v8388_v53 = vrot.slane %v8378_v3, %v11588_v24  ;;  %v8402_v30 = vrot.slane %v8380_v37, %v11588_v24 }
 0x655   :  { %v8409_v4 = vrot.slane %v8381_v62, %v11588_v24  ;;  %v7056_v7 = vcombine.low %v4139_v18, %v4143_v25  ;;  %v7058_v47 = vcombine.low %v4155_v19, %v4159_v48  ;;  %v8320_v31 = vrot.slane %v8312_v5, %v11588_v24  ;;  %v2967_v18 = vpop.xlane.xlu0 %2966  ;;  %v10179_v19 = vld [vmem:[%s13729_s9] ss:$0 sm:$0xff]  ;;  %v13905_v48 = vld [vmem:[#allocation16_spill] sm:$0xff]  ;;  %s10206_s9 = smov [#allocation3]  }
 0x656   :  { %v9595_v42 = vsel %vm9503_vm11, %v9594_v20, %v12543_v2  ;;  %v8131_v2 = vrot.slane %v8117_v21, %v11588_v24  ;;  %v8222_v21 = vrot.slane %v8214_v55, %v11588_v24  ;;  %v7055_v20 = vcombine.low %v4131_v9, %v4135_v59  ;;  %s9889_s22 = sshll.u32 %s10206_s9, 4  ;;  %s9890_s22 = int_to_ptr.vmem [resolvable:$true] %s9889_s22 }
 0x657   :  { %v12751_v60 = vsel %vm9510_vm12, %v9599_v57, %v9595_v42  ;;  %v8327_v54 = vrot.slane %v8313_v51, %v11588_v24  ;;  %v8410_v12 = vcombine.low %v8388_v53, %v8395_v43  ;;  %v8411_v42 = vcombine.low %v8402_v30, %v8409_v4  ;;  %s10180_s3 = scalar_lea.vmem %s9890_s22, 80  ;;  %s10184_s23 = scalar_lea.vmem %s9890_s22, 96 }
 0x658   :  { %9356 = vperm.xlu0 %10135, %v7936_v56   ;;  %v4147_v56 = vrot.slane %v12613_v17, %v11564_v8  ;;  %v8132_v23 = vcombine.low %v8124_v14, %v8131_v2  ;;  %v2828_v17 = vmul.f32 %v12782_v15, %v2746_v22  ;;  %v8230_v57 = vcombine.low %v8222_v21, %v8229_v11  ;;  %v13906_v11 = vld [vmem:[#allocation6_spill] sm:$0xff]  ;;  %p10181_p0 = scmp.ne.s32.totalorder %s9890_s22, %s10180_s3  ;;  %p10185_p1 = scmp.lt.s32.totalorder %s9890_s22, %s9890_s22 }
 0x659   :  { %v7065_v36 = vrot.slane %v7055_v20, %v11588_v24  ;;  %v7072_v41 = vrot.slane %v7056_v7, %v11588_v24  ;;  %v7086_v22 = vrot.slane %v7058_v47, %v11588_v24  ;;  %v8418_v9 = vrot.slane %v8410_v12, %v11588_v24  ;;  %v13907_v20 = vld [vmem:[#allocation7_spill] sm:$0xff]  ;;  %p10186_p2 = scmp.lt.s32.totalorder %s10184_s23, %s10180_s3 }
 0x65a   :  { %v7057_v50 = vcombine.low %v4147_v56, %v4151_v32  ;;  %v8425_v14 = vrot.slane %v8411_v42, %v11588_v24  ;;  %v3019_v3 = vadd.f32 %v11551_v35, %v13904_v33  ;;  %v2659_v21 = vadd.f32 %v10179_v19, %v13905_v48 }
 0x65b   :  { %v7087_v2 = vcombine.low %v7065_v36, %v7072_v41  ;;  %v3021_v5 = vadd.f32 %v11551_v35, %v13906_v11  ;;  %v3052_v53 = vadd.f32 %v11551_v35, %v2967_v18  ;;  %v12814_v7 = vadd.f32 %v11551_v35, %v13907_v20  ;;  %p10187_p3 = por %p10186_p2, %p10185_p1 }
 0x65c   :  { %9362 = vperm.xlu0 %10135, %v8034_v27   ;;  %v7079_v34 = vrot.slane %v7057_v50, %v11588_v24  ;;  %v8328_v27 = vcombine.low %v8320_v31, %v8327_v54  ;;  %v8426_v28 = vcombine.low %v8418_v9, %v8425_v14  ;;  %v4195_v58 = vrot.slane %v3019_v3, %v13816_v10 }
 0x65d   :  { %v7095_v0 = vrot.slane %v7087_v2, %v11588_v24  ;;  %v4199_v37 = vrot.slane %v3019_v3, %v13817_v29  ;;  %v4203_v62 = vrot.slane %v3019_v3, %v11558_v6  ;;  %v4207_v59 = vrot.slane %v3019_v3, %v11561_v63  ;;  %p10188_p4 = pnand %p10187_p3, %p10181_p0 }
 0x65e   :  { %v7088_v55 = vcombine.low %v7079_v34, %v7086_v22  ;;  %v4211_v25 = vrot.slane %v3019_v3, %v11564_v8  ;;  %v4215_v56 = vrot.slane %v3019_v3, %v11567_v1  ;;  %v4223_v32 = vrot.slane %v3019_v3, %v11573_v38 }
 0x65f   :  { %v7153_v51 = vcombine.low %v4195_v58, %v4199_v37  ;;  %v7154_v43 = vcombine.low %v4203_v62, %v4207_v59  ;;  %v4259_v47 = vrot.slane %v3021_v5, %v13816_v10  ;;  %v5255_v31 = vrot.slane %v3052_v53, %v13817_v29  ;;  %v13908_v37 = vld [vmem:[#allocation18_spill] sm:$0xff]  ;;  %v13909_v59 = vld [vmem:[#allocation8_spill] sm:$0xff] }
 0x660   :  { %9368 = vperm.xlu0 %10135, %v8132_v23   ;;  %v7102_v26 = vrot.slane %v7088_v55, %v11588_v24  ;;  %v4219_v23 = vrot.slane %v3019_v3, %v11570_v45  ;;  %v7155_v30 = vcombine.low %v4211_v25, %v4215_v56  ;;  %v5259_v54 = vrot.slane %v3052_v53, %v11558_v6 }
 0x661   :  { %2972 = vadd.xlane.f32.xlu1 %v2828_v17  ;;  %v2748_v17 = vmax.f32 %v2659_v21, 0.0  ;;  %v7163_v50 = vrot.slane %v7153_v51, %v11588_v24  ;;  %v5263_v12 = vrot.slane %v3052_v53, %v11561_v63  ;;  %v7170_v42 = vrot.slane %v7154_v43, %v11588_v24 }
 0x662   :  { %v7103_v46 = vcombine.low %v7095_v0, %v7102_v26  ;;  %v7156_v4 = vcombine.low %v4219_v23, %v4223_v32  ;;  %v7177_v36 = vrot.slane %v7155_v30, %v11588_v24  ;;  %v4263_v34 = vrot.slane %v3021_v5, %v13817_v29 }
 0x663   :  { %v4267_v22 = vrot.slane %v3021_v5, %v11558_v6  ;;  %v4275_v9 = vrot.slane %v3021_v5, %v11564_v8  ;;  %v4279_v14 = vrot.slane %v3021_v5, %v11567_v1  ;;  %v5267_v2 = vrot.slane %v3052_v53, %v11564_v8 }
 0x664   :  { %9374 = vperm.xlu0 %10135, %v8230_v57   ;;  %v5251_v57 = vrot.slane %v3052_v53, %v13816_v10  ;;  %v7184_v41 = vrot.slane %v7156_v4, %v11588_v24  ;;  %v5271_v55 = vrot.slane %v3052_v53, %v11567_v1  ;;  %v4287_v0 = vrot.slane %v3021_v5, %v11573_v38  ;;  %v9297_v4 = vpop.permute.xlu0 %9296 }
 0x665   :  { %v5275_v26 = vrot.slane %v3052_v53, %v11570_v45  ;;  %v8771_v3 = vcombine.low %v5259_v54, %v5263_v12  ;;  %v12837_v58 = vmul.f32 %v12782_v15, %v2748_v17  ;;  %v12840_v62 = vadd.f32 %v10179_v19, %v13908_v37 }
 0x666   :  { %v8770_v33 = vcombine.low %v5251_v57, %v5255_v31  ;;  %v12844_v18 = vadd.f32 %v11551_v35, %v13909_v59  ;;  %v12846_v56 = vcombine.low %v7163_v50, %v7170_v42  ;;  %v12848_v23 = vcombine.low %v7177_v36, %v7184_v41 }
 0x667   :  { %v12850_v32 = vcombine.low %v4259_v47, %v4263_v34  ;;  %v8772_v11 = vcombine.low %v5267_v2, %v5271_v55  ;;  %v4323_v19 = vrot.slane %v12814_v7, %v13816_v10  ;;  %v8787_v43 = vrot.slane %v8771_v3, %v11588_v24 }
 0x668   :  { %9380 = vperm.xlu0 %10135, %v8328_v27   ;;  %v4271_v27 = vrot.slane %v3021_v5, %v11561_v63  ;;  %v4327_v59 = vrot.slane %v12814_v7, %v13817_v29 }
 0x66a   :  { %v12852_v48 = vcombine.low %v4267_v22, %v4271_v27  ;;  %v8794_v22 = vrot.slane %v8772_v11, %v11588_v24  ;;  %v13910_v27 = vld [vmem:[#allocation52_spill] sm:$0xff] }
 0x66c   :  { %9386 = vperm.xlu0 %10135, %v8426_v28   ;;  %v4283_v28 = vrot.slane %v3021_v5, %v11570_v45  ;;  %v12855_v5 = vcombine.low %v4275_v9, %v4279_v14  ;;  %v9609_v9 = vrot.slane %v9297_v4, %v13910_v27 }
 0x66e   :  { %v12861_v30 = vcombine.low %v4283_v28, %v4287_v0 }
 0x672   :  { %9305 = vperm.xlu1 %10134, %v7103_v46   ;;  %v5279_v46 = vrot.slane %v3052_v53, %v11573_v38  ;;  %v8780_v53 = vrot.slane %v8770_v33, %v11588_v24 }
 0x674   :  { %v8773_v51 = vcombine.low %v5275_v26, %v5279_v46  ;;  %v7261_v46 = vrot.slane %v12850_v32, %v11588_v24  ;;  %v4335_v32 = vrot.slane %v12814_v7, %v11561_v63 }
 0x676   :  { %v8801_v55 = vrot.slane %v8773_v51, %v11588_v24  ;;  %v8802_v51 = vcombine.low %v8780_v53, %v8787_v43  ;;  %v4387_v53 = vrot.slane %v12844_v18, %v13816_v10  ;;  %v4391_v43 = vrot.slane %v12844_v18, %v13817_v29 }
 0x678   :  { %v8803_v4 = vcombine.low %v8794_v22, %v8801_v55 }
 0x67a   :  { %v8817_v22 = vrot.slane %v8803_v4, %v11588_v24 }
 0x684   :  { %v2965_v25 = vpop.xlane.xlu1 %2964 }
 0x685   :  { %v3051_v21 = vadd.f32 %v11551_v35, %v2965_v25 }
 0x687   :  { %v5219_v17 = vrot.slane %v3051_v21, %v13816_v10  ;;  %v5223_v20 = vrot.slane %v3051_v21, %v13817_v29  ;;  %v5227_v50 = vrot.slane %v3051_v21, %v11558_v6  ;;  %v5231_v47 = vrot.slane %v3051_v21, %v11561_v63 }
 0x688   :  { %v9294_v57 = vpop.permute.xlu1 %9293  ;;  %v5235_v31 = vrot.slane %v3051_v21, %v11564_v8  ;;  %v5239_v54 = vrot.slane %v3051_v21, %v11567_v1  ;;  %v5243_v12 = vrot.slane %v3051_v21, %v11570_v45  ;;  %v5247_v42 = vrot.slane %v3051_v21, %v11573_v38 }
 0x689   :  { %v9604_v36 = vrot.slane %v9294_v57, %v12162_v39  ;;  %v8721_v41 = vcombine.low %v5219_v17, %v5223_v20  ;;  %v8722_v34 = vcombine.low %v5227_v50, %v5231_v47  ;;  %v4331_v21 = vrot.slane %v12814_v7, %v11558_v6 }
 0x68a   :  { %v8723_v14 = vcombine.low %v5235_v31, %v5239_v54  ;;  %v8724_v2 = vcombine.low %v5243_v12, %v5247_v42  ;;  %v4339_v17 = vrot.slane %v12814_v7, %v11564_v8  ;;  %v4343_v50 = vrot.slane %v12814_v7, %v11567_v1 }
 0x68b   :  { %v9605_v28 = vsel %vm9517_vm13, %v9604_v36, %v12751_v60  ;;  %v8731_v0 = vrot.slane %v8721_v41, %v11588_v24  ;;  %v8738_v26 = vrot.slane %v8722_v34, %v11588_v24  ;;  %v7268_v60 = vrot.slane %v12852_v48, %v11588_v24 }
 0x68c   :  { %v8745_v33 = vrot.slane %v8723_v14, %v11588_v24  ;;  %v8752_v3 = vrot.slane %v8724_v2, %v11588_v24  ;;  %v12884_v37 = vsel %vm9524_vm14, %v9609_v9, %v9605_v28  ;;  %v4347_v48 = vrot.slane %v12814_v7, %v11570_v45  ;;  %v13911_v2 = vld [vmem:[#allocation25_spill] sm:$0xff] }
 0x68d   :  { %v8753_v25 = vcombine.low %v8731_v0, %v8738_v26  ;;  %v4351_v47 = vrot.slane %v12814_v7, %v11573_v38  ;;  %v4395_v31 = vrot.slane %v12844_v18, %v11558_v6  ;;  %v4399_v54 = vrot.slane %v12844_v18, %v11561_v63 }
 0x68e   :  { %v8754_v11 = vcombine.low %v8745_v33, %v8752_v3  ;;  %v4403_v12 = vrot.slane %v12844_v18, %v11564_v8  ;;  %v4407_v42 = vrot.slane %v12844_v18, %v11567_v1  ;;  %v4411_v36 = vrot.slane %v12844_v18, %v11570_v45 }
 0x68f   :  { %v8761_v20 = vrot.slane %v8753_v25, %v11588_v24  ;;  %v8810_v34 = vrot.slane %v8802_v51, %v11588_v24  ;;  %v4415_v9 = vrot.slane %v12844_v18, %v11573_v38  ;;  %v2750_v14 = vmax.f32 %v12840_v62, 0.0 }
 0x690   :  { %v8768_v57 = vrot.slane %v8754_v11, %v11588_v24  ;;  %v3027_v55 = vadd.f32 %v11551_v35, %v13911_v2  ;;  %v7193_v28 = vrot.slane %v12846_v56, %v11588_v24  ;;  %v7200_v0 = vrot.slane %v12848_v23, %v11588_v24 }
 0x691   :  { %v7275_v26 = vrot.slane %v12855_v5, %v11588_v24  ;;  %v7282_v33 = vrot.slane %v12861_v30, %v11588_v24  ;;  %v12933_v3 = vcombine.low %v7261_v46, %v7268_v60  ;;  %v7349_v62 = vcombine.low %v4323_v19, %v4327_v59 }
 0x692   :  { %v8769_v41 = vcombine.low %v8761_v20, %v8768_v57  ;;  %v7350_v18 = vcombine.low %v4331_v21, %v4335_v32  ;;  %v7351_v25 = vcombine.low %v4339_v17, %v4343_v50  ;;  %v7352_v11 = vcombine.low %v4347_v48, %v4351_v47 }
 0x693   :  { %v7447_v56 = vcombine.low %v4387_v53, %v4391_v43  ;;  %v8818_v23 = vcombine.low %v8810_v34, %v8817_v22  ;;  %v7448_v51 = vcombine.low %v4395_v31, %v4399_v54  ;;  %v7449_v4 = vcombine.low %v4403_v12, %v4407_v42  ;;  %v13912_v43 = vld [vmem:[#allocation30_spill] sm:$0xff] }
 0x694   :  { %9407 = vperm.xlu0 %10135, %v8769_v41   ;;  %v7450_v20 = vcombine.low %v4411_v36, %v4415_v9  ;;  %v4451_v5 = vrot.slane %v3027_v55, %v13816_v10  ;;  %v4455_v30 = vrot.slane %v3027_v55, %v13817_v29  ;;  %v4459_v46 = vrot.slane %v3027_v55, %v11558_v6 }
 0x695   :  { %v4463_v60 = vrot.slane %v3027_v55, %v11561_v63  ;;  %v4467_v7 = vrot.slane %v3027_v55, %v11564_v8  ;;  %v4471_v19 = vrot.slane %v3027_v55, %v11567_v1  ;;  %v4475_v59 = vrot.slane %v3027_v55, %v11570_v45 }
 0x696   :  { %2976 = vadd.xlane.f32.xlu1 %v12837_v58  ;;  %v4479_v58 = vrot.slane %v3027_v55, %v11573_v38  ;;  %v7359_v21 = vrot.slane %v7349_v62, %v11588_v24  ;;  %v7366_v32 = vrot.slane %v7350_v18, %v11588_v24  ;;  %v7373_v17 = vrot.slane %v7351_v25, %v11588_v24  ;;  %v13914_v55 = vld [vmem:[#allocation34_spill] sm:$0xff] }
 0x697   :  { %v7380_v50 = vrot.slane %v7352_v11, %v11588_v24  ;;  %v7457_v48 = vrot.slane %v7447_v56, %v11588_v24  ;;  %v7464_v47 = vrot.slane %v7448_v51, %v11588_v24  ;;  %v7471_v57 = vrot.slane %v7449_v4, %v11588_v24 }
 0x698   :  { %9410 = vperm.xlu0 %10135, %v8818_v23   ;;  %v7478_v53 = vrot.slane %v7450_v20, %v11588_v24  ;;  %v3029_v31 = vadd.f32 %v11551_v35, %v13912_v43  ;;  %v7545_v54 = vcombine.low %v4451_v5, %v4455_v30  ;;  %v7546_v12 = vcombine.low %v4459_v46, %v4463_v60 }
 0x699   :  { %v12958_v42 = vmul.f32 %v12782_v15, %v2750_v14  ;;  %v7547_v36 = vcombine.low %v4467_v7, %v4471_v19  ;;  %v7548_v41 = vcombine.low %v4475_v59, %v4479_v58  ;;  %v7201_v34 = vcombine.low %v7193_v28, %v7200_v0  ;;  %v13918_v19 = vld [vmem:[#allocation45_spill] sm:$0xff] }
 0x69a   :  { %v12960_v22 = vcombine.low %v7275_v26, %v7282_v33  ;;  %v12964_v2 = vcombine.low %v7359_v21, %v7366_v32  ;;  %v3031_v62 = vadd.f32 %v11551_v35, %v13914_v55  ;;  %v12968_v18 = vcombine.low %v7373_v17, %v7380_v50 }
 0x69b   :  { %v12970_v25 = vcombine.low %v7457_v48, %v7464_v47  ;;  %v12972_v11 = vcombine.low %v7471_v57, %v7478_v53  ;;  %v7555_v15 = vrot.slane %v7545_v54, %v11588_v24  ;;  %v7562_v14 = vrot.slane %v7546_v12, %v11588_v24 }
 0x69c   :  { %13913 = vst [vmem:[#allocation27_spill] sm:$0xff] %v12964_v2  ;;  %13915 = vst [vmem:[#allocation9_spill] sm:$0xff] %v12968_v18  ;;  %v4515_v28 = vrot.slane %v3029_v31, %v13816_v10  ;;  %v4519_v0 = vrot.slane %v3029_v31, %v13817_v29  ;;  %v7569_v26 = vrot.slane %v7547_v36, %v11588_v24 }
 0x69d   :  { %13916 = vst [vmem:[#allocation15_spill] sm:$0xff] %v12970_v25  ;;  %13917 = vst [vmem:[#allocation22_spill] sm:$0xff] %v12972_v11  ;;  %v7576_v33 = vrot.slane %v7548_v41, %v11588_v24  ;;  %v4523_v56 = vrot.slane %v3029_v31, %v11558_v6  ;;  %v4527_v23 = vrot.slane %v3029_v31, %v11561_v63 }
 0x69e   :  { %v4531_v51 = vrot.slane %v3029_v31, %v11564_v8  ;;  %v4535_v4 = vrot.slane %v3029_v31, %v11567_v1  ;;  %v4539_v20 = vrot.slane %v3029_v31, %v11570_v45  ;;  %v4543_v5 = vrot.slane %v3029_v31, %v11573_v38 }
 0x69f   :  { %v4579_v7 = vrot.slane %v3031_v62, %v13816_v10  ;;  %v3033_v59 = vadd.f32 %v11551_v35, %v13918_v19  ;;  %v4583_v58 = vrot.slane %v3031_v62, %v13817_v29  ;;  %v4587_v21 = vrot.slane %v3031_v62, %v11558_v6 }
 0x6a0   :  { %v4591_v32 = vrot.slane %v3031_v62, %v11561_v63  ;;  %v13002_v48 = vcombine.low %v7555_v15, %v7562_v14  ;;  %v7643_v47 = vcombine.low %v4515_v28, %v4519_v0  ;;  %v13004_v57 = vcombine.low %v7569_v26, %v7576_v33 }
 0x6a1   :  { %v7644_v53 = vcombine.low %v4523_v56, %v4527_v23  ;;  %v7645_v43 = vcombine.low %v4531_v51, %v4535_v4  ;;  %v7646_v31 = vcombine.low %v4539_v20, %v4543_v5  ;;  %v4595_v54 = vrot.slane %v3031_v62, %v11564_v8  ;;  %v13921_v56 = vld [vmem:[#allocation50_spill] sm:$0xff] }
 0x6a2   :  { %13919 = vst [vmem:[#allocation28_spill] sm:$0xff] %v13002_v48  ;;  %13920 = vst [vmem:[#allocation21_spill] sm:$0xff] %v13004_v57  ;;  %v4599_v12 = vrot.slane %v3031_v62, %v11567_v1  ;;  %v4603_v36 = vrot.slane %v3031_v62, %v11570_v45  ;;  %v4607_v41 = vrot.slane %v3031_v62, %v11573_v38 }
 0x6a3   :  { %v7741_v55 = vcombine.low %v4579_v7, %v4583_v58  ;;  %v7742_v19 = vcombine.low %v4587_v21, %v4591_v32  ;;  %v4643_v15 = vrot.slane %v3033_v59, %v13816_v10  ;;  %v4647_v14 = vrot.slane %v3033_v59, %v13817_v29 }
 0x6a4   :  { %v4651_v28 = vrot.slane %v3033_v59, %v11558_v6  ;;  %v4655_v0 = vrot.slane %v3033_v59, %v11561_v63  ;;  %v4659_v26 = vrot.slane %v3033_v59, %v11564_v8  ;;  %v4663_v33 = vrot.slane %v3033_v59, %v11567_v1 }
 0x6a5   :  { %v3035_v23 = vadd.f32 %v11551_v35, %v13921_v56  ;;  %v4667_v62 = vrot.slane %v3033_v59, %v11570_v45  ;;  %v4671_v51 = vrot.slane %v3033_v59, %v11573_v38  ;;  %v7653_v20 = vrot.slane %v7643_v47, %v11588_v24 }
 0x6a6   :  { %v7660_v5 = vrot.slane %v7644_v53, %v11588_v24  ;;  %v7667_v7 = vrot.slane %v7645_v43, %v11588_v24  ;;  %v7674_v58 = vrot.slane %v7646_v31, %v11588_v24  ;;  %v13028_v21 = vcombine.low %v4595_v54, %v4599_v12 }
 0x6a7   :  { %9311 = vperm.xlu1 %10134, %v7201_v34   ;;  %v13030_v32 = vcombine.low %v4603_v36, %v4607_v41  ;;  %v7751_v56 = vrot.slane %v7741_v55, %v11588_v24  ;;  %v2971_v34 = vpop.xlane.xlu0 %2970  ;;  %v7758_v59 = vrot.slane %v7742_v19, %v11588_v24  ;;  %v13034_v17 = vcombine.low %v4643_v15, %v4647_v14 }
 0x6a8   :  { %v13036_v4 = vcombine.low %v4651_v28, %v4655_v0  ;;  %v13038_v47 = vcombine.low %v4659_v26, %v4663_v33  ;;  %v13040_v53 = vcombine.low %v4667_v62, %v4671_v51  ;;  %v4707_v43 = vrot.slane %v3035_v23, %v13816_v10 }
 0x6a9   :  { %v4711_v31 = vrot.slane %v3035_v23, %v13817_v29  ;;  %v4715_v54 = vrot.slane %v3035_v23, %v11558_v6  ;;  %v3037_v12 = vadd.f32 %v11551_v35, %v12226_v16  ;;  %v4719_v36 = vrot.slane %v3035_v23, %v11561_v63 }
 0x6aa   :  { %v4723_v41 = vrot.slane %v3035_v23, %v11564_v8  ;;  %v4727_v55 = vrot.slane %v3035_v23, %v11567_v1  ;;  %v3054_v19 = vadd.f32 %v11551_v35, %v2971_v34  ;;  %v13051_v15 = vcombine.low %v7653_v20, %v7660_v5 }
 0x6ab   :  { %v13053_v14 = vcombine.low %v7667_v7, %v7674_v58  ;;  %v13059_v26 = vcombine.low %v7751_v56, %v7758_v59  ;;  %v4731_v51 = vrot.slane %v3035_v23, %v11570_v45  ;;  %v4735_v20 = vrot.slane %v3035_v23, %v11573_v38 }
 0x6ac   :  { %v13071_v5 = vcombine.low %v4707_v43, %v4711_v31  ;;  %v13073_v7 = vcombine.low %v4715_v54, %v4719_v36  ;;  %v13075_v58 = vcombine.low %v4723_v41, %v4727_v55  ;;  %v4771_v56 = vrot.slane %v3037_v12, %v13816_v10 }
 0x6ad   :  { %v5315_v59 = vrot.slane %v3054_v19, %v13816_v10  ;;  %v5319_v50 = vrot.slane %v3054_v19, %v13817_v29  ;;  %v5323_v46 = vrot.slane %v3054_v19, %v11558_v6  ;;  %v5327_v60 = vrot.slane %v3054_v19, %v11561_v63 }
 0x6ae   :  { %v4775_v9 = vrot.slane %v3037_v12, %v13817_v29  ;;  %v4779_v23 = vrot.slane %v3037_v12, %v11558_v6  ;;  %v4783_v43 = vrot.slane %v3037_v12, %v11561_v63  ;;  %v4787_v31 = vrot.slane %v3037_v12, %v11564_v8 }
 0x6af   :  { %v13088_v54 = vadd.f32 %v11551_v35, %v12420_v40  ;;  %v4791_v36 = vrot.slane %v3037_v12, %v11567_v1  ;;  %v4795_v41 = vrot.slane %v3037_v12, %v11570_v45  ;;  %v4799_v55 = vrot.slane %v3037_v12, %v11573_v38 }
 0x6b0   :  { %v13095_v30 = vadd.f32 %v11551_v35, %v12278_v49  ;;  %v5331_v34 = vrot.slane %v3054_v19, %v11564_v8  ;;  %v5335_v62 = vrot.slane %v3054_v19, %v11567_v1  ;;  %v13099_v16 = vcombine.low %v4731_v51, %v4735_v20 }
 0x6b1   :  { %v5339_v33 = vrot.slane %v3054_v19, %v11570_v45  ;;  %v5343_v40 = vrot.slane %v3054_v19, %v11573_v38  ;;  %v8868_v28 = vcombine.low %v5315_v59, %v5319_v50  ;;  %v8869_v0 = vcombine.low %v5323_v46, %v5327_v60 }
 0x6b2   :  { %v13109_v13 = vcombine.low %v4771_v56, %v4775_v9  ;;  %v13111_v51 = vcombine.low %v4779_v23, %v4783_v43  ;;  %v13113_v20 = vcombine.low %v4787_v31, %v4791_v36  ;;  %v13115_v52 = vcombine.low %v4795_v41, %v4799_v55  ;;  %v9303_v31 = vpop.permute.xlu0 %9302 }
 0x6b3   :  { %v8870_v50 = vcombine.low %v5331_v34, %v5335_v62  ;;  %v4835_v19 = vrot.slane %v13095_v30, %v13816_v10  ;;  %v4839_v9 = vrot.slane %v13095_v30, %v13817_v29  ;;  %v8871_v56 = vcombine.low %v5339_v33, %v5343_v40  ;;  %v13922_v40 = vld [vmem:[#allocation53_spill] sm:$0xff] }
 0x6b4   :  { %v8878_v59 = vrot.slane %v8868_v28, %v11588_v24  ;;  %v8885_v23 = vrot.slane %v8869_v0, %v11588_v24  ;;  %v4843_v43 = vrot.slane %v13095_v30, %v11558_v6  ;;  %v9619_v44 = vrot.slane %v9303_v31, %v13923_v61 }
 0x6b5   :  { %v8892_v46 = vrot.slane %v8870_v50, %v11588_v24  ;;  %v8899_v25 = vrot.slane %v8871_v56, %v11588_v24  ;;  %v4851_v56 = vrot.slane %v13095_v30, %v11564_v8 }
 0x6b9   :  { %v2969_v39 = vpop.xlane.xlu1 %2968 }
 0x6ba   :  { %v3053_v60 = vadd.f32 %v11551_v35, %v2969_v39 }
 0x6bc   :  { %v5283_v36 = vrot.slane %v3053_v60, %v13816_v10  ;;  %v5287_v39 = vrot.slane %v3053_v60, %v13817_v29  ;;  %v5291_v34 = vrot.slane %v3053_v60, %v11558_v6  ;;  %v5295_v62 = vrot.slane %v3053_v60, %v11561_v63 }
 0x6bd   :  { %v9300_v41 = vpop.permute.xlu1 %9299  ;;  %v5299_v55 = vrot.slane %v3053_v60, %v11564_v8  ;;  %v5303_v33 = vrot.slane %v3053_v60, %v11567_v1  ;;  %v5307_v28 = vrot.slane %v3053_v60, %v11570_v45  ;;  %v5311_v0 = vrot.slane %v3053_v60, %v11573_v38 }
 0x6be   :  { %v9614_v49 = vrot.slane %v9300_v41, %v13922_v40  ;;  %v8819_v27 = vcombine.low %v5283_v36, %v5287_v39  ;;  %v8820_v12 = vcombine.low %v5291_v34, %v5295_v62  ;;  %v4847_v60 = vrot.slane %v13095_v30, %v11561_v63 }
 0x6bf   :  { %v8821_v48 = vcombine.low %v5299_v55, %v5303_v33  ;;  %v8822_v57 = vcombine.low %v5307_v28, %v5311_v0  ;;  %v8901_v34 = vcombine.low %v8892_v46, %v8899_v25  ;;  %v5079_v25 = vrot.slane %v13088_v54, %v11567_v1 }
 0x6c0   :  { %v9615_v11 = vsel %vm9531_vm15, %v9614_v49, %v12884_v37  ;;  %v8829_v2 = vrot.slane %v8819_v27, %v11588_v24  ;;  %v8836_v18 = vrot.slane %v8820_v12, %v11588_v24  ;;  %v4855_v37 = vrot.slane %v13095_v30, %v11567_v1 }
 0x6c1   :  { %v8843_v36 = vrot.slane %v8821_v48, %v11588_v24  ;;  %v8850_v50 = vrot.slane %v8822_v57, %v11588_v24  ;;  %v13149_v31 = vsel %vm9538_vm0, %v9619_v44, %v9615_v11  ;;  %v4859_v27 = vrot.slane %v13095_v30, %v11570_v45 }
 0x6c2   :  { %v8851_v39 = vcombine.low %v8829_v2, %v8836_v18  ;;  %v4863_v12 = vrot.slane %v13095_v30, %v11573_v38  ;;  %v8900_v48 = vcombine.low %v8878_v59, %v8885_v23  ;;  %v5063_v44 = vrot.slane %v13088_v54, %v13817_v29 }
 0x6c3   :  { %v8852_v49 = vcombine.low %v8843_v36, %v8850_v50  ;;  %v5067_v2 = vrot.slane %v13088_v54, %v11558_v6  ;;  %v5071_v18 = vrot.slane %v13088_v54, %v11561_v63  ;;  %v5075_v57 = vrot.slane %v13088_v54, %v11564_v8 }
 0x6c4   :  { %v8859_v11 = vrot.slane %v8851_v39, %v11588_v24  ;;  %v8133_v30 = vcombine.low %v4835_v19, %v4839_v9  ;;  %v8134_v41 = vcombine.low %v4843_v43, %v4847_v60  ;;  %v8135_v46 = vcombine.low %v4851_v56, %v4855_v37 }
 0x6c5   :  { %v8866_v62 = vrot.slane %v8852_v49, %v11588_v24  ;;  %v8136_v59 = vcombine.low %v4859_v27, %v4863_v12  ;;  %v5083_v23 = vrot.slane %v13088_v54, %v11570_v45  ;;  %v5087_v55 = vrot.slane %v13088_v54, %v11573_v38 }
 0x6c6   :  { %v8908_v28 = vrot.slane %v8900_v48, %v11588_v24  ;;  %v8915_v0 = vrot.slane %v8901_v34, %v11588_v24  ;;  %v7968_v19 = vrot.slane %v13099_v16, %v11588_v24  ;;  %v8045_v9 = vrot.slane %v13109_v13, %v11588_v24 }
 0x6c7   :  { %v8867_v33 = vcombine.low %v8859_v11, %v8866_v62  ;;  %v8052_v43 = vrot.slane %v13111_v51, %v11588_v24  ;;  %v8059_v60 = vrot.slane %v13113_v20, %v11588_v24  ;;  %v8066_v36 = vrot.slane %v13115_v52, %v11588_v24 }
 0x6c8   :  { %v8143_v50 = vrot.slane %v8133_v30, %v11588_v24  ;;  %v8150_v56 = vrot.slane %v8134_v41, %v11588_v24  ;;  %v13924_v16 = vrot.slane %v13088_v54, %v13816_v10  ;;  %v8477_v37 = vcombine.low %v5067_v2, %v5071_v18 }
 0x6c9   :  { %9413 = vperm.xlu0 %10135, %v8867_v33   ;;  %v8157_v13 = vrot.slane %v8135_v46, %v11588_v24  ;;  %v8164_v51 = vrot.slane %v8136_v59, %v11588_v24  ;;  %v8478_v27 = vcombine.low %v5075_v57, %v5079_v25  ;;  %v8479_v12 = vcombine.low %v5083_v23, %v5087_v55 }
 0x6ca   :  { %v8476_v39 = vcombine.low %v13924_v16, %v5063_v44  ;;  %v8916_v20 = vcombine.low %v8908_v28, %v8915_v0  ;;  %v13925_v52 = vrot.slane %v13030_v32, %v11588_v24  ;;  %v13926_v49 = vrot.slane %v13028_v21, %v11588_v24  ;;  %v13934_v0 = vld [vmem:[#allocation57_spill] sm:$0xff] }
 0x6cb   :  { %2980 = vadd.xlane.f32.xlu1 %v12958_v42  ;;  %v13927_v54 = vrot.slane %v13036_v4, %v11588_v24  ;;  %v13928_v34 = vrot.slane %v13034_v17, %v11588_v24  ;;  %v13929_v11 = vrot.slane %v13040_v53, %v11588_v24  ;;  %v13930_v42 = vrot.slane %v13038_v47, %v11588_v24 }
 0x6cc   :  { %v7774_v48 = vcombine.low %v13926_v49, %v13925_v52  ;;  %v13931_v32 = vrot.slane %v13073_v7, %v11588_v24  ;;  %v13932_v21 = vrot.slane %v13071_v5, %v11588_v24  ;;  %v13933_v4 = vrot.slane %v13075_v58, %v11588_v24  ;;  %v13945_v52 = vld [vmem:[#allocation21_spill] sm:$0xff] }
 0x6cd   :  { %v7871_v44 = vcombine.low %v13928_v34, %v13927_v54  ;;  %v7872_v2 = vcombine.low %v13930_v42, %v13929_v11  ;;  %v8067_v17 = vcombine.low %v8045_v9, %v8052_v43  ;;  %v8068_v62 = vcombine.low %v8059_v60, %v8066_v36  ;;  %9416 = vperm.xlu0 %10135, %v8916_v20   ;;  %v13937_v60 = vld [vmem:[#allocation9_spill] sm:$0xff]  ;;  %v13949_v42 = vld [vmem:[#allocation26_spill] sm:$0xff] }
 0x6ce   :  { %v7969_v18 = vcombine.low %v13932_v21, %v13931_v32  ;;  %v7970_v57 = vcombine.low %v13933_v4, %v7968_v19  ;;  %v7683_v53 = vrot.slane %v13051_v15, %v11588_v24  ;;  %v7690_v47 = vrot.slane %v13053_v14, %v11588_v24 }
 0x6cf   :  { %v8165_v30 = vcombine.low %v8143_v50, %v8150_v56  ;;  %v8486_v7 = vrot.slane %v8476_v39, %v11588_v24  ;;  %v8166_v41 = vcombine.low %v8157_v13, %v8164_v51  ;;  %v8493_v5 = vrot.slane %v8477_v37, %v11588_v24  ;;  %v13939_v50 = vld [vmem:[#allocation27_spill] sm:$0xff] }
 0x6d0   :  { %v8500_v25 = vrot.slane %v8478_v27, %v11588_v24  ;;  %v8507_v58 = vrot.slane %v8479_v12, %v11588_v24  ;;  %v7781_v46 = vrot.slane %v13059_v26, %v11588_v24  ;;  %v7788_v59 = vrot.slane %v7774_v48, %v11588_v24  ;;  %v13947_v48 = vld [vmem:[#allocation28_spill] sm:$0xff] }
 0x6d1   :  { %v7879_v15 = vrot.slane %v7871_v44, %v11588_v24  ;;  %v7886_v23 = vrot.slane %v7872_v2, %v11588_v24  ;;  %v7977_v14 = vrot.slane %v7969_v18, %v11588_v24  ;;  %v7984_v55 = vrot.slane %v7970_v57, %v11588_v24 }
 0x6d2   :  { %v8075_v33 = vrot.slane %v8067_v17, %v11588_v24  ;;  %v8082_v28 = vrot.slane %v8068_v62, %v11588_v24  ;;  %v3041_v19 = vadd.f32 %v11551_v35, %v13934_v0  ;;  %v13935_v26 = vrot.slane %v12960_v22, %v11588_v24  ;;  %v13941_v22 = vld [vmem:[#allocation22_spill] sm:$0xff] }
 0x6d3   :  { %v13936_v9 = vrot.slane %v12933_v3, %v11588_v24  ;;  %v13938_v36 = vrot.slane %v13937_v60, %v11588_v24  ;;  %v13940_v56 = vrot.slane %v13939_v50, %v11588_v24  ;;  %v8173_v39 = vrot.slane %v8165_v30, %v11588_v24  ;;  %v13943_v3 = vld [vmem:[#allocation15_spill] sm:$0xff] }
 0x6d4   :  { %v8180_v37 = vrot.slane %v8166_v41, %v11588_v24  ;;  %v13255_v13 = vcombine.low %v8486_v7, %v8493_v5  ;;  %v13257_v51 = vcombine.low %v8500_v25, %v8507_v58  ;;  %v13942_v27 = vrot.slane %v13941_v22, %v11588_v24 }
 0x6d5   :  { %v7299_v43 = vcombine.low %v13936_v9, %v13935_v26  ;;  %v7397_v16 = vcombine.low %v13940_v56, %v13938_v36  ;;  %v13944_v12 = vrot.slane %v13943_v3, %v11588_v24  ;;  %v13946_v49 = vrot.slane %v13945_v52, %v11588_v24 }
 0x6d6   :  { %v13948_v54 = vrot.slane %v13947_v48, %v11588_v24  ;;  %v13275_v44 = vcombine.low %v7683_v53, %v7690_v47  ;;  %v13277_v11 = vcombine.low %v7781_v46, %v7788_v59  ;;  %v13281_v2 = vadd.f32 %v11551_v35, %v13949_v42  ;;  %v13950_v53 = vld [vmem:[#allocation11_spill] sm:$0xff]  ;;  %v2975_v59 = vpop.xlane.xlu0 %2974 }
 0x6d7   :  { %v13265_v20 = vcombine.low %v13944_v12, %v13942_v27  ;;  %v13283_v32 = vcombine.low %v7879_v15, %v7886_v23  ;;  %v13285_v21 = vcombine.low %v7977_v14, %v7984_v55  ;;  %v13287_v18 = vcombine.low %v8075_v33, %v8082_v28 }
 0x6d8   :  { %v13273_v34 = vcombine.low %v13948_v54, %v13946_v49  ;;  %v4899_v4 = vrot.slane %v3041_v19, %v13816_v10  ;;  %v4903_v57 = vrot.slane %v3041_v19, %v13817_v29  ;;  %v4907_v17 = vrot.slane %v3041_v19, %v11558_v6 }
 0x6d9   :  { %v4911_v62 = vrot.slane %v3041_v19, %v11561_v63  ;;  %v3043_v47 = vadd.f32 %v11551_v35, %v13950_v53  ;;  %v13295_v30 = vcombine.low %v8173_v39, %v8180_v37  ;;  %v4915_v5 = vrot.slane %v3041_v19, %v11564_v8 }
 0x6da   :  { %v4919_v25 = vrot.slane %v3041_v19, %v11567_v1  ;;  %v4923_v58 = vrot.slane %v3041_v19, %v11570_v45  ;;  %v4927_v46 = vrot.slane %v3041_v19, %v11573_v38  ;;  %v5123_v15 = vrot.slane %v13281_v2, %v13816_v10  ;;  %v13324_v27 = vpop.permute.xlu0 %9308 }
 0x6db   :  { %v5127_v23 = vrot.slane %v13281_v2, %v13817_v29  ;;  %v5131_v14 = vrot.slane %v13281_v2, %v11558_v6  ;;  %v5135_v55 = vrot.slane %v13281_v2, %v11561_v63  ;;  %v8231_v33 = vcombine.low %v4899_v4, %v4903_v57  ;;  %v13951_v4 = vld [vmem:[#allocation20_spill] sm:$0xff] }
 0x6dc   :  { %v8232_v28 = vcombine.low %v4907_v17, %v4911_v62  ;;  %v5139_v0 = vrot.slane %v13281_v2, %v11564_v8  ;;  %v5143_v19 = vrot.slane %v13281_v2, %v11567_v1  ;;  %v4963_v26 = vrot.slane %v3043_v47, %v13816_v10  ;;  %9317 = vperm.xlu1 %10134, %v7299_v43  }
 0x6dd   :  { %v4967_v9 = vrot.slane %v3043_v47, %v13817_v29  ;;  %v4971_v60 = vrot.slane %v3043_v47, %v11558_v6  ;;  %v4975_v36 = vrot.slane %v3043_v47, %v11561_v63  ;;  %v8233_v50 = vcombine.low %v4915_v5, %v4919_v25 }
 0x6de   :  { %v8234_v56 = vcombine.low %v4923_v58, %v4927_v46  ;;  %v4979_v39 = vrot.slane %v3043_v47, %v11564_v8  ;;  %v4983_v37 = vrot.slane %v3043_v47, %v11567_v1  ;;  %v3056_v22 = vadd.f32 %v11551_v35, %v2975_v59  ;;  %v2979_v58 = vpop.xlane.xlu0 %2978 }
 0x6df   :  { %v5147_v3 = vrot.slane %v13281_v2, %v11570_v45  ;;  %v5151_v12 = vrot.slane %v13281_v2, %v11573_v38  ;;  %v13330_v52 = vcombine.low %v5123_v15, %v5127_v23  ;;  %v8241_v49 = vrot.slane %v8231_v33, %v11588_v24 }
 0x6e0   :  { %v8248_v48 = vrot.slane %v8232_v28, %v11588_v24  ;;  %v4987_v54 = vrot.slane %v3043_v47, %v11570_v45  ;;  %v13335_v42 = vcombine.low %v5131_v14, %v5135_v55  ;;  %v3045_v57 = vadd.f32 %v11551_v35, %v13951_v4  ;;  %9323 = vperm.xlu1 %10134, %v7397_v16  }
 0x6e1   :  { %v4991_v43 = vrot.slane %v3043_v47, %v11573_v38  ;;  %v8329_v17 = vcombine.low %v4963_v26, %v4967_v9  ;;  %v8330_v62 = vcombine.low %v4971_v60, %v4975_v36  ;;  %v8255_v53 = vrot.slane %v8233_v50, %v11588_v24 }
 0x6e2   :  { %v8262_v2 = vrot.slane %v8234_v56, %v11588_v24  ;;  %v8331_v5 = vcombine.low %v4979_v39, %v4983_v37  ;;  %v13342_v25 = vcombine.low %v5139_v0, %v5143_v19  ;;  %v5379_v46 = vrot.slane %v3056_v22, %v13816_v10  ;;  %v13359_v50 = vpop.permute.xlu0 %9314 }
 0x6e3   :  { %v5383_v59 = vrot.slane %v3056_v22, %v13817_v29  ;;  %v5387_v15 = vrot.slane %v3056_v22, %v11558_v6  ;;  %v5391_v23 = vrot.slane %v3056_v22, %v11561_v63  ;;  %v5395_v47 = vrot.slane %v3056_v22, %v11564_v8 }
 0x6e4   :  { %v5399_v14 = vrot.slane %v3056_v22, %v11567_v1  ;;  %v5403_v55 = vrot.slane %v3056_v22, %v11570_v45  ;;  %v5407_v33 = vrot.slane %v3056_v22, %v11573_v38  ;;  %v8332_v28 = vcombine.low %v4987_v54, %v4991_v43  ;;  %9329 = vperm.xlu1 %10134, %v13265_v20  }
 0x6e5   :  { %v8339_v0 = vrot.slane %v8329_v17, %v11588_v24  ;;  %v8346_v16 = vrot.slane %v8330_v62, %v11588_v24  ;;  %v5027_v19 = vrot.slane %v3045_v57, %v13816_v10  ;;  %v5031_v26 = vrot.slane %v3045_v57, %v13817_v29 }
 0x6e6   :  { %v5035_v9 = vrot.slane %v3045_v57, %v11558_v6  ;;  %v5039_v60 = vrot.slane %v3045_v57, %v11561_v63  ;;  %v5043_v36 = vrot.slane %v3045_v57, %v11564_v8  ;;  %v8966_v56 = vcombine.low %v5379_v46, %v5383_v59 }
 0x6e7   :  { %v5047_v39 = vrot.slane %v3045_v57, %v11567_v1  ;;  %v5051_v37 = vrot.slane %v3045_v57, %v11570_v45  ;;  %v5055_v22 = vrot.slane %v3045_v57, %v11573_v38  ;;  %v3058_v54 = vadd.f32 %v11551_v35, %v2979_v58  ;;  %v13952_v58 = vld [vmem:[#allocation10_spill] sm:$0xff] }
 0x6e8   :  { %v8967_v4 = vcombine.low %v5387_v15, %v5391_v23  ;;  %v8968_v43 = vcombine.low %v5395_v47, %v5399_v14  ;;  %v8969_v17 = vcombine.low %v5403_v55, %v5407_v33  ;;  %v13366_v62 = vcombine.low %v8241_v49, %v8248_v48  ;;  %v2983_v49 = vpop.xlane.xlu0 %2982  ;;  %9335 = vperm.xlu1 %10134, %v13273_v34  }
 0x6e9   :  { %v13368_v7 = vcombine.low %v8255_v53, %v8262_v2  ;;  %v8353_v41 = vrot.slane %v8331_v5, %v11588_v24  ;;  %v13371_v61 = vcombine.low %v5147_v3, %v5151_v12  ;;  %v8360_v20 = vrot.slane %v8332_v28, %v11588_v24 }
 0x6ea   :  { %v13374_v46 = vcombine.low %v8339_v0, %v8346_v16  ;;  %v13376_v59 = vcombine.low %v5027_v19, %v5031_v26  ;;  %v13378_v57 = vcombine.low %v5035_v9, %v5039_v60  ;;  %v13382_v15 = vadd.f32 %v11551_v35, %v13952_v58 }
 0x6eb   :  { %v8976_v48 = vrot.slane %v8966_v56, %v11588_v24  ;;  %v13386_v53 = vcombine.low %v5043_v36, %v5047_v39  ;;  %v13388_v3 = vcombine.low %v5051_v37, %v5055_v22  ;;  %v8983_v12 = vrot.slane %v8967_v4, %v11588_v24 }
 0x6ec   :  { %v8990_v2 = vrot.slane %v8968_v43, %v11588_v24  ;;  %v8997_v5 = vrot.slane %v8969_v17, %v11588_v24  ;;  %v5443_v23 = vrot.slane %v3058_v54, %v13816_v10  ;;  %v5447_v47 = vrot.slane %v3058_v54, %v13817_v29  ;;  %9341 = vperm.xlu1 %10134, %v13275_v44  }
 0x6ed   :  { %v5451_v14 = vrot.slane %v3058_v54, %v11558_v6  ;;  %v5455_v34 = vrot.slane %v3058_v54, %v11561_v63  ;;  %v5459_v55 = vrot.slane %v3058_v54, %v11564_v8  ;;  %v3060_v33 = vadd.f32 %v11551_v35, %v2983_v49 }
 0x6ee   :  { %v5463_v28 = vrot.slane %v3058_v54, %v11567_v1  ;;  %v5467_v0 = vrot.slane %v3058_v54, %v11570_v45  ;;  %v5471_v16 = vrot.slane %v3058_v54, %v11573_v38  ;;  %v13403_v19 = vcombine.low %v8353_v41, %v8360_v20  ;;  %v2973_v39 = vpop.xlane.xlu1 %2972 }
 0x6ef   :  { %v13419_v37 = vcombine.low %v8976_v48, %v8983_v12  ;;  %v13421_v22 = vcombine.low %v8990_v2, %v8997_v5  ;;  %v9064_v54 = vcombine.low %v5443_v23, %v5447_v47  ;;  %v9065_v4 = vcombine.low %v5451_v14, %v5455_v34 }
 0x6f0   :  { %v3055_v43 = vadd.f32 %v11551_v35, %v2973_v39  ;;  %v9066_v17 = vcombine.low %v5459_v55, %v5463_v28  ;;  %v9067_v20 = vcombine.low %v5467_v0, %v5471_v16  ;;  %v5507_v58 = vrot.slane %v3060_v33, %v13816_v10  ;;  %9347 = vperm.xlu1 %10134, %v13277_v11   ;;  %v13953_v28 = vld [vmem:[#allocation55_spill] sm:$0xff] }
 0x6f1   :  { %v5511_v49 = vrot.slane %v3060_v33, %v13817_v29  ;;  %v5515_v56 = vrot.slane %v3060_v33, %v11558_v6  ;;  %v5519_v41 = vrot.slane %v3060_v33, %v11561_v63  ;;  %v5523_v48 = vrot.slane %v3060_v33, %v11564_v8 }
 0x6f2   :  { %v5347_v12 = vrot.slane %v3055_v43, %v13816_v10  ;;  %v5351_v2 = vrot.slane %v3055_v43, %v13817_v29  ;;  %v5355_v5 = vrot.slane %v3055_v43, %v11558_v6  ;;  %v5359_v23 = vrot.slane %v3055_v43, %v11561_v63  ;;  %v9306_v47 = vpop.permute.xlu1 %9305 }
 0x6f3   :  { %v5363_v14 = vrot.slane %v3055_v43, %v11564_v8  ;;  %v5367_v11 = vrot.slane %v3055_v43, %v11567_v1  ;;  %v5371_v34 = vrot.slane %v3055_v43, %v11570_v45  ;;  %v5375_v55 = vrot.slane %v3055_v43, %v11573_v38 }
 0x6f4   :  { %v9624_v0 = vrot.slane %v9306_v47, %v13953_v28  ;;  %v8917_v16 = vcombine.low %v5347_v12, %v5351_v2  ;;  %v8918_v39 = vcombine.low %v5355_v5, %v5359_v23  ;;  %v5527_v44 = vrot.slane %v3060_v33, %v11567_v1  ;;  %9353 = vperm.xlu1 %10134, %v13283_v32   ;;  %v13954_v2 = vld [vmem:[#allocation56_spill] sm:$0xff] }
 0x6f5   :  { %v8919_v60 = vcombine.low %v5363_v14, %v5367_v11  ;;  %v8920_v36 = vcombine.low %v5371_v34, %v5375_v55  ;;  %v5531_v26 = vrot.slane %v3060_v33, %v11570_v45  ;;  %v5535_v9 = vrot.slane %v3060_v33, %v11573_v38 }
 0x6f6   :  { %v13445_v40 = vsel %vm9545_vm1, %v9624_v0, %v13149_v31  ;;  %v8927_v43 = vrot.slane %v8917_v16, %v11588_v24  ;;  %v8934_v47 = vrot.slane %v8918_v39, %v11588_v24  ;;  %v9074_v12 = vrot.slane %v9064_v54, %v11588_v24 }
 0x6f7   :  { %v9838_v5 = vcombine.low %v13954_v2, %v13445_v40  ;;  %v8941_v32 = vrot.slane %v8919_v60, %v11588_v24  ;;  %v8948_v23 = vrot.slane %v8920_v36, %v11588_v24  ;;  %v9081_v14 = vrot.slane %v9065_v4, %v11588_v24 }
 0x6f8   :  { %v8949_v33 = vcombine.low %v8927_v43, %v8934_v47  ;;  %v9088_v11 = vrot.slane %v9066_v17, %v11588_v24  ;;  %v9095_v31 = vrot.slane %v9067_v20, %v11588_v24  ;;  %v9162_v34 = vcombine.low %v5507_v58, %v5511_v49  ;;  %9359 = vperm.xlu1 %10134, %v13285_v21  }
 0x6f9   :  { %v8950_v55 = vcombine.low %v8941_v32, %v8948_v23  ;;  %v9163_v0 = vcombine.low %v5515_v56, %v5519_v41  ;;  %v9164_v54 = vcombine.low %v5523_v48, %v5527_v44  ;;  %v9165_v16 = vcombine.low %v5531_v26, %v5535_v9 }
 0x6fa   :  { %v8957_v39 = vrot.slane %v8949_v33, %v11588_v24  ;;  %v5103_v60 = vrot.slane %v13382_v15, %v11561_v63  ;;  %v5107_v36 = vrot.slane %v13382_v15, %v11564_v8  ;;  %v5111_v4 = vrot.slane %v13382_v15, %v11567_v1 }
 0x6fb   :  { %v8964_v17 = vrot.slane %v8950_v55, %v11588_v24  ;;  %v9006_v21 = vrot.slane %v13419_v37, %v11588_v24  ;;  %v5115_v56 = vrot.slane %v13382_v15, %v11570_v45  ;;  %v5119_v26 = vrot.slane %v13382_v15, %v11573_v38 }
 0x6fc   :  { %v9013_v9 = vrot.slane %v13421_v22, %v11588_v24  ;;  %v9096_v44 = vcombine.low %v9074_v12, %v9081_v14  ;;  %v9097_v41 = vcombine.low %v9088_v11, %v9095_v31  ;;  %v9172_v20 = vrot.slane %v9162_v34, %v11588_v24  ;;  %9365 = vperm.xlu1 %10134, %v13287_v18  }
 0x6fd   :  { %v8965_v58 = vcombine.low %v8957_v39, %v8964_v17  ;;  %v9179_v49 = vrot.slane %v9163_v0, %v11588_v24  ;;  %v9186_v37 = vrot.slane %v9164_v54, %v11588_v24  ;;  %v9193_v48 = vrot.slane %v9165_v16, %v11588_v24  ;;  %v13962_v54 = vld [vmem:[#allocation19_spill] sm:$0xff] }
 0x6fe   :  { %v8271_v43 = vrot.slane %v13366_v62, %v11588_v24  ;;  %v8278_v47 = vrot.slane %v13368_v7, %v11588_v24  ;;  %v8369_v22 = vrot.slane %v13374_v46, %v11588_v24  ;;  %v8584_v12 = vrot.slane %v13330_v52, %v11588_v24 }
 0x6ff   :  { %9419 = vperm.xlu0 %10135, %v8965_v58   ;;  %v8376_v18 = vrot.slane %v13403_v19, %v11588_v24  ;;  %v13955_v32 = vrot.slane %v13378_v57, %v11588_v24  ;;  %v13956_v23 = vrot.slane %v13376_v59, %v11588_v24  ;;  %v13957_v7 = vrot.slane %v13388_v3, %v11588_v24 }
 0x700   :  { %v13958_v46 = vrot.slane %v13386_v53, %v11588_v24  ;;  %v13959_v52 = vrot.slane %v13382_v15, %v13817_v29  ;;  %v13960_v19 = vrot.slane %v13382_v15, %v13816_v10  ;;  %v9014_v11 = vcombine.low %v9006_v21, %v9013_v9  ;;  %9371 = vperm.xlu1 %10134, %v13295_v30  }
 0x701   :  { %v8459_v62 = vcombine.low %v13956_v23, %v13955_v32  ;;  %v13961_v57 = vrot.slane %v13382_v15, %v11558_v6  ;;  %v8527_v31 = vcombine.low %v5107_v36, %v5111_v4  ;;  %v8528_v34 = vcombine.low %v5115_v56, %v5119_v26  ;;  %v13963_v36 = vld [vmem:[#allocation13_spill] sm:$0xff] }
 0x702   :  { %v8460_v14 = vcombine.low %v13958_v46, %v13957_v7  ;;  %v8525_v33 = vcombine.low %v13960_v19, %v13959_v52  ;;  %v9104_v3 = vrot.slane %v9096_v44, %v11588_v24  ;;  %v9111_v53 = vrot.slane %v9097_v41, %v11588_v24 }
 0x703   :  { %v8526_v59 = vcombine.low %v13961_v57, %v5103_v60  ;;  %v9194_v55 = vcombine.low %v9172_v20, %v9179_v49  ;;  %v9195_v0 = vcombine.low %v9186_v37, %v9193_v48  ;;  %v3049_v16 = vadd.f32 %v11551_v35, %v13962_v54  ;;  %9422 = vperm.xlu0 %10135, %v9014_v11  }
 0x704   :  { %v8591_v39 = vrot.slane %v13335_v42, %v11588_v24  ;;  %v8598_v15 = vrot.slane %v13342_v25, %v11588_v24  ;;  %v8605_v60 = vrot.slane %v13371_v61, %v11588_v24  ;;  %v3050_v30 = vadd.f32 %v11551_v35, %v13963_v36 }
 0x705   :  { %v8279_v4 = vcombine.low %v8271_v43, %v8278_v47  ;;  %v8377_v17 = vcombine.low %v8369_v22, %v8376_v18  ;;  %v8467_v21 = vrot.slane %v8459_v62, %v11588_v24  ;;  %v8474_v56 = vrot.slane %v8460_v14, %v11588_v24 }
 0x706   :  { %v8535_v26 = vrot.slane %v8525_v33, %v11588_v24  ;;  %v8542_v42 = vrot.slane %v8526_v59, %v11588_v24  ;;  %v8549_v9 = vrot.slane %v8527_v31, %v11588_v24  ;;  %v9112_v25 = vcombine.low %v9104_v3, %v9111_v53 }
 0x707   :  { %9377 = vperm.xlu1 %10134, %v8279_v4   ;;  %v9202_v61 = vrot.slane %v9194_v55, %v11588_v24  ;;  %v9209_v44 = vrot.slane %v9195_v0, %v11588_v24  ;;  %v8556_v41 = vrot.slane %v8528_v34, %v11588_v24  ;;  %v5155_v20 = vrot.slane %v3049_v16, %v13816_v10 }
 0x708   :  { %v5159_v58 = vrot.slane %v3049_v16, %v13817_v29  ;;  %v5163_v49 = vrot.slane %v3049_v16, %v11558_v6  ;;  %v5167_v37 = vrot.slane %v3049_v16, %v11561_v63  ;;  %9428 = vperm.xlu0 %10135, %v9112_v25   ;;  %v5171_v48 = vrot.slane %v3049_v16, %v11564_v8 }
 0x709   :  { %v5175_v43 = vrot.slane %v3049_v16, %v11567_v1  ;;  %v5179_v47 = vrot.slane %v3049_v16, %v11570_v45  ;;  %v5183_v22 = vrot.slane %v3049_v16, %v11573_v38  ;;  %v5187_v18 = vrot.slane %v3050_v30, %v13816_v10 }
 0x70a   :  { %v5191_v32 = vrot.slane %v3050_v30, %v13817_v29  ;;  %v5195_v23 = vrot.slane %v3050_v30, %v11558_v6  ;;  %v5199_v62 = vrot.slane %v3050_v30, %v11561_v63  ;;  %v9210_v7 = vcombine.low %v9202_v61, %v9209_v44 }
 0x70b   :  { %9383 = vperm.xlu1 %10134, %v8377_v17   ;;  %v5203_v46 = vrot.slane %v3050_v30, %v11564_v8  ;;  %v5207_v14 = vrot.slane %v3050_v30, %v11567_v1  ;;  %v5211_v52 = vrot.slane %v3050_v30, %v11570_v45  ;;  %v8475_v19 = vcombine.low %v8467_v21, %v8474_v56 }
 0x70c   :  { %v8557_v33 = vcombine.low %v8535_v26, %v8542_v42  ;;  %v8558_v11 = vcombine.low %v8549_v9, %v8556_v41  ;;  %v5215_v57 = vrot.slane %v3050_v30, %v11573_v38  ;;  %9434 = vperm.xlu0 %10135, %v9210_v7   ;;  %v8623_v59 = vcombine.low %v5155_v20, %v5159_v58 }
 0x70d   :  { %v8624_v31 = vcombine.low %v5163_v49, %v5167_v37  ;;  %v8625_v34 = vcombine.low %v5171_v48, %v5175_v43  ;;  %v8626_v3 = vcombine.low %v5179_v47, %v5183_v22  ;;  %v13964_v53 = vrot.slane %v13257_v51, %v11588_v24 }
 0x70e   :  { %v13965_v55 = vrot.slane %v13255_v13, %v11588_v24  ;;  %v8606_v54 = vcombine.low %v8584_v12, %v8591_v39  ;;  %v8607_v16 = vcombine.low %v8598_v15, %v8605_v60  ;;  %v8672_v36 = vcombine.low %v5187_v18, %v5191_v32 }
 0x70f   :  { %9389 = vperm.xlu1 %10134, %v8475_v19   ;;  %v8673_v4 = vcombine.low %v5195_v23, %v5199_v62  ;;  %v8565_v17 = vrot.slane %v8557_v33, %v11588_v24  ;;  %v8572_v30 = vrot.slane %v8558_v11, %v11588_v24  ;;  %v8674_v21 = vcombine.low %v5203_v46, %v5207_v14 }
 0x710   :  { %v8524_v0 = vcombine.low %v13965_v55, %v13964_v53  ;;  %v8675_v56 = vcombine.low %v5211_v52, %v5215_v57  ;;  %v8633_v26 = vrot.slane %v8623_v59, %v11588_v24  ;;  %v8640_v42 = vrot.slane %v8624_v31, %v11588_v24  ;;  %v13966_v59 = vld [vmem:[#allocation38_spill] sm:$0xff] }
 0x711   :  { %v8647_v51 = vrot.slane %v8625_v34, %v11588_v24  ;;  %v8654_v13 = vrot.slane %v8626_v3, %v11588_v24  ;;  %v8614_v12 = vrot.slane %v8606_v54, %v11588_v24  ;;  %v8621_v39 = vrot.slane %v8607_v16, %v11588_v24  ;;  %v13967_v34 = vld [vmem:[#allocation36_spill] sm:$0xff] }
 0x712   :  { %v8682_v15 = vrot.slane %v8672_v36, %v11588_v24  ;;  %v8689_v60 = vrot.slane %v8673_v4, %v11588_v24  ;;  %v8696_v9 = vrot.slane %v8674_v21, %v11588_v24  ;;  %v8573_v25 = vcombine.low %v8565_v17, %v8572_v30 }
 0x713   :  { %9392 = vperm.xlu1 %10134, %v8524_v0   ;;  %v8655_v61 = vcombine.low %v8633_v26, %v8640_v42  ;;  %v8656_v44 = vcombine.low %v8647_v51, %v8654_v13  ;;  %v8703_v41 = vrot.slane %v8675_v56, %v11588_v24  ;;  %v8622_v20 = vcombine.low %v8614_v12, %v8621_v39  ;;  %v13968_v0 = vld [vmem:[#allocation37_spill] sm:$0xff]  ;;  %v9321_v12 = vpop.permute.xlu0 %9320 }
 0x714   :  { %v8704_v37 = vcombine.low %v8682_v15, %v8689_v60  ;;  %v9629_v31 = vrot.slane %v13324_v27, %v13966_v59  ;;  %v9638_v54 = vrot.slane %v13359_v50, %v13968_v0 }
 0x715   :  { %v8663_v58 = vrot.slane %v8655_v61, %v11588_v24  ;;  %v8670_v49 = vrot.slane %v8656_v44, %v11588_v24  ;;  %v8705_v48 = vcombine.low %v8696_v9, %v8703_v41 }
 0x716   :  { %v8712_v47 = vrot.slane %v8704_v37, %v11588_v24 }
 0x717   :  { %9395 = vperm.xlu1 %10134, %v8573_v25   ;;  %v8671_v43 = vcombine.low %v8663_v58, %v8670_v49  ;;  %v8719_v22 = vrot.slane %v8705_v48, %v11588_v24  ;;  %v13591_v15 = vpop.permute.xlu0 %9326 }
 0x719   :  { %v8720_v18 = vcombine.low %v8712_v47, %v8719_v22 }
 0x71b   :  { %9398 = vperm.xlu1 %10134, %v8622_v20  }
 0x71f   :  { %9401 = vperm.xlu1 %10134, %v8671_v43  }
 0x723   :  { %9404 = vperm.xlu1 %10134, %v8720_v18   ;;  %v2977_v32 = vpop.xlane.xlu1 %2976 }
 0x724   :  { %v3057_v23 = vadd.f32 %v11551_v35, %v2977_v32 }
 0x726   :  { %v5411_v62 = vrot.slane %v3057_v23, %v13816_v10  ;;  %v5415_v7 = vrot.slane %v3057_v23, %v13817_v29  ;;  %v5419_v46 = vrot.slane %v3057_v23, %v11558_v6  ;;  %v5423_v14 = vrot.slane %v3057_v23, %v11561_v63 }
 0x727   :  { %v9312_v52 = vpop.permute.xlu1 %9311  ;;  %v5427_v19 = vrot.slane %v3057_v23, %v11564_v8  ;;  %v5431_v33 = vrot.slane %v3057_v23, %v11567_v1  ;;  %v5435_v11 = vrot.slane %v3057_v23, %v11570_v45  ;;  %v5439_v57 = vrot.slane %v3057_v23, %v11573_v38 }
 0x728   :  { %v9633_v3 = vrot.slane %v9312_v52, %v13967_v34  ;;  %v9015_v53 = vcombine.low %v5411_v62, %v5415_v7  ;;  %v9016_v55 = vcombine.low %v5419_v46, %v5423_v14 }
 0x729   :  { %v9017_v16 = vcombine.low %v5427_v19, %v5431_v33  ;;  %v9018_v36 = vcombine.low %v5435_v11, %v5439_v57 }
 0x72a   :  { %v9634_v4 = vsel %vm9447_vm3, %v9633_v3, %v9629_v31  ;;  %v9025_v17 = vrot.slane %v9015_v53, %v11588_v24  ;;  %v9032_v30 = vrot.slane %v9016_v55, %v11588_v24 }
 0x72b   :  { %v9039_v21 = vrot.slane %v9017_v16, %v11588_v24  ;;  %v9046_v56 = vrot.slane %v9018_v36, %v11588_v24  ;;  %v9639_v27 = vsel %vm9454_vm4, %v9638_v54, %v9634_v4  ;;  %v13969_v54 = vld [vmem:[#allocation39_spill] sm:$0xff] }
 0x72c   :  { %v9047_v26 = vcombine.low %v9025_v17, %v9032_v30 }
 0x72d   :  { %v9048_v42 = vcombine.low %v9039_v21, %v9046_v56  ;;  %v13970_v21 = vld [vmem:[#allocation42_spill] sm:$0xff] }
 0x72e   :  { %v9055_v51 = vrot.slane %v9047_v26, %v11588_v24 }
 0x72f   :  { %v9062_v50 = vrot.slane %v9048_v42, %v11588_v24 }
 0x731   :  { %v9063_v13 = vcombine.low %v9055_v51, %v9062_v50  ;;  %v13971_v51 = vld [vmem:[#allocation41_spill] sm:$0xff] }
 0x732   :  { %v9648_v50 = vrot.slane %v9321_v12, %v13971_v51 }
 0x733   :  { %9425 = vperm.xlu1 %10134, %v9063_v13  }
 0x758   :  { %v2981_v39 = vpop.xlane.xlu1 %2980 }
 0x759   :  { %v3059_v60 = vadd.f32 %v11551_v35, %v2981_v39 }
 0x75b   :  { %v5475_v9 = vrot.slane %v3059_v60, %v13816_v10  ;;  %v5479_v25 = vrot.slane %v3059_v60, %v13817_v29  ;;  %v5483_v61 = vrot.slane %v3059_v60, %v11558_v6  ;;  %v5487_v44 = vrot.slane %v3059_v60, %v11561_v63  ;;  %v9333_v10 = vpop.permute.xlu0 %9332 }
 0x75c   :  { %v9318_v41 = vpop.permute.xlu1 %9317  ;;  %v5491_v20 = vrot.slane %v3059_v60, %v11564_v8  ;;  %v5495_v58 = vrot.slane %v3059_v60, %v11567_v1  ;;  %v5499_v49 = vrot.slane %v3059_v60, %v11570_v45  ;;  %v5503_v37 = vrot.slane %v3059_v60, %v11573_v38 }
 0x75d   :  { %v9113_v48 = vcombine.low %v5475_v9, %v5479_v25  ;;  %v9114_v43 = vcombine.low %v5483_v61, %v5487_v44  ;;  %v9643_v16 = vrot.slane %v9318_v41, %v13969_v54  ;;  %v13972_v44 = vld [vmem:[#allocation44_spill] sm:$0xff] }
 0x75e   :  { %v9115_v35 = vcombine.low %v5491_v20, %v5495_v58  ;;  %v9116_v47 = vcombine.low %v5499_v49, %v5503_v37  ;;  %v13973_v58 = vld [vmem:[#allocation43_spill] sm:$0xff] }
 0x75f   :  { %v9123_v29 = vrot.slane %v9113_v48, %v11588_v24  ;;  %v9130_v6 = vrot.slane %v9114_v43, %v11588_v24  ;;  %v9339_v23 = vpop.permute.xlu0 %9338  ;;  %v9644_v30 = vsel %vm9461_vm5, %v9643_v16, %v9639_v27  ;;  %v9658_v49 = vrot.slane %v13591_v15, %v13973_v58 }
 0x760   :  { %v9324_v22 = vpop.permute.xlu1 %9323  ;;  %v9137_v63 = vrot.slane %v9115_v35, %v11588_v24  ;;  %v9144_v8 = vrot.slane %v9116_v47, %v11588_v24  ;;  %v9649_v9 = vsel %vm9468_vm6, %v9648_v50, %v9644_v30 }
 0x761   :  { %v9145_v18 = vcombine.low %v9123_v29, %v9130_v6  ;;  %v9653_v56 = vrot.slane %v9324_v22, %v13970_v21  ;;  %v13974_v29 = vld [vmem:[#allocation48_spill] sm:$0xff] }
 0x762   :  { %v9146_v1 = vcombine.low %v9137_v63, %v9144_v8  ;;  %v13975_v8 = vld [vmem:[#allocation47_spill] sm:$0xff] }
 0x763   :  { %v9153_v45 = vrot.slane %v9145_v18, %v11588_v24  ;;  %v13608_v46 = vpop.permute.xlu0 %9344  ;;  %v9654_v61 = vsel %vm9475_vm7, %v9653_v56, %v9649_v9  ;;  %v9668_v18 = vrot.slane %v9333_v10, %v13975_v8 }
 0x764   :  { %v9330_v32 = vpop.permute.xlu1 %9329  ;;  %v9160_v38 = vrot.slane %v9146_v1, %v11588_v24  ;;  %v9659_v48 = vsel %vm9482_vm8, %v9658_v49, %v9654_v61 }
 0x765   :  { %v9663_v27 = vrot.slane %v9330_v32, %v13972_v44 }
 0x766   :  { %v9161_v62 = vcombine.low %v9153_v45, %v9160_v38 }
 0x767   :  { %v13612_v19 = vpop.permute.xlu0 %9350  ;;  %v9664_v47 = vsel %vm9489_vm9, %v9663_v27, %v9659_v48 }
 0x768   :  { %9431 = vperm.xlu1 %10134, %v9161_v62   ;;  %v9336_v7 = vpop.permute.xlu1 %9335  ;;  %v9669_v45 = vsel %vm9496_vm10, %v9668_v18, %v9664_v47  ;;  %v13976_v62 = vld [vmem:[#allocation51_spill] sm:$0xff] }
 0x769   :  { %v9673_v6 = vrot.slane %v9336_v7, %v13974_v29 }
 0x76b   :  { %v9357_v11 = vpop.permute.xlu0 %9356  ;;  %v9674_v38 = vsel %vm9503_vm11, %v9673_v6, %v9669_v45 }
 0x76c   :  { %v9342_v14 = vpop.permute.xlu1 %9341  ;;  %v9708_v17 = vrot.slane %v9357_v11, %v13966_v59 }
 0x76d   :  { %v9683_v11 = vrot.slane %v9342_v14, %v13976_v62 }
 0x76f   :  { %v9363_v3 = vpop.permute.xlu0 %9362 }
 0x770   :  { %v13610_v52 = vpop.permute.xlu1 %9347  ;;  %v9717_v13 = vrot.slane %v9363_v3, %v13968_v0 }
 0x773   :  { %v9369_v55 = vpop.permute.xlu0 %9368 }
 0x774   :  { %v13614_v33 = vpop.permute.xlu1 %9353  ;;  %v9727_v12 = vrot.slane %v9369_v55, %v13971_v51 }
 0x775   :  { %v9703_v27 = vrot.slane %v13614_v33, %v13953_v28 }
 0x777   :  { %v9375_v60 = vpop.permute.xlu0 %9374 }
 0x778   :  { %v9360_v57 = vpop.permute.xlu1 %9359  ;;  %v9737_v15 = vrot.slane %v9375_v60, %v13973_v58 }
 0x779   :  { %v9712_v36 = vrot.slane %v9360_v57, %v13967_v34 }
 0x77b   :  { %v9713_v26 = vsel %vm9447_vm3, %v9712_v36, %v9708_v17  ;;  %v9381_v35 = vpop.permute.xlu0 %9380  ;;  %v13978_v17 = vld [vmem:[#allocation53_spill] sm:$0xff] }
 0x77c   :  { %v9366_v31 = vpop.permute.xlu1 %9365  ;;  %v9718_v25 = vsel %vm9454_vm4, %v9717_v13, %v9713_v26  ;;  %v9693_v30 = vrot.slane %v13610_v52, %v13978_v17  ;;  %v13979_v26 = vld [vmem:[#allocation52_spill] sm:$0xff] }
 0x77d   :  { %v9722_v42 = vrot.slane %v9366_v31, %v13969_v54  ;;  %v13977_v31 = vld [vmem:[#allocation49_spill] sm:$0xff] }
 0x77e   :  { %v9678_v3 = vrot.slane %v9339_v23, %v13977_v31  ;;  %v9688_v23 = vrot.slane %v13608_v46, %v13979_v26 }
 0x77f   :  { %v9723_v41 = vsel %vm9461_vm5, %v9722_v42, %v9718_v25  ;;  %v9387_v55 = vpop.permute.xlu0 %9386  ;;  %v13980_v25 = vld [vmem:[#allocation54_spill] sm:$0xff] }
 0x780   :  { %v9372_v53 = vpop.permute.xlu1 %9371  ;;  %v9728_v43 = vsel %vm9468_vm6, %v9727_v12, %v9723_v41  ;;  %v9679_v16 = vsel %vm9510_vm12, %v9678_v3, %v9674_v38  ;;  %v9757_v42 = vrot.slane %v9387_v55, %v13977_v31  ;;  %v9698_v41 = vrot.slane %v13612_v19, %v13980_v25 }
 0x781   :  { %v9732_v20 = vrot.slane %v9372_v53, %v13970_v21  ;;  %v9747_v53 = vrot.slane %v9381_v35, %v13975_v8  ;;  %v9846_v19 = vrot.slane %v9838_v5, %v11588_v24 }
 0x783   :  { %v9733_v22 = vsel %vm9475_vm7, %v9732_v20, %v9728_v43 }
 0x784   :  { %v9738_v32 = vsel %vm9482_vm8, %v9737_v15, %v9733_v22 }
 0x786   :  { %v9378_v4 = vpop.permute.xlu1 %9377 }
 0x787   :  { %v9742_v63 = vrot.slane %v9378_v4, %v13972_v44  ;;  %v9684_v4 = vsel %vm9517_vm13, %v9683_v11, %v9679_v16 }
 0x788   :  { %v9689_v60 = vsel %vm9524_vm14, %v9688_v23, %v9684_v4 }
 0x789   :  { %v9743_v57 = vsel %vm9489_vm9, %v9742_v63, %v9738_v32  ;;  %v9694_v61 = vsel %vm9531_vm15, %v9693_v30, %v9689_v60  ;;  %v9408_v63 = vpop.permute.xlu0 %9407 }
 0x78a   :  { %v9384_v39 = vpop.permute.xlu1 %9383  ;;  %v9748_v36 = vsel %vm9496_vm10, %v9747_v53, %v9743_v57  ;;  %v9699_v48 = vsel %vm9538_vm0, %v9698_v41, %v9694_v61  ;;  %v9791_v32 = vrot.slane %v9408_v63, %v13967_v34 }
 0x78b   :  { %v9752_v7 = vrot.slane %v9384_v39, %v13974_v29  ;;  %v9704_v35 = vsel %vm9545_vm1, %v9703_v27, %v9699_v48 }
 0x78d   :  { %v9753_v14 = vsel %vm9503_vm11, %v9752_v7, %v9748_v36  ;;  %v9411_v18 = vpop.permute.xlu0 %9410 }
 0x78e   :  { %v9390_v37 = vpop.permute.xlu1 %9389  ;;  %v9758_v9 = vsel %vm9510_vm12, %v9757_v42, %v9753_v14  ;;  %v9796_v11 = vrot.slane %v9411_v18, %v13968_v0 }
 0x78f   :  { %v9762_v56 = vrot.slane %v9390_v37, %v13976_v62 }
 0x791   :  { %v9763_v46 = vsel %vm9517_vm13, %v9762_v56, %v9758_v9 }
 0x792   :  { %v9393_v1 = vpop.permute.xlu1 %9392 }
 0x793   :  { %v9767_v50 = vrot.slane %v9393_v1, %v13979_v26 }
 0x795   :  { %v9768_v20 = vsel %vm9524_vm14, %v9767_v50, %v9763_v46 }
 0x796   :  { %v9396_v10 = vpop.permute.xlu1 %9395 }
 0x797   :  { %v9772_v39 = vrot.slane %v9396_v10, %v13978_v17 }
 0x799   :  { %v9773_v12 = vsel %vm9531_vm15, %v9772_v39, %v9768_v20 }
 0x79a   :  { %v9399_v13 = vpop.permute.xlu1 %9398 }
 0x79b   :  { %v9777_v52 = vrot.slane %v9399_v13, %v13980_v25 }
 0x79d   :  { %v9778_v43 = vsel %vm9538_vm0, %v9777_v52, %v9773_v12 }
 0x79e   :  { %v9402_v49 = vpop.permute.xlu1 %9401 }
 0x79f   :  { %v9782_v37 = vrot.slane %v9402_v49, %v13953_v28  ;;  %v9414_v28 = vpop.permute.xlu0 %9413 }
 0x7a0   :  { %v9801_v2 = vrot.slane %v9414_v28, %v13969_v54 }
 0x7a1   :  { %v9783_v33 = vsel %vm9545_vm1, %v9782_v37, %v9778_v43 }
 0x7a2   :  { %v9839_v47 = vcombine.low %v9704_v35, %v9783_v33  ;;  %v9405_v15 = vpop.permute.xlu1 %9404 }
 0x7a3   :  { %v9417_v1 = vpop.permute.xlu0 %9416  ;;  %v9787_v45 = vrot.slane %v9405_v15, %v13966_v59 }
 0x7a4   :  { %v9853_v6 = vrot.slane %v9839_v47, %v11588_v24  ;;  %v9806_v7 = vrot.slane %v9417_v1, %v13971_v51 }
 0x7a5   :  { %v9792_v62 = vsel %vm9447_vm3, %v9791_v32, %v9787_v45 }
 0x7a6   :  { %v9861_v22 = vcombine.low %v9846_v19, %v9853_v6  ;;  %v9797_v40 = vsel %vm9454_vm4, %v9796_v11, %v9792_v62 }
 0x7a7   :  { %v9420_v38 = vpop.permute.xlu0 %9419  ;;  %v9802_v57 = vsel %vm9461_vm5, %v9801_v2, %v9797_v40 }
 0x7a8   :  { %v9807_v53 = vsel %vm9468_vm6, %v9806_v7, %v9802_v57  ;;  %v9811_v59 = vrot.slane %v9420_v38, %v13970_v21  ;;  %v9868_v56 = vrot.slane %v9861_v22, %v11588_v24 }
 0x7aa   :  { %v9812_v10 = vsel %vm9475_vm7, %v9811_v59, %v9807_v53 }
 0x7ab   :  { %v9423_v5 = vpop.permute.xlu0 %9422 }
 0x7ac   :  { %v9816_v0 = vrot.slane %v9423_v5, %v13973_v58 }
 0x7ae   :  { %v9817_v16 = vsel %vm9482_vm8, %v9816_v0, %v9812_v10 }
 0x7af   :  { %v9429_v34 = vpop.permute.xlu0 %9428 }
 0x7b0   :  { %v9826_v4 = vrot.slane %v9429_v34, %v13975_v8  ;;  %v13981_v8 = vlaneseq }
 0x7b2   :  { %v9426_v3 = vpop.permute.xlu1 %9425  ;;  %vm9880_vm2 = vcmp.lt.s32.totalorder %v13981_v8, 600 }
 0x7b3   :  { %v9821_v55 = vrot.slane %v9426_v3, %v13972_v44  ;;  %v9435_v54 = vpop.permute.xlu0 %9434 }
 0x7b4   :  { %v9836_v30 = vrot.slane %v9435_v54, %v13977_v31 }
 0x7b5   :  { %v9822_v36 = vsel %vm9489_vm9, %v9821_v55, %v9817_v16 }
 0x7b6   :  { %v9827_v21 = vsel %vm9496_vm10, %v9826_v4, %v9822_v36 }
 0x7e7   :  { %v9432_v51 = vpop.permute.xlu1 %9431 }
 0x7e8   :  { %v9831_v17 = vrot.slane %v9432_v51, %v13974_v29 }
 0x7ea   :  { %v9832_v14 = vsel %vm9503_vm11, %v9831_v17, %v9827_v21 }
 0x7eb   :  { %v9837_v44 = vsel %vm9510_vm12, %v9836_v30, %v9832_v14 }
 0x7ec   :  { %v9860_v58 = vrot.slane %v9837_v44, %v11588_v24 }
 0x7ee   :  { %v9875_v26 = vrot.slane %v9860_v58, %v11588_v24 }
 0x7f0   :  { %v9876_v23 = vcombine.low %v9868_v56, %v9875_v26 }
 0x7f2   :  { %9882 = vst.msk [vmem:[#allocation3] sm:$0x1f] %vm9880_vm2, %v9876_v23 }
 0x7f3   :  { %10191 = shalt.err (!%p10188_p4)
}
 0x7f4   :  { %s10192_s25 = scalar_lea.hbm %s13732_s12, 80 }
 0x7f5   :  { %p10193_p5 = scmp.ne.s32.totalorder %s13732_s12, %s10192_s25  ;;  %p10196_p6 = scmp.lt.u32.totalorder %s10192_s25, %s13732_s12 }
 0x7f7   :  { %p10198_p7 = pnand %p10196_p6, %p10193_p5 }
 0x7f9   :  { %10201 = shalt.err (!%p10198_p7)
}
 0x7fa   :  { %9892 = dma.vmem_to_hbm [thread:$0]  %s9890_s22, 80, %s13732_s12, [#allocation4]  }
 0x7fb   :  { %10202 = dma.done.wait [#allocation4], 80  }
 0x7fc   :  { %10203 = vsyncadd [#allocation4], 4294967216 }
 0x7fd   :  { %9896 = vsyncpa [#allocation4], 1 }

</bundles_post_ra>
